<compile_context>
chip_gen: v5e
topology: v5e:2x2
jax: 0.10.0
libtpu: 0.0.40
codegen_flags: <defaults>
</compile_context>

<pallas_src>
import functools

import jax
import jax.numpy as jnp
from jax.experimental import pallas as pl
from jax.experimental.pallas import tpu as pltpu

EPS = 1e-5
LANE = 128        # TPU lane width: channel dims are padded to multiples of this
ROW_TILE = 512    # rows (of N*H*W) per grid step for the row-tiled kernels

_VMEM_LIMIT = None


def _round_up(x, m):
    return (x + m - 1) // m * m


def _vmem_limit_bytes():
    """Generation-split VMEM budget: v7x has 64 MiB/TC, v5e/v6e have 128 MiB."""
    global _VMEM_LIMIT
    if _VMEM_LIMIT is None:
        try:
            kind = jax.devices()[0].device_kind.lower()
        except Exception:
            kind = ""
        _VMEM_LIMIT = (48 if ("v7" in kind or "7x" in kind) else 64) * 1024 * 1024
    return _VMEM_LIMIT


def _compiler_params():
    return pltpu.CompilerParams(
        dimension_semantics=("parallel",),
        vmem_limit_bytes=_vmem_limit_bytes())


# ---------------------------------------------------------------------------
# Kernels
# ---------------------------------------------------------------------------
def _conv1x1_stats_kernel(x_ref, w_ref, y_ref, st_ref):
    """y = x @ w (bf16 inputs, f32 MXU accumulation); bf16 y out + f32 BN stats."""
    y = jnp.dot(x_ref[...], w_ref[...], preferred_element_type=jnp.float32)
    y_ref[...] = y.astype(y_ref.dtype)
    st_ref[0, :, :] = jnp.concatenate(
        [jnp.sum(y, axis=0, keepdims=True),
         jnp.sum(y * y, axis=0, keepdims=True)], axis=0)


def _bnrelu_conv3x3_stats_kernel(y1_ref, s1_ref, w2_ref, y2_ref, st_ref,
                                 apad_ref, acc_ref):
    """Per image: a1 = relu(y1*scale1+shift1) (bf16), zero-halo VMEM tile, 9
    shifted matmuls accumulate the 3x3 conv in f32; bf16 y2 out + BN2 stats."""
    h = apad_ref.shape[0] - 2
    w = apad_ref.shape[1] - 2
    c = apad_ref.shape[2]

    # Zero only the thin halo border every step (interior is fully overwritten;
    # must be per-step, not program_id==0-gated, because "parallel" grid axes
    # may be sharded across TensorCores with per-core scratch).
    zrow = jnp.zeros((1, w + 2, c), jnp.bfloat16)
    zcol = jnp.zeros((h, 1, c), jnp.bfloat16)
    apad_ref[0:1, :, :] = zrow
    apad_ref[h + 1:h + 2, :, :] = zrow
    apad_ref[1:h + 1, 0:1, :] = zcol
    apad_ref[1:h + 1, w + 1:w + 2, :] = zcol

    # BN1-apply + ReLU in f32, store bf16 into the padded interior.
    a1 = jnp.maximum(
        y1_ref[...].astype(jnp.float32) * s1_ref[0:1, :] + s1_ref[1:2, :], 0.0)
    apad_ref[1:h + 1, 1:w + 1, :] = a1.astype(jnp.bfloat16).reshape(h, w, c)

    # 9 shifted-window bf16 matmuls, f32 accumulation (tap 0 initialises acc).
    # TODO(synk): on v6e/v7x, grouping taps along K (256-wide MXU) would raise
    #             MXU utilisation for C_p=128 stages.
    for t in range(9):
        dh, dw = divmod(t, 3)
        patch = apad_ref[dh:dh + h, dw:dw + w, :].reshape(h * w, c)
        contrib = jnp.dot(patch, w2_ref[t], preferred_element_type=jnp.float32)
        if t == 0:
            acc_ref[...] = contrib
        else:
            acc_ref[...] += contrib

    y2 = acc_ref[...]
    y2_ref[...] = y2.astype(y2_ref.dtype)
    st_ref[0, :, :] = jnp.concatenate(
        [jnp.sum(y2, axis=0, keepdims=True),
         jnp.sum(y2 * y2, axis=0, keepdims=True)], axis=0)


def _bnrelu_conv1x1_stats_kernel(valid_rows, y2_ref, s2_ref, w3_ref,
                                 y3_ref, st_ref):
    """a2 = relu(y2*scale2+shift2); y3 = a2 @ w3; bf16 y3 out + BN3 stats."""
    a2 = jnp.maximum(
        y2_ref[...].astype(jnp.float32) * s2_ref[0:1, :] + s2_ref[1:2, :], 0.0)
    if valid_rows is not None:   # mask zero-padded rows so BN3 stats stay exact
        tm = y2_ref.shape[0]
        row = (pl.program_id(0) * tm +
               jax.lax.broadcasted_iota(jnp.int32, (tm, 1), 0))
        a2 = jnp.where(row < valid_rows, a2, 0.0)
    y3 = jnp.dot(a2.astype(jnp.bfloat16), w3_ref[...],
                 preferred_element_type=jnp.float32)
    y3_ref[...] = y3.astype(y3_ref.dtype)
    st_ref[0, :, :] = jnp.concatenate(
        [jnp.sum(y3, axis=0, keepdims=True),
         jnp.sum(y3 * y3, axis=0, keepdims=True)], axis=0)


def _bnrelu_residual_kernel(y3_ref, s3_ref, id_ref, o_ref):
    """out = relu(y3*scale3 + shift3 + identity) (bf16 streams, f32 math/out)."""
    o_ref[...] = jnp.maximum(
        y3_ref[...].astype(jnp.float32) * s3_ref[0:1, :] + s3_ref[1:2, :]
        + id_ref[...].astype(jnp.float32), 0.0)


# ---------------------------------------------------------------------------
# pallas_call wrappers
# ---------------------------------------------------------------------------
def _conv1x1_stats(x2d, w, tm):
    mp, cin = x2d.shape
    cout = w.shape[1]
    grid = (mp // tm,)
    return pl.pallas_call(
        _conv1x1_stats_kernel,
        grid=grid,
        in_specs=[pl.BlockSpec((tm, cin), lambda i: (i, 0)),
                  pl.BlockSpec((cin, cout), lambda i: (0, 0))],
        out_specs=(pl.BlockSpec((tm, cout), lambda i: (i, 0)),
                   pl.BlockSpec((1, 2, cout), lambda i: (i, 0, 0))),
        out_shape=(jax.ShapeDtypeStruct((mp, cout), jnp.bfloat16),
                   jax.ShapeDtypeStruct((grid[0], 2, cout), jnp.float32)),
        compiler_params=_compiler_params(),
        cost_estimate=pl.CostEstimate(
            flops=2 * mp * cin * cout, transcendentals=0,
            bytes_accessed=2 * mp * (cin + cout) + 2 * cin * cout),
    )(x2d, w)


def _bnrelu_conv3x3_stats(y1_2d, s1, w2, n, h, w):
    hw = h * w
    c = y1_2d.shape[1]
    # TODO(synk): w2's index_map is constant; a single pipeline buffer
    #             (pl.Buffered(1)) would save one VMEM copy of w2 on v7x.
    return pl.pallas_call(
        _bnrelu_conv3x3_stats_kernel,
        grid=(n,),
        in_specs=[pl.BlockSpec((hw, c), lambda i: (i, 0)),
                  pl.BlockSpec((2, c), lambda i: (0, 0)),
                  pl.BlockSpec((9, c, c), lambda i: (0, 0, 0))],
        out_specs=(pl.BlockSpec((hw, c), lambda i: (i, 0)),
                   pl.BlockSpec((1, 2, c), lambda i: (i, 0, 0))),
        out_shape=(jax.ShapeDtypeStruct((n * hw, c), jnp.bfloat16),
                   jax.ShapeDtypeStruct((n, 2, c), jnp.float32)),
        scratch_shapes=[pltpu.VMEM((h + 2, w + 2, c), jnp.bfloat16),
                        pltpu.VMEM((hw, c), jnp.float32)],
        compiler_params=_compiler_params(),
        cost_estimate=pl.CostEstimate(
            flops=2 * 9 * n * hw * c * c, transcendentals=0,
            bytes_accessed=4 * n * hw * c + 2 * 9 * c * c),
    )(y1_2d, s1, w2)


def _bnrelu_conv1x1_stats(y2_2d, s2, w3, tm, valid_rows):
    mp, c = y2_2d.shape
    cout = w3.shape[1]
    grid = (mp // tm,)
    kernel = functools.partial(_bnrelu_conv1x1_stats_kernel, valid_rows)
    return pl.pallas_call(
        kernel,
        grid=grid,
        in_specs=[pl.BlockSpec((tm, c), lambda i: (i, 0)),
                  pl.BlockSpec((2, c), lambda i: (0, 0)),
                  pl.BlockSpec((c, cout), lambda i: (0, 0))],
        out_specs=(pl.BlockSpec((tm, cout), lambda i: (i, 0)),
                   pl.BlockSpec((1, 2, cout), lambda i: (i, 0, 0))),
        out_shape=(jax.ShapeDtypeStruct((mp, cout), jnp.bfloat16),
                   jax.ShapeDtypeStruct((grid[0], 2, cout), jnp.float32)),
        compiler_params=_compiler_params(),
        cost_estimate=pl.CostEstimate(
            flops=2 * mp * c * cout, transcendentals=0,
            bytes_accessed=2 * mp * (c + cout) + 2 * c * cout),
    )(y2_2d, s2, w3)


def _bnrelu_residual(y3_2d, s3, id_2d, tm):
    mp, c = y3_2d.shape
    return pl.pallas_call(
        _bnrelu_residual_kernel,
        grid=(mp // tm,),
        in_specs=[pl.BlockSpec((tm, c), lambda i: (i, 0)),
                  pl.BlockSpec((2, c), lambda i: (0, 0)),
                  pl.BlockSpec((tm, c), lambda i: (i, 0))],
        out_specs=pl.BlockSpec((tm, c), lambda i: (i, 0)),
        out_shape=jax.ShapeDtypeStruct((mp, c), jnp.float32),
        compiler_params=_compiler_params(),
        cost_estimate=pl.CostEstimate(
            flops=3 * mp * c, transcendentals=0, bytes_accessed=8 * mp * c),
    )(y3_2d, s3, id_2d)


# ---------------------------------------------------------------------------
# Glue: fold global batch stats + affine into a per-channel (scale, shift)
# ---------------------------------------------------------------------------
def _fold_bn(part_stats, gamma, beta, count):
    tot = jnp.sum(part_stats, axis=0)                        # (2, C)
    mean = tot[0] / count
    var = jnp.maximum(tot[1] / count - mean * mean, 0.0)     # biased (train mode)
    scale = gamma * jax.lax.rsqrt(var + EPS)
    shift = beta - mean * scale
    return jnp.stack([scale, shift]).astype(jnp.float32)     # (2, C)


# ---------------------------------------------------------------------------
# Forward pass (NCHW in / NCHW out)
# ---------------------------------------------------------------------------
def bottleneck_block(x_nchw, params, stride=1):
    n, cin, h, w = x_nchw.shape
    c = params["gamma1"].shape[0]
    cexp = params["gamma3"].shape[0]
    # TODO(synk): stride>1 / identity_downsample path not implemented
    #             (module is used with identity_downsample=None, stride=1).
    assert stride == 1 and cin == cexp, \
        "identity_downsample=None requires stride=1 and in_channels == 4*out_channels"
    assert (h * w) % 8 == 0, "stage-2 per-image row block must be sublane-aligned"

    cin_p = _round_up(cin, LANE)
    c_p = _round_up(c, LANE)
    cexp_p = _round_up(cexp, LANE)

    m = n * h * w
    tm = min(ROW_TILE, _round_up(m, 8))
    mp = _round_up(m, tm)

    # layout: NCHW -> NHWC -> flat (M, Cin_p), bf16, lane-padded (single fused op)
    x = jnp.transpose(x_nchw, (0, 2, 3, 1)).astype(jnp.bfloat16)
    x2d = jnp.pad(x.reshape(m, cin), ((0, mp - m), (0, cin_p - cin)))

    # parameters: lane-pad (gamma/beta pads are zero => padded channels stay 0),
    # weights stored bf16 for the MXU
    w1 = jnp.pad(params["w1"], ((0, cin_p - cin), (0, c_p - c))).astype(jnp.bfloat16)
    w2 = jnp.pad(params["w2"], ((0, 0), (0, c_p - c), (0, c_p - c))).astype(jnp.bfloat16)
    w3 = jnp.pad(params["w3"], ((0, c_p - c), (0, cexp_p - cexp))).astype(jnp.bfloat16)
    g1 = jnp.pad(params["gamma1"], (0, c_p - c))
    b1 = jnp.pad(params["beta1"], (0, c_p - c))
    g2 = jnp.pad(params["gamma2"], (0, c_p - c))
    b2 = jnp.pad(params["beta2"], (0, c_p - c))
    g3 = jnp.pad(params["gamma3"], (0, cexp_p - cexp))
    b3 = jnp.pad(params["beta3"], (0, cexp_p - cexp))

    # stage 1: conv1x1 + BN1 partial stats (padded rows are zero => stats-neutral)
    y1, st1 = _conv1x1_stats(x2d, w1, tm)
    s1 = _fold_bn(st1, g1, b1, m)

    # stage 2: BN1-apply+ReLU fused with in-VMEM 9-tap 3x3 conv + BN2 stats
    # (flat 2D layout throughout: each image is one contiguous h*w-row block)
    y1_m = y1 if mp == m else y1[:m]
    y2, st2 = _bnrelu_conv3x3_stats(y1_m, s1, w2, n, h, w)
    s2 = _fold_bn(st2, g2, b2, m)

    # stage 3: BN2-apply+ReLU fused with conv1x1 + BN3 stats
    y2_p = y2 if mp == m else jnp.pad(y2, ((0, mp - m), (0, 0)))
    y3, st3 = _bnrelu_conv1x1_stats(y2_p, s2, w3, tm, None if mp == m else m)
    s3 = _fold_bn(st3, g3, b3, m)

    # stage 4: BN3-apply + residual add + ReLU (identity reuses the bf16 x2d)
    out2d = _bnrelu_residual(y3, s3, x2d, tm)

    out = out2d[:m, :cexp].reshape(n, h, w, cexp)
    return jnp.transpose(out, (0, 3, 1, 2))


def init_params(key, in_channels, out_channels):
    """Synthetic parameters with the PyTorch module's shapes.

    Conv biases are omitted on purpose: training-mode BatchNorm subtracts the
    batch mean immediately after each conv, so a per-channel bias cancels
    exactly in the forward pass.
    """
    c, cexp = out_channels, out_channels * 4
    ks = jax.random.split(key, 9)

    def nrm(k, shape, scale=0.1):
        return (scale * jax.random.normal(k, shape)).astype(jnp.float32)

    return {
        # conv1: 1x1 (Cin -> C) stored as a (Cin, C) matmul weight
        "w1": nrm(ks[0], (in_channels, c)),
        # conv2: 3x3 (C -> C) stored as 9 taps (t = kh*3+kw), each (Cin, Cout)
        "w2": nrm(ks[1], (9, c, c)),
        # conv3: 1x1 (C -> 4C) stored as (C, 4C)
        "w3": nrm(ks[2], (c, cexp)),
        "gamma1": 1.0 + nrm(ks[3], (c,)), "beta1": nrm(ks[4], (c,)),
        "gamma2": 1.0 + nrm(ks[5], (c,)), "beta2": nrm(ks[6], (c,)),
        "gamma3": 1.0 + nrm(ks[7], (cexp,)), "beta3": nrm(ks[8], (cexp,)),
    }


def _reference(x_nchw, params):
    """Pure-JAX reference with matching bf16-matmul / f32-BN numerics."""
    x = jnp.transpose(x_nchw, (0, 2, 3, 1)).astype(jnp.float32)
    _, h, w, _ = x.shape

    def bn(y, g, b):
        mean = jnp.mean(y, axis=(0, 1, 2))
        var = jnp.mean(y * y, axis=(0, 1, 2)) - mean * mean
        return (y - mean) * jax.lax.rsqrt(var + EPS) * g + b

    def mm(a, wt):
        return jnp.einsum('nhwc,cd->nhwd', a.astype(jnp.bfloat16),
                          wt.astype(jnp.bfloat16),
                          preferred_element_type=jnp.float32)

    a1 = jnp.maximum(bn(mm(x, params["w1"]), params["gamma1"], params["beta1"]), 0.0)
    a1p = jnp.pad(a1, ((0, 0), (1, 1), (1, 1), (0, 0)))
    y2 = sum(mm(a1p[:, dh:dh + h, dw:dw + w, :], params["w2"][dh * 3 + dw])
             for dh in range(3) for dw in range(3))
    a2 = jnp.maximum(bn(y2, params["gamma2"], params["beta2"]), 0.0)
    y3 = bn(mm(a2, params["w3"]), params["gamma3"], params["beta3"])
    out = jnp.maximum(y3 + x, 0.0)
    return jnp.transpose(out, (0, 3, 1, 2))


if __name__ == "__main__":
    key = jax.random.PRNGKey(0)
    k_x, k_p = jax.random.split(key)

    # interior bottleneck block: in_channels == out_channels * 4
    n, in_channels, out_channels, h, w = 2, 16, 4, 16, 16
    x = jax.random.normal(k_x, (n, in_channels, h, w), dtype=jnp.float32)
    params = init_params(k_p, in_channels, out_channels)

    fwd = jax.jit(functools.partial(bottleneck_block, stride=1))
    out = fwd(x, params)
    jax.block_until_ready(out)

    assert out.shape == (n, out_channels * 4, h, w)
    assert bool(jnp.all(out >= 0.0))                      # final ReLU

    ref = _reference(x, params)
    assert bool(jnp.allclose(out, ref, rtol=5e-2, atol=5e-2)), \
        float(jnp.max(jnp.abs(out - ref)))
    print("KERNEL_OK")
</pallas_src>

<mosaic_0001>
module attributes {stable_mosaic.version = 11 : i64} {
  func.func @_conv1x1_stats_kernel(%arg0: i32, %arg1: memref<512x128xbf16, #tpu.memory_space<vmem>>, %arg2: memref<128x128xbf16, #tpu.memory_space<vmem>>, %arg3: memref<512x128xbf16, #tpu.memory_space<vmem>>, %arg4: memref<1x2x128xf32, #tpu.memory_space<vmem>>) attributes {dimension_semantics = [#tpu.dimension_semantics<parallel>], iteration_bounds = array<i64: 1>, scalar_prefetch = 0 : i64, scratch_operands = 0 : i64, tpu.core_type = #tpu.core_type<tc>, window_params = [{transform_indices = @transform_0, window_bounds = array<i64: 512, 128>}, {pipeline_mode = #tpu.pipeline_mode<synchronous>, transform_indices = @transform_1, window_bounds = array<i64: 128, 128>}, {transform_indices = @transform_2, window_bounds = array<i64: 512, 128>}, {transform_indices = @transform_3, window_bounds = array<i64: 1, 2, 128>}]} {
    %c0 = arith.constant 0 : index
    %c0_0 = arith.constant 0 : index
    %0 = vector.load %arg1[%c0, %c0_0] : memref<512x128xbf16, #tpu.memory_space<vmem>>, vector<512x128xbf16>
    %c0_1 = arith.constant 0 : index
    %c0_2 = arith.constant 0 : index
    %1 = vector.load %arg2[%c0_1, %c0_2] : memref<128x128xbf16, #tpu.memory_space<vmem>>, vector<128x128xbf16>
    %cst = arith.constant dense<0.000000e+00> : vector<512x128xf32>
    %2 = tpu.matmul %0, %1, %cst {dimension_numbers = #tpu.dot_dimension_numbers<[1], [0], [0], [1], [0, 0, 1, 1], [], []>} : vector<512x128xbf16>, vector<128x128xbf16>, vector<512x128xf32> -> vector<512x128xf32>
    %3 = arith.truncf %2 : vector<512x128xf32> to vector<512x128xbf16>
    %c0_3 = arith.constant 0 : index
    %c0_4 = arith.constant 0 : index
    %4 = vector.load %arg3[%c0_3, %c0_4] : memref<512x128xbf16, #tpu.memory_space<vmem>>, vector<512x128xbf16>
    tpu.vector_store %arg3[%c0_3, %c0_4], %3 {strides = array<i32>} : memref<512x128xbf16, #tpu.memory_space<vmem>>, vector<512x128xbf16>,
    %cst_5 = arith.constant dense<0.000000e+00> : vector<128xf32>
    %5 = vector.multi_reduction <add>, %2, %cst_5 [0] : vector<512x128xf32> to vector<128xf32>
    %6 = vector.shape_cast %5 : vector<128xf32> to vector<1x128xf32>
    %7 = arith.mulf %2, %2 : vector<512x128xf32>
    %cst_6 = arith.constant dense<0.000000e+00> : vector<128xf32>
    %8 = vector.multi_reduction <add>, %7, %cst_6 [0] : vector<512x128xf32> to vector<128xf32>
    %9 = vector.shape_cast %8 : vector<128xf32> to vector<1x128xf32>
    %10 = tpu.concatenate %6, %9 in 0 : vector<1x128xf32>, vector<1x128xf32> -> vector<2x128xf32>
    %c0_7 = arith.constant 0 : index
    %c0_8 = arith.constant 0 : index
    %c0_9 = arith.constant 0 : index
    %11 = vector.load %arg4[%c0_7, %c0_8, %c0_9] : memref<1x2x128xf32, #tpu.memory_space<vmem>>, vector<1x2x128xf32>
    %12 = vector.shape_cast %11 : vector<1x2x128xf32> to vector<2x128xf32>
    %13 = vector.shape_cast %10 : vector<2x128xf32> to vector<1x2x128xf32>
    tpu.vector_store %arg4[%c0_7, %c0_8, %c0_9], %13 {strides = array<i32>} : memref<1x2x128xf32, #tpu.memory_space<vmem>>, vector<1x2x128xf32>,
    return
  }
  func.func @transform_0(%arg0: i32) -> (i32, i32) {
    %c0_i32 = arith.constant 0 : i32
    %c0_i32_0 = arith.constant 0 : i32
    return %arg0, %c0_i32 : i32, i32
  }
  func.func @transform_1(%arg0: i32) -> (i32, i32) {
    %c0_i32 = arith.constant 0 : i32
    %c0_i32_0 = arith.constant 0 : i32
    %c0_i32_1 = arith.constant 0 : i32
    return %c0_i32, %c0_i32_0 : i32, i32
  }
  func.func @transform_2(%arg0: i32) -> (i32, i32) {
    %c0_i32 = arith.constant 0 : i32
    %c0_i32_0 = arith.constant 0 : i32
    return %arg0, %c0_i32 : i32, i32
  }
  func.func @transform_3(%arg0: i32) -> (i32, i32, i32) {
    %c0_i32 = arith.constant 0 : i32
    %c0_i32_0 = arith.constant 0 : i32
    %c0_i32_1 = arith.constant 0 : i32
    return %arg0, %c0_i32, %c0_i32_0 : i32, i32, i32
  }
}

module attributes {stable_mosaic.version = 11 : i64} {
  func.func @_bnrelu_conv3x3_stats_kernel(%arg0: i32, %arg1: memref<256x128xbf16, #tpu.memory_space<vmem>>, %arg2: memref<2x128xf32, #tpu.memory_space<vmem>>, %arg3: memref<9x128x128xbf16, #tpu.memory_space<vmem>>, %arg4: memref<256x128xbf16, #tpu.memory_space<vmem>>, %arg5: memref<1x2x128xf32, #tpu.memory_space<vmem>>, %arg6: memref<18x18x128xbf16, #tpu.memory_space<vmem>>, %arg7: memref<256x128xf32, #tpu.memory_space<vmem>>) attributes {dimension_semantics = [#tpu.dimension_semantics<parallel>], iteration_bounds = array<i64: 2>, scalar_prefetch = 0 : i64, scratch_operands = 2 : i64, tpu.core_type = #tpu.core_type<tc>, window_params = [{transform_indices = @transform_0, window_bounds = array<i64: 256, 128>}, {pipeline_mode = #tpu.pipeline_mode<synchronous>, transform_indices = @transform_1, window_bounds = array<i64: 2, 128>}, {pipeline_mode = #tpu.pipeline_mode<synchronous>, transform_indices = @transform_2, window_bounds = array<i64: 9, 128, 128>}, {transform_indices = @transform_3, window_bounds = array<i64: 256, 128>}, {transform_indices = @transform_4, window_bounds = array<i64: 1, 2, 128>}]} {
    %cst = arith.constant 0.000000e+00 : bf16
    %0 = vector.broadcast %cst : bf16 to vector<1x18x128xbf16>
    %cst_0 = arith.constant 0.000000e+00 : bf16
    %1 = vector.broadcast %cst_0 : bf16 to vector<16x1x128xbf16>
    %c0 = arith.constant 0 : index
    %c0_1 = arith.constant 0 : index
    %c0_2 = arith.constant 0 : index
    %2 = vector.load %arg6[%c0, %c0_1, %c0_2] : memref<18x18x128xbf16, #tpu.memory_space<vmem>>, vector<1x18x128xbf16>
    tpu.vector_store %arg6[%c0, %c0_1, %c0_2], %0 {strides = array<i32>} : memref<18x18x128xbf16, #tpu.memory_space<vmem>>, vector<1x18x128xbf16>,
    %c17 = arith.constant 17 : index
    %c0_3 = arith.constant 0 : index
    %c0_4 = arith.constant 0 : index
    %3 = vector.load %arg6[%c17, %c0_3, %c0_4] : memref<18x18x128xbf16, #tpu.memory_space<vmem>>, vector<1x18x128xbf16>
    tpu.vector_store %arg6[%c17, %c0_3, %c0_4], %0 {strides = array<i32>} : memref<18x18x128xbf16, #tpu.memory_space<vmem>>, vector<1x18x128xbf16>,
    %c1 = arith.constant 1 : index
    %c0_5 = arith.constant 0 : index
    %c0_6 = arith.constant 0 : index
    %4 = vector.load %arg6[%c1, %c0_5, %c0_6] : memref<18x18x128xbf16, #tpu.memory_space<vmem>>, vector<16x1x128xbf16>
    tpu.vector_store %arg6[%c1, %c0_5, %c0_6], %1 {strides = array<i32>} : memref<18x18x128xbf16, #tpu.memory_space<vmem>>, vector<16x1x128xbf16>,
    %c1_7 = arith.constant 1 : index
    %c17_8 = arith.constant 17 : index
    %c0_9 = arith.constant 0 : index
    %5 = vector.load %arg6[%c1_7, %c17_8, %c0_9] : memref<18x18x128xbf16, #tpu.memory_space<vmem>>, vector<16x1x128xbf16>
    tpu.vector_store %arg6[%c1_7, %c17_8, %c0_9], %1 {strides = array<i32>} : memref<18x18x128xbf16, #tpu.memory_space<vmem>>, vector<16x1x128xbf16>,
    %c0_10 = arith.constant 0 : index
    %c0_11 = arith.constant 0 : index
    %6 = vector.load %arg1[%c0_10, %c0_11] : memref<256x128xbf16, #tpu.memory_space<vmem>>, vector<256x128xbf16>
    %7 = arith.extf %6 : vector<256x128xbf16> to vector<256x128xf32>
    %c0_12 = arith.constant 0 : index
    %c0_13 = arith.constant 0 : index
    %8 = vector.load %arg2[%c0_12, %c0_13] : memref<2x128xf32, #tpu.memory_space<vmem>>, vector<1x128xf32>
    %9 = vector.broadcast %8 : vector<1x128xf32> to vector<256x128xf32>
    %10 = arith.mulf %7, %9 : vector<256x128xf32>
    %c1_14 = arith.constant 1 : index
    %c0_15 = arith.constant 0 : index
    %11 = vector.load %arg2[%c1_14, %c0_15] : memref<2x128xf32, #tpu.memory_space<vmem>>, vector<1x128xf32>
    %12 = vector.broadcast %11 : vector<1x128xf32> to vector<256x128xf32>
    %13 = arith.addf %10, %12 : vector<256x128xf32>
    %cst_16 = arith.constant 0.000000e+00 : f32
    %14 = vector.broadcast %cst_16 : f32 to vector<256x128xf32>
    %15 = arith.maximumf %13, %14 : vector<256x128xf32>
    %16 = arith.truncf %15 : vector<256x128xf32> to vector<256x128xbf16>
    %17 = vector.shape_cast %16 : vector<256x128xbf16> to vector<16x16x128xbf16>
    %c1_17 = arith.constant 1 : index
    %c1_18 = arith.constant 1 : index
    %c0_19 = arith.constant 0 : index
    %18 = vector.load %arg6[%c1_17, %c1_18, %c0_19] : memref<18x18x128xbf16, #tpu.memory_space<vmem>>, vector<16x16x128xbf16>
    tpu.vector_store %arg6[%c1_17, %c1_18, %c0_19], %17 {strides = array<i32>} : memref<18x18x128xbf16, #tpu.memory_space<vmem>>, vector<16x16x128xbf16>,
    %c0_20 = arith.constant 0 : index
    %c0_21 = arith.constant 0 : index
    %c0_22 = arith.constant 0 : index
    %19 = vector.load %arg6[%c0_20, %c0_21, %c0_22] : memref<18x18x128xbf16, #tpu.memory_space<vmem>>, vector<16x16x128xbf16>
    %20 = vector.shape_cast %19 : vector<16x16x128xbf16> to vector<256x128xbf16>
    %c0_23 = arith.constant 0 : index
    %c0_24 = arith.constant 0 : index
    %c0_25 = arith.constant 0 : index
    %21 = vector.load %arg3[%c0_23, %c0_24, %c0_25] : memref<9x128x128xbf16, #tpu.memory_space<vmem>>, vector<1x128x128xbf16>
    %22 = vector.shape_cast %21 : vector<1x128x128xbf16> to vector<128x128xbf16>
    %cst_26 = arith.constant dense<0.000000e+00> : vector<256x128xf32>
    %23 = tpu.matmul %20, %22, %cst_26 {dimension_numbers = #tpu.dot_dimension_numbers<[1], [0], [0], [1], [0, 0, 1, 1], [], []>} : vector<256x128xbf16>, vector<128x128xbf16>, vector<256x128xf32> -> vector<256x128xf32>
    %c0_27 = arith.constant 0 : index
    %c0_28 = arith.constant 0 : index
    %24 = vector.load %arg7[%c0_27, %c0_28] : memref<256x128xf32, #tpu.memory_space<vmem>>, vector<256x128xf32>
    tpu.vector_store %arg7[%c0_27, %c0_28], %23 {strides = array<i32>} : memref<256x128xf32, #tpu.memory_space<vmem>>, vector<256x128xf32>,
    %c0_29 = arith.constant 0 : index
    %c1_30 = arith.constant 1 : index
    %c0_31 = arith.constant 0 : index
    %25 = vector.load %arg6[%c0_29, %c1_30, %c0_31] : memref<18x18x128xbf16, #tpu.memory_space<vmem>>, vector<16x16x128xbf16>
    %26 = vector.shape_cast %25 : vector<16x16x128xbf16> to vector<256x128xbf16>
    %c1_32 = arith.constant 1 : index
    %c0_33 = arith.constant 0 : index
    %c0_34 = arith.constant 0 : index
    %27 = vector.load %arg3[%c1_32, %c0_33, %c0_34] : memref<9x128x128xbf16, #tpu.memory_space<vmem>>, vector<1x128x128xbf16>
    %28 = vector.shape_cast %27 : vector<1x128x128xbf16> to vector<128x128xbf16>
    %cst_35 = arith.constant dense<0.000000e+00> : vector<256x128xf32>
    %29 = tpu.matmul %26, %28, %cst_35 {dimension_numbers = #tpu.dot_dimension_numbers<[1], [0], [0], [1], [0, 0, 1, 1], [], []>} : vector<256x128xbf16>, vector<128x128xbf16>, vector<256x128xf32> -> vector<256x128xf32>
    %c0_36 = arith.constant 0 : index
    %c0_37 = arith.constant 0 : index
    %30 = vector.load %arg7[%c0_36, %c0_37] : memref<256x128xf32, #tpu.memory_space<vmem>>, vector<256x128xf32>
    %31 = arith.addf %30, %29 : vector<256x128xf32>
    %c0_38 = arith.constant 0 : index
    %c0_39 = arith.constant 0 : index
    %32 = vector.load %arg7[%c0_38, %c0_39] : memref<256x128xf32, #tpu.memory_space<vmem>>, vector<256x128xf32>
    tpu.vector_store %arg7[%c0_38, %c0_39], %31 {strides = array<i32>} : memref<256x128xf32, #tpu.memory_space<vmem>>, vector<256x128xf32>,
    %c0_40 = arith.constant 0 : index
    %c2 = arith.constant 2 : index
    %c0_41 = arith.constant 0 : index
    %33 = vector.load %arg6[%c0_40, %c2, %c0_41] : memref<18x18x128xbf16, #tpu.memory_space<vmem>>, vector<16x16x128xbf16>
    %34 = vector.shape_cast %33 : vector<16x16x128xbf16> to vector<256x128xbf16>
    %c2_42 = arith.constant 2 : index
    %c0_43 = arith.constant 0 : index
    %c0_44 = arith.constant 0 : index
    %35 = vector.load %arg3[%c2_42, %c0_43, %c0_44] : memref<9x128x128xbf16, #tpu.memory_space<vmem>>, vector<1x128x128xbf16>
    %36 = vector.shape_cast %35 : vector<1x128x128xbf16> to vector<128x128xbf16>
    %cst_45 = arith.constant dense<0.000000e+00> : vector<256x128xf32>
    %37 = tpu.matmul %34, %36, %cst_45 {dimension_numbers = #tpu.dot_dimension_numbers<[1], [0], [0], [1], [0, 0, 1, 1], [], []>} : vector<256x128xbf16>, vector<128x128xbf16>, vector<256x128xf32> -> vector<256x128xf32>
    %c0_46 = arith.constant 0 : index
    %c0_47 = arith.constant 0 : index
    %38 = vector.load %arg7[%c0_46, %c0_47] : memref<256x128xf32, #tpu.memory_space<vmem>>, vector<256x128xf32>
    %39 = arith.addf %38, %37 : vector<256x128xf32>
    %c0_48 = arith.constant 0 : index
    %c0_49 = arith.constant 0 : index
    %40 = vector.load %arg7[%c0_48, %c0_49] : memref<256x128xf32, #tpu.memory_space<vmem>>, vector<256x128xf32>
    tpu.vector_store %arg7[%c0_48, %c0_49], %39 {strides = array<i32>} : memref<256x128xf32, #tpu.memory_space<vmem>>, vector<256x128xf32>,
    %c1_50 = arith.constant 1 : index
    %c0_51 = arith.constant 0 : index
    %c0_52 = arith.constant 0 : index
    %41 = vector.load %arg6[%c1_50, %c0_51, %c0_52] : memref<18x18x128xbf16, #tpu.memory_space<vmem>>, vector<16x16x128xbf16>
    %42 = vector.shape_cast %41 : vector<16x16x128xbf16> to vector<256x128xbf16>
    %c3 = arith.constant 3 : index
    %c0_53 = arith.constant 0 : index
    %c0_54 = arith.constant 0 : index
    %43 = vector.load %arg3[%c3, %c0_53, %c0_54] : memref<9x128x128xbf16, #tpu.memory_space<vmem>>, vector<1x128x128xbf16>
    %44 = vector.shape_cast %43 : vector<1x128x128xbf16> to vector<128x128xbf16>
    %cst_55 = arith.constant dense<0.000000e+00> : vector<256x128xf32>
    %45 = tpu.matmul %42, %44, %cst_55 {dimension_numbers = #tpu.dot_dimension_numbers<[1], [0], [0], [1], [0, 0, 1, 1], [], []>} : vector<256x128xbf16>, vector<128x128xbf16>, vector<256x128xf32> -> vector<256x128xf32>
    %c0_56 = arith.constant 0 : index
    %c0_57 = arith.constant 0 : index
    %46 = vector.load %arg7[%c0_56, %c0_57] : memref<256x128xf32, #tpu.memory_space<vmem>>, vector<256x128xf32>
    %47 = arith.addf %46, %45 : vector<256x128xf32>
    %c0_58 = arith.constant 0 : index
    %c0_59 = arith.constant 0 : index
    %48 = vector.load %arg7[%c0_58, %c0_59] : memref<256x128xf32, #tpu.memory_space<vmem>>, vector<256x128xf32>
    tpu.vector_store %arg7[%c0_58, %c0_59], %47 {strides = array<i32>} : memref<256x128xf32, #tpu.memory_space<vmem>>, vector<256x128xf32>,
    %c1_60 = arith.constant 1 : index
    %c1_61 = arith.constant 1 : index
    %c0_62 = arith.constant 0 : index
    %49 = vector.load %arg6[%c1_60, %c1_61, %c0_62] : memref<18x18x128xbf16, #tpu.memory_space<vmem>>, vector<16x16x128xbf16>
    %50 = vector.shape_cast %49 : vector<16x16x128xbf16> to vector<256x128xbf16>
    %c4 = arith.constant 4 : index
    %c0_63 = arith.constant 0 : index
    %c0_64 = arith.constant 0 : index
    %51 = vector.load %arg3[%c4, %c0_63, %c0_64] : memref<9x128x128xbf16, #tpu.memory_space<vmem>>, vector<1x128x128xbf16>
    %52 = vector.shape_cast %51 : vector<1x128x128xbf16> to vector<128x128xbf16>
    %cst_65 = arith.constant dense<0.000000e+00> : vector<256x128xf32>
    %53 = tpu.matmul %50, %52, %cst_65 {dimension_numbers = #tpu.dot_dimension_numbers<[1], [0], [0], [1], [0, 0, 1, 1], [], []>} : vector<256x128xbf16>, vector<128x128xbf16>, vector<256x128xf32> -> vector<256x128xf32>
    %c0_66 = arith.constant 0 : index
    %c0_67 = arith.constant 0 : index
    %54 = vector.load %arg7[%c0_66, %c0_67] : memref<256x128xf32, #tpu.memory_space<vmem>>, vector<256x128xf32>
    %55 = arith.addf %54, %53 : vector<256x128xf32>
    %c0_68 = arith.constant 0 : index
    %c0_69 = arith.constant 0 : index
    %56 = vector.load %arg7[%c0_68, %c0_69] : memref<256x128xf32, #tpu.memory_space<vmem>>, vector<256x128xf32>
    tpu.vector_store %arg7[%c0_68, %c0_69], %55 {strides = array<i32>} : memref<256x128xf32, #tpu.memory_space<vmem>>, vector<256x128xf32>,
    %c1_70 = arith.constant 1 : index
    %c2_71 = arith.constant 2 : index
    %c0_72 = arith.constant 0 : index
    %57 = vector.load %arg6[%c1_70, %c2_71, %c0_72] : memref<18x18x128xbf16, #tpu.memory_space<vmem>>, vector<16x16x128xbf16>
    %58 = vector.shape_cast %57 : vector<16x16x128xbf16> to vector<256x128xbf16>
    %c5 = arith.constant 5 : index
    %c0_73 = arith.constant 0 : index
    %c0_74 = arith.constant 0 : index
    %59 = vector.load %arg3[%c5, %c0_73, %c0_74] : memref<9x128x128xbf16, #tpu.memory_space<vmem>>, vector<1x128x128xbf16>
    %60 = vector.shape_cast %59 : vector<1x128x128xbf16> to vector<128x128xbf16>
    %cst_75 = arith.constant dense<0.000000e+00> : vector<256x128xf32>
    %61 = tpu.matmul %58, %60, %cst_75 {dimension_numbers = #tpu.dot_dimension_numbers<[1], [0], [0], [1], [0, 0, 1, 1], [], []>} : vector<256x128xbf16>, vector<128x128xbf16>, vector<256x128xf32> -> vector<256x128xf32>
    %c0_76 = arith.constant 0 : index
    %c0_77 = arith.constant 0 : index
    %62 = vector.load %arg7[%c0_76, %c0_77] : memref<256x128xf32, #tpu.memory_space<vmem>>, vector<256x128xf32>
    %63 = arith.addf %62, %61 : vector<256x128xf32>
    %c0_78 = arith.constant 0 : index
    %c0_79 = arith.constant 0 : index
    %64 = vector.load %arg7[%c0_78, %c0_79] : memref<256x128xf32, #tpu.memory_space<vmem>>, vector<256x128xf32>
    tpu.vector_store %arg7[%c0_78, %c0_79], %63 {strides = array<i32>} : memref<256x128xf32, #tpu.memory_space<vmem>>, vector<256x128xf32>,
    %c2_80 = arith.constant 2 : index
    %c0_81 = arith.constant 0 : index
    %c0_82 = arith.constant 0 : index
    %65 = vector.load %arg6[%c2_80, %c0_81, %c0_82] : memref<18x18x128xbf16, #tpu.memory_space<vmem>>, vector<16x16x128xbf16>
    %66 = vector.shape_cast %65 : vector<16x16x128xbf16> to vector<256x128xbf16>
    %c6 = arith.constant 6 : index
    %c0_83 = arith.constant 0 : index
    %c0_84 = arith.constant 0 : index
    %67 = vector.load %arg3[%c6, %c0_83, %c0_84] : memref<9x128x128xbf16, #tpu.memory_space<vmem>>, vector<1x128x128xbf16>
    %68 = vector.shape_cast %67 : vector<1x128x128xbf16> to vector<128x128xbf16>
    %cst_85 = arith.constant dense<0.000000e+00> : vector<256x128xf32>
    %69 = tpu.matmul %66, %68, %cst_85 {dimension_numbers = #tpu.dot_dimension_numbers<[1], [0], [0], [1], [0, 0, 1, 1], [], []>} : vector<256x128xbf16>, vector<128x128xbf16>, vector<256x128xf32> -> vector<256x128xf32>
    %c0_86 = arith.constant 0 : index
    %c0_87 = arith.constant 0 : index
    %70 = vector.load %arg7[%c0_86, %c0_87] : memref<256x128xf32, #tpu.memory_space<vmem>>, vector<256x128xf32>
    %71 = arith.addf %70, %69 : vector<256x128xf32>
    %c0_88 = arith.constant 0 : index
    %c0_89 = arith.constant 0 : index
    %72 = vector.load %arg7[%c0_88, %c0_89] : memref<256x128xf32, #tpu.memory_space<vmem>>, vector<256x128xf32>
    tpu.vector_store %arg7[%c0_88, %c0_89], %71 {strides = array<i32>} : memref<256x128xf32, #tpu.memory_space<vmem>>, vector<256x128xf32>,
    %c2_90 = arith.constant 2 : index
    %c1_91 = arith.constant 1 : index
    %c0_92 = arith.constant 0 : index
    %73 = vector.load %arg6[%c2_90, %c1_91, %c0_92] : memref<18x18x128xbf16, #tpu.memory_space<vmem>>, vector<16x16x128xbf16>
    %74 = vector.shape_cast %73 : vector<16x16x128xbf16> to vector<256x128xbf16>
    %c7 = arith.constant 7 : index
    %c0_93 = arith.constant 0 : index
    %c0_94 = arith.constant 0 : index
    %75 = vector.load %arg3[%c7, %c0_93, %c0_94] : memref<9x128x128xbf16, #tpu.memory_space<vmem>>, vector<1x128x128xbf16>
    %76 = vector.shape_cast %75 : vector<1x128x128xbf16> to vector<128x128xbf16>
    %cst_95 = arith.constant dense<0.000000e+00> : vector<256x128xf32>
    %77 = tpu.matmul %74, %76, %cst_95 {dimension_numbers = #tpu.dot_dimension_numbers<[1], [0], [0], [1], [0, 0, 1, 1], [], []>} : vector<256x128xbf16>, vector<128x128xbf16>, vector<256x128xf32> -> vector<256x128xf32>
    %c0_96 = arith.constant 0 : index
    %c0_97 = arith.constant 0 : index
    %78 = vector.load %arg7[%c0_96, %c0_97] : memref<256x128xf32, #tpu.memory_space<vmem>>, vector<256x128xf32>
    %79 = arith.addf %78, %77 : vector<256x128xf32>
    %c0_98 = arith.constant 0 : index
    %c0_99 = arith.constant 0 : index
    %80 = vector.load %arg7[%c0_98, %c0_99] : memref<256x128xf32, #tpu.memory_space<vmem>>, vector<256x128xf32>
    tpu.vector_store %arg7[%c0_98, %c0_99], %79 {strides = array<i32>} : memref<256x128xf32, #tpu.memory_space<vmem>>, vector<256x128xf32>,
    %c2_100 = arith.constant 2 : index
    %c2_101 = arith.constant 2 : index
    %c0_102 = arith.constant 0 : index
    %81 = vector.load %arg6[%c2_100, %c2_101, %c0_102] : memref<18x18x128xbf16, #tpu.memory_space<vmem>>, vector<16x16x128xbf16>
    %82 = vector.shape_cast %81 : vector<16x16x128xbf16> to vector<256x128xbf16>
    %c8 = arith.constant 8 : index
    %c0_103 = arith.constant 0 : index
    %c0_104 = arith.constant 0 : index
    %83 = vector.load %arg3[%c8, %c0_103, %c0_104] : memref<9x128x128xbf16, #tpu.memory_space<vmem>>, vector<1x128x128xbf16>
    %84 = vector.shape_cast %83 : vector<1x128x128xbf16> to vector<128x128xbf16>
    %cst_105 = arith.constant dense<0.000000e+00> : vector<256x128xf32>
    %85 = tpu.matmul %82, %84, %cst_105 {dimension_numbers = #tpu.dot_dimension_numbers<[1], [0], [0], [1], [0, 0, 1, 1], [], []>} : vector<256x128xbf16>, vector<128x128xbf16>, vector<256x128xf32> -> vector<256x128xf32>
    %c0_106 = arith.constant 0 : index
    %c0_107 = arith.constant 0 : index
    %86 = vector.load %arg7[%c0_106, %c0_107] : memref<256x128xf32, #tpu.memory_space<vmem>>, vector<256x128xf32>
    %87 = arith.addf %86, %85 : vector<256x128xf32>
    %c0_108 = arith.constant 0 : index
    %c0_109 = arith.constant 0 : index
    %88 = vector.load %arg7[%c0_108, %c0_109] : memref<256x128xf32, #tpu.memory_space<vmem>>, vector<256x128xf32>
    tpu.vector_store %arg7[%c0_108, %c0_109], %87 {strides = array<i32>} : memref<256x128xf32, #tpu.memory_space<vmem>>, vector<256x128xf32>,
    %c0_110 = arith.constant 0 : index
    %c0_111 = arith.constant 0 : index
    %89 = vector.load %arg7[%c0_110, %c0_111] : memref<256x128xf32, #tpu.memory_space<vmem>>, vector<256x128xf32>
    %90 = arith.truncf %89 : vector<256x128xf32> to vector<256x128xbf16>
    %c0_112 = arith.constant 0 : index
    %c0_113 = arith.constant 0 : index
    %91 = vector.load %arg4[%c0_112, %c0_113] : memref<256x128xbf16, #tpu.memory_space<vmem>>, vector<256x128xbf16>
    tpu.vector_store %arg4[%c0_112, %c0_113], %90 {strides = array<i32>} : memref<256x128xbf16, #tpu.memory_space<vmem>>, vector<256x128xbf16>,
    %cst_114 = arith.constant dense<0.000000e+00> : vector<128xf32>
    %92 = vector.multi_reduction <add>, %89, %cst_114 [0] : vector<256x128xf32> to vector<128xf32>
    %93 = vector.shape_cast %92 : vector<128xf32> to vector<1x128xf32>
    %94 = arith.mulf %89, %89 : vector<256x128xf32>
    %cst_115 = arith.constant dense<0.000000e+00> : vector<128xf32>
    %95 = vector.multi_reduction <add>, %94, %cst_115 [0] : vector<256x128xf32> to vector<128xf32>
    %96 = vector.shape_cast %95 : vector<128xf32> to vector<1x128xf32>
    %97 = tpu.concatenate %93, %96 in 0 : vector<1x128xf32>, vector<1x128xf32> -> vector<2x128xf32>
    %c0_116 = arith.constant 0 : index
    %c0_117 = arith.constant 0 : index
    %c0_118 = arith.constant 0 : index
    %98 = vector.load %arg5[%c0_116, %c0_117, %c0_118] : memref<1x2x128xf32, #tpu.memory_space<vmem>>, vector<1x2x128xf32>
    %99 = vector.shape_cast %98 : vector<1x2x128xf32> to vector<2x128xf32>
    %100 = vector.shape_cast %97 : vector<2x128xf32> to vector<1x2x128xf32>
    tpu.vector_store %arg5[%c0_116, %c0_117, %c0_118], %100 {strides = array<i32>} : memref<1x2x128xf32, #tpu.memory_space<vmem>>, vector<1x2x128xf32>,
    return
  }
  func.func @transform_0(%arg0: i32) -> (i32, i32) {
    %c0_i32 = arith.constant 0 : i32
    %c0_i32_0 = arith.constant 0 : i32
    return %arg0, %c0_i32 : i32, i32
  }
  func.func @transform_1(%arg0: i32) -> (i32, i32) {
    %c0_i32 = arith.constant 0 : i32
    %c0_i32_0 = arith.constant 0 : i32
    %c0_i32_1 = arith.constant 0 : i32
    return %c0_i32, %c0_i32_0 : i32, i32
  }
  func.func @transform_2(%arg0: i32) -> (i32, i32, i32) {
    %c0_i32 = arith.constant 0 : i32
    %c0_i32_0 = arith.constant 0 : i32
    %c0_i32_1 = arith.constant 0 : i32
    %c0_i32_2 = arith.constant 0 : i32
    return %c0_i32, %c0_i32_0, %c0_i32_1 : i32, i32, i32
  }
  func.func @transform_3(%arg0: i32) -> (i32, i32) {
    %c0_i32 = arith.constant 0 : i32
    %c0_i32_0 = arith.constant 0 : i32
    return %arg0, %c0_i32 : i32, i32
  }
  func.func @transform_4(%arg0: i32) -> (i32, i32, i32) {
    %c0_i32 = arith.constant 0 : i32
    %c0_i32_0 = arith.constant 0 : i32
    %c0_i32_1 = arith.constant 0 : i32
    return %arg0, %c0_i32, %c0_i32_0 : i32, i32, i32
  }
}

module attributes {stable_mosaic.version = 11 : i64} {
  func.func @_bnrelu_conv1x1_stats_kernel(%arg0: i32, %arg1: memref<512x128xbf16, #tpu.memory_space<vmem>>, %arg2: memref<2x128xf32, #tpu.memory_space<vmem>>, %arg3: memref<128x128xbf16, #tpu.memory_space<vmem>>, %arg4: memref<512x128xbf16, #tpu.memory_space<vmem>>, %arg5: memref<1x2x128xf32, #tpu.memory_space<vmem>>) attributes {dimension_semantics = [#tpu.dimension_semantics<parallel>], iteration_bounds = array<i64: 1>, scalar_prefetch = 0 : i64, scratch_operands = 0 : i64, tpu.core_type = #tpu.core_type<tc>, window_params = [{transform_indices = @transform_0, window_bounds = array<i64: 512, 128>}, {pipeline_mode = #tpu.pipeline_mode<synchronous>, transform_indices = @transform_1, window_bounds = array<i64: 2, 128>}, {pipeline_mode = #tpu.pipeline_mode<synchronous>, transform_indices = @transform_2, window_bounds = array<i64: 128, 128>}, {transform_indices = @transform_3, window_bounds = array<i64: 512, 128>}, {transform_indices = @transform_4, window_bounds = array<i64: 1, 2, 128>}]} {
    %c0 = arith.constant 0 : index
    %c0_0 = arith.constant 0 : index
    %0 = vector.load %arg1[%c0, %c0_0] : memref<512x128xbf16, #tpu.memory_space<vmem>>, vector<512x128xbf16>
    %1 = arith.extf %0 : vector<512x128xbf16> to vector<512x128xf32>
    %c0_1 = arith.constant 0 : index
    %c0_2 = arith.constant 0 : index
    %2 = vector.load %arg2[%c0_1, %c0_2] : memref<2x128xf32, #tpu.memory_space<vmem>>, vector<1x128xf32>
    %3 = vector.broadcast %2 : vector<1x128xf32> to vector<512x128xf32>
    %4 = arith.mulf %1, %3 : vector<512x128xf32>
    %c1 = arith.constant 1 : index
    %c0_3 = arith.constant 0 : index
    %5 = vector.load %arg2[%c1, %c0_3] : memref<2x128xf32, #tpu.memory_space<vmem>>, vector<1x128xf32>
    %6 = vector.broadcast %5 : vector<1x128xf32> to vector<512x128xf32>
    %7 = arith.addf %4, %6 : vector<512x128xf32>
    %cst = arith.constant 0.000000e+00 : f32
    %8 = vector.broadcast %cst : f32 to vector<512x128xf32>
    %9 = arith.maximumf %7, %8 : vector<512x128xf32>
    %10 = arith.truncf %9 : vector<512x128xf32> to vector<512x128xbf16>
    %c0_4 = arith.constant 0 : index
    %c0_5 = arith.constant 0 : index
    %11 = vector.load %arg3[%c0_4, %c0_5] : memref<128x128xbf16, #tpu.memory_space<vmem>>, vector<128x128xbf16>
    %cst_6 = arith.constant dense<0.000000e+00> : vector<512x128xf32>
    %12 = tpu.matmul %10, %11, %cst_6 {dimension_numbers = #tpu.dot_dimension_numbers<[1], [0], [0], [1], [0, 0, 1, 1], [], []>} : vector<512x128xbf16>, vector<128x128xbf16>, vector<512x128xf32> -> vector<512x128xf32>
    %13 = arith.truncf %12 : vector<512x128xf32> to vector<512x128xbf16>
    %c0_7 = arith.constant 0 : index
    %c0_8 = arith.constant 0 : index
    %14 = vector.load %arg4[%c0_7, %c0_8] : memref<512x128xbf16, #tpu.memory_space<vmem>>, vector<512x128xbf16>
    tpu.vector_store %arg4[%c0_7, %c0_8], %13 {strides = array<i32>} : memref<512x128xbf16, #tpu.memory_space<vmem>>, vector<512x128xbf16>,
    %cst_9 = arith.constant dense<0.000000e+00> : vector<128xf32>
    %15 = vector.multi_reduction <add>, %12, %cst_9 [0] : vector<512x128xf32> to vector<128xf32>
    %16 = vector.shape_cast %15 : vector<128xf32> to vector<1x128xf32>
    %17 = arith.mulf %12, %12 : vector<512x128xf32>
    %cst_10 = arith.constant dense<0.000000e+00> : vector<128xf32>
    %18 = vector.multi_reduction <add>, %17, %cst_10 [0] : vector<512x128xf32> to vector<128xf32>
    %19 = vector.shape_cast %18 : vector<128xf32> to vector<1x128xf32>
    %20 = tpu.concatenate %16, %19 in 0 : vector<1x128xf32>, vector<1x128xf32> -> vector<2x128xf32>
    %c0_11 = arith.constant 0 : index
    %c0_12 = arith.constant 0 : index
    %c0_13 = arith.constant 0 : index
    %21 = vector.load %arg5[%c0_11, %c0_12, %c0_13] : memref<1x2x128xf32, #tpu.memory_space<vmem>>, vector<1x2x128xf32>
    %22 = vector.shape_cast %21 : vector<1x2x128xf32> to vector<2x128xf32>
    %23 = vector.shape_cast %20 : vector<2x128xf32> to vector<1x2x128xf32>
    tpu.vector_store %arg5[%c0_11, %c0_12, %c0_13], %23 {strides = array<i32>} : memref<1x2x128xf32, #tpu.memory_space<vmem>>, vector<1x2x128xf32>,
    return
  }
  func.func @transform_0(%arg0: i32) -> (i32, i32) {
    %c0_i32 = arith.constant 0 : i32
    %c0_i32_0 = arith.constant 0 : i32
    return %arg0, %c0_i32 : i32, i32
  }
  func.func @transform_1(%arg0: i32) -> (i32, i32) {
    %c0_i32 = arith.constant 0 : i32
    %c0_i32_0 = arith.constant 0 : i32
    %c0_i32_1 = arith.constant 0 : i32
    return %c0_i32, %c0_i32_0 : i32, i32
  }
  func.func @transform_2(%arg0: i32) -> (i32, i32) {
    %c0_i32 = arith.constant 0 : i32
    %c0_i32_0 = arith.constant 0 : i32
    %c0_i32_1 = arith.constant 0 : i32
    return %c0_i32, %c0_i32_0 : i32, i32
  }
  func.func @transform_3(%arg0: i32) -> (i32, i32) {
    %c0_i32 = arith.constant 0 : i32
    %c0_i32_0 = arith.constant 0 : i32
    return %arg0, %c0_i32 : i32, i32
  }
  func.func @transform_4(%arg0: i32) -> (i32, i32, i32) {
    %c0_i32 = arith.constant 0 : i32
    %c0_i32_0 = arith.constant 0 : i32
    %c0_i32_1 = arith.constant 0 : i32
    return %arg0, %c0_i32, %c0_i32_0 : i32, i32, i32
  }
}

module attributes {stable_mosaic.version = 11 : i64} {
  func.func @_bnrelu_residual_kernel(%arg0: i32, %arg1: memref<512x128xbf16, #tpu.memory_space<vmem>>, %arg2: memref<2x128xf32, #tpu.memory_space<vmem>>, %arg3: memref<512x128xbf16, #tpu.memory_space<vmem>>, %arg4: memref<512x128xf32, #tpu.memory_space<vmem>>) attributes {dimension_semantics = [#tpu.dimension_semantics<parallel>], iteration_bounds = array<i64: 1>, scalar_prefetch = 0 : i64, scratch_operands = 0 : i64, tpu.core_type = #tpu.core_type<tc>, window_params = [{transform_indices = @transform_0, window_bounds = array<i64: 512, 128>}, {pipeline_mode = #tpu.pipeline_mode<synchronous>, transform_indices = @transform_1, window_bounds = array<i64: 2, 128>}, {transform_indices = @transform_2, window_bounds = array<i64: 512, 128>}, {transform_indices = @transform_3, window_bounds = array<i64: 512, 128>}]} {
    %c0 = arith.constant 0 : index
    %c0_0 = arith.constant 0 : index
    %0 = vector.load %arg1[%c0, %c0_0] : memref<512x128xbf16, #tpu.memory_space<vmem>>, vector<512x128xbf16>
    %1 = arith.extf %0 : vector<512x128xbf16> to vector<512x128xf32>
    %c0_1 = arith.constant 0 : index
    %c0_2 = arith.constant 0 : index
    %2 = vector.load %arg2[%c0_1, %c0_2] : memref<2x128xf32, #tpu.memory_space<vmem>>, vector<1x128xf32>
    %3 = vector.broadcast %2 : vector<1x128xf32> to vector<512x128xf32>
    %4 = arith.mulf %1, %3 : vector<512x128xf32>
    %c1 = arith.constant 1 : index
    %c0_3 = arith.constant 0 : index
    %5 = vector.load %arg2[%c1, %c0_3] : memref<2x128xf32, #tpu.memory_space<vmem>>, vector<1x128xf32>
    %6 = vector.broadcast %5 : vector<1x128xf32> to vector<512x128xf32>
    %7 = arith.addf %4, %6 : vector<512x128xf32>
    %c0_4 = arith.constant 0 : index
    %c0_5 = arith.constant 0 : index
    %8 = vector.load %arg3[%c0_4, %c0_5] : memref<512x128xbf16, #tpu.memory_space<vmem>>, vector<512x128xbf16>
    %9 = arith.extf %8 : vector<512x128xbf16> to vector<512x128xf32>
    %10 = arith.addf %7, %9 : vector<512x128xf32>
    %cst = arith.constant 0.000000e+00 : f32
    %11 = vector.broadcast %cst : f32 to vector<512x128xf32>
    %12 = arith.maximumf %10, %11 : vector<512x128xf32>
    %c0_6 = arith.constant 0 : index
    %c0_7 = arith.constant 0 : index
    %13 = vector.load %arg4[%c0_6, %c0_7] : memref<512x128xf32, #tpu.memory_space<vmem>>, vector<512x128xf32>
    tpu.vector_store %arg4[%c0_6, %c0_7], %12 {strides = array<i32>} : memref<512x128xf32, #tpu.memory_space<vmem>>, vector<512x128xf32>,
    return
  }
  func.func @transform_0(%arg0: i32) -> (i32, i32) {
    %c0_i32 = arith.constant 0 : i32
    %c0_i32_0 = arith.constant 0 : i32
    return %arg0, %c0_i32 : i32, i32
  }
  func.func @transform_1(%arg0: i32) -> (i32, i32) {
    %c0_i32 = arith.constant 0 : i32
    %c0_i32_0 = arith.constant 0 : i32
    %c0_i32_1 = arith.constant 0 : i32
    return %c0_i32, %c0_i32_0 : i32, i32
  }
  func.func @transform_2(%arg0: i32) -> (i32, i32) {
    %c0_i32 = arith.constant 0 : i32
    %c0_i32_0 = arith.constant 0 : i32
    return %arg0, %c0_i32 : i32, i32
  }
  func.func @transform_3(%arg0: i32) -> (i32, i32) {
    %c0_i32 = arith.constant 0 : i32
    %c0_i32_0 = arith.constant 0 : i32
    return %arg0, %c0_i32 : i32, i32
  }
}

</mosaic_0001>

<bundles_post_ra>
// kernel: bottleneck_block.4
= control target key start
LH: loop header
LB: loop body
LE: loop exit
PB: predicated region body
PF: predicated region fallthrough
CT: control target
= control target key end

     0   :  { %vm832_vm0 = vcmask 1040384   ;;  %s1785_s1 = inlined_call_operand.vmem [shape: bf16[128,128], index: 1, kind: input, shape index: {}]   ;;  %s1786_s0 = inlined_call_operand.vmem [shape: bf16[512,128], index: 0, kind: input, shape index: {}]   ;;  %s1787_s2 = inlined_call_operand.vmem [shape: bf16[512,128], index: 2, kind: output, shape index: {0}]   ;;  %s1788_s3 = inlined_call_operand.vmem [shape: f32[1,2,128], index: 3, kind: output, shape index: {1}]  }
   0x1   :  { %v1042_v0 = vld [vmem:[%s1785_s1 + $0x38] sm:$0xff]  ;;  %v1041_v1 = vld [vmem:[%s1785_s1 + $0x30] sm:$0xff]  ;;  %v1040_v2 = vld [vmem:[%s1785_s1 + $0x28] sm:$0xff] }
   0x2   :  { %333 = vmatpush.bf16.msra.mxu0 %v1042_v0  ;;  %1234 = vmatpush.bf16.msra.mxu1 %v1042_v0  ;;  %v1039_v3 = vld [vmem:[%s1785_s1 + $0x20] sm:$0xff]  ;;  %v1038_v4 = vld [vmem:[%s1785_s1 + $0x18] sm:$0xff]  ;;  %v1037_v5 = vld [vmem:[%s1785_s1 + $0x10] sm:$0xff] }
   0x3   :  { %1235 = vmatpush.bf16.msra.mxu2 %v1042_v0  ;;  %1236 = vmatpush.bf16.msra.mxu3 %v1042_v0  ;;  %v1036_v6 = vld [vmem:[%s1785_s1 + $0x8] sm:$0xff]  ;;  %v1035_v7 = vld [vmem:[%s1785_s1] sm:$0xff]  ;;  %v1005_v13 = vld [vmem:[%s1786_s0 + $0x10] sm:$0xff] }
   0x4   :  { %v1003_v8 = vld [vmem:[%s1786_s0] sm:$0xff]  ;;  %v1004_v10 = vld [vmem:[%s1786_s0 + $0x8] sm:$0xff]  ;;  %v1013_v14 = vld [vmem:[%s1786_s0 + $0x50] sm:$0xff] }
   0x5   :  { %v1011_v9 = vld [vmem:[%s1786_s0 + $0x40] sm:$0xff]  ;;  %v1012_v11 = vld [vmem:[%s1786_s0 + $0x48] sm:$0xff]  ;;  %v1006_v16 = vld [vmem:[%s1786_s0 + $0x18] sm:$0xff] }
   0x6   :  { %334 = vmatpush.bf16.msra.mxu0 %v1041_v1  ;;  %1237 = vmatpush.bf16.msra.mxu1 %v1041_v1  ;;  %v1019_v12 = vld [vmem:[%s1786_s0 + $0x80] sm:$0xff]  ;;  %v1020_v15 = vld [vmem:[%s1786_s0 + $0x88] sm:$0xff]  ;;  %v1014_v17 = vld [vmem:[%s1786_s0 + $0x58] sm:$0xff] }
   0x7   :  { %1238 = vmatpush.bf16.msra.mxu2 %v1041_v1  ;;  %1239 = vmatpush.bf16.msra.mxu3 %v1041_v1  ;;  %v1021_v18 = vld [vmem:[%s1786_s0 + $0x90] sm:$0xff]  ;;  %v1027_v19 = vld [vmem:[%s1786_s0 + $0xc0] sm:$0xff]  ;;  %v1022_v22 = vld [vmem:[%s1786_s0 + $0x98] sm:$0xff] }
   0x8   :  { %v1007_v20 = vld [vmem:[%s1786_s0 + $0x20] sm:$0xff]  ;;  %v1028_v23 = vld [vmem:[%s1786_s0 + $0xc8] sm:$0xff]  ;;  %v1029_v27 = vld [vmem:[%s1786_s0 + $0xd0] sm:$0xff] }
   0x9   :  { %v1015_v21 = vld [vmem:[%s1786_s0 + $0x60] sm:$0xff]  ;;  %v1008_v24 = vld [vmem:[%s1786_s0 + $0x28] sm:$0xff]  ;;  %v1009_v28 = vld [vmem:[%s1786_s0 + $0x30] sm:$0xff] }
   0xa   :  { %335 = vmatpush.bf16.msra.mxu0 %v1040_v2  ;;  %1240 = vmatpush.bf16.msra.mxu1 %v1040_v2  ;;  %v1016_v25 = vld [vmem:[%s1786_s0 + $0x68] sm:$0xff]  ;;  %v1023_v26 = vld [vmem:[%s1786_s0 + $0xa0] sm:$0xff]  ;;  %v1017_v29 = vld [vmem:[%s1786_s0 + $0x70] sm:$0xff] }
   0xb   :  { %1241 = vmatpush.bf16.msra.mxu2 %v1040_v2  ;;  %1242 = vmatpush.bf16.msra.mxu3 %v1040_v2  ;;  %v1024_v30 = vld [vmem:[%s1786_s0 + $0xa8] sm:$0xff]  ;;  %v1030_v31 = vld [vmem:[%s1786_s0 + $0xd8] sm:$0xff]  ;;  %v1025_v34 = vld [vmem:[%s1786_s0 + $0xb0] sm:$0xff] }
   0xc   :  { %v1010_v32 = vld [vmem:[%s1786_s0 + $0x38] sm:$0xff]  ;;  %v1031_v35 = vld [vmem:[%s1786_s0 + $0xe0] sm:$0xff]  ;;  %v1032_v39 = vld [vmem:[%s1786_s0 + $0xe8] sm:$0xff] }
   0xd   :  { %v1018_v33 = vld [vmem:[%s1786_s0 + $0x78] sm:$0xff]  ;;  %v1033_v53 = vld [vmem:[%s1786_s0 + $0xf0] sm:$0xff] }
   0xe   :  { %336 = vmatpush.bf16.msra.mxu0 %v1039_v3  ;;  %1243 = vmatpush.bf16.msra.mxu1 %v1039_v3  ;;  %v1026_v38 = vld [vmem:[%s1786_s0 + $0xb8] sm:$0xff] }
   0xf   :  { %1244 = vmatpush.bf16.msra.mxu2 %v1039_v3  ;;  %1245 = vmatpush.bf16.msra.mxu3 %v1039_v3 }
  0x12   :  { %337 = vmatpush.bf16.msra.mxu0 %v1038_v4  ;;  %1246 = vmatpush.bf16.msra.mxu1 %v1038_v4 }
  0x13   :  { %1247 = vmatpush.bf16.msra.mxu2 %v1038_v4  ;;  %1248 = vmatpush.bf16.msra.mxu3 %v1038_v4 }
  0x16   :  { %338 = vmatpush.bf16.msra.mxu0 %v1037_v5  ;;  %1249 = vmatpush.bf16.msra.mxu1 %v1037_v5 }
  0x17   :  { %1250 = vmatpush.bf16.msra.mxu2 %v1037_v5  ;;  %1251 = vmatpush.bf16.msra.mxu3 %v1037_v5  ;;  %v1034_v5 = vld [vmem:[%s1786_s0 + $0xf8] sm:$0xff] }
  0x1a   :  { %339 = vmatpush.bf16.msra.mxu0 %v1036_v6  ;;  %1252 = vmatpush.bf16.msra.mxu1 %v1036_v6 }
  0x1b   :  { %1253 = vmatpush.bf16.msra.mxu2 %v1036_v6  ;;  %1254 = vmatpush.bf16.msra.mxu3 %v1036_v6 }
  0x1e   :  { %340 = vmatpush.bf16.msra.mxu0 %v1035_v7  ;;  %1255 = vmatpush.bf16.msra.mxu1 %v1035_v7 }
  0x1f   :  { %1256 = vmatpush.bf16.msra.mxu2 %v1035_v7  ;;  %1257 = vmatpush.bf16.msra.mxu3 %v1035_v7 }
  0x21   :  { %341 = vmatmul.bf16.vlgmr.msra.gmra.mxu0 %v1003_v8  ;;  %381 = vmatmul.bf16.vlgmr.msra.gmra.mxu1 %v1011_v9 }
  0x22   :  { %421 = vmatmul.bf16.vlgmr.msra.gmra.mxu2 %v1019_v12  ;;  %461 = vmatmul.bf16.vlgmr.msra.gmra.mxu3 %v1027_v19 }
  0x31   :  { %346 = vmatmul.bf16.gmra.mxu0 %v1004_v10  ;;  %386 = vmatmul.bf16.gmra.mxu1 %v1012_v11 }
  0x32   :  { %426 = vmatmul.bf16.gmra.mxu2 %v1020_v15  ;;  %466 = vmatmul.bf16.gmra.mxu3 %v1028_v23 }
  0x41   :  { %351 = vmatmul.bf16.gmra.mxu0 %v1005_v13  ;;  %391 = vmatmul.bf16.gmra.mxu1 %v1013_v14 }
  0x42   :  { %431 = vmatmul.bf16.gmra.mxu2 %v1021_v18  ;;  %471 = vmatmul.bf16.gmra.mxu3 %v1029_v27 }
  0x51   :  { %356 = vmatmul.bf16.gmra.mxu0 %v1006_v16  ;;  %396 = vmatmul.bf16.gmra.mxu1 %v1014_v17 }
  0x52   :  { %436 = vmatmul.bf16.gmra.mxu2 %v1022_v22  ;;  %476 = vmatmul.bf16.gmra.mxu3 %v1030_v31 }
  0x61   :  { %361 = vmatmul.bf16.gmra.mxu0 %v1007_v20  ;;  %401 = vmatmul.bf16.gmra.mxu1 %v1015_v21 }
  0x62   :  { %441 = vmatmul.bf16.gmra.mxu2 %v1023_v26  ;;  %481 = vmatmul.bf16.gmra.mxu3 %v1031_v35 }
  0x71   :  { %366 = vmatmul.bf16.gmra.mxu0 %v1008_v24  ;;  %406 = vmatmul.bf16.gmra.mxu1 %v1016_v25 }
  0x72   :  { %446 = vmatmul.bf16.gmra.mxu2 %v1024_v30  ;;  %486 = vmatmul.bf16.gmra.mxu3 %v1032_v39 }
  0x81   :  { %371 = vmatmul.bf16.gmra.mxu0 %v1009_v28  ;;  %411 = vmatmul.bf16.gmra.mxu1 %v1017_v29 }
  0x82   :  { %451 = vmatmul.bf16.gmra.mxu2 %v1025_v34  ;;  %491 = vmatmul.bf16.gmra.mxu3 %v1033_v53 }
  0x91   :  { %376 = vmatmul.bf16.gmra.mxu0 %v1010_v32  ;;  %416 = vmatmul.bf16.gmra.mxu1 %v1018_v33 }
  0x92   :  { %456 = vmatmul.bf16.gmra.mxu2 %v1026_v38  ;;  %496 = vmatmul.bf16.gmra.mxu3 %v1034_v5 }
  0x9e   :  { %v342_v36 = vpop.f32.mrf.mxu0  ;;  %v1386_v37 = vpop.f32.mrf.mxu1 }
  0x9f   :  { %v699_v40 = vmul.f32 %v342_v36, %v342_v36 }
  0xa5   :  { %v1413_v60 = vpop.f32.mrf.mxu2  ;;  %v1464_v20 = vpop.f32.mrf.mxu3 }
  0xa6   :  { %v344_v41 = vpop.f32.mrf.mxu0  ;;  %v1394_v42 = vpop.f32.mrf.mxu1 }
  0xa7   :  { %v1046_v43 = vpack.c.bf16 %v344_v41, %v342_v36  ;;  %v630_v44 = vadd.f32 %v344_v41, %v342_v36  ;;  %v700_v45 = vmul.f32 %v344_v41, %v344_v41  ;;  %v1086_v46 = vpack.c.bf16 %v1394_v42, %v1386_v37 }
  0xa9   :  { %1047 = vst [vmem:[%s1787_s2] sm:$0xff] %v1046_v43   ;;  %v763_v47 = vadd.f32 %v700_v45, %v699_v40 }
  0xaa   :  { %1210 = vst [vmem:[%s1787_s2 + $0x40] sm:$0xff] %v1086_v46  }
  0xad   :  { %v1425_v2 = vpop.f32.mrf.mxu2  ;;  %v1476_v24 = vpop.f32.mrf.mxu3 }
  0xae   :  { %v347_v48 = vpop.f32.mrf.mxu0  ;;  %v1404_v49 = vpop.f32.mrf.mxu1  ;;  %v1126_v3 = vpack.c.bf16 %v1425_v2, %v1413_v60  ;;  %v1166_v26 = vpack.c.bf16 %v1476_v24, %v1464_v20 }
  0xaf   :  { %v631_v50 = vadd.f32 %v630_v44, %v347_v48  ;;  %v701_v51 = vmul.f32 %v347_v48, %v347_v48 }
  0xb0   :  { %1218 = vst [vmem:[%s1787_s2 + $0x80] sm:$0xff] %v1126_v3  }
  0xb1   :  { %v764_v52 = vadd.f32 %v763_v47, %v701_v51  ;;  %1226 = vst [vmem:[%s1787_s2 + $0xc0] sm:$0xff] %v1166_v26  }
  0xb5   :  { %v1441_v10 = vpop.f32.mrf.mxu2  ;;  %v1494_v32 = vpop.f32.mrf.mxu3 }
  0xb6   :  { %v349_v54 = vpop.f32.mrf.mxu0  ;;  %v1409_v55 = vpop.f32.mrf.mxu1 }
  0xb7   :  { %v1051_v56 = vpack.c.bf16 %v349_v54, %v347_v48  ;;  %v632_v57 = vadd.f32 %v631_v50, %v349_v54  ;;  %v702_v58 = vmul.f32 %v349_v54, %v349_v54  ;;  %v1091_v59 = vpack.c.bf16 %v1409_v55, %v1404_v49 }
  0xb9   :  { %1203 = vst [vmem:[%s1787_s2 + $0x8] sm:$0xff] %v1051_v56   ;;  %v765_v61 = vadd.f32 %v764_v52, %v702_v58 }
  0xba   :  { %1211 = vst [vmem:[%s1787_s2 + $0x48] sm:$0xff] %v1091_v59  }
  0xbd   :  { %v1451_v13 = vpop.f32.mrf.mxu2  ;;  %v1506_v36 = vpop.f32.mrf.mxu3 }
  0xbe   :  { %v352_v62 = vpop.f32.mrf.mxu0  ;;  %v1421_v63 = vpop.f32.mrf.mxu1  ;;  %v1131_v14 = vpack.c.bf16 %v1451_v13, %v1441_v10  ;;  %v1171_v39 = vpack.c.bf16 %v1506_v36, %v1494_v32 }
  0xbf   :  { %v1423_v0 = vadd.f32 %v632_v57, %v352_v62  ;;  %v703_v1 = vmul.f32 %v352_v62, %v352_v62 }
  0xc0   :  { %1219 = vst [vmem:[%s1787_s2 + $0x88] sm:$0xff] %v1131_v14  }
  0xc1   :  { %v1429_v4 = vadd.f32 %v765_v61, %v703_v1  ;;  %1227 = vst [vmem:[%s1787_s2 + $0xc8] sm:$0xff] %v1171_v39  }
  0xc5   :  { %v1462_v19 = vpop.f32.mrf.mxu2  ;;  %v1524_v46 = vpop.f32.mrf.mxu3 }
  0xc6   :  { %v354_v6 = vpop.f32.mrf.mxu0  ;;  %v1437_v7 = vpop.f32.mrf.mxu1 }
  0xc7   :  { %v1056_v8 = vpack.c.bf16 %v354_v6, %v352_v62  ;;  %v1096_v9 = vpack.c.bf16 %v1437_v7, %v1421_v63  ;;  %v704_v52 = vmul.f32 %v354_v6, %v354_v6  ;;  %v634_v57 = vadd.f32 %v1423_v0, %v354_v6 }
  0xc9   :  { %1204 = vst [vmem:[%s1787_s2 + $0x10] sm:$0xff] %v1056_v8   ;;  %v767_v58 = vadd.f32 %v1429_v4, %v704_v52 }
  0xca   :  { %1212 = vst [vmem:[%s1787_s2 + $0x50] sm:$0xff] %v1096_v9  }
  0xcd   :  { %v1474_v23 = vpop.f32.mrf.mxu2  ;;  %v1536_v51 = vpop.f32.mrf.mxu3 }
  0xce   :  { %v357_v11 = vpop.f32.mrf.mxu0  ;;  %v1449_v12 = vpop.f32.mrf.mxu1  ;;  %v1136_v25 = vpack.c.bf16 %v1474_v23, %v1462_v19  ;;  %v1176_v54 = vpack.c.bf16 %v1536_v51, %v1524_v46 }
  0xcf   :  { %v705_v56 = vmul.f32 %v357_v11, %v357_v11  ;;  %v635_v61 = vadd.f32 %v634_v57, %v357_v11 }
  0xd0   :  { %1220 = vst [vmem:[%s1787_s2 + $0x90] sm:$0xff] %v1136_v25  }
  0xd1   :  { %1228 = vst [vmem:[%s1787_s2 + $0xd0] sm:$0xff] %v1176_v54   ;;  %v768_v62 = vadd.f32 %v767_v58, %v705_v56 }
  0xd5   :  { %v1492_v31 = vpop.f32.mrf.mxu2  ;;  %v1556_v0 = vpop.f32.mrf.mxu3 }
  0xd6   :  { %v359_v15 = vpop.f32.mrf.mxu0  ;;  %v1458_v16 = vpop.f32.mrf.mxu1 }
  0xd7   :  { %v1061_v17 = vpack.c.bf16 %v359_v15, %v357_v11  ;;  %v1101_v18 = vpack.c.bf16 %v1458_v16, %v1449_v12  ;;  %v706_v59 = vmul.f32 %v359_v15, %v359_v15  ;;  %v636_v8 = vadd.f32 %v635_v61, %v359_v15 }
  0xd9   :  { %1205 = vst [vmem:[%s1787_s2 + $0x18] sm:$0xff] %v1061_v17   ;;  %v769_v6 = vadd.f32 %v768_v62, %v706_v59 }
  0xda   :  { %1213 = vst [vmem:[%s1787_s2 + $0x58] sm:$0xff] %v1101_v18  }
  0xdd   :  { %v1504_v35 = vpop.f32.mrf.mxu2 }
  0xde   :  { %v362_v21 = vpop.f32.mrf.mxu0  ;;  %v1472_v22 = vpop.f32.mrf.mxu1  ;;  %v1141_v38 = vpack.c.bf16 %v1504_v35, %v1492_v31 }
  0xdf   :  { %v707_v1 = vmul.f32 %v362_v21, %v362_v21  ;;  %v637_v25 = vadd.f32 %v636_v8, %v362_v21 }
  0xe0   :  { %1221 = vst [vmem:[%s1787_s2 + $0x98] sm:$0xff] %v1141_v38  }
  0xe1   :  { %v770_v4 = vadd.f32 %v769_v6, %v707_v1 }
  0xe5   :  { %v1522_v45 = vpop.f32.mrf.mxu2 }
  0xe6   :  { %v364_v27 = vpop.f32.mrf.mxu0  ;;  %v1488_v28 = vpop.f32.mrf.mxu1 }
  0xe7   :  { %v1066_v29 = vpack.c.bf16 %v364_v27, %v362_v21  ;;  %v1106_v30 = vpack.c.bf16 %v1488_v28, %v1472_v22  ;;  %v708_v18 = vmul.f32 %v364_v27, %v364_v27  ;;  %v638_v15 = vadd.f32 %v637_v25, %v364_v27 }
  0xe9   :  { %1206 = vst [vmem:[%s1787_s2 + $0x20] sm:$0xff] %v1066_v29   ;;  %v771_v26 = vadd.f32 %v770_v4, %v708_v18 }
  0xea   :  { %1214 = vst [vmem:[%s1787_s2 + $0x60] sm:$0xff] %v1106_v30  }
  0xed   :  { %v1534_v50 = vpop.f32.mrf.mxu2 }
  0xee   :  { %v367_v33 = vpop.f32.mrf.mxu0  ;;  %v1502_v34 = vpop.f32.mrf.mxu1  ;;  %v1146_v53 = vpack.c.bf16 %v1534_v50, %v1522_v45 }
  0xef   :  { %v709_v11 = vmul.f32 %v367_v33, %v367_v33  ;;  %v639_v30 = vadd.f32 %v638_v15, %v367_v33 }
  0xf0   :  { %1222 = vst [vmem:[%s1787_s2 + $0xa0] sm:$0xff] %v1146_v53   ;;  %v1568_v53 = vpop.f32.mrf.mxu3 }
  0xf1   :  { %v772_v38 = vadd.f32 %v771_v26, %v709_v11  ;;  %v1181_v27 = vpack.c.bf16 %v1568_v53, %v1556_v0  ;;  %v716_v26 = vmul.f32 %v1394_v42, %v1394_v42 }
  0xf3   :  { %1229 = vst [vmem:[%s1787_s2 + $0xd8] sm:$0xff] %v1181_v27  }
  0xf5   :  { %v1554_v17 = vpop.f32.mrf.mxu2 }
  0xf6   :  { %v369_v40 = vpop.f32.mrf.mxu0  ;;  %v1518_v41 = vpop.f32.mrf.mxu1 }
  0xf7   :  { %v1071_v43 = vpack.c.bf16 %v369_v40, %v367_v33  ;;  %v1111_v44 = vpack.c.bf16 %v1518_v41, %v1502_v34  ;;  %v710_v29 = vmul.f32 %v369_v40, %v369_v40  ;;  %v640_v21 = vadd.f32 %v639_v30, %v369_v40 }
  0xf8   :  { %v1586_v4 = vpop.f32.mrf.mxu3 }
  0xf9   :  { %1207 = vst [vmem:[%s1787_s2 + $0x28] sm:$0xff] %v1071_v43   ;;  %v773_v54 = vadd.f32 %v772_v38, %v710_v29  ;;  %v717_v38 = vmul.f32 %v1404_v49, %v1404_v49 }
  0xfa   :  { %1215 = vst [vmem:[%s1787_s2 + $0x68] sm:$0xff] %v1111_v44  }
  0xfd   :  { %v1566_v52 = vpop.f32.mrf.mxu2 }
  0xfe   :  { %v372_v47 = vpop.f32.mrf.mxu0  ;;  %v1532_v48 = vpop.f32.mrf.mxu1  ;;  %v1151_v57 = vpack.c.bf16 %v1566_v52, %v1554_v17 }
  0xff   :  { %v711_v39 = vmul.f32 %v372_v47, %v372_v47  ;;  %v641_v58 = vadd.f32 %v640_v21, %v372_v47 }
 0x100   :  { %1223 = vst [vmem:[%s1787_s2 + $0xa8] sm:$0xff] %v1151_v57   ;;  %v1608_v57 = vpop.f32.mrf.mxu3 }
 0x101   :  { %v774_v33 = vadd.f32 %v773_v54, %v711_v39  ;;  %v1186_v27 = vpack.c.bf16 %v1608_v57, %v1586_v4 }
 0x103   :  { %1230 = vst [vmem:[%s1787_s2 + $0xe0] sm:$0xff] %v1186_v27  }
 0x105   :  { %v1584_v25 = vpop.f32.mrf.mxu2 }
 0x106   :  { %v374_v3 = vpop.f32.mrf.mxu0  ;;  %v1550_v5 = vpop.f32.mrf.mxu1 }
 0x107   :  { %v1076_v9 = vpack.c.bf16 %v374_v3, %v372_v47  ;;  %v1116_v14 = vpack.c.bf16 %v1550_v5, %v1532_v48  ;;  %v712_v56 = vmul.f32 %v374_v3, %v374_v3  ;;  %v642_v40 = vadd.f32 %v641_v58, %v374_v3 }
 0x108   :  { %v715_v3 = vmul.f32 %v1386_v37, %v1386_v37  ;;  %v728_v27 = vmul.f32 %v1550_v5, %v1550_v5 }
 0x109   :  { %1208 = vst [vmem:[%s1787_s2 + $0x30] sm:$0xff] %v1076_v9   ;;  %v775_v61 = vadd.f32 %v774_v33, %v712_v56 }
 0x10a   :  { %1216 = vst [vmem:[%s1787_s2 + $0x70] sm:$0xff] %v1116_v14  }
 0x10d   :  { %v1606_v56 = vpop.f32.mrf.mxu2 }
 0x10e   :  { %v377_v43 = vpop.f32.mrf.mxu0  ;;  %v1564_v44 = vpop.f32.mrf.mxu1 }
 0x10f   :  { %v713_v59 = vmul.f32 %v377_v43, %v377_v43  ;;  %v643_v62 = vadd.f32 %v642_v40, %v377_v43 }
 0x111   :  { %v776_v1 = vadd.f32 %v775_v61, %v713_v59  ;;  %v721_v61 = vmul.f32 %v1449_v12, %v1449_v12 }
 0x116   :  { %v379_v8 = vpop.f32.mrf.mxu0  ;;  %v1580_v9 = vpop.f32.mrf.mxu1 }
 0x117   :  { %v1081_v14 = vpack.c.bf16 %v379_v8, %v377_v43  ;;  %v644_v6 = vadd.f32 %v643_v62, %v379_v8  ;;  %v714_v47 = vmul.f32 %v379_v8, %v379_v8  ;;  %v1121_v18 = vpack.c.bf16 %v1580_v9, %v1564_v44 }
 0x119   :  { %1209 = vst [vmem:[%s1787_s2 + $0x38] sm:$0xff] %v1081_v14   ;;  %v645_v11 = vadd.f32 %v644_v6, %v1386_v37  ;;  %v777_v15 = vadd.f32 %v776_v1, %v714_v47  ;;  %v718_v37 = vmul.f32 %v1409_v55, %v1409_v55  ;;  %v722_v1 = vmul.f32 %v1458_v16, %v1458_v16  ;;  %v1632_v6 = vpop.f32.mrf.mxu2 }
 0x11a   :  { %1217 = vst [vmem:[%s1787_s2 + $0x78] sm:$0xff] %v1121_v18   ;;  %v723_v47 = vmul.f32 %v1472_v22, %v1472_v22 }
 0x11b   :  { %v646_v29 = vadd.f32 %v645_v11, %v1394_v42  ;;  %v778_v30 = vadd.f32 %v777_v15, %v715_v3  ;;  %v1156_v42 = vpack.c.bf16 %v1606_v56, %v1584_v25  ;;  %v724_v11 = vmul.f32 %v1488_v28, %v1488_v28 }
 0x11d   :  { %v647_v39 = vadd.f32 %v646_v29, %v1404_v49  ;;  %v779_v43 = vadd.f32 %v778_v30, %v716_v26  ;;  %v719_v49 = vmul.f32 %v1421_v63, %v1421_v63  ;;  %1224 = vst [vmem:[%s1787_s2 + $0xb0] sm:$0xff] %v1156_v42   ;;  %v726_v30 = vmul.f32 %v1518_v41, %v1518_v41 }
 0x11f   :  { %v648_v21 = vadd.f32 %v647_v39, %v1409_v55  ;;  %v780_v54 = vadd.f32 %v779_v43, %v717_v38  ;;  %v720_v55 = vmul.f32 %v1437_v7, %v1437_v7 }
 0x121   :  { %v649_v58 = vadd.f32 %v648_v21, %v1421_v63  ;;  %v781_v33 = vadd.f32 %v780_v54, %v718_v37 }
 0x123   :  { %v650_v59 = vadd.f32 %v649_v58, %v1437_v7  ;;  %v782_v40 = vadd.f32 %v781_v33, %v719_v49  ;;  %v1634_v7 = vpop.f32.mrf.mxu3 }
 0x125   :  { %v783_v62 = vadd.f32 %v782_v40, %v720_v55  ;;  %v651_v63 = vadd.f32 %v650_v59, %v1449_v12  ;;  %v730_v59 = vmul.f32 %v1580_v9, %v1580_v9 }
 0x127   :  { %v652_v8 = vadd.f32 %v651_v63, %v1458_v16  ;;  %v784_v14 = vadd.f32 %v783_v62, %v721_v61  ;;  %v725_v16 = vmul.f32 %v1502_v34, %v1502_v34  ;;  %v732_v63 = vmul.f32 %v1425_v2, %v1425_v2 }
 0x129   :  { %v653_v18 = vadd.f32 %v652_v8, %v1472_v22  ;;  %v785_v3 = vadd.f32 %v784_v14, %v722_v1  ;;  %v1648_v22 = vpop.f32.mrf.mxu2  ;;  %v733_v8 = vmul.f32 %v1441_v10, %v1441_v10 }
 0x12b   :  { %v654_v12 = vadd.f32 %v653_v18, %v1488_v28  ;;  %v786_v15 = vadd.f32 %v785_v3, %v723_v47  ;;  %v1650_v43 = vpop.f32.mrf.mxu3  ;;  %v1161_v28 = vpack.c.bf16 %v1648_v22, %v1632_v6  ;;  %v734_v47 = vmul.f32 %v1451_v13, %v1451_v13 }
 0x12c   :  { %v1191_v37 = vpack.c.bf16 %v1650_v43, %v1634_v7 }
 0x12d   :  { %v655_v26 = vadd.f32 %v654_v12, %v1502_v34  ;;  %v787_v29 = vadd.f32 %v786_v15, %v724_v11  ;;  %v727_v34 = vmul.f32 %v1532_v48, %v1532_v48  ;;  %1225 = vst [vmem:[%s1787_s2 + $0xb8] sm:$0xff] %v1161_v28  }
 0x12e   :  { %1231 = vst [vmem:[%s1787_s2 + $0xe8] sm:$0xff] %v1191_v37   ;;  %v739_v37 = vmul.f32 %v1522_v45, %v1522_v45 }
 0x12f   :  { %v656_v38 = vadd.f32 %v655_v26, %v1518_v41  ;;  %v788_v39 = vadd.f32 %v787_v29, %v725_v16  ;;  %v737_v26 = vmul.f32 %v1492_v31, %v1492_v31 }
 0x131   :  { %v657_v21 = vadd.f32 %v656_v38, %v1532_v48  ;;  %v789_v54 = vadd.f32 %v788_v39, %v726_v30  ;;  %v729_v48 = vmul.f32 %v1564_v44, %v1564_v44 }
 0x133   :  { %v790_v41 = vadd.f32 %v789_v54, %v727_v34  ;;  %v658_v42 = vadd.f32 %v657_v21, %v1550_v5  ;;  %v1674_v40 = vpop.f32.mrf.mxu3  ;;  %v731_v5 = vmul.f32 %v1413_v60, %v1413_v60  ;;  %v740_v34 = vmul.f32 %v1534_v50, %v1534_v50 }
 0x135   :  { %v791_v49 = vadd.f32 %v790_v41, %v728_v27  ;;  %v659_v58 = vadd.f32 %v658_v42, %v1564_v44  ;;  %v741_v41 = vmul.f32 %v1554_v17, %v1554_v17 }
 0x137   :  { %v792_v33 = vadd.f32 %v791_v49, %v729_v48  ;;  %v660_v55 = vadd.f32 %v659_v58, %v1580_v9  ;;  %v742_v49 = vmul.f32 %v1566_v52, %v1566_v52 }
 0x139   :  { %v661_v61 = vadd.f32 %v660_v55, %v1413_v60  ;;  %v793_v62 = vadd.f32 %v792_v33, %v730_v59 }
 0x13b   :  { %v662_v1 = vadd.f32 %v661_v61, %v1425_v2  ;;  %v794_v44 = vadd.f32 %v793_v62, %v731_v5  ;;  %v1688_v60 = vpop.f32.mrf.mxu3  ;;  %v735_v2 = vmul.f32 %v1462_v19, %v1462_v19  ;;  %v745_v62 = vmul.f32 %v1632_v6, %v1632_v6 }
 0x13c   :  { %v1196_v11 = vpack.c.bf16 %v1688_v60, %v1674_v40 }
 0x13d   :  { %v663_v14 = vadd.f32 %v662_v1, %v1441_v10  ;;  %v795_v9 = vadd.f32 %v794_v44, %v732_v63  ;;  %v736_v10 = vmul.f32 %v1474_v23, %v1474_v23  ;;  %v747_v44 = vmul.f32 %v1464_v20, %v1464_v20 }
 0x13e   :  { %1232 = vst [vmem:[%s1787_s2 + $0xf0] sm:$0xff] %v1196_v11  }
 0x13f   :  { %v664_v18 = vadd.f32 %v663_v14, %v1451_v13  ;;  %v796_v3 = vadd.f32 %v795_v9, %v733_v8 }
 0x141   :  { %v665_v12 = vadd.f32 %v664_v18, %v1462_v19  ;;  %v797_v15 = vadd.f32 %v796_v3, %v734_v47  ;;  %v738_v19 = vmul.f32 %v1504_v35, %v1504_v35 }
 0x143   :  { %v666_v13 = vadd.f32 %v665_v12, %v1474_v23  ;;  %v798_v16 = vadd.f32 %v797_v15, %v735_v2  ;;  %v1707_v28 = vpop.f32.mrf.mxu3 }
 0x145   :  { %v799_v29 = vadd.f32 %v798_v16, %v736_v10  ;;  %v667_v30 = vadd.f32 %v666_v13, %v1492_v31 }
 0x147   :  { %v668_v38 = vadd.f32 %v667_v30, %v1504_v35  ;;  %v800_v39 = vadd.f32 %v799_v29, %v737_v26 }
 0x149   :  { %v669_v23 = vadd.f32 %v668_v38, %v1522_v45  ;;  %v801_v21 = vadd.f32 %v800_v39, %v738_v19 }
 0x14b   :  { %v670_v54 = vadd.f32 %v669_v23, %v1534_v50  ;;  %v802_v31 = vadd.f32 %v801_v21, %v739_v37  ;;  %v499_v45 = vpop.f32.mrf.mxu3  ;;  %v743_v50 = vmul.f32 %v1584_v25, %v1584_v25 }
 0x14c   :  { %v1201_v48 = vpack.c.bf16 %v499_v45, %v1707_v28 }
 0x14d   :  { %v671_v35 = vadd.f32 %v670_v54, %v1554_v17  ;;  %v803_v42 = vadd.f32 %v802_v31, %v740_v34  ;;  %v758_v34 = vmul.f32 %v1650_v43, %v1650_v43 }
 0x14e   :  { %1233 = vst [vmem:[%s1787_s2 + $0xf8] sm:$0xff] %v1201_v48   ;;  %v762_v48 = vmul.f32 %v499_v45, %v499_v45 }
 0x14f   :  { %v672_v27 = vadd.f32 %v671_v35, %v1566_v52  ;;  %v804_v58 = vadd.f32 %v803_v42, %v741_v41  ;;  %v744_v52 = vmul.f32 %v1606_v56, %v1606_v56  ;;  %v759_v41 = vmul.f32 %v1674_v40, %v1674_v40 }
 0x150   :  { %v760_v42 = vmul.f32 %v1688_v60, %v1688_v60 }
 0x151   :  { %v805_v33 = vadd.f32 %v804_v58, %v742_v49  ;;  %v673_v55 = vadd.f32 %v672_v27, %v1584_v25  ;;  %v746_v25 = vmul.f32 %v1648_v22, %v1648_v22  ;;  %v761_v49 = vmul.f32 %v1707_v28, %v1707_v28 }
 0x153   :  { %v806_v17 = vadd.f32 %v805_v33, %v743_v50  ;;  %v674_v59 = vadd.f32 %v673_v55, %v1606_v56  ;;  %v748_v56 = vmul.f32 %v1476_v24, %v1476_v24 }
 0x155   :  { %v807_v5 = vadd.f32 %v806_v17, %v744_v52  ;;  %v675_v61 = vadd.f32 %v674_v59, %v1632_v6  ;;  %v749_v6 = vmul.f32 %v1494_v32, %v1494_v32 }
 0x157   :  { %v808_v63 = vadd.f32 %v807_v5, %v745_v62  ;;  %v676_v1 = vadd.f32 %v675_v61, %v1648_v22  ;;  %v750_v22 = vmul.f32 %v1506_v36, %v1506_v36 }
 0x159   :  { %v677_v8 = vadd.f32 %v676_v1, %v1464_v20  ;;  %v809_v14 = vadd.f32 %v808_v63, %v746_v25  ;;  %v751_v20 = vmul.f32 %v1524_v46, %v1524_v46 }
 0x15b   :  { %v678_v9 = vadd.f32 %v677_v8, %v1476_v24  ;;  %v810_v47 = vadd.f32 %v809_v14, %v747_v44  ;;  %v752_v24 = vmul.f32 %v1536_v51, %v1536_v51 }
 0x15d   :  { %v679_v18 = vadd.f32 %v678_v9, %v1494_v32  ;;  %v811_v3 = vadd.f32 %v810_v47, %v748_v56  ;;  %v753_v32 = vmul.f32 %v1556_v0, %v1556_v0 }
 0x15f   :  { %v680_v11 = vadd.f32 %v679_v18, %v1506_v36  ;;  %v812_v2 = vadd.f32 %v811_v3, %v749_v6  ;;  %v754_v36 = vmul.f32 %v1568_v53, %v1568_v53 }
 0x161   :  { %v681_v12 = vadd.f32 %v680_v11, %v1524_v46  ;;  %v813_v15 = vadd.f32 %v812_v2, %v750_v22  ;;  %v755_v46 = vmul.f32 %v1586_v4, %v1586_v4 }
 0x163   :  { %v682_v10 = vadd.f32 %v681_v12, %v1536_v51  ;;  %v814_v13 = vadd.f32 %v813_v15, %v751_v20  ;;  %v756_v51 = vmul.f32 %v1608_v57, %v1608_v57 }
 0x165   :  { %v815_v16 = vadd.f32 %v814_v13, %v752_v24  ;;  %v683_v26 = vadd.f32 %v682_v10, %v1556_v0  ;;  %v757_v0 = vmul.f32 %v1634_v7, %v1634_v7 }
 0x167   :  { %v684_v29 = vadd.f32 %v683_v26, %v1568_v53  ;;  %v816_v30 = vadd.f32 %v815_v16, %v753_v32 }
 0x169   :  { %v685_v19 = vadd.f32 %v684_v29, %v1586_v4  ;;  %v817_v38 = vadd.f32 %v816_v30, %v754_v36 }
 0x16b   :  { %v686_v39 = vadd.f32 %v685_v19, %v1608_v57  ;;  %v818_v37 = vadd.f32 %v817_v38, %v755_v46 }
 0x16d   :  { %v687_v23 = vadd.f32 %v686_v39, %v1634_v7  ;;  %v819_v21 = vadd.f32 %v818_v37, %v756_v51 }
 0x16f   :  { %v688_v53 = vadd.f32 %v687_v23, %v1650_v43  ;;  %v820_v54 = vadd.f32 %v819_v21, %v757_v0 }
 0x171   :  { %v821_v4 = vadd.f32 %v820_v54, %v758_v34  ;;  %v689_v31 = vadd.f32 %v688_v53, %v1674_v40 }
 0x173   :  { %v822_v57 = vadd.f32 %v821_v4, %v759_v41  ;;  %v690_v35 = vadd.f32 %v689_v31, %v1688_v60 }
 0x175   :  { %v823_v7 = vadd.f32 %v822_v57, %v760_v42  ;;  %v691_v27 = vadd.f32 %v690_v35, %v1707_v28 }
 0x177   :  { %v824_v43 = vadd.f32 %v823_v7, %v761_v49  ;;  %v692_v58 = vadd.f32 %v691_v27, %v499_v45 }
 0x179   :  { %v693_v33 = vrot.slane %v692_v58, 4  ;;  %v825_v55 = vadd.f32 %v824_v43, %v762_v48 }
 0x17b   :  { %v694_v50 = vadd.f32 %v693_v33, %v692_v58  ;;  %v826_v17 = vrot.slane %v825_v55, 4 }
 0x17d   :  { %v695_v40 = vrot.slane %v694_v50, 2  ;;  %v827_v59 = vadd.f32 %v826_v17, %v825_v55 }
 0x17f   :  { %v696_v52 = vadd.f32 %v695_v40, %v694_v50  ;;  %v828_v5 = vrot.slane %v827_v59, 2 }
 0x181   :  { %v697_v61 = vrot.slane %v696_v52, 1  ;;  %v829_v62 = vadd.f32 %v828_v5, %v827_v59 }
 0x183   :  { %v830_v60 = vrot.slane %v829_v62, 1  ;;  %v698_v63 = vadd.f32 %v697_v61, %v696_v52 }
 0x185   :  { %v831_v1 = vadd.f32 %v830_v60, %v829_v62 }
 0x187   :  { %v833_v25 = vsel %vm832_vm0, %v698_v63, %v831_v1 }
 0x188   :  { %834 = vst [vmem:[%s1788_s3] sm:$0x3] %v833_v25 }

// kernel: bottleneck_block.7
= control target key start
LH: loop header
LB: loop body
LE: loop exit
PB: predicated region body
PF: predicated region fallthrough
CT: control target
= control target key end

     0   :  { %s1460_s0 = inlined_call_operand.vmem [shape: bf16[512,128], index: 0, kind: input, shape index: {}]   ;;  %s1461_s1 = inlined_call_operand.vmem [shape: f32[2,128], index: 1, kind: input, shape index: {}]   ;;  %s1462_s2 = inlined_call_operand.vmem [shape: bf16[512,128], index: 2, kind: input, shape index: {}]   ;;  %s1463_s3 = inlined_call_operand.vmem [shape: f32[512,128], index: 3, kind: output, shape index: {}]  }
   0x1   :  { %v599_v0 = vld [vmem:[%s1460_s0] sm:$0xff]   ;;  %v854_v8 = vld [vmem:[%s1460_s0 + $0x8] sm:$0xff]   ;;  %v855_v10 = vld [vmem:[%s1460_s0 + $0x10] sm:$0xff]  }
   0x2   :  { %v944_v1 = vld [vmem:[%s1461_s1] ss:$0 sm:$0xff]  ;;  %v600_v2 = vunpack.c.l.bf16 %v599_v0  ;;  %v949_v3 = vld [vmem:[%s1461_s1 + $0x1] ss:$0 sm:$0xff]  ;;  %v601_v5 = vunpack.c.h.bf16 %v599_v0  ;;  %v885_v9 = vld [vmem:[%s1462_s2 + $0x8] sm:$0xff]   ;;  %v604_v13 = vunpack.c.l.bf16 %v854_v8  ;;  %v605_v17 = vunpack.c.h.bf16 %v854_v8 }
   0x3   :  { %v727_v4 = vld [vmem:[%s1462_s2] sm:$0xff]   ;;  %v732_v14 = vunpack.c.l.bf16 %v885_v9  ;;  %v886_v15 = vld [vmem:[%s1462_s2 + $0x10] sm:$0xff]   ;;  %v856_v16 = vld [vmem:[%s1460_s0 + $0x18] sm:$0xff]   ;;  %v733_v18 = vunpack.c.h.bf16 %v885_v9  ;;  %v608_v19 = vunpack.c.l.bf16 %v855_v10  ;;  %v609_v24 = vunpack.c.h.bf16 %v855_v10 }
   0x4   :  { %v728_v6 = vunpack.c.l.bf16 %v727_v4  ;;  %v729_v7 = vunpack.c.h.bf16 %v727_v4  ;;  %v144_v11 = vmul.f32 %v944_v1, %v600_v2  ;;  %v145_v12 = vmul.f32 %v944_v1, %v601_v5  ;;  %v887_v25 = vld [vmem:[%s1462_s2 + $0x18] sm:$0xff]   ;;  %v857_v38 = vld [vmem:[%s1460_s0 + $0x20] sm:$0xff]   ;;  %v858_v52 = vld [vmem:[%s1460_s0 + $0x28] sm:$0xff]  }
   0x5   :  { %v736_v20 = vunpack.c.l.bf16 %v886_v15  ;;  %v146_v23 = vmul.f32 %v944_v1, %v604_v13  ;;  %v147_v26 = vmul.f32 %v944_v1, %v605_v17  ;;  %v148_v27 = vmul.f32 %v944_v1, %v608_v19  ;;  %v888_v47 = vld [vmem:[%s1462_s2 + $0x20] sm:$0xff]   ;;  %v889_v57 = vld [vmem:[%s1462_s2 + $0x28] sm:$0xff]   ;;  %v859_v62 = vld [vmem:[%s1460_s0 + $0x30] sm:$0xff]  }
   0x6   :  { %v210_v21 = vadd.f32 %v949_v3, %v144_v11  ;;  %v211_v22 = vadd.f32 %v949_v3, %v145_v12  ;;  %v737_v28 = vunpack.c.h.bf16 %v886_v15  ;;  %v612_v29 = vunpack.c.l.bf16 %v856_v16  ;;  %v890_v5 = vld [vmem:[%s1462_s2 + $0x30] sm:$0xff]  }
   0x7   :  { %v212_v32 = vadd.f32 %v949_v3, %v146_v23  ;;  %v149_v33 = vmul.f32 %v944_v1, %v609_v24  ;;  %v213_v34 = vadd.f32 %v949_v3, %v147_v26  ;;  %v214_v35 = vadd.f32 %v949_v3, %v148_v27  ;;  %v891_v23 = vld [vmem:[%s1462_s2 + $0x38] sm:$0xff]  }
   0x8   :  { %v402_v30 = vadd.f32 %v728_v6, %v210_v21  ;;  %v403_v31 = vadd.f32 %v729_v7, %v211_v22  ;;  %v150_v36 = vmul.f32 %v944_v1, %v612_v29  ;;  %v740_v37 = vunpack.c.l.bf16 %v887_v25 }
   0x9   :  { %v404_v41 = vadd.f32 %v732_v14, %v212_v32  ;;  %v215_v42 = vadd.f32 %v949_v3, %v149_v33  ;;  %v405_v43 = vadd.f32 %v733_v18, %v213_v34  ;;  %v406_v44 = vadd.f32 %v736_v20, %v214_v35  ;;  %v860_v18 = vld [vmem:[%s1460_s0 + $0x38] sm:$0xff]   ;;  %v861_v32 = vld [vmem:[%s1460_s0 + $0x40] sm:$0xff]  }
   0xa   :  { %v466_v39 = vmax.f32 %v402_v30, 0.0  ;;  %v467_v40 = vmax.f32 %v403_v31, 0.0  ;;  %v216_v45 = vadd.f32 %v949_v3, %v150_v36  ;;  %v613_v46 = vunpack.c.h.bf16 %v856_v16 }
   0xb   :  { %v468_v48 = vmax.f32 %v404_v41, 0.0  ;;  %v407_v49 = vadd.f32 %v737_v28, %v215_v42  ;;  %v741_v50 = vunpack.c.h.bf16 %v887_v25  ;;  %v616_v51 = vunpack.c.l.bf16 %v857_v38 }
   0xc   :  { %530 = vst [vmem:[%s1463_s3] sm:$0xff] %v466_v39  ;;  %v469_v53 = vmax.f32 %v405_v43, 0.0  ;;  %v470_v54 = vmax.f32 %v406_v44, 0.0  ;;  %v408_v55 = vadd.f32 %v740_v37, %v216_v45  ;;  %v151_v56 = vmul.f32 %v944_v1, %v613_v46  ;;  %v892_v37 = vld [vmem:[%s1462_s2 + $0x40] sm:$0xff]   ;;  %v862_v46 = vld [vmem:[%s1460_s0 + $0x48] sm:$0xff]  }
   0xd   :  { %531 = vst [vmem:[%s1463_s3 + $0x8] sm:$0xff] %v467_v40  ;;  %v471_v58 = vmax.f32 %v407_v49, 0.0  ;;  %v152_v59 = vmul.f32 %v944_v1, %v616_v51  ;;  %v744_v60 = vunpack.c.l.bf16 %v888_v47  ;;  %v617_v61 = vunpack.c.h.bf16 %v857_v38 }
   0xe   :  { %532 = vst [vmem:[%s1463_s3 + $0x10] sm:$0xff] %v468_v48  ;;  %v472_v63 = vmax.f32 %v408_v55, 0.0  ;;  %v217_v0 = vadd.f32 %v949_v3, %v151_v56  ;;  %v745_v2 = vunpack.c.h.bf16 %v888_v47  ;;  %v620_v4 = vunpack.c.l.bf16 %v858_v52  ;;  %v893_v47 = vld [vmem:[%s1462_s2 + $0x48] sm:$0xff]   ;;  %v863_v56 = vld [vmem:[%s1460_s0 + $0x50] sm:$0xff]  }
   0xf   :  { %533 = vst [vmem:[%s1463_s3 + $0x18] sm:$0xff] %v469_v53  ;;  %v218_v6 = vadd.f32 %v949_v3, %v152_v59  ;;  %v153_v7 = vmul.f32 %v944_v1, %v617_v61  ;;  %v748_v8 = vunpack.c.l.bf16 %v889_v57  ;;  %v621_v9 = vunpack.c.h.bf16 %v858_v52 }
  0x10   :  { %534 = vst [vmem:[%s1463_s3 + $0x20] sm:$0xff] %v470_v54  ;;  %v409_v10 = vadd.f32 %v741_v50, %v217_v0  ;;  %v154_v11 = vmul.f32 %v944_v1, %v620_v4  ;;  %v749_v12 = vunpack.c.h.bf16 %v889_v57  ;;  %v624_v13 = vunpack.c.l.bf16 %v859_v62 }
  0x11   :  { %535 = vst [vmem:[%s1463_s3 + $0x28] sm:$0xff] %v471_v58  ;;  %v410_v14 = vadd.f32 %v744_v60, %v218_v6  ;;  %v219_v15 = vadd.f32 %v949_v3, %v153_v7  ;;  %v155_v16 = vmul.f32 %v944_v1, %v621_v9  ;;  %v752_v17 = vunpack.c.l.bf16 %v890_v5 }
  0x12   :  { %536 = vst [vmem:[%s1463_s3 + $0x30] sm:$0xff] %v472_v63  ;;  %v473_v19 = vmax.f32 %v409_v10, 0.0  ;;  %v220_v20 = vadd.f32 %v949_v3, %v154_v11  ;;  %v156_v21 = vmul.f32 %v944_v1, %v624_v13  ;;  %v625_v22 = vunpack.c.h.bf16 %v859_v62 }
  0x13   :  { %v474_v24 = vmax.f32 %v410_v14, 0.0  ;;  %v411_v25 = vadd.f32 %v745_v2, %v219_v15  ;;  %v221_v26 = vadd.f32 %v949_v3, %v155_v16  ;;  %v753_v27 = vunpack.c.h.bf16 %v890_v5  ;;  %v894_v2 = vld [vmem:[%s1462_s2 + $0x50] sm:$0xff]  }
  0x14   :  { %537 = vst [vmem:[%s1463_s3 + $0x38] sm:$0xff] %v473_v19  ;;  %v412_v28 = vadd.f32 %v748_v8, %v220_v20  ;;  %v222_v29 = vadd.f32 %v949_v3, %v156_v21  ;;  %v157_v30 = vmul.f32 %v944_v1, %v625_v22  ;;  %v628_v31 = vunpack.c.l.bf16 %v860_v18 }
  0x15   :  { %538 = vst [vmem:[%s1463_s3 + $0x40] sm:$0xff] %v474_v24  ;;  %v475_v33 = vmax.f32 %v411_v25, 0.0  ;;  %v413_v34 = vadd.f32 %v749_v12, %v221_v26  ;;  %v756_v35 = vunpack.c.l.bf16 %v891_v23  ;;  %v629_v36 = vunpack.c.h.bf16 %v860_v18  ;;  %v864_v12 = vld [vmem:[%s1460_s0 + $0x58] sm:$0xff]   ;;  %v865_v26 = vld [vmem:[%s1460_s0 + $0x60] sm:$0xff]  }
  0x16   :  { %v476_v38 = vmax.f32 %v412_v28, 0.0  ;;  %v414_v39 = vadd.f32 %v752_v17, %v222_v29  ;;  %v223_v40 = vadd.f32 %v949_v3, %v157_v30  ;;  %v158_v41 = vmul.f32 %v944_v1, %v628_v31  ;;  %v895_v17 = vld [vmem:[%s1462_s2 + $0x58] sm:$0xff]   ;;  %v896_v31 = vld [vmem:[%s1462_s2 + $0x60] sm:$0xff]  }
  0x17   :  { %539 = vst [vmem:[%s1463_s3 + $0x48] sm:$0xff] %v475_v33  ;;  %v477_v42 = vmax.f32 %v413_v34, 0.0  ;;  %v159_v43 = vmul.f32 %v944_v1, %v629_v36  ;;  %v757_v44 = vunpack.c.h.bf16 %v891_v23  ;;  %v632_v45 = vunpack.c.l.bf16 %v861_v32 }
  0x18   :  { %540 = vst [vmem:[%s1463_s3 + $0x50] sm:$0xff] %v476_v38  ;;  %v478_v48 = vmax.f32 %v414_v39, 0.0  ;;  %v415_v49 = vadd.f32 %v753_v27, %v223_v40  ;;  %v224_v50 = vadd.f32 %v949_v3, %v158_v41  ;;  %v760_v51 = vunpack.c.l.bf16 %v892_v37  ;;  %v866_v40 = vld [vmem:[%s1460_s0 + $0x68] sm:$0xff]  }
  0x19   :  { %541 = vst [vmem:[%s1463_s3 + $0x58] sm:$0xff] %v477_v42  ;;  %v225_v52 = vadd.f32 %v949_v3, %v159_v43  ;;  %v160_v53 = vmul.f32 %v944_v1, %v632_v45  ;;  %v633_v54 = vunpack.c.h.bf16 %v861_v32  ;;  %v761_v55 = vunpack.c.h.bf16 %v892_v37  ;;  %v897_v41 = vld [vmem:[%s1462_s2 + $0x68] sm:$0xff]  }
  0x1a   :  { %542 = vst [vmem:[%s1463_s3 + $0x60] sm:$0xff] %v478_v48  ;;  %v479_v57 = vmax.f32 %v415_v49, 0.0  ;;  %v416_v58 = vadd.f32 %v756_v35, %v224_v50  ;;  %v636_v59 = vunpack.c.l.bf16 %v862_v46  ;;  %v764_v60 = vunpack.c.l.bf16 %v893_v47  ;;  %v867_v50 = vld [vmem:[%s1460_s0 + $0x70] sm:$0xff]  }
  0x1b   :  { %v417_v61 = vadd.f32 %v757_v44, %v225_v52  ;;  %v226_v62 = vadd.f32 %v949_v3, %v160_v53  ;;  %v161_v63 = vmul.f32 %v944_v1, %v633_v54  ;;  %v637_v0 = vunpack.c.h.bf16 %v862_v46 }
  0x1c   :  { %543 = vst [vmem:[%s1463_s3 + $0x68] sm:$0xff] %v479_v57  ;;  %v480_v4 = vmax.f32 %v416_v58, 0.0  ;;  %v162_v5 = vmul.f32 %v944_v1, %v636_v59  ;;  %v765_v6 = vunpack.c.h.bf16 %v893_v47  ;;  %v640_v7 = vunpack.c.l.bf16 %v863_v56  ;;  %v898_v59 = vld [vmem:[%s1462_s2 + $0x70] sm:$0xff]  }
  0x1d   :  { %v481_v8 = vmax.f32 %v417_v61, 0.0  ;;  %v418_v9 = vadd.f32 %v760_v51, %v226_v62  ;;  %v227_v10 = vadd.f32 %v949_v3, %v161_v63  ;;  %v163_v11 = vmul.f32 %v944_v1, %v637_v0 }
  0x1e   :  { %544 = vst [vmem:[%s1463_s3 + $0x70] sm:$0xff] %v480_v4  ;;  %v228_v13 = vadd.f32 %v949_v3, %v162_v5  ;;  %v164_v14 = vmul.f32 %v944_v1, %v640_v7  ;;  %v768_v15 = vunpack.c.l.bf16 %v894_v2  ;;  %v641_v16 = vunpack.c.h.bf16 %v863_v56 }
  0x1f   :  { %545 = vst [vmem:[%s1463_s3 + $0x78] sm:$0xff] %v481_v8  ;;  %v482_v18 = vmax.f32 %v418_v9, 0.0  ;;  %v419_v19 = vadd.f32 %v761_v55, %v227_v10  ;;  %v229_v20 = vadd.f32 %v949_v3, %v163_v11  ;;  %v769_v21 = vunpack.c.h.bf16 %v894_v2  ;;  %v899_v11 = vld [vmem:[%s1462_s2 + $0x78] sm:$0xff]  }
  0x20   :  { %v420_v22 = vadd.f32 %v764_v60, %v228_v13  ;;  %v230_v23 = vadd.f32 %v949_v3, %v164_v14  ;;  %v165_v24 = vmul.f32 %v944_v1, %v641_v16  ;;  %v644_v25 = vunpack.c.l.bf16 %v864_v12 }
  0x21   :  { %546 = vst [vmem:[%s1463_s3 + $0x80] sm:$0xff] %v482_v18  ;;  %v483_v27 = vmax.f32 %v419_v19, 0.0  ;;  %v421_v28 = vadd.f32 %v765_v6, %v229_v20  ;;  %v772_v29 = vunpack.c.l.bf16 %v895_v17  ;;  %v645_v30 = vunpack.c.h.bf16 %v864_v12  ;;  %v868_v6 = vld [vmem:[%s1460_s0 + $0x78] sm:$0xff]   ;;  %v869_v20 = vld [vmem:[%s1460_s0 + $0x80] sm:$0xff]  }
  0x22   :  { %v484_v32 = vmax.f32 %v420_v22, 0.0  ;;  %v422_v33 = vadd.f32 %v768_v15, %v230_v23  ;;  %v231_v34 = vadd.f32 %v949_v3, %v165_v24  ;;  %v166_v35 = vmul.f32 %v944_v1, %v644_v25  ;;  %v900_v25 = vld [vmem:[%s1462_s2 + $0x80] sm:$0xff]  }
  0x23   :  { %547 = vst [vmem:[%s1463_s3 + $0x88] sm:$0xff] %v483_v27  ;;  %v485_v36 = vmax.f32 %v421_v28, 0.0  ;;  %v167_v37 = vmul.f32 %v944_v1, %v645_v30  ;;  %v773_v38 = vunpack.c.h.bf16 %v895_v17  ;;  %v648_v39 = vunpack.c.l.bf16 %v865_v26 }
  0x24   :  { %548 = vst [vmem:[%s1463_s3 + $0x90] sm:$0xff] %v484_v32  ;;  %v486_v42 = vmax.f32 %v422_v33, 0.0  ;;  %v423_v43 = vadd.f32 %v769_v21, %v231_v34  ;;  %v232_v44 = vadd.f32 %v949_v3, %v166_v35  ;;  %v776_v45 = vunpack.c.l.bf16 %v896_v31  ;;  %v870_v34 = vld [vmem:[%s1460_s0 + $0x88] sm:$0xff]  }
  0x25   :  { %549 = vst [vmem:[%s1463_s3 + $0x98] sm:$0xff] %v485_v36  ;;  %v233_v46 = vadd.f32 %v949_v3, %v167_v37  ;;  %v168_v47 = vmul.f32 %v944_v1, %v648_v39  ;;  %v649_v48 = vunpack.c.h.bf16 %v865_v26  ;;  %v777_v49 = vunpack.c.h.bf16 %v896_v31  ;;  %v901_v35 = vld [vmem:[%s1462_s2 + $0x88] sm:$0xff]  }
  0x26   :  { %550 = vst [vmem:[%s1463_s3 + $0xa0] sm:$0xff] %v486_v42  ;;  %v487_v51 = vmax.f32 %v423_v43, 0.0  ;;  %v424_v52 = vadd.f32 %v772_v29, %v232_v44  ;;  %v652_v53 = vunpack.c.l.bf16 %v866_v40  ;;  %v780_v54 = vunpack.c.l.bf16 %v897_v41  ;;  %v871_v44 = vld [vmem:[%s1460_s0 + $0x90] sm:$0xff]  }
  0x27   :  { %v425_v55 = vadd.f32 %v773_v38, %v233_v46  ;;  %v234_v56 = vadd.f32 %v949_v3, %v168_v47  ;;  %v169_v57 = vmul.f32 %v944_v1, %v649_v48  ;;  %v653_v58 = vunpack.c.h.bf16 %v866_v40 }
  0x28   :  { %551 = vst [vmem:[%s1463_s3 + $0xa8] sm:$0xff] %v487_v51  ;;  %v488_v60 = vmax.f32 %v424_v52, 0.0  ;;  %v170_v61 = vmul.f32 %v944_v1, %v652_v53  ;;  %v781_v62 = vunpack.c.h.bf16 %v897_v41  ;;  %v656_v63 = vunpack.c.l.bf16 %v867_v50  ;;  %v902_v53 = vld [vmem:[%s1462_s2 + $0x90] sm:$0xff]  }
  0x29   :  { %v489_v0 = vmax.f32 %v425_v55, 0.0  ;;  %v426_v2 = vadd.f32 %v776_v45, %v234_v56  ;;  %v235_v4 = vadd.f32 %v949_v3, %v169_v57  ;;  %v171_v5 = vmul.f32 %v944_v1, %v653_v58 }
  0x2a   :  { %552 = vst [vmem:[%s1463_s3 + $0xb0] sm:$0xff] %v488_v60  ;;  %v236_v7 = vadd.f32 %v949_v3, %v170_v61  ;;  %v172_v8 = vmul.f32 %v944_v1, %v656_v63  ;;  %v784_v9 = vunpack.c.l.bf16 %v898_v59  ;;  %v657_v10 = vunpack.c.h.bf16 %v867_v50 }
  0x2b   :  { %553 = vst [vmem:[%s1463_s3 + $0xb8] sm:$0xff] %v489_v0  ;;  %v490_v12 = vmax.f32 %v426_v2, 0.0  ;;  %v427_v13 = vadd.f32 %v777_v49, %v235_v4  ;;  %v237_v14 = vadd.f32 %v949_v3, %v171_v5  ;;  %v785_v15 = vunpack.c.h.bf16 %v898_v59  ;;  %v903_v5 = vld [vmem:[%s1462_s2 + $0x98] sm:$0xff]  }
  0x2c   :  { %v428_v16 = vadd.f32 %v780_v54, %v236_v7  ;;  %v238_v17 = vadd.f32 %v949_v3, %v172_v8  ;;  %v173_v18 = vmul.f32 %v944_v1, %v657_v10  ;;  %v660_v19 = vunpack.c.l.bf16 %v868_v6 }
  0x2d   :  { %554 = vst [vmem:[%s1463_s3 + $0xc0] sm:$0xff] %v490_v12  ;;  %v491_v21 = vmax.f32 %v427_v13, 0.0  ;;  %v429_v22 = vadd.f32 %v781_v62, %v237_v14  ;;  %v788_v23 = vunpack.c.l.bf16 %v899_v11  ;;  %v661_v24 = vunpack.c.h.bf16 %v868_v6  ;;  %v872_v62 = vld [vmem:[%s1460_s0 + $0x98] sm:$0xff]   ;;  %v873_v14 = vld [vmem:[%s1460_s0 + $0xa0] sm:$0xff]  }
  0x2e   :  { %v492_v26 = vmax.f32 %v428_v16, 0.0  ;;  %v430_v27 = vadd.f32 %v784_v9, %v238_v17  ;;  %v239_v28 = vadd.f32 %v949_v3, %v173_v18  ;;  %v174_v29 = vmul.f32 %v944_v1, %v660_v19  ;;  %v904_v19 = vld [vmem:[%s1462_s2 + $0xa0] sm:$0xff]  }
  0x2f   :  { %555 = vst [vmem:[%s1463_s3 + $0xc8] sm:$0xff] %v491_v21  ;;  %v493_v30 = vmax.f32 %v429_v22, 0.0  ;;  %v175_v31 = vmul.f32 %v944_v1, %v661_v24  ;;  %v789_v32 = vunpack.c.h.bf16 %v899_v11  ;;  %v664_v33 = vunpack.c.l.bf16 %v869_v20 }
  0x30   :  { %556 = vst [vmem:[%s1463_s3 + $0xd0] sm:$0xff] %v492_v26  ;;  %v494_v36 = vmax.f32 %v430_v27, 0.0  ;;  %v431_v37 = vadd.f32 %v785_v15, %v239_v28  ;;  %v240_v38 = vadd.f32 %v949_v3, %v174_v29  ;;  %v792_v39 = vunpack.c.l.bf16 %v900_v25  ;;  %v874_v28 = vld [vmem:[%s1460_s0 + $0xa8] sm:$0xff]  }
  0x31   :  { %557 = vst [vmem:[%s1463_s3 + $0xd8] sm:$0xff] %v493_v30  ;;  %v241_v40 = vadd.f32 %v949_v3, %v175_v31  ;;  %v176_v41 = vmul.f32 %v944_v1, %v664_v33  ;;  %v665_v42 = vunpack.c.h.bf16 %v869_v20  ;;  %v793_v43 = vunpack.c.h.bf16 %v900_v25  ;;  %v905_v29 = vld [vmem:[%s1462_s2 + $0xa8] sm:$0xff]  }
  0x32   :  { %558 = vst [vmem:[%s1463_s3 + $0xe0] sm:$0xff] %v494_v36  ;;  %v495_v45 = vmax.f32 %v431_v37, 0.0  ;;  %v432_v46 = vadd.f32 %v788_v23, %v240_v38  ;;  %v668_v47 = vunpack.c.l.bf16 %v870_v34  ;;  %v796_v48 = vunpack.c.l.bf16 %v901_v35  ;;  %v875_v38 = vld [vmem:[%s1460_s0 + $0xb0] sm:$0xff]  }
  0x33   :  { %v433_v49 = vadd.f32 %v789_v32, %v241_v40  ;;  %v242_v50 = vadd.f32 %v949_v3, %v176_v41  ;;  %v177_v51 = vmul.f32 %v944_v1, %v665_v42  ;;  %v669_v52 = vunpack.c.h.bf16 %v870_v34 }
  0x34   :  { %559 = vst [vmem:[%s1463_s3 + $0xe8] sm:$0xff] %v495_v45  ;;  %v496_v54 = vmax.f32 %v432_v46, 0.0  ;;  %v178_v55 = vmul.f32 %v944_v1, %v668_v47  ;;  %v797_v56 = vunpack.c.h.bf16 %v901_v35  ;;  %v672_v57 = vunpack.c.l.bf16 %v871_v44  ;;  %v906_v47 = vld [vmem:[%s1462_s2 + $0xb0] sm:$0xff]  }
  0x35   :  { %v497_v58 = vmax.f32 %v433_v49, 0.0  ;;  %v434_v59 = vadd.f32 %v792_v39, %v242_v50  ;;  %v243_v60 = vadd.f32 %v949_v3, %v177_v51  ;;  %v179_v61 = vmul.f32 %v944_v1, %v669_v52 }
  0x36   :  { %560 = vst [vmem:[%s1463_s3 + $0xf0] sm:$0xff] %v496_v54  ;;  %v244_v63 = vadd.f32 %v949_v3, %v178_v55  ;;  %v180_v0 = vmul.f32 %v944_v1, %v672_v57  ;;  %v800_v2 = vunpack.c.l.bf16 %v902_v53  ;;  %v673_v4 = vunpack.c.h.bf16 %v871_v44 }
  0x37   :  { %561 = vst [vmem:[%s1463_s3 + $0xf8] sm:$0xff] %v497_v58  ;;  %v498_v6 = vmax.f32 %v434_v59, 0.0  ;;  %v435_v7 = vadd.f32 %v793_v43, %v243_v60  ;;  %v245_v8 = vadd.f32 %v949_v3, %v179_v61  ;;  %v801_v9 = vunpack.c.h.bf16 %v902_v53  ;;  %v907_v61 = vld [vmem:[%s1462_s2 + $0xb8] sm:$0xff]  }
  0x38   :  { %v436_v10 = vadd.f32 %v796_v48, %v244_v63  ;;  %v246_v11 = vadd.f32 %v949_v3, %v180_v0  ;;  %v181_v12 = vmul.f32 %v944_v1, %v673_v4  ;;  %v676_v13 = vunpack.c.l.bf16 %v872_v62 }
  0x39   :  { %562 = vst [vmem:[%s1463_s3 + $0x100] sm:$0xff] %v498_v6  ;;  %v499_v15 = vmax.f32 %v435_v7, 0.0  ;;  %v437_v16 = vadd.f32 %v797_v56, %v245_v8  ;;  %v804_v17 = vunpack.c.l.bf16 %v903_v5  ;;  %v677_v18 = vunpack.c.h.bf16 %v872_v62  ;;  %v876_v56 = vld [vmem:[%s1460_s0 + $0xb8] sm:$0xff]   ;;  %v877_v8 = vld [vmem:[%s1460_s0 + $0xc0] sm:$0xff]  }
  0x3a   :  { %v500_v20 = vmax.f32 %v436_v10, 0.0  ;;  %v438_v21 = vadd.f32 %v800_v2, %v246_v11  ;;  %v247_v22 = vadd.f32 %v949_v3, %v181_v12  ;;  %v182_v23 = vmul.f32 %v944_v1, %v676_v13  ;;  %v908_v13 = vld [vmem:[%s1462_s2 + $0xc0] sm:$0xff]  }
  0x3b   :  { %563 = vst [vmem:[%s1463_s3 + $0x108] sm:$0xff] %v499_v15  ;;  %v501_v24 = vmax.f32 %v437_v16, 0.0  ;;  %v183_v25 = vmul.f32 %v944_v1, %v677_v18  ;;  %v805_v26 = vunpack.c.h.bf16 %v903_v5  ;;  %v680_v27 = vunpack.c.l.bf16 %v873_v14 }
  0x3c   :  { %564 = vst [vmem:[%s1463_s3 + $0x110] sm:$0xff] %v500_v20  ;;  %v502_v30 = vmax.f32 %v438_v21, 0.0  ;;  %v439_v31 = vadd.f32 %v801_v9, %v247_v22  ;;  %v248_v32 = vadd.f32 %v949_v3, %v182_v23  ;;  %v808_v33 = vunpack.c.l.bf16 %v904_v19  ;;  %v878_v22 = vld [vmem:[%s1460_s0 + $0xc8] sm:$0xff]  }
  0x3d   :  { %565 = vst [vmem:[%s1463_s3 + $0x118] sm:$0xff] %v501_v24  ;;  %v249_v34 = vadd.f32 %v949_v3, %v183_v25  ;;  %v184_v35 = vmul.f32 %v944_v1, %v680_v27  ;;  %v681_v36 = vunpack.c.h.bf16 %v873_v14  ;;  %v809_v37 = vunpack.c.h.bf16 %v904_v19  ;;  %v909_v23 = vld [vmem:[%s1462_s2 + $0xc8] sm:$0xff]  }
  0x3e   :  { %566 = vst [vmem:[%s1463_s3 + $0x120] sm:$0xff] %v502_v30  ;;  %v503_v39 = vmax.f32 %v439_v31, 0.0  ;;  %v440_v40 = vadd.f32 %v804_v17, %v248_v32  ;;  %v684_v41 = vunpack.c.l.bf16 %v874_v28  ;;  %v812_v42 = vunpack.c.l.bf16 %v905_v29  ;;  %v879_v32 = vld [vmem:[%s1460_s0 + $0xd0] sm:$0xff]  }
  0x3f   :  { %v441_v43 = vadd.f32 %v805_v26, %v249_v34  ;;  %v250_v44 = vadd.f32 %v949_v3, %v184_v35  ;;  %v185_v45 = vmul.f32 %v944_v1, %v681_v36  ;;  %v685_v46 = vunpack.c.h.bf16 %v874_v28 }
  0x40   :  { %567 = vst [vmem:[%s1463_s3 + $0x128] sm:$0xff] %v503_v39  ;;  %v504_v48 = vmax.f32 %v440_v40, 0.0  ;;  %v186_v49 = vmul.f32 %v944_v1, %v684_v41  ;;  %v813_v50 = vunpack.c.h.bf16 %v905_v29  ;;  %v688_v51 = vunpack.c.l.bf16 %v875_v38  ;;  %v910_v41 = vld [vmem:[%s1462_s2 + $0xd0] sm:$0xff]  }
  0x41   :  { %v505_v52 = vmax.f32 %v441_v43, 0.0  ;;  %v442_v53 = vadd.f32 %v808_v33, %v250_v44  ;;  %v251_v54 = vadd.f32 %v949_v3, %v185_v45  ;;  %v187_v55 = vmul.f32 %v944_v1, %v685_v46 }
  0x42   :  { %568 = vst [vmem:[%s1463_s3 + $0x130] sm:$0xff] %v504_v48  ;;  %v252_v57 = vadd.f32 %v949_v3, %v186_v49  ;;  %v188_v58 = vmul.f32 %v944_v1, %v688_v51  ;;  %v816_v59 = vunpack.c.l.bf16 %v906_v47  ;;  %v689_v60 = vunpack.c.h.bf16 %v875_v38 }
  0x43   :  { %569 = vst [vmem:[%s1463_s3 + $0x138] sm:$0xff] %v505_v52  ;;  %v506_v62 = vmax.f32 %v442_v53, 0.0  ;;  %v443_v63 = vadd.f32 %v809_v37, %v251_v54  ;;  %v253_v0 = vadd.f32 %v949_v3, %v187_v55  ;;  %v817_v2 = vunpack.c.h.bf16 %v906_v47  ;;  %v911_v55 = vld [vmem:[%s1462_s2 + $0xd8] sm:$0xff]  }
  0x44   :  { %v444_v4 = vadd.f32 %v812_v42, %v252_v57  ;;  %v254_v5 = vadd.f32 %v949_v3, %v188_v58  ;;  %v189_v6 = vmul.f32 %v944_v1, %v689_v60  ;;  %v692_v7 = vunpack.c.l.bf16 %v876_v56 }
  0x45   :  { %570 = vst [vmem:[%s1463_s3 + $0x140] sm:$0xff] %v506_v62  ;;  %v507_v9 = vmax.f32 %v443_v63, 0.0  ;;  %v445_v10 = vadd.f32 %v813_v50, %v253_v0  ;;  %v820_v11 = vunpack.c.l.bf16 %v907_v61  ;;  %v693_v12 = vunpack.c.h.bf16 %v876_v56  ;;  %v880_v50 = vld [vmem:[%s1460_s0 + $0xd8] sm:$0xff]   ;;  %v881_v0 = vld [vmem:[%s1460_s0 + $0xe0] sm:$0xff]  }
  0x46   :  { %v508_v14 = vmax.f32 %v444_v4, 0.0  ;;  %v446_v15 = vadd.f32 %v816_v59, %v254_v5  ;;  %v255_v16 = vadd.f32 %v949_v3, %v189_v6  ;;  %v190_v17 = vmul.f32 %v944_v1, %v692_v7  ;;  %v912_v7 = vld [vmem:[%s1462_s2 + $0xe0] sm:$0xff]  }
  0x47   :  { %571 = vst [vmem:[%s1463_s3 + $0x148] sm:$0xff] %v507_v9  ;;  %v509_v18 = vmax.f32 %v445_v10, 0.0  ;;  %v191_v19 = vmul.f32 %v944_v1, %v693_v12  ;;  %v821_v20 = vunpack.c.h.bf16 %v907_v61  ;;  %v696_v21 = vunpack.c.l.bf16 %v877_v8 }
  0x48   :  { %572 = vst [vmem:[%s1463_s3 + $0x150] sm:$0xff] %v508_v14  ;;  %v510_v24 = vmax.f32 %v446_v15, 0.0  ;;  %v447_v25 = vadd.f32 %v817_v2, %v255_v16  ;;  %v256_v26 = vadd.f32 %v949_v3, %v190_v17  ;;  %v824_v27 = vunpack.c.l.bf16 %v908_v13  ;;  %v882_v16 = vld [vmem:[%s1460_s0 + $0xe8] sm:$0xff]  }
  0x49   :  { %573 = vst [vmem:[%s1463_s3 + $0x158] sm:$0xff] %v509_v18  ;;  %v257_v28 = vadd.f32 %v949_v3, %v191_v19  ;;  %v192_v29 = vmul.f32 %v944_v1, %v696_v21  ;;  %v697_v30 = vunpack.c.h.bf16 %v877_v8  ;;  %v825_v31 = vunpack.c.h.bf16 %v908_v13  ;;  %v913_v17 = vld [vmem:[%s1462_s2 + $0xe8] sm:$0xff]  }
  0x4a   :  { %574 = vst [vmem:[%s1463_s3 + $0x160] sm:$0xff] %v510_v24  ;;  %v511_v33 = vmax.f32 %v447_v25, 0.0  ;;  %v448_v34 = vadd.f32 %v820_v11, %v256_v26  ;;  %v700_v35 = vunpack.c.l.bf16 %v878_v22  ;;  %v828_v36 = vunpack.c.l.bf16 %v909_v23  ;;  %v883_v26 = vld [vmem:[%s1460_s0 + $0xf0] sm:$0xff]  }
  0x4b   :  { %v449_v37 = vadd.f32 %v821_v20, %v257_v28  ;;  %v258_v38 = vadd.f32 %v949_v3, %v192_v29  ;;  %v193_v39 = vmul.f32 %v944_v1, %v697_v30  ;;  %v701_v40 = vunpack.c.h.bf16 %v878_v22 }
  0x4c   :  { %575 = vst [vmem:[%s1463_s3 + $0x168] sm:$0xff] %v511_v33  ;;  %v512_v42 = vmax.f32 %v448_v34, 0.0  ;;  %v194_v43 = vmul.f32 %v944_v1, %v700_v35  ;;  %v829_v44 = vunpack.c.h.bf16 %v909_v23  ;;  %v704_v45 = vunpack.c.l.bf16 %v879_v32  ;;  %v914_v35 = vld [vmem:[%s1462_s2 + $0xf0] sm:$0xff]  }
  0x4d   :  { %v513_v46 = vmax.f32 %v449_v37, 0.0  ;;  %v450_v47 = vadd.f32 %v824_v27, %v258_v38  ;;  %v259_v48 = vadd.f32 %v949_v3, %v193_v39  ;;  %v195_v49 = vmul.f32 %v944_v1, %v701_v40 }
  0x4e   :  { %576 = vst [vmem:[%s1463_s3 + $0x170] sm:$0xff] %v512_v42  ;;  %v260_v51 = vadd.f32 %v949_v3, %v194_v43  ;;  %v196_v52 = vmul.f32 %v944_v1, %v704_v45  ;;  %v832_v53 = vunpack.c.l.bf16 %v910_v41  ;;  %v705_v54 = vunpack.c.h.bf16 %v879_v32 }
  0x4f   :  { %577 = vst [vmem:[%s1463_s3 + $0x178] sm:$0xff] %v513_v46  ;;  %v514_v56 = vmax.f32 %v450_v47, 0.0  ;;  %v451_v57 = vadd.f32 %v825_v31, %v259_v48  ;;  %v261_v58 = vadd.f32 %v949_v3, %v195_v49  ;;  %v833_v59 = vunpack.c.h.bf16 %v910_v41  ;;  %v915_v49 = vld [vmem:[%s1462_s2 + $0xf8] sm:$0xff]  }
  0x50   :  { %v452_v60 = vadd.f32 %v828_v36, %v260_v51  ;;  %v262_v61 = vadd.f32 %v949_v3, %v196_v52  ;;  %v197_v62 = vmul.f32 %v944_v1, %v705_v54  ;;  %v708_v63 = vunpack.c.l.bf16 %v880_v50 }
  0x51   :  { %578 = vst [vmem:[%s1463_s3 + $0x180] sm:$0xff] %v514_v56  ;;  %v515_v2 = vmax.f32 %v451_v57, 0.0  ;;  %v453_v4 = vadd.f32 %v829_v44, %v261_v58  ;;  %v836_v5 = vunpack.c.l.bf16 %v911_v55  ;;  %v709_v6 = vunpack.c.h.bf16 %v880_v50  ;;  %v884_v44 = vld [vmem:[%s1460_s0 + $0xf8] sm:$0xff]  }
  0x52   :  { %v516_v8 = vmax.f32 %v452_v60, 0.0  ;;  %v454_v9 = vadd.f32 %v832_v53, %v262_v61  ;;  %v263_v10 = vadd.f32 %v949_v3, %v197_v62  ;;  %v198_v11 = vmul.f32 %v944_v1, %v708_v63 }
  0x53   :  { %579 = vst [vmem:[%s1463_s3 + $0x188] sm:$0xff] %v515_v2  ;;  %v517_v12 = vmax.f32 %v453_v4, 0.0  ;;  %v199_v13 = vmul.f32 %v944_v1, %v709_v6  ;;  %v837_v14 = vunpack.c.h.bf16 %v911_v55  ;;  %v712_v15 = vunpack.c.l.bf16 %v881_v0 }
  0x54   :  { %580 = vst [vmem:[%s1463_s3 + $0x190] sm:$0xff] %v516_v8  ;;  %v518_v18 = vmax.f32 %v454_v9, 0.0  ;;  %v455_v19 = vadd.f32 %v833_v59, %v263_v10  ;;  %v264_v20 = vadd.f32 %v949_v3, %v198_v11  ;;  %v840_v21 = vunpack.c.l.bf16 %v912_v7 }
  0x55   :  { %581 = vst [vmem:[%s1463_s3 + $0x198] sm:$0xff] %v517_v12  ;;  %v265_v22 = vadd.f32 %v949_v3, %v199_v13  ;;  %v200_v23 = vmul.f32 %v944_v1, %v712_v15  ;;  %v713_v24 = vunpack.c.h.bf16 %v881_v0  ;;  %v841_v25 = vunpack.c.h.bf16 %v912_v7 }
  0x56   :  { %582 = vst [vmem:[%s1463_s3 + $0x1a0] sm:$0xff] %v518_v18  ;;  %v519_v27 = vmax.f32 %v455_v19, 0.0  ;;  %v456_v28 = vadd.f32 %v836_v5, %v264_v20  ;;  %v716_v29 = vunpack.c.l.bf16 %v882_v16  ;;  %v844_v30 = vunpack.c.l.bf16 %v913_v17 }
  0x57   :  { %v457_v31 = vadd.f32 %v837_v14, %v265_v22  ;;  %v266_v32 = vadd.f32 %v949_v3, %v200_v23  ;;  %v201_v33 = vmul.f32 %v944_v1, %v713_v24  ;;  %v717_v34 = vunpack.c.h.bf16 %v882_v16 }
  0x58   :  { %583 = vst [vmem:[%s1463_s3 + $0x1a8] sm:$0xff] %v519_v27  ;;  %v520_v36 = vmax.f32 %v456_v28, 0.0  ;;  %v202_v37 = vmul.f32 %v944_v1, %v716_v29  ;;  %v845_v38 = vunpack.c.h.bf16 %v913_v17  ;;  %v720_v39 = vunpack.c.l.bf16 %v883_v26 }
  0x59   :  { %v521_v40 = vmax.f32 %v457_v31, 0.0  ;;  %v458_v41 = vadd.f32 %v840_v21, %v266_v32  ;;  %v267_v42 = vadd.f32 %v949_v3, %v201_v33  ;;  %v203_v43 = vmul.f32 %v944_v1, %v717_v34 }
  0x5a   :  { %584 = vst [vmem:[%s1463_s3 + $0x1b0] sm:$0xff] %v520_v36  ;;  %v268_v45 = vadd.f32 %v949_v3, %v202_v37  ;;  %v204_v46 = vmul.f32 %v944_v1, %v720_v39  ;;  %v848_v47 = vunpack.c.l.bf16 %v914_v35  ;;  %v721_v48 = vunpack.c.h.bf16 %v883_v26 }
  0x5b   :  { %585 = vst [vmem:[%s1463_s3 + $0x1b8] sm:$0xff] %v521_v40  ;;  %v522_v50 = vmax.f32 %v458_v41, 0.0  ;;  %v459_v51 = vadd.f32 %v841_v25, %v267_v42  ;;  %v269_v52 = vadd.f32 %v949_v3, %v203_v43  ;;  %v849_v53 = vunpack.c.h.bf16 %v914_v35 }
  0x5c   :  { %v460_v54 = vadd.f32 %v844_v30, %v268_v45  ;;  %v270_v55 = vadd.f32 %v949_v3, %v204_v46  ;;  %v205_v56 = vmul.f32 %v944_v1, %v721_v48  ;;  %v724_v57 = vunpack.c.l.bf16 %v884_v44 }
  0x5d   :  { %586 = vst [vmem:[%s1463_s3 + $0x1c0] sm:$0xff] %v522_v50  ;;  %v523_v58 = vmax.f32 %v459_v51, 0.0  ;;  %v461_v59 = vadd.f32 %v845_v38, %v269_v52  ;;  %v852_v60 = vunpack.c.l.bf16 %v915_v49  ;;  %v725_v61 = vunpack.c.h.bf16 %v884_v44 }
  0x5e   :  { %v524_v62 = vmax.f32 %v460_v54, 0.0  ;;  %v462_v63 = vadd.f32 %v848_v47, %v270_v55  ;;  %v271_v0 = vadd.f32 %v949_v3, %v205_v56  ;;  %v206_v2 = vmul.f32 %v944_v1, %v724_v57 }
  0x5f   :  { %587 = vst [vmem:[%s1463_s3 + $0x1c8] sm:$0xff] %v523_v58  ;;  %v525_v4 = vmax.f32 %v461_v59, 0.0  ;;  %v207_v5 = vmul.f32 %v944_v1, %v725_v61  ;;  %v853_v6 = vunpack.c.h.bf16 %v915_v49 }
  0x60   :  { %588 = vst [vmem:[%s1463_s3 + $0x1d0] sm:$0xff] %v524_v62  ;;  %v526_v7 = vmax.f32 %v462_v63, 0.0  ;;  %v463_v8 = vadd.f32 %v849_v53, %v271_v0  ;;  %v272_v9 = vadd.f32 %v949_v3, %v206_v2 }
  0x61   :  { %589 = vst [vmem:[%s1463_s3 + $0x1d8] sm:$0xff] %v525_v4  ;;  %v273_v10 = vadd.f32 %v949_v3, %v207_v5 }
  0x62   :  { %590 = vst [vmem:[%s1463_s3 + $0x1e0] sm:$0xff] %v526_v7  ;;  %v527_v1 = vmax.f32 %v463_v8, 0.0  ;;  %v464_v11 = vadd.f32 %v852_v60, %v272_v9 }
  0x63   :  { %v465_v12 = vadd.f32 %v853_v6, %v273_v10 }
  0x64   :  { %591 = vst [vmem:[%s1463_s3 + $0x1e8] sm:$0xff] %v527_v1  ;;  %v528_v13 = vmax.f32 %v464_v11, 0.0 }
  0x65   :  { %v529_v14 = vmax.f32 %v465_v12, 0.0 }
  0x66   :  { %592 = vst [vmem:[%s1463_s3 + $0x1f0] sm:$0xff] %v528_v13 }
  0x67   :  { %593 = vst [vmem:[%s1463_s3 + $0x1f8] sm:$0xff] %v529_v14 }

// kernel: bottleneck_block.6
= control target key start
LH: loop header
LB: loop body
LE: loop exit
PB: predicated region body
PF: predicated region fallthrough
CT: control target
= control target key end

     0   :  { %vm935_vm0 = vcmask 1040384   ;;  %s2032_s2 = inlined_call_operand.vmem [shape: bf16[128,128], index: 2, kind: input, shape index: {}]   ;;  %s2033_s1 = inlined_call_operand.vmem [shape: f32[2,128], index: 1, kind: input, shape index: {}]   ;;  %s2034_s0 = inlined_call_operand.vmem [shape: bf16[512,128], index: 0, kind: input, shape index: {}]   ;;  %s2035_s3 = inlined_call_operand.vmem [shape: bf16[512,128], index: 3, kind: output, shape index: {0}]   ;;  %s2036_s4 = inlined_call_operand.vmem [shape: f32[1,2,128], index: 4, kind: output, shape index: {1}]  }
   0x1   :  { %v985_v0 = vld [vmem:[%s2032_s2 + $0x38] sm:$0xff]  ;;  %v984_v1 = vld [vmem:[%s2032_s2 + $0x30] sm:$0xff]  ;;  %v983_v2 = vld [vmem:[%s2032_s2 + $0x28] sm:$0xff] }
   0x2   :  { %436 = vmatpush.bf16.msra.mxu0 %v985_v0  ;;  %1336 = vmatpush.bf16.msra.mxu1 %v985_v0  ;;  %v982_v3 = vld [vmem:[%s2032_s2 + $0x20] sm:$0xff]  ;;  %v981_v8 = vld [vmem:[%s2032_s2 + $0x18] sm:$0xff]  ;;  %v980_v17 = vld [vmem:[%s2032_s2 + $0x10] sm:$0xff] }
   0x3   :  { %1337 = vmatpush.bf16.msra.mxu2 %v985_v0  ;;  %1338 = vmatpush.bf16.msra.mxu3 %v985_v0  ;;  %v987_v4 = vld [vmem:[%s2034_s0] sm:$0xff]   ;;  %v979_v22 = vld [vmem:[%s2032_s2 + $0x8] sm:$0xff]  ;;  %v1275_v47 = vld [vmem:[%s2034_s0 + $0x10] sm:$0xff]  }
   0x4   :  { %v988_v5 = vunpack.c.l.bf16 %v987_v4  ;;  %v989_v6 = vunpack.c.h.bf16 %v987_v4  ;;  %v1405_v7 = vld [vmem:[%s2033_s1] ss:$0 sm:$0xff]  ;;  %v1418_v14 = vld [vmem:[%s2033_s1 + $0x1] ss:$0 sm:$0xff]  ;;  %v1274_v25 = vld [vmem:[%s2034_s0 + $0x8] sm:$0xff]   ;;  %v996_v54 = vunpack.c.l.bf16 %v1275_v47  ;;  %v997_v55 = vunpack.c.h.bf16 %v1275_v47 }
   0x5   :  { %v1281_v9 = vld [vmem:[%s2034_s0 + $0x40] sm:$0xff]   ;;  %v992_v29 = vunpack.c.l.bf16 %v1274_v25  ;;  %v993_v30 = vunpack.c.h.bf16 %v1274_v25  ;;  %v1282_v33 = vld [vmem:[%s2034_s0 + $0x48] sm:$0xff]   ;;  %v1283_v60 = vld [vmem:[%s2034_s0 + $0x50] sm:$0xff]  }
   0x6   :  { %437 = vmatpush.bf16.msra.mxu0 %v984_v1  ;;  %1339 = vmatpush.bf16.msra.mxu1 %v984_v1  ;;  %v1020_v10 = vunpack.c.l.bf16 %v1281_v9  ;;  %v1021_v11 = vunpack.c.h.bf16 %v1281_v9  ;;  %v146_v12 = vmul.f32 %v1405_v7, %v988_v5  ;;  %v147_v13 = vmul.f32 %v1405_v7, %v989_v6  ;;  %v978_v28 = vld [vmem:[%s2032_s2] sm:$0xff] }
   0x7   :  { %1340 = vmatpush.bf16.msra.mxu2 %v984_v1  ;;  %1341 = vmatpush.bf16.msra.mxu3 %v984_v1  ;;  %v1024_v34 = vunpack.c.l.bf16 %v1282_v33  ;;  %v1025_v35 = vunpack.c.h.bf16 %v1282_v33  ;;  %v148_v36 = vmul.f32 %v1405_v7, %v992_v29  ;;  %v149_v37 = vmul.f32 %v1405_v7, %v993_v30  ;;  %v1289_v46 = vld [vmem:[%s2034_s0 + $0x80] sm:$0xff]  }
   0x8   :  { %v162_v15 = vmul.f32 %v1405_v7, %v1020_v10  ;;  %v163_v16 = vmul.f32 %v1405_v7, %v1021_v11  ;;  %v212_v18 = vadd.f32 %v1418_v14, %v146_v12  ;;  %v213_v19 = vadd.f32 %v1418_v14, %v147_v13  ;;  %v1290_v13 = vld [vmem:[%s2034_s0 + $0x88] sm:$0xff]   ;;  %v1297_v47 = vld [vmem:[%s2034_s0 + $0xc0] sm:$0xff]  }
   0x9   :  { %v164_v38 = vmul.f32 %v1405_v7, %v1024_v34  ;;  %v165_v39 = vmul.f32 %v1405_v7, %v1025_v35  ;;  %v214_v40 = vadd.f32 %v1418_v14, %v148_v36  ;;  %v215_v41 = vadd.f32 %v1418_v14, %v149_v37 }
   0xa   :  { %438 = vmatpush.bf16.msra.mxu0 %v983_v2  ;;  %1342 = vmatpush.bf16.msra.mxu1 %v983_v2  ;;  %v228_v20 = vadd.f32 %v1418_v14, %v162_v15  ;;  %v229_v21 = vadd.f32 %v1418_v14, %v163_v16  ;;  %v276_v23 = vmax.f32 %v212_v18, 0.0  ;;  %v277_v24 = vmax.f32 %v213_v19, 0.0  ;;  %v1276_v15 = vld [vmem:[%s2034_s0 + $0x18] sm:$0xff]  }
   0xb   :  { %1343 = vmatpush.bf16.msra.mxu2 %v983_v2  ;;  %1344 = vmatpush.bf16.msra.mxu3 %v983_v2  ;;  %v230_v42 = vadd.f32 %v1418_v14, %v164_v38  ;;  %v231_v43 = vadd.f32 %v1418_v14, %v165_v39  ;;  %v278_v44 = vmax.f32 %v214_v40, 0.0  ;;  %v279_v45 = vmax.f32 %v215_v41, 0.0 }
   0xc   :  { %v292_v26 = vmax.f32 %v228_v20, 0.0  ;;  %v293_v27 = vmax.f32 %v229_v21, 0.0  ;;  %v340_v31 = vpack.c.bf16 %v277_v24, %v276_v23  ;;  %v1052_v50 = vunpack.c.l.bf16 %v1289_v46 }
   0xd   :  { %v294_v48 = vmax.f32 %v230_v42, 0.0  ;;  %v295_v49 = vmax.f32 %v231_v43, 0.0  ;;  %v1053_v51 = vunpack.c.h.bf16 %v1289_v46  ;;  %v341_v56 = vpack.c.bf16 %v279_v45, %v278_v44  ;;  %v1291_v46 = vld [vmem:[%s2034_s0 + $0x90] sm:$0xff]  }
   0xe   :  { %439 = vmatpush.bf16.msra.mxu0 %v982_v3  ;;  %1345 = vmatpush.bf16.msra.mxu1 %v982_v3  ;;  %v348_v32 = vpack.c.bf16 %v293_v27, %v292_v26  ;;  %v178_v52 = vmul.f32 %v1405_v7, %v1052_v50  ;;  %v1028_v63 = vunpack.c.l.bf16 %v1283_v60  ;;  %v1029_v0 = vunpack.c.h.bf16 %v1283_v60 }
   0xf   :  { %1346 = vmatpush.bf16.msra.mxu2 %v982_v3  ;;  %1347 = vmatpush.bf16.msra.mxu3 %v982_v3  ;;  %v179_v53 = vmul.f32 %v1405_v7, %v1053_v51  ;;  %v349_v57 = vpack.c.bf16 %v295_v49, %v294_v48  ;;  %v150_v1 = vmul.f32 %v1405_v7, %v996_v54  ;;  %v1056_v18 = vunpack.c.l.bf16 %v1290_v13  ;;  %v1277_v48 = vld [vmem:[%s2034_s0 + $0x20] sm:$0xff]  }
  0x10   :  { %v244_v58 = vadd.f32 %v1418_v14, %v178_v52  ;;  %v151_v2 = vmul.f32 %v1405_v7, %v997_v55  ;;  %v166_v4 = vmul.f32 %v1405_v7, %v1028_v63  ;;  %v167_v5 = vmul.f32 %v1405_v7, %v1029_v0 }
  0x11   :  { %v245_v59 = vadd.f32 %v1418_v14, %v179_v53  ;;  %v216_v6 = vadd.f32 %v1418_v14, %v150_v1  ;;  %v1057_v19 = vunpack.c.h.bf16 %v1290_v13  ;;  %v180_v20 = vmul.f32 %v1405_v7, %v1056_v18  ;;  %v1285_v1 = vld [vmem:[%s2034_s0 + $0x60] sm:$0xff]  }
  0x12   :  { %440 = vmatpush.bf16.msra.mxu0 %v981_v8  ;;  %1348 = vmatpush.bf16.msra.mxu1 %v981_v8  ;;  %v308_v61 = vmax.f32 %v244_v58, 0.0  ;;  %v232_v9 = vadd.f32 %v1418_v14, %v166_v4  ;;  %v233_v10 = vadd.f32 %v1418_v14, %v167_v5  ;;  %v1001_v23 = vunpack.c.h.bf16 %v1276_v15 }
  0x13   :  { %1349 = vmatpush.bf16.msra.mxu2 %v981_v8  ;;  %1350 = vmatpush.bf16.msra.mxu3 %v981_v8  ;;  %v309_v62 = vmax.f32 %v245_v59, 0.0  ;;  %v217_v8 = vadd.f32 %v1418_v14, %v151_v2  ;;  %v280_v11 = vmax.f32 %v216_v6, 0.0  ;;  %v181_v21 = vmul.f32 %v1405_v7, %v1057_v19 }
  0x14   :  { %v296_v16 = vmax.f32 %v232_v9, 0.0  ;;  %v246_v26 = vadd.f32 %v1418_v14, %v180_v20  ;;  %v153_v34 = vmul.f32 %v1405_v7, %v1001_v23  ;;  %v1060_v49 = vunpack.c.l.bf16 %v1291_v46 }
  0x15   :  { %v356_v3 = vpack.c.bf16 %v309_v62, %v308_v61  ;;  %v281_v12 = vmax.f32 %v217_v8, 0.0  ;;  %v247_v27 = vadd.f32 %v1418_v14, %v181_v21  ;;  %v1061_v50 = vunpack.c.h.bf16 %v1291_v46 }
  0x16   :  { %441 = vmatpush.bf16.msra.mxu0 %v980_v17  ;;  %1351 = vmatpush.bf16.msra.mxu1 %v980_v17  ;;  %v310_v29 = vmax.f32 %v246_v26, 0.0  ;;  %v219_v39 = vadd.f32 %v1418_v14, %v153_v34  ;;  %v1084_v51 = vunpack.c.l.bf16 %v1297_v47  ;;  %v1085_v52 = vunpack.c.h.bf16 %v1297_v47  ;;  %v1278_v26 = vld [vmem:[%s2034_s0 + $0x28] sm:$0xff]  }
  0x17   :  { %1352 = vmatpush.bf16.msra.mxu2 %v980_v17  ;;  %1353 = vmatpush.bf16.msra.mxu3 %v980_v17  ;;  %v297_v17 = vmax.f32 %v233_v10, 0.0  ;;  %v342_v24 = vpack.c.bf16 %v281_v12, %v280_v11  ;;  %v311_v30 = vmax.f32 %v247_v27, 0.0  ;;  %v182_v53 = vmul.f32 %v1405_v7, %v1060_v49 }
  0x18   :  { %v283_v43 = vmax.f32 %v219_v39, 0.0  ;;  %v183_v54 = vmul.f32 %v1405_v7, %v1061_v50  ;;  %v194_v55 = vmul.f32 %v1405_v7, %v1084_v51  ;;  %v1004_v58 = vunpack.c.l.bf16 %v1277_v48 }
  0x19   :  { %v350_v25 = vpack.c.bf16 %v297_v17, %v296_v16  ;;  %v357_v35 = vpack.c.bf16 %v311_v30, %v310_v29  ;;  %v1005_v59 = vunpack.c.h.bf16 %v1277_v48  ;;  %v248_v61 = vadd.f32 %v1418_v14, %v182_v53 }
  0x1a   :  { %442 = vmatpush.bf16.msra.mxu0 %v979_v22  ;;  %1354 = vmatpush.bf16.msra.mxu1 %v979_v22  ;;  %v249_v62 = vadd.f32 %v1418_v14, %v183_v54  ;;  %v260_v63 = vadd.f32 %v1418_v14, %v194_v55  ;;  %v154_v6 = vmul.f32 %v1405_v7, %v1004_v58  ;;  %v1036_v9 = vunpack.c.l.bf16 %v1285_v1 }
  0x1b   :  { %1355 = vmatpush.bf16.msra.mxu2 %v979_v22  ;;  %1356 = vmatpush.bf16.msra.mxu3 %v979_v22  ;;  %v1000_v22 = vunpack.c.l.bf16 %v1276_v15  ;;  %v312_v2 = vmax.f32 %v248_v61, 0.0  ;;  %v155_v8 = vmul.f32 %v1405_v7, %v1005_v59  ;;  %v1037_v10 = vunpack.c.h.bf16 %v1285_v1  ;;  %v1299_v1 = vld [vmem:[%s2034_s0 + $0xd0] sm:$0xff]  }
  0x1c   :  { %v324_v4 = vmax.f32 %v260_v63, 0.0  ;;  %v170_v13 = vmul.f32 %v1405_v7, %v1036_v9  ;;  %v220_v16 = vadd.f32 %v1418_v14, %v154_v6  ;;  %v1093_v6 = vunpack.c.h.bf16 %v1299_v1 }
  0x1d   :  { %v152_v33 = vmul.f32 %v1405_v7, %v1000_v22  ;;  %v171_v15 = vmul.f32 %v1405_v7, %v1037_v10  ;;  %v221_v17 = vadd.f32 %v1418_v14, %v155_v8 }
  0x1e   :  { %443 = vmatpush.bf16.msra.mxu0 %v978_v28  ;;  %1357 = vmatpush.bf16.msra.mxu1 %v978_v28  ;;  %v236_v18 = vadd.f32 %v1418_v14, %v170_v13  ;;  %v284_v20 = vmax.f32 %v220_v16, 0.0 }
  0x1f   :  { %1358 = vmatpush.bf16.msra.mxu2 %v978_v28  ;;  %1359 = vmatpush.bf16.msra.mxu3 %v978_v28  ;;  %v1284_v28 = vld [vmem:[%s2034_s0 + $0x58] sm:$0xff]   ;;  %v218_v38 = vadd.f32 %v1418_v14, %v152_v33  ;;  %v237_v19 = vadd.f32 %v1418_v14, %v171_v15  ;;  %v285_v21 = vmax.f32 %v221_v17, 0.0 }
  0x20   :  { %v300_v22 = vmax.f32 %v236_v18, 0.0 }
  0x21   :  { %444 = vmatmul.bf16.vlgmr.msra.gmra.mxu0 %v340_v31  ;;  %484 = vmatmul.bf16.vlgmr.msra.gmra.mxu1 %v348_v32  ;;  %v1032_v31 = vunpack.c.l.bf16 %v1284_v28  ;;  %v1033_v32 = vunpack.c.h.bf16 %v1284_v28  ;;  %v282_v42 = vmax.f32 %v218_v38, 0.0  ;;  %v301_v23 = vmax.f32 %v237_v19, 0.0 }
  0x22   :  { %524 = vmatmul.bf16.vlgmr.msra.gmra.mxu2 %v356_v3  ;;  %v313_v3 = vmax.f32 %v249_v62, 0.0 }
  0x23   :  { %v168_v36 = vmul.f32 %v1405_v7, %v1032_v31  ;;  %v169_v37 = vmul.f32 %v1405_v7, %v1033_v32  ;;  %v352_v38 = vpack.c.bf16 %v301_v23, %v300_v22 }
  0x24   :  { %v358_v11 = vpack.c.bf16 %v313_v3, %v312_v2  ;;  %v1279_v2 = vld [vmem:[%s2034_s0 + $0x30] sm:$0xff]  }
  0x25   :  { %v234_v40 = vadd.f32 %v1418_v14, %v168_v36  ;;  %v235_v41 = vadd.f32 %v1418_v14, %v169_v37  ;;  %v1008_v36 = vunpack.c.l.bf16 %v1278_v26  ;;  %v1009_v37 = vunpack.c.h.bf16 %v1278_v26 }
  0x26   :  { %v1012_v13 = vunpack.c.l.bf16 %v1279_v2  ;;  %v1013_v15 = vunpack.c.h.bf16 %v1279_v2 }
  0x27   :  { %v298_v44 = vmax.f32 %v234_v40, 0.0  ;;  %v299_v45 = vmax.f32 %v235_v41, 0.0  ;;  %v156_v48 = vmul.f32 %v1405_v7, %v1008_v36  ;;  %v157_v49 = vmul.f32 %v1405_v7, %v1009_v37 }
  0x28   :  { %v158_v26 = vmul.f32 %v1405_v7, %v1012_v13 }
  0x29   :  { %v351_v60 = vpack.c.bf16 %v299_v45, %v298_v44 }
  0x31   :  { %449 = vmatmul.bf16.gmra.mxu0 %v341_v56  ;;  %489 = vmatmul.bf16.gmra.mxu1 %v349_v57  ;;  %v195_v56 = vmul.f32 %v1405_v7, %v1085_v52  ;;  %v343_v57 = vpack.c.bf16 %v283_v43, %v282_v42  ;;  %v1286_v43 = vld [vmem:[%s2034_s0 + $0x68] sm:$0xff]  }
  0x32   :  { %529 = vmatmul.bf16.gmra.mxu2 %v357_v35  ;;  %v344_v35 = vpack.c.bf16 %v285_v21, %v284_v20  ;;  %v1040_v50 = vunpack.c.l.bf16 %v1286_v43  ;;  %v1041_v51 = vunpack.c.h.bf16 %v1286_v43  ;;  %v1287_v21 = vld [vmem:[%s2034_s0 + $0x70] sm:$0xff]   ;;  %v1300_v43 = vld [vmem:[%s2034_s0 + $0xd8] sm:$0xff]  }
  0x33   :  { %v261_v0 = vadd.f32 %v1418_v14, %v195_v56  ;;  %v222_v56 = vadd.f32 %v1418_v14, %v156_v48  ;;  %v1097_v48 = vunpack.c.h.bf16 %v1300_v43 }
  0x34   :  { %v172_v54 = vmul.f32 %v1405_v7, %v1040_v50  ;;  %v173_v55 = vmul.f32 %v1405_v7, %v1041_v51 }
  0x35   :  { %v325_v5 = vmax.f32 %v261_v0, 0.0  ;;  %v1293_v0 = vld [vmem:[%s2034_s0 + $0xa0] sm:$0xff]  }
  0x36   :  { %v238_v58 = vadd.f32 %v1418_v14, %v172_v54  ;;  %v239_v59 = vadd.f32 %v1418_v14, %v173_v55  ;;  %v1068_v3 = vunpack.c.l.bf16 %v1293_v0 }
  0x37   :  { %v364_v12 = vpack.c.bf16 %v325_v5, %v324_v4  ;;  %v1069_v4 = vunpack.c.h.bf16 %v1293_v0  ;;  %v1092_v5 = vunpack.c.l.bf16 %v1299_v1 }
  0x38   :  { %v302_v62 = vmax.f32 %v238_v58, 0.0  ;;  %v303_v63 = vmax.f32 %v239_v59, 0.0  ;;  %v186_v8 = vmul.f32 %v1405_v7, %v1068_v3 }
  0x39   :  { %564 = vmatmul.bf16.vlgmr.msra.gmra.mxu3 %v364_v12  ;;  %v187_v9 = vmul.f32 %v1405_v7, %v1069_v4  ;;  %v198_v10 = vmul.f32 %v1405_v7, %v1092_v5 }
  0x3a   :  { %v353_v16 = vpack.c.bf16 %v303_v63, %v302_v62  ;;  %v252_v17 = vadd.f32 %v1418_v14, %v186_v8 }
  0x3b   :  { %v253_v18 = vadd.f32 %v1418_v14, %v187_v9  ;;  %v264_v19 = vadd.f32 %v1418_v14, %v198_v10 }
  0x3c   :  { %v316_v22 = vmax.f32 %v252_v17, 0.0 }
  0x3d   :  { %v317_v23 = vmax.f32 %v253_v18, 0.0 }
  0x41   :  { %454 = vmatmul.bf16.gmra.mxu0 %v342_v24  ;;  %494 = vmatmul.bf16.gmra.mxu1 %v350_v25  ;;  %v1292_v24 = vld [vmem:[%s2034_s0 + $0x98] sm:$0xff]   ;;  %v1298_v25 = vld [vmem:[%s2034_s0 + $0xc8] sm:$0xff]  }
  0x42   :  { %534 = vmatmul.bf16.gmra.mxu2 %v358_v11  ;;  %v1064_v27 = vunpack.c.l.bf16 %v1292_v24  ;;  %v1065_v28 = vunpack.c.h.bf16 %v1292_v24  ;;  %v1088_v29 = vunpack.c.l.bf16 %v1298_v25  ;;  %v1089_v30 = vunpack.c.h.bf16 %v1298_v25 }
  0x43   :  { %v199_v11 = vmul.f32 %v1405_v7, %v1093_v6  ;;  %v328_v24 = vmax.f32 %v264_v19, 0.0 }
  0x44   :  { %v184_v31 = vmul.f32 %v1405_v7, %v1064_v27  ;;  %v185_v32 = vmul.f32 %v1405_v7, %v1065_v28  ;;  %v196_v33 = vmul.f32 %v1405_v7, %v1088_v29  ;;  %v197_v34 = vmul.f32 %v1405_v7, %v1089_v30 }
  0x45   :  { %v265_v20 = vadd.f32 %v1418_v14, %v199_v11  ;;  %v159_v27 = vmul.f32 %v1405_v7, %v1013_v15  ;;  %v1044_v28 = vunpack.c.l.bf16 %v1287_v21  ;;  %v1045_v29 = vunpack.c.h.bf16 %v1287_v21  ;;  %v1301_v21 = vld [vmem:[%s2034_s0 + $0xe0] sm:$0xff]  }
  0x46   :  { %v250_v39 = vadd.f32 %v1418_v14, %v184_v31  ;;  %v251_v40 = vadd.f32 %v1418_v14, %v185_v32  ;;  %v262_v41 = vadd.f32 %v1418_v14, %v196_v33  ;;  %v263_v42 = vadd.f32 %v1418_v14, %v197_v34 }
  0x47   :  { %v329_v25 = vmax.f32 %v265_v20, 0.0  ;;  %v360_v30 = vpack.c.bf16 %v317_v23, %v316_v22  ;;  %v174_v32 = vmul.f32 %v1405_v7, %v1044_v28  ;;  %v175_v33 = vmul.f32 %v1405_v7, %v1045_v29  ;;  %v1295_v20 = vld [vmem:[%s2034_s0 + $0xb0] sm:$0xff]  }
  0x48   :  { %v314_v44 = vmax.f32 %v250_v39, 0.0  ;;  %v315_v45 = vmax.f32 %v251_v40, 0.0  ;;  %v326_v46 = vmax.f32 %v262_v41, 0.0  ;;  %v327_v47 = vmax.f32 %v263_v42, 0.0  ;;  %v1294_v42 = vld [vmem:[%s2034_s0 + $0xa8] sm:$0xff]  }
  0x49   :  { %v366_v31 = vpack.c.bf16 %v329_v25, %v328_v24  ;;  %v224_v34 = vadd.f32 %v1418_v14, %v158_v26  ;;  %v240_v36 = vadd.f32 %v1418_v14, %v174_v32  ;;  %v241_v37 = vadd.f32 %v1418_v14, %v175_v33 }
  0x4a   :  { %v359_v52 = vpack.c.bf16 %v315_v45, %v314_v44  ;;  %v365_v53 = vpack.c.bf16 %v327_v47, %v326_v46  ;;  %v1280_v44 = vld [vmem:[%s2034_s0 + $0x38] sm:$0xff]   ;;  %v1072_v45 = vunpack.c.l.bf16 %v1294_v42  ;;  %v1073_v46 = vunpack.c.h.bf16 %v1294_v42 }
  0x4b   :  { %v304_v40 = vmax.f32 %v240_v36, 0.0  ;;  %v305_v41 = vmax.f32 %v241_v37, 0.0  ;;  %v1096_v47 = vunpack.c.l.bf16 %v1300_v43  ;;  %v1016_v54 = vunpack.c.l.bf16 %v1280_v44  ;;  %v1296_v42 = vld [vmem:[%s2034_s0 + $0xb8] sm:$0xff]   ;;  %v1302_v43 = vld [vmem:[%s2034_s0 + $0xe8] sm:$0xff]  }
  0x4c   :  { %569 = vmatmul.bf16.gmra.mxu3 %v365_v53  ;;  %v189_v50 = vmul.f32 %v1405_v7, %v1073_v46  ;;  %v1017_v55 = vunpack.c.h.bf16 %v1280_v44  ;;  %v1076_v22 = vunpack.c.l.bf16 %v1295_v20  ;;  %v1077_v23 = vunpack.c.h.bf16 %v1295_v20 }
  0x4d   :  { %v200_v51 = vmul.f32 %v1405_v7, %v1096_v47  ;;  %v160_v2 = vmul.f32 %v1405_v7, %v1016_v54  ;;  %v1100_v24 = vunpack.c.l.bf16 %v1301_v21  ;;  %v1101_v25 = vunpack.c.h.bf16 %v1301_v21 }
  0x4e   :  { %v255_v58 = vadd.f32 %v1418_v14, %v189_v50  ;;  %v161_v3 = vmul.f32 %v1405_v7, %v1017_v55  ;;  %v190_v26 = vmul.f32 %v1405_v7, %v1076_v22  ;;  %v1080_v44 = vunpack.c.l.bf16 %v1296_v42 }
  0x4f   :  { %v266_v59 = vadd.f32 %v1418_v14, %v200_v51  ;;  %v226_v11 = vadd.f32 %v1418_v14, %v160_v2  ;;  %v202_v28 = vmul.f32 %v1405_v7, %v1100_v24  ;;  %v203_v29 = vmul.f32 %v1405_v7, %v1101_v25 }
  0x50   :  { %v319_v63 = vmax.f32 %v255_v58, 0.0  ;;  %v256_v32 = vadd.f32 %v1418_v14, %v190_v26  ;;  %v1104_v46 = vunpack.c.l.bf16 %v1302_v43  ;;  %v1105_v47 = vunpack.c.h.bf16 %v1302_v43 }
  0x51   :  { %459 = vmatmul.bf16.gmra.mxu0 %v343_v57  ;;  %499 = vmatmul.bf16.gmra.mxu1 %v351_v60  ;;  %v223_v57 = vadd.f32 %v1418_v14, %v157_v49  ;;  %v286_v60 = vmax.f32 %v222_v56, 0.0  ;;  %v188_v49 = vmul.f32 %v1405_v7, %v1072_v45  ;;  %v354_v56 = vpack.c.bf16 %v305_v41, %v304_v40 }
  0x52   :  { %539 = vmatmul.bf16.gmra.mxu2 %v359_v52  ;;  %v201_v52 = vmul.f32 %v1405_v7, %v1097_v48  ;;  %v330_v0 = vmax.f32 %v266_v59, 0.0  ;;  %v320_v36 = vmax.f32 %v256_v32, 0.0  ;;  %v1081_v45 = vunpack.c.h.bf16 %v1296_v42  ;;  %v1304_v32 = vld [vmem:[%s2034_s0 + $0xf8] sm:$0xff]  }
  0x53   :  { %v287_v61 = vmax.f32 %v223_v57, 0.0  ;;  %v254_v57 = vadd.f32 %v1418_v14, %v188_v49  ;;  %v192_v48 = vmul.f32 %v1405_v7, %v1080_v44  ;;  %v204_v50 = vmul.f32 %v1405_v7, %v1104_v46 }
  0x54   :  { %v193_v49 = vmul.f32 %v1405_v7, %v1081_v45  ;;  %v205_v51 = vmul.f32 %v1405_v7, %v1105_v47 }
  0x55   :  { %v345_v12 = vpack.c.bf16 %v287_v61, %v286_v60  ;;  %v267_v60 = vadd.f32 %v1418_v14, %v201_v52  ;;  %v1288_v61 = vld [vmem:[%s2034_s0 + $0x78] sm:$0xff]   ;;  %v318_v62 = vmax.f32 %v254_v57, 0.0  ;;  %v258_v52 = vadd.f32 %v1418_v14, %v192_v48 }
  0x56   :  { %v1048_v4 = vunpack.c.l.bf16 %v1288_v61  ;;  %v1049_v5 = vunpack.c.h.bf16 %v1288_v61  ;;  %v270_v54 = vadd.f32 %v1418_v14, %v204_v50  ;;  %v271_v55 = vadd.f32 %v1418_v14, %v205_v51 }
  0x57   :  { %v331_v1 = vmax.f32 %v267_v60, 0.0  ;;  %v361_v6 = vpack.c.bf16 %v319_v63, %v318_v62  ;;  %v322_v58 = vmax.f32 %v258_v52, 0.0 }
  0x58   :  { %v176_v9 = vmul.f32 %v1405_v7, %v1048_v4  ;;  %v177_v10 = vmul.f32 %v1405_v7, %v1049_v5  ;;  %v334_v60 = vmax.f32 %v270_v54, 0.0  ;;  %v335_v61 = vmax.f32 %v271_v55, 0.0 }
  0x59   :  { %v367_v8 = vpack.c.bf16 %v331_v1, %v330_v0 }
  0x5a   :  { %v242_v13 = vadd.f32 %v1418_v14, %v176_v9  ;;  %v243_v15 = vadd.f32 %v1418_v14, %v177_v10  ;;  %v369_v63 = vpack.c.bf16 %v335_v61, %v334_v60 }
  0x5c   :  { %574 = vmatmul.bf16.gmra.mxu3 %v366_v31  ;;  %v306_v18 = vmax.f32 %v242_v13, 0.0  ;;  %v307_v19 = vmax.f32 %v243_v15, 0.0 }
  0x5e   :  { %v355_v31 = vpack.c.bf16 %v307_v19, %v306_v18 }
  0x61   :  { %464 = vmatmul.bf16.gmra.mxu0 %v344_v35  ;;  %504 = vmatmul.bf16.gmra.mxu1 %v352_v38  ;;  %v225_v35 = vadd.f32 %v1418_v14, %v159_v27  ;;  %v288_v38 = vmax.f32 %v224_v34, 0.0  ;;  %v191_v27 = vmul.f32 %v1405_v7, %v1077_v23  ;;  %v268_v34 = vadd.f32 %v1418_v14, %v202_v28 }
  0x62   :  { %544 = vmatmul.bf16.gmra.mxu2 %v360_v30 }
  0x63   :  { %v289_v39 = vmax.f32 %v225_v35, 0.0  ;;  %v257_v33 = vadd.f32 %v1418_v14, %v191_v27  ;;  %v269_v35 = vadd.f32 %v1418_v14, %v203_v29 }
  0x65   :  { %v346_v53 = vpack.c.bf16 %v289_v39, %v288_v38  ;;  %v321_v37 = vmax.f32 %v257_v33, 0.0  ;;  %v332_v38 = vmax.f32 %v268_v34, 0.0  ;;  %v333_v39 = vmax.f32 %v269_v35, 0.0 }
  0x66   :  { %v1112_v34 = vunpack.c.l.bf16 %v1304_v32  ;;  %v1113_v35 = vunpack.c.h.bf16 %v1304_v32 }
  0x67   :  { %v362_v40 = vpack.c.bf16 %v321_v37, %v320_v36  ;;  %v368_v41 = vpack.c.bf16 %v333_v39, %v332_v38 }
  0x68   :  { %v208_v36 = vmul.f32 %v1405_v7, %v1112_v34  ;;  %v209_v37 = vmul.f32 %v1405_v7, %v1113_v35 }
  0x6a   :  { %v274_v38 = vadd.f32 %v1418_v14, %v208_v36  ;;  %v275_v39 = vadd.f32 %v1418_v14, %v209_v37 }
  0x6c   :  { %579 = vmatmul.bf16.gmra.mxu3 %v367_v8  ;;  %v1303_v8 = vld [vmem:[%s2034_s0 + $0xf0] sm:$0xff]   ;;  %v338_v45 = vmax.f32 %v274_v38, 0.0  ;;  %v339_v47 = vmax.f32 %v275_v39, 0.0 }
  0x6d   :  { %v1108_v10 = vunpack.c.l.bf16 %v1303_v8 }
  0x71   :  { %469 = vmatmul.bf16.gmra.mxu0 %v345_v12  ;;  %509 = vmatmul.bf16.gmra.mxu1 %v353_v16  ;;  %v227_v12 = vadd.f32 %v1418_v14, %v161_v3  ;;  %v290_v16 = vmax.f32 %v226_v11, 0.0  ;;  %v1109_v11 = vunpack.c.h.bf16 %v1303_v8 }
  0x72   :  { %549 = vmatmul.bf16.gmra.mxu2 %v361_v6 }
  0x73   :  { %v291_v17 = vmax.f32 %v227_v12, 0.0  ;;  %v206_v12 = vmul.f32 %v1405_v7, %v1108_v10  ;;  %v207_v13 = vmul.f32 %v1405_v7, %v1109_v11  ;;  %v371_v7 = vpack.c.bf16 %v339_v47, %v338_v45 }
  0x75   :  { %v347_v30 = vpack.c.bf16 %v291_v17, %v290_v16  ;;  %v272_v15 = vadd.f32 %v1418_v14, %v206_v12  ;;  %v273_v16 = vadd.f32 %v1418_v14, %v207_v13 }
  0x77   :  { %v336_v21 = vmax.f32 %v272_v15, 0.0  ;;  %v337_v22 = vmax.f32 %v273_v16, 0.0 }
  0x79   :  { %v370_v24 = vpack.c.bf16 %v337_v22, %v336_v21 }
  0x7c   :  { %584 = vmatmul.bf16.gmra.mxu3 %v368_v41 }
  0x81   :  { %474 = vmatmul.bf16.gmra.mxu0 %v346_v53  ;;  %514 = vmatmul.bf16.gmra.mxu1 %v354_v56  ;;  %v259_v53 = vadd.f32 %v1418_v14, %v193_v49 }
  0x82   :  { %554 = vmatmul.bf16.gmra.mxu2 %v362_v40 }
  0x83   :  { %v323_v59 = vmax.f32 %v259_v53, 0.0 }
  0x85   :  { %v363_v62 = vpack.c.bf16 %v323_v59, %v322_v58 }
  0x8c   :  { %589 = vmatmul.bf16.gmra.mxu3 %v369_v63 }
  0x91   :  { %479 = vmatmul.bf16.gmra.mxu0 %v347_v30  ;;  %519 = vmatmul.bf16.gmra.mxu1 %v355_v31 }
  0x92   :  { %559 = vmatmul.bf16.gmra.mxu2 %v363_v62 }
  0x9c   :  { %594 = vmatmul.bf16.gmra.mxu3 %v370_v24 }
  0x9e   :  { %v445_v56 = vpop.f32.mrf.mxu0  ;;  %v1631_v57 = vpop.f32.mrf.mxu1 }
  0x9f   :  { %v802_v0 = vmul.f32 %v445_v56, %v445_v56 }
  0xa5   :  { %v1656_v31 = vpop.f32.mrf.mxu2 }
  0xa6   :  { %v447_v1 = vpop.f32.mrf.mxu0  ;;  %v1633_v2 = vpop.f32.mrf.mxu1 }
  0xa7   :  { %v1117_v3 = vpack.c.bf16 %v447_v1, %v445_v56  ;;  %v733_v4 = vadd.f32 %v447_v1, %v445_v56  ;;  %v803_v5 = vmul.f32 %v447_v1, %v447_v1  ;;  %v1157_v6 = vpack.c.bf16 %v1633_v2, %v1631_v57 }
  0xa9   :  { %1118 = vst [vmem:[%s2035_s3] sm:$0xff] %v1117_v3   ;;  %v866_v9 = vadd.f32 %v803_v5, %v802_v0 }
  0xaa   :  { %1312 = vst [vmem:[%s2035_s3 + $0x40] sm:$0xff] %v1157_v6  }
  0xac   :  { %599 = vmatmul.bf16.gmra.mxu3 %v371_v7 }
  0xad   :  { %v1675_v44 = vpop.f32.mrf.mxu2 }
  0xae   :  { %v450_v17 = vpop.f32.mrf.mxu0  ;;  %v1650_v18 = vpop.f32.mrf.mxu1  ;;  %v1197_v46 = vpack.c.bf16 %v1675_v44, %v1656_v31 }
  0xaf   :  { %v734_v19 = vadd.f32 %v733_v4, %v450_v17  ;;  %v804_v20 = vmul.f32 %v450_v17, %v450_v17 }
  0xb0   :  { %1320 = vst [vmem:[%s2035_s3 + $0x80] sm:$0xff] %v1197_v46  }
  0xb1   :  { %v867_v23 = vadd.f32 %v866_v9, %v804_v20 }
  0xb5   :  { %v1688_v52 = vpop.f32.mrf.mxu2 }
  0xb6   :  { %v452_v25 = vpop.f32.mrf.mxu0  ;;  %v1652_v26 = vpop.f32.mrf.mxu1 }
  0xb7   :  { %v1122_v27 = vpack.c.bf16 %v452_v25, %v450_v17  ;;  %v735_v28 = vadd.f32 %v734_v19, %v452_v25  ;;  %v805_v29 = vmul.f32 %v452_v25, %v452_v25  ;;  %v1162_v30 = vpack.c.bf16 %v1652_v26, %v1650_v18 }
  0xb9   :  { %1305 = vst [vmem:[%s2035_s3 + $0x8] sm:$0xff] %v1122_v27   ;;  %v868_v33 = vadd.f32 %v867_v23, %v805_v29 }
  0xba   :  { %1313 = vst [vmem:[%s2035_s3 + $0x48] sm:$0xff] %v1162_v30  }
  0xbc   :  { %v1711_v63 = vpop.f32.mrf.mxu3 }
  0xbd   :  { %v1698_v55 = vpop.f32.mrf.mxu2 }
  0xbe   :  { %v455_v40 = vpop.f32.mrf.mxu0  ;;  %v1671_v41 = vpop.f32.mrf.mxu1  ;;  %v1202_v56 = vpack.c.bf16 %v1698_v55, %v1688_v52 }
  0xbf   :  { %v1673_v42 = vadd.f32 %v735_v28, %v455_v40  ;;  %v806_v43 = vmul.f32 %v455_v40, %v455_v40 }
  0xc0   :  { %1321 = vst [vmem:[%s2035_s3 + $0x88] sm:$0xff] %v1202_v56  }
  0xc1   :  { %v1679_v48 = vadd.f32 %v868_v33, %v806_v43 }
  0xc4   :  { %v1723_v4 = vpop.f32.mrf.mxu3 }
  0xc5   :  { %v1709_v62 = vpop.f32.mrf.mxu2  ;;  %v1237_v6 = vpack.c.bf16 %v1723_v4, %v1711_v63 }
  0xc6   :  { %v457_v14 = vpop.f32.mrf.mxu0  ;;  %v1684_v49 = vpop.f32.mrf.mxu1 }
  0xc7   :  { %v1127_v50 = vpack.c.bf16 %v457_v14, %v455_v40  ;;  %v1167_v51 = vpack.c.bf16 %v1684_v49, %v1671_v41  ;;  %1328 = vst [vmem:[%s2035_s3 + $0xc0] sm:$0xff] %v1237_v6   ;;  %v807_v34 = vmul.f32 %v457_v14, %v457_v14  ;;  %v737_v38 = vadd.f32 %v1673_v42, %v457_v14 }
  0xc9   :  { %1306 = vst [vmem:[%s2035_s3 + $0x10] sm:$0xff] %v1127_v50   ;;  %v870_v39 = vadd.f32 %v1679_v48, %v807_v34 }
  0xca   :  { %1314 = vst [vmem:[%s2035_s3 + $0x50] sm:$0xff] %v1167_v51  }
  0xcd   :  { %v1721_v3 = vpop.f32.mrf.mxu2 }
  0xce   :  { %v460_v53 = vpop.f32.mrf.mxu0  ;;  %v1696_v54 = vpop.f32.mrf.mxu1  ;;  %v1207_v5 = vpack.c.bf16 %v1721_v3, %v1709_v62 }
  0xcf   :  { %v1741_v13 = vpop.f32.mrf.mxu3  ;;  %v808_v37 = vmul.f32 %v460_v53, %v460_v53  ;;  %v738_v43 = vadd.f32 %v737_v38, %v460_v53 }
  0xd0   :  { %1322 = vst [vmem:[%s2035_s3 + $0x90] sm:$0xff] %v1207_v5  }
  0xd1   :  { %v871_v45 = vadd.f32 %v870_v39, %v808_v37 }
  0xd5   :  { %v1739_v12 = vpop.f32.mrf.mxu2 }
  0xd6   :  { %v462_v58 = vpop.f32.mrf.mxu0  ;;  %v1705_v59 = vpop.f32.mrf.mxu1 }
  0xd7   :  { %v1132_v60 = vpack.c.bf16 %v462_v58, %v460_v53  ;;  %v1172_v61 = vpack.c.bf16 %v1705_v59, %v1696_v54  ;;  %v1753_v19 = vpop.f32.mrf.mxu3  ;;  %v809_v40 = vmul.f32 %v462_v58, %v462_v58  ;;  %v739_v50 = vadd.f32 %v738_v43, %v462_v58 }
  0xd8   :  { %v1242_v21 = vpack.c.bf16 %v1753_v19, %v1741_v13 }
  0xd9   :  { %1307 = vst [vmem:[%s2035_s3 + $0x18] sm:$0xff] %v1132_v60   ;;  %v872_v14 = vadd.f32 %v871_v45, %v809_v40 }
  0xda   :  { %1315 = vst [vmem:[%s2035_s3 + $0x58] sm:$0xff] %v1172_v61  }
  0xdb   :  { %1329 = vst [vmem:[%s2035_s3 + $0xc8] sm:$0xff] %v1242_v21  }
  0xdd   :  { %v1751_v17 = vpop.f32.mrf.mxu2 }
  0xde   :  { %v465_v0 = vpop.f32.mrf.mxu0  ;;  %v1719_v1 = vpop.f32.mrf.mxu1  ;;  %v1212_v20 = vpack.c.bf16 %v1751_v17, %v1739_v12 }
  0xdf   :  { %v1771_v28 = vpop.f32.mrf.mxu3  ;;  %v810_v46 = vmul.f32 %v465_v0, %v465_v0  ;;  %v740_v5 = vadd.f32 %v739_v50, %v465_v0 }
  0xe0   :  { %1323 = vst [vmem:[%s2035_s3 + $0x98] sm:$0xff] %v1212_v20  }
  0xe1   :  { %v873_v48 = vadd.f32 %v872_v14, %v810_v46 }
  0xe5   :  { %v1769_v27 = vpop.f32.mrf.mxu2 }
  0xe6   :  { %v467_v8 = vpop.f32.mrf.mxu0  ;;  %v1735_v9 = vpop.f32.mrf.mxu1 }
  0xe7   :  { %v1137_v10 = vpack.c.bf16 %v467_v8, %v465_v0  ;;  %v1177_v11 = vpack.c.bf16 %v1735_v9, %v1719_v1  ;;  %v1783_v33 = vpop.f32.mrf.mxu3  ;;  %v811_v61 = vmul.f32 %v467_v8, %v467_v8  ;;  %v741_v58 = vadd.f32 %v740_v5, %v467_v8 }
  0xe8   :  { %v1247_v36 = vpack.c.bf16 %v1783_v33, %v1771_v28 }
  0xe9   :  { %1308 = vst [vmem:[%s2035_s3 + $0x20] sm:$0xff] %v1137_v10   ;;  %v874_v6 = vadd.f32 %v873_v48, %v811_v61 }
  0xea   :  { %1316 = vst [vmem:[%s2035_s3 + $0x60] sm:$0xff] %v1177_v11  }
  0xeb   :  { %1330 = vst [vmem:[%s2035_s3 + $0xd0] sm:$0xff] %v1247_v36  }
  0xed   :  { %v1781_v32 = vpop.f32.mrf.mxu2 }
  0xee   :  { %v470_v15 = vpop.f32.mrf.mxu0  ;;  %v1749_v16 = vpop.f32.mrf.mxu1  ;;  %v1217_v35 = vpack.c.bf16 %v1781_v32, %v1769_v27 }
  0xef   :  { %v1803_v42 = vpop.f32.mrf.mxu3  ;;  %v812_v53 = vmul.f32 %v470_v15, %v470_v15  ;;  %v742_v11 = vadd.f32 %v741_v58, %v470_v15 }
  0xf0   :  { %1324 = vst [vmem:[%s2035_s3 + $0xa0] sm:$0xff] %v1217_v35  }
  0xf1   :  { %v875_v20 = vadd.f32 %v874_v6, %v812_v53  ;;  %v819_v6 = vmul.f32 %v1633_v2, %v1633_v2 }
  0xf5   :  { %v1801_v60 = vpop.f32.mrf.mxu2 }
  0xf6   :  { %v472_v22 = vpop.f32.mrf.mxu0  ;;  %v1765_v23 = vpop.f32.mrf.mxu1 }
  0xf7   :  { %v1142_v24 = vpack.c.bf16 %v472_v22, %v470_v15  ;;  %v1182_v25 = vpack.c.bf16 %v1765_v23, %v1749_v16  ;;  %v813_v10 = vmul.f32 %v472_v22, %v472_v22  ;;  %v743_v0 = vadd.f32 %v742_v11, %v472_v22  ;;  %v1815_v35 = vpop.f32.mrf.mxu3 }
  0xf8   :  { %v1252_v8 = vpack.c.bf16 %v1815_v35, %v1803_v42 }
  0xf9   :  { %1309 = vst [vmem:[%s2035_s3 + $0x28] sm:$0xff] %v1142_v24   ;;  %v876_v36 = vadd.f32 %v875_v20, %v813_v10  ;;  %v820_v20 = vmul.f32 %v1650_v18, %v1650_v18 }
  0xfa   :  { %1317 = vst [vmem:[%s2035_s3 + $0x68] sm:$0xff] %v1182_v25  }
  0xfb   :  { %1331 = vst [vmem:[%s2035_s3 + $0xd8] sm:$0xff] %v1252_v8  }
  0xfd   :  { %v1813_v34 = vpop.f32.mrf.mxu2 }
  0xfe   :  { %v475_v29 = vpop.f32.mrf.mxu0  ;;  %v1779_v30 = vpop.f32.mrf.mxu1  ;;  %v1222_v38 = vpack.c.bf16 %v1813_v34, %v1801_v60 }
  0xff   :  { %v814_v21 = vmul.f32 %v475_v29, %v475_v29  ;;  %v744_v39 = vadd.f32 %v743_v0, %v475_v29  ;;  %v1833_v48 = vpop.f32.mrf.mxu3 }
 0x100   :  { %1325 = vst [vmem:[%s2035_s3 + $0xa8] sm:$0xff] %v1222_v38  }
 0x101   :  { %v877_v15 = vadd.f32 %v876_v36, %v814_v21 }
 0x105   :  { %v1831_v5 = vpop.f32.mrf.mxu2 }
 0x106   :  { %v477_v47 = vpop.f32.mrf.mxu0  ;;  %v1797_v7 = vpop.f32.mrf.mxu1 }
 0x107   :  { %v1147_v51 = vpack.c.bf16 %v477_v47, %v475_v29  ;;  %v1187_v56 = vpack.c.bf16 %v1797_v7, %v1779_v30  ;;  %v815_v37 = vmul.f32 %v477_v47, %v477_v47  ;;  %v745_v22 = vadd.f32 %v744_v39, %v477_v47  ;;  %v1855_v38 = vpop.f32.mrf.mxu3 }
 0x108   :  { %v818_v47 = vmul.f32 %v1631_v57, %v1631_v57  ;;  %v1257_v8 = vpack.c.bf16 %v1855_v38, %v1833_v48 }
 0x109   :  { %1310 = vst [vmem:[%s2035_s3 + $0x30] sm:$0xff] %v1147_v51   ;;  %v878_v43 = vadd.f32 %v877_v15, %v815_v37 }
 0x10a   :  { %1318 = vst [vmem:[%s2035_s3 + $0x70] sm:$0xff] %v1187_v56  }
 0x10b   :  { %1332 = vst [vmem:[%s2035_s3 + $0xe0] sm:$0xff] %v1257_v8   ;;  %v831_v8 = vmul.f32 %v1797_v7, %v1797_v7 }
 0x10d   :  { %v1853_v37 = vpop.f32.mrf.mxu2 }
 0x10e   :  { %v480_v24 = vpop.f32.mrf.mxu0  ;;  %v1811_v25 = vpop.f32.mrf.mxu1 }
 0x10f   :  { %v816_v40 = vmul.f32 %v480_v24, %v480_v24  ;;  %v746_v45 = vadd.f32 %v745_v22, %v480_v24 }
 0x111   :  { %v879_v46 = vadd.f32 %v878_v43, %v816_v40  ;;  %v824_v43 = vmul.f32 %v1696_v54, %v1696_v54 }
 0x116   :  { %v482_v50 = vpop.f32.mrf.mxu0  ;;  %v1827_v51 = vpop.f32.mrf.mxu1 }
 0x117   :  { %v1152_v56 = vpack.c.bf16 %v482_v50, %v480_v24  ;;  %v747_v14 = vadd.f32 %v746_v45, %v482_v50  ;;  %v817_v29 = vmul.f32 %v482_v50, %v482_v50  ;;  %v1192_v61 = vpack.c.bf16 %v1827_v51, %v1811_v25 }
 0x119   :  { %1311 = vst [vmem:[%s2035_s3 + $0x38] sm:$0xff] %v1152_v56   ;;  %v748_v53 = vadd.f32 %v747_v14, %v1631_v57  ;;  %v880_v58 = vadd.f32 %v879_v46, %v817_v29  ;;  %v821_v57 = vmul.f32 %v1652_v26, %v1652_v26  ;;  %v825_v46 = vmul.f32 %v1705_v59, %v1705_v59  ;;  %v1879_v14 = vpop.f32.mrf.mxu2 }
 0x11a   :  { %1319 = vst [vmem:[%s2035_s3 + $0x78] sm:$0xff] %v1192_v61   ;;  %v826_v29 = vmul.f32 %v1719_v1, %v1719_v1 }
 0x11b   :  { %v749_v10 = vadd.f32 %v748_v53, %v1633_v2  ;;  %v881_v11 = vadd.f32 %v880_v58, %v818_v47  ;;  %v1227_v2 = vpack.c.bf16 %v1853_v37, %v1831_v5  ;;  %v827_v53 = vmul.f32 %v1735_v9, %v1735_v9 }
 0x11d   :  { %v750_v21 = vadd.f32 %v749_v10, %v1650_v18  ;;  %v882_v24 = vadd.f32 %v881_v11, %v819_v6  ;;  %v822_v18 = vmul.f32 %v1671_v41, %v1671_v41  ;;  %1326 = vst [vmem:[%s2035_s3 + $0xb0] sm:$0xff] %v1227_v2   ;;  %v829_v11 = vmul.f32 %v1765_v23, %v1765_v23 }
 0x11f   :  { %v751_v0 = vadd.f32 %v750_v21, %v1652_v26  ;;  %v883_v36 = vadd.f32 %v882_v24, %v820_v20  ;;  %v823_v26 = vmul.f32 %v1684_v49, %v1684_v49 }
 0x121   :  { %v752_v39 = vadd.f32 %v751_v0, %v1671_v41  ;;  %v884_v15 = vadd.f32 %v883_v36, %v821_v57 }
 0x123   :  { %v753_v40 = vadd.f32 %v752_v39, %v1684_v49  ;;  %v885_v22 = vadd.f32 %v884_v15, %v822_v18  ;;  %v1881_v49 = vpop.f32.mrf.mxu3 }
 0x125   :  { %v886_v45 = vadd.f32 %v885_v22, %v823_v26  ;;  %v754_v41 = vadd.f32 %v753_v40, %v1696_v54  ;;  %v833_v40 = vmul.f32 %v1827_v51, %v1827_v51 }
 0x127   :  { %v755_v50 = vadd.f32 %v754_v41, %v1705_v59  ;;  %v887_v56 = vadd.f32 %v886_v45, %v824_v43  ;;  %v828_v59 = vmul.f32 %v1749_v16, %v1749_v16  ;;  %v835_v41 = vmul.f32 %v1675_v44, %v1675_v44 }
 0x129   :  { %v756_v61 = vadd.f32 %v755_v50, %v1719_v1  ;;  %v888_v47 = vadd.f32 %v887_v56, %v825_v46  ;;  %v1895_v1 = vpop.f32.mrf.mxu2  ;;  %v836_v50 = vmul.f32 %v1688_v52, %v1688_v52 }
 0x12b   :  { %v757_v54 = vadd.f32 %v756_v61, %v1735_v9  ;;  %v889_v58 = vadd.f32 %v888_v47, %v826_v29  ;;  %v1897_v24 = vpop.f32.mrf.mxu3  ;;  %v1232_v9 = vpack.c.bf16 %v1895_v1, %v1879_v14  ;;  %v837_v29 = vmul.f32 %v1698_v55, %v1698_v55 }
 0x12c   :  { %v1262_v57 = vpack.c.bf16 %v1897_v24, %v1881_v49 }
 0x12d   :  { %v758_v6 = vadd.f32 %v757_v54, %v1749_v16  ;;  %v890_v10 = vadd.f32 %v889_v58, %v827_v53  ;;  %v830_v16 = vmul.f32 %v1779_v30, %v1779_v30  ;;  %1327 = vst [vmem:[%s2035_s3 + $0xb8] sm:$0xff] %v1232_v9  }
 0x12e   :  { %1333 = vst [vmem:[%s2035_s3 + $0xe8] sm:$0xff] %v1262_v57   ;;  %v842_v57 = vmul.f32 %v1769_v27, %v1769_v27 }
 0x12f   :  { %v759_v20 = vadd.f32 %v758_v6, %v1765_v23  ;;  %v891_v21 = vadd.f32 %v890_v10, %v828_v59  ;;  %v840_v6 = vmul.f32 %v1739_v12, %v1739_v12 }
 0x131   :  { %v760_v0 = vadd.f32 %v759_v20, %v1779_v30  ;;  %v892_v36 = vadd.f32 %v891_v21, %v829_v11  ;;  %v832_v30 = vmul.f32 %v1811_v25, %v1811_v25 }
 0x133   :  { %v893_v23 = vadd.f32 %v892_v36, %v830_v16  ;;  %v761_v2 = vadd.f32 %v760_v0, %v1797_v7  ;;  %v1921_v22 = vpop.f32.mrf.mxu3  ;;  %v834_v7 = vmul.f32 %v1656_v31, %v1656_v31  ;;  %v843_v16 = vmul.f32 %v1781_v32, %v1781_v32 }
 0x135   :  { %v894_v18 = vadd.f32 %v893_v23, %v831_v8  ;;  %v762_v39 = vadd.f32 %v761_v2, %v1811_v25  ;;  %v844_v23 = vmul.f32 %v1801_v60, %v1801_v60 }
 0x137   :  { %v895_v15 = vadd.f32 %v894_v18, %v832_v30  ;;  %v763_v26 = vadd.f32 %v762_v39, %v1827_v51  ;;  %v845_v18 = vmul.f32 %v1813_v34, %v1813_v34 }
 0x139   :  { %v764_v43 = vadd.f32 %v763_v26, %v1656_v31  ;;  %v896_v45 = vadd.f32 %v895_v15, %v833_v40 }
 0x13b   :  { %v765_v46 = vadd.f32 %v764_v43, %v1675_v44  ;;  %v897_v25 = vadd.f32 %v896_v45, %v834_v7  ;;  %v1935_v31 = vpop.f32.mrf.mxu3  ;;  %v838_v44 = vmul.f32 %v1709_v62, %v1709_v62  ;;  %v848_v45 = vmul.f32 %v1879_v14, %v1879_v14 }
 0x13c   :  { %v1267_v53 = vpack.c.bf16 %v1935_v31, %v1921_v22 }
 0x13d   :  { %v766_v56 = vadd.f32 %v765_v46, %v1688_v52  ;;  %v898_v51 = vadd.f32 %v897_v25, %v835_v41  ;;  %v839_v52 = vmul.f32 %v1721_v3, %v1721_v3  ;;  %v850_v25 = vmul.f32 %v1711_v63, %v1711_v63 }
 0x13e   :  { %1334 = vst [vmem:[%s2035_s3 + $0xf0] sm:$0xff] %v1267_v53  }
 0x13f   :  { %v767_v61 = vadd.f32 %v766_v56, %v1698_v55  ;;  %v899_v47 = vadd.f32 %v898_v51, %v836_v50 }
 0x141   :  { %v768_v54 = vadd.f32 %v767_v61, %v1709_v62  ;;  %v900_v58 = vadd.f32 %v899_v47, %v837_v29  ;;  %v841_v62 = vmul.f32 %v1751_v17, %v1751_v17 }
 0x143   :  { %v769_v55 = vadd.f32 %v768_v54, %v1721_v3  ;;  %v901_v59 = vadd.f32 %v900_v58, %v838_v44  ;;  %v1954_v9 = vpop.f32.mrf.mxu3 }
 0x145   :  { %v902_v10 = vadd.f32 %v901_v59, %v839_v52  ;;  %v770_v11 = vadd.f32 %v769_v55, %v1739_v12 }
 0x147   :  { %v771_v20 = vadd.f32 %v770_v11, %v1751_v17  ;;  %v903_v21 = vadd.f32 %v902_v10, %v840_v6 }
 0x149   :  { %v772_v3 = vadd.f32 %v771_v20, %v1769_v27  ;;  %v904_v0 = vadd.f32 %v903_v21, %v841_v62 }
 0x14b   :  { %v773_v36 = vadd.f32 %v772_v3, %v1781_v32  ;;  %v905_v12 = vadd.f32 %v904_v0, %v842_v57  ;;  %v602_v27 = vpop.f32.mrf.mxu3  ;;  %v846_v32 = vmul.f32 %v1831_v5, %v1831_v5 }
 0x14c   :  { %v1272_v30 = vpack.c.bf16 %v602_v27, %v1954_v9 }
 0x14d   :  { %v774_v17 = vadd.f32 %v773_v36, %v1801_v60  ;;  %v906_v2 = vadd.f32 %v905_v12, %v843_v16  ;;  %v861_v16 = vmul.f32 %v1897_v24, %v1897_v24 }
 0x14e   :  { %1335 = vst [vmem:[%s2035_s3 + $0xf8] sm:$0xff] %v1272_v30   ;;  %v865_v30 = vmul.f32 %v602_v27, %v602_v27 }
 0x14f   :  { %v775_v8 = vadd.f32 %v774_v17, %v1813_v34  ;;  %v907_v39 = vadd.f32 %v906_v2, %v844_v23  ;;  %v847_v34 = vmul.f32 %v1853_v37, %v1853_v37  ;;  %v862_v23 = vmul.f32 %v1921_v22, %v1921_v22 }
 0x150   :  { %v863_v2 = vmul.f32 %v1935_v31, %v1935_v31 }
 0x151   :  { %v908_v15 = vadd.f32 %v907_v39, %v845_v18  ;;  %v776_v26 = vadd.f32 %v775_v8, %v1831_v5  ;;  %v849_v5 = vmul.f32 %v1895_v1, %v1895_v1  ;;  %v864_v18 = vmul.f32 %v1954_v9, %v1954_v9 }
 0x153   :  { %v909_v60 = vadd.f32 %v908_v15, %v846_v32  ;;  %v777_v40 = vadd.f32 %v776_v26, %v1853_v37  ;;  %v851_v37 = vmul.f32 %v1723_v4, %v1723_v4 }
 0x155   :  { %v910_v7 = vadd.f32 %v909_v60, %v847_v34  ;;  %v778_v43 = vadd.f32 %v777_v40, %v1879_v14  ;;  %v852_v14 = vmul.f32 %v1741_v13, %v1741_v13 }
 0x157   :  { %v911_v41 = vadd.f32 %v910_v7, %v848_v45  ;;  %v779_v46 = vadd.f32 %v778_v43, %v1895_v1  ;;  %v853_v1 = vmul.f32 %v1753_v19, %v1753_v19 }
 0x159   :  { %v780_v50 = vadd.f32 %v779_v46, %v1711_v63  ;;  %v912_v56 = vadd.f32 %v911_v41, %v849_v5  ;;  %v854_v63 = vmul.f32 %v1771_v28, %v1771_v28 }
 0x15b   :  { %v781_v51 = vadd.f32 %v780_v50, %v1723_v4  ;;  %v913_v29 = vadd.f32 %v912_v56, %v850_v25  ;;  %v855_v4 = vmul.f32 %v1783_v33, %v1783_v33 }
 0x15d   :  { %v782_v61 = vadd.f32 %v781_v51, %v1741_v13  ;;  %v914_v47 = vadd.f32 %v913_v29, %v851_v37  ;;  %v856_v13 = vmul.f32 %v1803_v42, %v1803_v42 }
 0x15f   :  { %v783_v53 = vadd.f32 %v782_v61, %v1753_v19  ;;  %v915_v44 = vadd.f32 %v914_v47, %v852_v14  ;;  %v857_v19 = vmul.f32 %v1815_v35, %v1815_v35 }
 0x161   :  { %v784_v54 = vadd.f32 %v783_v53, %v1771_v28  ;;  %v916_v58 = vadd.f32 %v915_v44, %v853_v1  ;;  %v858_v28 = vmul.f32 %v1833_v48, %v1833_v48 }
 0x163   :  { %v785_v52 = vadd.f32 %v784_v54, %v1783_v33  ;;  %v917_v55 = vadd.f32 %v916_v58, %v854_v63  ;;  %v859_v33 = vmul.f32 %v1855_v38, %v1855_v38 }
 0x165   :  { %v918_v59 = vadd.f32 %v917_v55, %v855_v4  ;;  %v786_v6 = vadd.f32 %v785_v52, %v1803_v42  ;;  %v860_v42 = vmul.f32 %v1881_v49, %v1881_v49 }
 0x167   :  { %v787_v10 = vadd.f32 %v786_v6, %v1815_v35  ;;  %v919_v11 = vadd.f32 %v918_v59, %v856_v13 }
 0x169   :  { %v788_v62 = vadd.f32 %v787_v10, %v1833_v48  ;;  %v920_v20 = vadd.f32 %v919_v11, %v857_v19 }
 0x16b   :  { %v789_v21 = vadd.f32 %v788_v62, %v1855_v38  ;;  %v921_v57 = vadd.f32 %v920_v20, %v858_v28 }
 0x16d   :  { %v790_v3 = vadd.f32 %v789_v21, %v1881_v49  ;;  %v922_v0 = vadd.f32 %v921_v57, %v859_v33 }
 0x16f   :  { %v791_v35 = vadd.f32 %v790_v3, %v1897_v24  ;;  %v923_v36 = vadd.f32 %v922_v0, %v860_v42 }
 0x171   :  { %v924_v48 = vadd.f32 %v923_v36, %v861_v16  ;;  %v792_v12 = vadd.f32 %v791_v35, %v1921_v22 }
 0x173   :  { %v925_v38 = vadd.f32 %v924_v48, %v862_v23  ;;  %v793_v17 = vadd.f32 %v792_v12, %v1935_v31 }
 0x175   :  { %v926_v49 = vadd.f32 %v925_v38, %v863_v2  ;;  %v794_v8 = vadd.f32 %v793_v17, %v1954_v9 }
 0x177   :  { %v927_v24 = vadd.f32 %v926_v49, %v864_v18  ;;  %v795_v39 = vadd.f32 %v794_v8, %v602_v27 }
 0x179   :  { %v796_v15 = vrot.slane %v795_v39, 4  ;;  %v928_v26 = vadd.f32 %v927_v24, %v865_v30 }
 0x17b   :  { %v797_v32 = vadd.f32 %v796_v15, %v795_v39  ;;  %v929_v60 = vrot.slane %v928_v26, 4 }
 0x17d   :  { %v798_v22 = vrot.slane %v797_v32, 2  ;;  %v930_v40 = vadd.f32 %v929_v60, %v928_v26 }
 0x17f   :  { %v799_v34 = vadd.f32 %v798_v22, %v797_v32  ;;  %v931_v7 = vrot.slane %v930_v40, 2 }
 0x181   :  { %v800_v43 = vrot.slane %v799_v34, 1  ;;  %v932_v45 = vadd.f32 %v931_v7, %v930_v40 }
 0x183   :  { %v933_v31 = vrot.slane %v932_v45, 1  ;;  %v801_v41 = vadd.f32 %v800_v43, %v799_v34 }
 0x185   :  { %v934_v46 = vadd.f32 %v933_v31, %v932_v45 }
 0x187   :  { %v936_v5 = vsel %vm935_vm0, %v801_v41, %v934_v46 }
 0x188   :  { %937 = vst [vmem:[%s2036_s4] sm:$0x3] %v936_v5 }

// kernel: bottleneck_block.5
= control target key start
LH: loop header
LB: loop body
LE: loop exit
PB: predicated region body
PF: predicated region fallthrough
CT: control target
= control target key end

     0   :  { %s7159_s15 = smov 0   ;;  %s8600_s0 = inlined_call_operand.vmem [shape: bf16[512,128], index: 0, kind: input, shape index: {}]   ;;  %s8601_s1 = inlined_call_operand.vmem [shape: f32[2,128], index: 1, kind: input, shape index: {}]   ;;  %s8602_s2 = inlined_call_operand.vmem [shape: bf16[9,128,128], index: 2, kind: input, shape index: {}]   ;;  %s8603_s3 = inlined_call_operand.vmem [shape: bf16[512,128], index: 3, kind: output, shape index: {0}]   ;;  %s8604_s4 = inlined_call_operand.vmem [shape: f32[2,2,128], index: 4, kind: output, shape index: {1}]  }
   0x1 LB: > { %s7165_s16 = sadd.s32 4294967295, %s7131_s15   ;;  %p6130_p0 = scmp.ge.s32.totalorder %s7131_s15, 1  ;;  %s7131_s15 = sphi %s7159_s15, %s15_s15  }
   0x2   : > { %p166_p1 = scmp.lt.s32.totalorder %s7131_s15, 3 }
   0x4   : > { %p167_p2 = pnand %p6130_p0, %p166_p1 }
   0x6   : > { %170 = sbr.rel (%p167_p2) target bundleno = 785 (0x311), region = 32 }
   0xb   : > { %v6817_v0 = vld [vmem:[%s8602_s2 + $0x38] sm:$0xff]  ;;  %s6131_s19 = sshll.u32 %s7165_s16, 5  ;;  %vm221_vm0 = vcmask 1040384   ;;  %vm222_vm1 = vsmask.f32 256  ;;  %v6816_v1 = vld [vmem:[%s8602_s2 + $0x30] sm:$0xff] }
   0xc   : > { %p197_p3 = scmp.lt.s32.totalorder %s6131_s19, 63  ;;  %7088 = vmatpush.bf16.msra.mxu1 %v6817_v0  ;;  %7089 = vmatpush.bf16.msra.mxu2 %v6817_v0  ;;  %vm7178_vm2 = vmand %vm221_vm0, %vm222_vm1  ;;  %v233_v3 = vld [vmem:[#allocation2 + $0x30] sm:$0x1]  ;;  %v6815_v5 = vld [vmem:[%s8602_s2 + $0x28] sm:$0xff]  ;;  %v7133_v9 = vmov 0   ;;  %vm840_vm3 = vcmask 1043456  }
   0xd   : > { %7090 = vmatpush.bf16.msra.mxu3 %v6817_v0  ;;  %1146 = vmatpush.bf16.msra.mxu0 %v6817_v0  ;;  %v234_v4 = vsel %vm7178_vm2, 0, %v233_v3  ;;  %v7193_v6 = vld [vmem:[%s8601_s1] ss:$0 sm:$0xff]  ;;  %v257_v8 = vld [vmem:[#allocation2 + $0x90] sm:$0x1]  ;;  %v6813_v39 = vld [vmem:[%s8602_s2 + $0x18] sm:$0xff] }
   0xe   : > { %s8654_s19 = smov (!%p197_p3, %s6131_s19), 63  ;;  %235 = vst [vmem:[#allocation2 + $0x30] sm:$0x1] %v234_v4  ;;  %v245_v7 = vld [vmem:[#allocation2 + $0x60] sm:$0x1]  ;;  %v258_v13 = vsel %vm7178_vm2, 0, %v257_v8 }
   0xf   : > { %s6132_s24 = sshll.u32 %s8654_s19, 2  ;;  %213 = vst [vmem:[#allocation2] sm:$0xf] %v7133_v9  ;;  %v246_v11 = vsel %vm7178_vm2, 0, %v245_v7  ;;  %v7212_v17 = vld [vmem:[%s8601_s1 + $0x1] ss:$0 sm:$0xff] }
  0x10   : > { %7091 = vmatpush.bf16.msra.mxu1 %v6816_v1  ;;  %7092 = vmatpush.bf16.msra.mxu2 %v6816_v1  ;;  %s7200_s29 = scalar_lea.vmem %s8600_s0, %s6132_s24  ;;  %247 = vst [vmem:[#allocation2 + $0x60] sm:$0x1] %v246_v11  ;;  %v6814_v22 = vld [vmem:[%s8602_s2 + $0x20] sm:$0xff]  ;;  %v236_v26 = vld [vmem:[#allocation2 + $0x3c] sm:$0x1]  ;;  %v6812_v55 = vld [vmem:[%s8602_s2 + $0x10] sm:$0xff]  ;;  %s8467_s27 = scalar_lea.vmem %s8603_s3, %s6132_s24 }
  0x11   : > { %7093 = vmatpush.bf16.msra.mxu3 %v6816_v1  ;;  %1147 = vmatpush.bf16.msra.mxu0 %v6816_v1  ;;  %v7060_v10 = vld [vmem:[%s7200_s29 + $0x18] sm:$0xff]   ;;  %259 = vst [vmem:[#allocation2 + $0x90] sm:$0x1] %v258_v13  ;;  %v7061_v27 = vld [vmem:[%s7200_s29 + $0x20] sm:$0xff]   ;;  %vm272_vm4 = vsmask.f32 7938 }
  0x12   : > { %v7064_v12 = vld [vmem:[%s7200_s29 + $0x38] sm:$0xff]   ;;  %v6928_v15 = vunpack.c.l.bf16 %v7060_v10  ;;  %v6929_v16 = vunpack.c.h.bf16 %v7060_v10  ;;  %214 = vst [vmem:[#allocation2 + $0x4] sm:$0xf] %v7133_v9  ;;  %v237_v34 = vsel %vm7178_vm2, 0, %v236_v26  ;;  %v6932_v38 = vunpack.c.l.bf16 %v7061_v27  ;;  %vm7251_vm7 = vmand %vm840_vm3, %vm272_vm4  ;;  %v6811_v13 = vld [vmem:[%s8602_s2 + $0x8] sm:$0xff]  ;;  %p208_p4 = scmp.lt.s32.totalorder %s7165_s16, 1 }
  0x13   : > { %v7068_v14 = vld [vmem:[%s7200_s29 + $0x58] sm:$0xff]   ;;  %v6944_v18 = vunpack.c.l.bf16 %v7064_v12  ;;  %v6945_v19 = vunpack.c.h.bf16 %v7064_v12  ;;  %215 = vst [vmem:[#allocation2 + $0x8] sm:$0x1] %v7133_v9  ;;  %v6933_v43 = vunpack.c.h.bf16 %v7061_v27  ;;  %vm518_vm5 = vsmask.f32 4368  ;;  %vm7561_vm12 = vmand %vm221_vm0, %vm272_vm4 }
  0x14   : > { %v6960_v20 = vunpack.c.l.bf16 %v7068_v14  ;;  %v6961_v21 = vunpack.c.h.bf16 %v7068_v14  ;;  %7094 = vmatpush.bf16.msra.mxu1 %v6815_v5  ;;  %7095 = vmatpush.bf16.msra.mxu2 %v6815_v5  ;;  %v394_v23 = vmul.f32 %v7193_v6, %v6928_v15  ;;  %v395_v24 = vmul.f32 %v7193_v6, %v6929_v16  ;;  %217 = vst [vmem:[#allocation2 + $0xcc] sm:$0xf] %v7133_v9  ;;  %vm7242_vm6 = vmor %vm222_vm1, %vm518_vm5  ;;  %s8656_s16 = smov (!%p208_p4, %s7165_s16), 1 }
  0x15   : > { %v402_v25 = vmul.f32 %v7193_v6, %v6944_v18  ;;  %7096 = vmatpush.bf16.msra.mxu3 %v6815_v5  ;;  %1148 = vmatpush.bf16.msra.mxu0 %v6815_v5  ;;  %v403_v28 = vmul.f32 %v7193_v6, %v6945_v19  ;;  %218 = vst [vmem:[#allocation2 + $0xd0] sm:$0xf] %v7133_v9  ;;  %v863_v8 = vld [vmem:[#allocation2 + $0x30] sm:$0xf]  ;;  %vm1315_vm8 = vsmask.f32 3328 }
  0x16   : > { %v410_v29 = vmul.f32 %v7193_v6, %v6960_v20  ;;  %v411_v30 = vmul.f32 %v7193_v6, %v6961_v21  ;;  %v428_v31 = vadd.f32 %v7212_v17, %v394_v23  ;;  %v429_v32 = vadd.f32 %v7212_v17, %v395_v24  ;;  %219 = vst [vmem:[#allocation2 + $0xd4] sm:$0x1] %v7133_v9  ;;  %v248_v23 = vld [vmem:[#allocation2 + $0x6c] sm:$0x1]  ;;  %s6135_s19 = sshll.u32 %s8656_s16, 1 }
  0x17   : > { %v436_v33 = vadd.f32 %v7212_v17, %v402_v25  ;;  %v437_v35 = vadd.f32 %v7212_v17, %v403_v28  ;;  %238 = vst [vmem:[#allocation2 + $0x3c] sm:$0x1] %v237_v34  ;;  %v396_v50 = vmul.f32 %v7193_v6, %v6932_v38  ;;  %v397_v54 = vmul.f32 %v7193_v6, %v6933_v43  ;;  %v891_v18 = vld [vmem:[#allocation2 + $0x60] sm:$0xf]  ;;  %s211_s30 = scalar_lea.vmem %s8604_s4, %s6135_s19 }
  0x18   : > { %v444_v36 = vadd.f32 %v7212_v17, %v410_v29  ;;  %v445_v37 = vadd.f32 %v7212_v17, %v411_v30  ;;  %7097 = vmatpush.bf16.msra.mxu1 %v6814_v22  ;;  %7098 = vmatpush.bf16.msra.mxu2 %v6814_v22  ;;  %v460_v40 = vmax.f32 %v428_v31, 0.0  ;;  %v461_v41 = vmax.f32 %v429_v32, 0.0  ;;  %v7065_v28 = vld [vmem:[%s7200_s29 + $0x40] sm:$0xff]   ;;  %v260_v29 = vld [vmem:[#allocation2 + $0x9c] sm:$0x1] }
  0x19   : > { %v468_v42 = vmax.f32 %v436_v33, 0.0  ;;  %7099 = vmatpush.bf16.msra.mxu3 %v6814_v22  ;;  %1149 = vmatpush.bf16.msra.mxu0 %v6814_v22  ;;  %v469_v44 = vmax.f32 %v437_v35, 0.0  ;;  %v430_v5 = vadd.f32 %v7212_v17, %v396_v50  ;;  %v919_v32 = vld [vmem:[#allocation2 + $0x90] sm:$0xf]  ;;  %v431_v33 = vadd.f32 %v7212_v17, %v397_v54  ;;  %v6810_v35 = vld [vmem:[%s8602_s2] sm:$0xff] }
  0x1a   : > { %v476_v45 = vmax.f32 %v444_v36, 0.0  ;;  %v477_v46 = vmax.f32 %v445_v37, 0.0  ;;  %v492_v47 = vpack.c.bf16 %v460_v40, %v460_v40  ;;  %v493_v48 = vpack.c.bf16 %v461_v41, %v461_v41 }
  0x1b   : > { %v500_v49 = vpack.c.bf16 %v468_v42, %v468_v42  ;;  %v501_v51 = vpack.c.bf16 %v469_v44, %v469_v44  ;;  %v462_v34 = vmax.f32 %v430_v5, 0.0  ;;  %v463_v40 = vmax.f32 %v431_v33, 0.0  ;;  %v224_v44 = vld [vmem:[#allocation2 + $0xc] sm:$0x1] }
  0x1c   : > { %v508_v52 = vpack.c.bf16 %v476_v45, %v476_v45  ;;  %v509_v53 = vpack.c.bf16 %v477_v46, %v477_v46  ;;  %7100 = vmatpush.bf16.msra.mxu1 %v6813_v39  ;;  %7101 = vmatpush.bf16.msra.mxu2 %v6813_v39  ;;  %v572_v56 = vshrl.u32 %v492_v47, 16  ;;  %v575_v57 = vshll.u32 %v492_v47, 16  ;;  %v6833_v47 = vld [vmem:[%s8602_s2 + $0xb8] sm:$0xff] }
  0x1d   : > { %v580_v58 = vshrl.u32 %v493_v48, 16  ;;  %v583_v59 = vshll.u32 %v493_v48, 16  ;;  %7102 = vmatpush.bf16.msra.mxu3 %v6813_v39  ;;  %1150 = vmatpush.bf16.msra.mxu0 %v6813_v39  ;;  %v640_v60 = vshrl.u32 %v500_v49, 16  ;;  %v643_v61 = vshll.u32 %v500_v49, 16  ;;  %v7069_v39 = vld [vmem:[%s7200_s29 + $0x60] sm:$0xff]   ;;  %v6857_v48 = vld [vmem:[%s8602_s2 + $0xf8] sm:$0xff] }
  0x1e   : > { %v648_v62 = vshrl.u32 %v501_v51, 16  ;;  %v651_v63 = vshll.u32 %v501_v51, 16  ;;  %v574_v1 = vrot.slane %v572_v56, 7  ;;  %v708_v4 = vshrl.u32 %v508_v52, 16  ;;  %v6825_v51 = vld [vmem:[%s8602_s2 + $0x78] sm:$0xff] }
  0x1f   : > { %v7246_v3 = vrot.slane %v580_v58, 7  ;;  %v642_v9 = vrot.slane %v640_v60, 7  ;;  %v711_v11 = vshll.u32 %v508_v52, 16  ;;  %v716_v12 = vshrl.u32 %v509_v53, 16  ;;  %v6865_v52 = vld [vmem:[%s8602_s2 + $0x138] sm:$0xff]  ;;  %v6832_v58 = vld [vmem:[%s8602_s2 + $0xb0] sm:$0xff] }
  0x20   : > { %v7255_v10 = vrot.slane %v648_v62, 7  ;;  %7103 = vmatpush.bf16.msra.mxu1 %v6812_v55  ;;  %7104 = vmatpush.bf16.msra.mxu2 %v6812_v55  ;;  %v577_v14 = vor.u32 %v575_v57, %v574_v1  ;;  %v578_v15 = vrot.slane %v574_v1, 4  ;;  %v719_v19 = vshll.u32 %v509_v53, 16  ;;  %v6794_v57 = vld [vmem:[#allocation2] sm:$0xff] }
  0x21   : > { %v585_v16 = vor.u32 %v583_v59, %v7246_v3  ;;  %7105 = vmatpush.bf16.msra.mxu3 %v6812_v55  ;;  %1151 = vmatpush.bf16.msra.mxu0 %v6812_v55  ;;  %v645_v20 = vor.u32 %v643_v61, %v642_v9  ;;  %v646_v21 = vrot.slane %v642_v9, 4  ;;  %v710_v26 = vrot.slane %v708_v4, 7  ;;  %v6856_v9 = vld [vmem:[%s8602_s2 + $0xf0] sm:$0xff] }
  0x22   : > { %v653_v22 = vor.u32 %v651_v63, %v7255_v10  ;;  %v864_v25 = vsel %vm7251_vm7, %v577_v14, %v863_v8  ;;  %v7266_v27 = vrot.slane %v716_v12, 7  ;;  %v494_v41 = vpack.c.bf16 %v462_v34, %v462_v34  ;;  %v6915_v8 = vld [vmem:[%s7200_s29] sm:$0xff]   ;;  %v870_v12 = vld [vmem:[#allocation2 + $0x3c] sm:$0xf] }
  0x23   : > { %v586_v24 = vsel %vm7242_vm6, %v578_v15, %v585_v16  ;;  %865 = vst [vmem:[#allocation2 + $0x30] sm:$0xf] %v864_v25  ;;  %v892_v31 = vsel %vm7251_vm7, %v645_v20, %v891_v18  ;;  %v713_v36 = vor.u32 %v711_v11, %v710_v26  ;;  %v714_v37 = vrot.slane %v710_v26, 4  ;;  %v6824_v11 = vld [vmem:[%s8602_s2 + $0x70] sm:$0xff] }
  0x24   : > { %v654_v30 = vsel %vm7242_vm6, %v646_v21, %v653_v22  ;;  %7106 = vmatpush.bf16.msra.mxu1 %v6811_v13  ;;  %7107 = vmatpush.bf16.msra.mxu2 %v6811_v13  ;;  %866 = vst [vmem:[#allocation2 + $0x34] sm:$0xf] %v586_v24  ;;  %v721_v38 = vor.u32 %v719_v19, %v7266_v27  ;;  %v249_v42 = vsel %vm7178_vm2, 0, %v248_v23  ;;  %v6948_v43 = vunpack.c.l.bf16 %v7065_v28  ;;  %v6864_v26 = vld [vmem:[%s8602_s2 + $0x130] sm:$0xff] }
  0x25   : > { %7108 = vmatpush.bf16.msra.mxu3 %v6811_v13  ;;  %1152 = vmatpush.bf16.msra.mxu0 %v6811_v13  ;;  %893 = vst [vmem:[#allocation2 + $0x60] sm:$0xf] %v892_v31  ;;  %v920_v46 = vsel %vm7251_vm7, %v713_v36, %v919_v32  ;;  %v6949_v49 = vunpack.c.h.bf16 %v7065_v28  ;;  %v261_v50 = vsel %vm7178_vm2, 0, %v260_v29  ;;  %v495_v53 = vpack.c.bf16 %v463_v40, %v463_v40  ;;  %v239_v32 = vld [vmem:[#allocation2 + $0x48] sm:$0x1] }
  0x26   : > { %894 = vst [vmem:[#allocation2 + $0x64] sm:$0xf] %v654_v30  ;;  %v722_v45 = vsel %vm7242_vm6, %v714_v37, %v721_v38  ;;  %v589_v54 = vshrl.u32 %v494_v41, 16  ;;  %v592_v55 = vshll.u32 %v494_v41, 16  ;;  %v404_v56 = vmul.f32 %v7193_v6, %v6948_v43  ;;  %v6831_v36 = vld [vmem:[%s8602_s2 + $0xa8] sm:$0xff] }
  0x27   : > { %921 = vst [vmem:[#allocation2 + $0x90] sm:$0xf] %v920_v46  ;;  %v405_v59 = vmul.f32 %v7193_v6, %v6949_v49  ;;  %v6964_v60 = vunpack.c.l.bf16 %v7069_v39  ;;  %v6965_v61 = vunpack.c.h.bf16 %v7069_v39  ;;  %v225_v62 = vsel %vm7178_vm2, 0, %v224_v44  ;;  %v6855_v38 = vld [vmem:[%s8602_s2 + $0xe8] sm:$0xff] }
  0x28   : > { %7109 = vmatpush.bf16.msra.mxu1 %v6810_v35  ;;  %7110 = vmatpush.bf16.msra.mxu2 %v6810_v35  ;;  %922 = vst [vmem:[#allocation2 + $0x94] sm:$0xf] %v722_v45  ;;  %v591_v63 = vrot.slane %v589_v54, 7  ;;  %v597_v1 = vshrl.u32 %v495_v53, 16  ;;  %v600_v4 = vshll.u32 %v495_v53, 16  ;;  %v438_v5 = vadd.f32 %v7212_v17, %v404_v56  ;;  %v6823_v44 = vld [vmem:[%s8602_s2 + $0x68] sm:$0xff] }
  0x29   : > { %7111 = vmatpush.bf16.msra.mxu3 %v6810_v35  ;;  %1153 = vmatpush.bf16.msra.mxu0 %v6810_v35  ;;  %250 = vst [vmem:[#allocation2 + $0x6c] sm:$0x1] %v249_v42  ;;  %v439_v13 = vadd.f32 %v7212_v17, %v405_v59  ;;  %v412_v14 = vmul.f32 %v7193_v6, %v6964_v60  ;;  %v6916_v25 = vunpack.c.l.bf16 %v6915_v8  ;;  %v6917_v37 = vunpack.c.h.bf16 %v6915_v8  ;;  %v6863_v49 = vld [vmem:[%s8602_s2 + $0x128] sm:$0xff]  ;;  %v6830_v53 = vld [vmem:[%s8602_s2 + $0xa0] sm:$0xff] }
  0x2a   : > { %262 = vst [vmem:[#allocation2 + $0x9c] sm:$0x1] %v261_v50  ;;  %v413_v15 = vmul.f32 %v7193_v6, %v6965_v61  ;;  %v594_v18 = vor.u32 %v592_v55, %v591_v63  ;;  %v595_v19 = vrot.slane %v591_v63, 4  ;;  %v7317_v20 = vrot.slane %v597_v1, 7  ;;  %v7062_v55 = vld [vmem:[%s7200_s29 + $0x28] sm:$0xff]  }
  0x2b   : > { %v6798_v16 = vld [vmem:[#allocation2 + $0x30] sm:$0xff]  ;;  %v470_v21 = vmax.f32 %v438_v5, 0.0  ;;  %226 = vst [vmem:[#allocation2 + $0xc] sm:$0x1] %v225_v62  ;;  %v471_v22 = vmax.f32 %v439_v13, 0.0  ;;  %v446_v23 = vadd.f32 %v7212_v17, %v412_v14  ;;  %v388_v43 = vmul.f32 %v7193_v6, %v6916_v25  ;;  %v6822_v5 = vld [vmem:[%s8602_s2 + $0x60] sm:$0xff] }
  0x2c   : > { %2356 = vmatpush.bf16.msrb.mxu2 %v6833_v47  ;;  %1831 = vmatpush.bf16.msrb.mxu1 %v6825_v51  ;;  %v447_v24 = vadd.f32 %v7212_v17, %v413_v15  ;;  %v602_v29 = vor.u32 %v600_v4, %v7317_v20  ;;  %v871_v30 = vsel %vm7251_vm7, %v594_v18, %v870_v12  ;;  %v240_v54 = vsel %vm7178_vm2, 0, %v239_v32  ;;  %v6854_v4 = vld [vmem:[%s8602_s2 + $0xe0] sm:$0xff]  ;;  %v251_v18 = vld [vmem:[#allocation2 + $0x78] sm:$0x1] }
  0x2d   : > { %2734 = vmatpush.bf16.msrb.mxu3 %v6857_v48  ;;  %3480 = vmatpush.bf16.msrb.mxu0 %v6865_v52  ;;  %v6802_v28 = vld [vmem:[#allocation2 + $0x60] sm:$0xff]  ;;  %v502_v31 = vpack.c.bf16 %v470_v21, %v470_v21  ;;  %872 = vst [vmem:[#allocation2 + $0x3c] sm:$0xf] %v871_v30  ;;  %v503_v33 = vpack.c.bf16 %v471_v22, %v471_v22  ;;  %v478_v34 = vmax.f32 %v446_v23, 0.0  ;;  %vm1316_vm9 = vsmask.f32 7440 }
  0x2e   : > { %1154 = vmatmul.bf16.vlgmr.msra.gmra.mxu0 %v6794_v57  ;;  %1174 = vmatmul.bf16.vlgmr.msra.gmra.mxu1 %v6798_v16  ;;  %v479_v35 = vmax.f32 %v447_v24, 0.0  ;;  %v603_v40 = vsel %vm7242_vm6, %v595_v19, %v602_v29  ;;  %v389_v51 = vmul.f32 %v7193_v6, %v6917_v37  ;;  %v422_v52 = vadd.f32 %v7212_v17, %v388_v43  ;;  %vm7544_vm10 = vmor %vm1315_vm8, %vm1316_vm9 }
  0x2f   : > { %1194 = vmatmul.bf16.vlgmr.msra.gmra.mxu2 %v6802_v28  ;;  %v6806_v39 = vld [vmem:[#allocation2 + $0x90] sm:$0xff]  ;;  %v657_v41 = vshrl.u32 %v502_v31, 16  ;;  %v660_v42 = vshll.u32 %v502_v31, 16  ;;  %873 = vst [vmem:[#allocation2 + $0x40] sm:$0xf] %v603_v40  ;;  %v665_v45 = vshrl.u32 %v503_v33, 16  ;;  %v510_v47 = vpack.c.bf16 %v478_v34, %v478_v34 }
  0x30   : > { %2357 = vmatpush.bf16.msrb.mxu2 %v6832_v58  ;;  %1832 = vmatpush.bf16.msrb.mxu1 %v6824_v11  ;;  %v668_v46 = vshll.u32 %v503_v33, 16  ;;  %v511_v48 = vpack.c.bf16 %v479_v35, %v479_v35  ;;  %v898_v57 = vld [vmem:[#allocation2 + $0x6c] sm:$0xf]  ;;  %v423_v1 = vadd.f32 %v7212_v17, %v389_v51  ;;  %241 = vst [vmem:[#allocation2 + $0x48] sm:$0x1] %v240_v54  ;;  %v454_v14 = vmax.f32 %v422_v52, 0.0 }
  0x31   : > { %2735 = vmatpush.bf16.msrb.mxu3 %v6856_v9  ;;  %3481 = vmatpush.bf16.msrb.mxu0 %v6864_v26  ;;  %v659_v50 = vrot.slane %v657_v41, 7  ;;  %v7350_v56 = vrot.slane %v665_v45, 7  ;;  %v725_v58 = vshrl.u32 %v510_v47, 16  ;;  %v728_v59 = vshll.u32 %v510_v47, 16  ;;  %v926_v13 = vld [vmem:[#allocation2 + $0x9c] sm:$0xf] }
  0x32   : > { %1214 = vmatmul.bf16.vlgmr.msra.gmra.mxu3 %v6806_v39  ;;  %v733_v60 = vshrl.u32 %v511_v48, 16  ;;  %v736_v63 = vshll.u32 %v511_v48, 16  ;;  %v455_v15 = vmax.f32 %v423_v1, 0.0  ;;  %v6936_v16 = vunpack.c.l.bf16 %v7062_v55  ;;  %v7066_v28 = vld [vmem:[%s7200_s29 + $0x48] sm:$0xff]  }
  0x33   : > { %v662_v61 = vor.u32 %v660_v42, %v659_v50  ;;  %v663_v62 = vrot.slane %v659_v50, 4  ;;  %v670_v8 = vor.u32 %v668_v46, %v7350_v56  ;;  %v727_v9 = vrot.slane %v725_v58, 7  ;;  %v263_v34 = vld [vmem:[#allocation2 + $0xa8] sm:$0x1] }
  0x34   : > { %2358 = vmatpush.bf16.msrb.mxu2 %v6831_v36  ;;  %1833 = vmatpush.bf16.msrb.mxu1 %v6823_v44  ;;  %v7360_v11 = vrot.slane %v733_v60, 7  ;;  %v486_v24 = vpack.c.bf16 %v454_v14, %v454_v14  ;;  %v487_v25 = vpack.c.bf16 %v455_v15, %v455_v15  ;;  %v6937_v26 = vunpack.c.h.bf16 %v7062_v55  ;;  %v7070_v35 = vld [vmem:[%s7200_s29 + $0x68] sm:$0xff]   ;;  %v6829_v44 = vld [vmem:[%s8602_s2 + $0x98] sm:$0xff] }
  0x35   : > { %2736 = vmatpush.bf16.msrb.mxu3 %v6855_v38  ;;  %3482 = vmatpush.bf16.msrb.mxu0 %v6863_v49  ;;  %v899_v12 = vsel %vm7251_vm7, %v662_v61, %v898_v57  ;;  %v671_v19 = vsel %vm7242_vm6, %v663_v62, %v670_v8  ;;  %v730_v21 = vor.u32 %v728_v59, %v727_v9  ;;  %v731_v22 = vrot.slane %v727_v9, 4  ;;  %v842_v49 = vld [vmem:[#allocation2 + $0xc] sm:$0xf] }
  0x36   : > { %900 = vst [vmem:[#allocation2 + $0x6c] sm:$0xf] %v899_v12  ;;  %v738_v23 = vor.u32 %v736_v63, %v7360_v11  ;;  %v6799_v29 = vld [vmem:[#allocation2 + $0x3c] sm:$0xff]  ;;  %v398_v32 = vmul.f32 %v7193_v6, %v6936_v16  ;;  %v252_v33 = vsel %vm7178_vm2, 0, %v251_v18  ;;  %v521_v36 = vshrl.u32 %v486_v24, 16  ;;  %v7397_v15 = vld [vmem:[%s7200_s29 + $0x8] sm:$0xff]  }
  0x37   : > { %901 = vst [vmem:[#allocation2 + $0x70] sm:$0xf] %v671_v19  ;;  %v927_v31 = vsel %vm7251_vm7, %v730_v21, %v926_v13  ;;  %v524_v37 = vshll.u32 %v486_v24, 16  ;;  %v529_v38 = vshrl.u32 %v487_v25, 16  ;;  %v532_v39 = vshll.u32 %v487_v25, 16 }
  0x38   : > { %2359 = vmatpush.bf16.msrb.mxu2 %v6830_v53  ;;  %1834 = vmatpush.bf16.msrb.mxu1 %v6822_v5  ;;  %v739_v30 = vsel %vm7242_vm6, %v731_v22, %v738_v23  ;;  %928 = vst [vmem:[#allocation2 + $0x9c] sm:$0xf] %v927_v31  ;;  %v399_v40 = vmul.f32 %v7193_v6, %v6937_v26  ;;  %v6952_v42 = vunpack.c.l.bf16 %v7066_v28  ;;  %v6953_v43 = vunpack.c.h.bf16 %v7066_v28  ;;  %v227_v63 = vld [vmem:[#allocation2 + $0x18] sm:$0x1] }
  0x39   : > { %2737 = vmatpush.bf16.msrb.mxu3 %v6854_v4  ;;  %929 = vst [vmem:[#allocation2 + $0xa0] sm:$0xf] %v739_v30  ;;  %v432_v41 = vadd.f32 %v7212_v17, %v398_v32  ;;  %v523_v45 = vrot.slane %v521_v36, 7  ;;  %v7381_v46 = vrot.slane %v529_v38, 7  ;;  %v264_v47 = vsel %vm7178_vm2, 0, %v263_v34  ;;  %v6853_v28 = vld [vmem:[%s8602_s2 + $0xd8] sm:$0xff] }
  0x3a   : > { %253 = vst [vmem:[#allocation2 + $0x78] sm:$0x1] %v252_v33  ;;  %v6968_v48 = vunpack.c.l.bf16 %v7070_v35  ;;  %v433_v50 = vadd.f32 %v7212_v17, %v399_v40  ;;  %v406_v52 = vmul.f32 %v7193_v6, %v6952_v42  ;;  %v407_v53 = vmul.f32 %v7193_v6, %v6953_v43  ;;  %v6862_v34 = vld [vmem:[%s8602_s2 + $0x120] sm:$0xff]  ;;  %v6828_v40 = vld [vmem:[%s8602_s2 + $0x90] sm:$0xff] }
  0x3b   : > { %v464_v51 = vmax.f32 %v432_v41, 0.0  ;;  %265 = vst [vmem:[#allocation2 + $0xa8] sm:$0x1] %v264_v47  ;;  %v526_v54 = vor.u32 %v524_v37, %v523_v45  ;;  %v527_v55 = vrot.slane %v523_v45, 4  ;;  %v534_v57 = vor.u32 %v532_v39, %v7381_v46  ;;  %v6821_v39 = vld [vmem:[%s8602_s2 + $0x58] sm:$0xff]  ;;  %v6852_v41 = vld [vmem:[%s8602_s2 + $0xd0] sm:$0xff]  ;;  %3483 = vmatpush.bf16.msrb.mxu0 %v6862_v34 }
  0x3c   : > { %2360 = vmatpush.bf16.msrb.mxu2 %v6829_v44  ;;  %v465_v59 = vmax.f32 %v433_v50, 0.0  ;;  %v440_v61 = vadd.f32 %v7212_v17, %v406_v52  ;;  %v441_v62 = vadd.f32 %v7212_v17, %v407_v53  ;;  %v6969_v5 = vunpack.c.h.bf16 %v7070_v35  ;;  %v6861_v47 = vld [vmem:[%s8602_s2 + $0x118] sm:$0xff]  ;;  %1835 = vmatpush.bf16.msrb.mxu1 %v6821_v39 }
  0x3d   : > { %v496_v60 = vpack.c.bf16 %v464_v51, %v464_v51  ;;  %v535_v1 = vsel %vm7242_vm6, %v527_v55, %v534_v57  ;;  %v843_v4 = vsel %vm7251_vm7, %v526_v54, %v842_v49  ;;  %v414_v8 = vmul.f32 %v7193_v6, %v6968_v48  ;;  %2738 = vmatpush.bf16.msrb.mxu3 %v6853_v28  ;;  %v6820_v51 = vld [vmem:[%s8602_s2 + $0x50] sm:$0xff] }
  0x3e   : > { %1179 = vmatmul.bf16.gmra.mxu1 %v6799_v29  ;;  %v6803_v58 = vld [vmem:[#allocation2 + $0x6c] sm:$0xff]  ;;  %844 = vst [vmem:[#allocation2 + $0xc] sm:$0xf] %v843_v4  ;;  %v497_v9 = vpack.c.bf16 %v465_v59, %v465_v59  ;;  %v472_v14 = vmax.f32 %v440_v61, 0.0  ;;  %v473_v18 = vmax.f32 %v441_v62, 0.0  ;;  %v415_v19 = vmul.f32 %v7193_v6, %v6969_v5 }
  0x3f   : > { %1199 = vmatmul.bf16.gmra.mxu2 %v6803_v58  ;;  %v606_v12 = vshrl.u32 %v496_v60, 16  ;;  %v609_v13 = vshll.u32 %v496_v60, 16  ;;  %845 = vst [vmem:[#allocation2 + $0x10] sm:$0xf] %v535_v1  ;;  %v448_v21 = vadd.f32 %v7212_v17, %v414_v8  ;;  %v228_v22 = vsel %vm7178_vm2, 0, %v227_v63  ;;  %3484 = vmatpush.bf16.msrb.mxu0 %v6861_v47  ;;  %v7063_v8 = vld [vmem:[%s7200_s29 + $0x30] sm:$0xff]  }
  0x40   : > { %v6807_v16 = vld [vmem:[#allocation2 + $0x9c] sm:$0xff]  ;;  %v614_v24 = vshrl.u32 %v497_v9, 16  ;;  %v617_v25 = vshll.u32 %v497_v9, 16  ;;  %v504_v26 = vpack.c.bf16 %v472_v14, %v472_v14  ;;  %v877_v29 = vld [vmem:[#allocation2 + $0x48] sm:$0xf]  ;;  %v505_v30 = vpack.c.bf16 %v473_v18, %v473_v18  ;;  %2361 = vmatpush.bf16.msrb.mxu2 %v6828_v40  ;;  %1836 = vmatpush.bf16.msrb.mxu1 %v6820_v51  ;;  %v7067_v28 = vld [vmem:[%s7200_s29 + $0x50] sm:$0xff]  }
  0x41   : > { %v608_v23 = vrot.slane %v606_v12, 7  ;;  %v449_v31 = vadd.f32 %v7212_v17, %v415_v19  ;;  %v480_v32 = vmax.f32 %v448_v21, 0.0  ;;  %229 = vst [vmem:[#allocation2 + $0x18] sm:$0x1] %v228_v22  ;;  %v6920_v33 = vunpack.c.l.bf16 %v7397_v15  ;;  %v905_v53 = vld [vmem:[#allocation2 + $0x78] sm:$0xf]  ;;  %2739 = vmatpush.bf16.msrb.mxu3 %v6852_v41 }
  0x42   : > { %1219 = vmatmul.bf16.gmra.mxu3 %v6807_v16  ;;  %v7411_v37 = vrot.slane %v614_v24, 7  ;;  %v674_v38 = vshrl.u32 %v504_v26, 16  ;;  %v677_v42 = vshll.u32 %v504_v26, 16  ;;  %v682_v43 = vshrl.u32 %v505_v30, 16  ;;  %v242_v63 = vld [vmem:[#allocation2 + $0x54] sm:$0x1] }
  0x43   : > { %v611_v35 = vor.u32 %v609_v13, %v608_v23  ;;  %v612_v36 = vrot.slane %v608_v23, 4  ;;  %v685_v44 = vshll.u32 %v505_v30, 16  ;;  %v481_v45 = vmax.f32 %v449_v31, 0.0  ;;  %v933_v23 = vld [vmem:[#allocation2 + $0xa8] sm:$0xf] }
  0x44   : > { %v619_v48 = vor.u32 %v617_v25, %v7411_v37  ;;  %v676_v50 = vrot.slane %v674_v38, 7  ;;  %v7431_v52 = vrot.slane %v682_v43, 7  ;;  %v512_v54 = vpack.c.bf16 %v480_v32, %v480_v32  ;;  %v266_v47 = vld [vmem:[#allocation2 + $0xb4] sm:$0x1] }
  0x45   : > { %v878_v49 = vsel %vm7251_vm7, %v611_v35, %v877_v29  ;;  %v513_v55 = vpack.c.bf16 %v481_v45, %v481_v45  ;;  %v6921_v57 = vunpack.c.h.bf16 %v7397_v15  ;;  %v390_v62 = vmul.f32 %v7193_v6, %v6920_v33  ;;  %v254_v15 = vld [vmem:[#allocation2 + $0x84] sm:$0x1] }
  0x46   : > { %879 = vst [vmem:[#allocation2 + $0x48] sm:$0xf] %v878_v49  ;;  %v6795_v58 = vld [vmem:[#allocation2 + $0xc] sm:$0xff]  ;;  %v620_v59 = vsel %vm7242_vm6, %v612_v36, %v619_v48  ;;  %v679_v60 = vor.u32 %v677_v42, %v676_v50  ;;  %v680_v61 = vrot.slane %v676_v50, 4  ;;  %v687_v1 = vor.u32 %v685_v44, %v7431_v52 }
  0x47   : > { %880 = vst [vmem:[#allocation2 + $0x4c] sm:$0xf] %v620_v59  ;;  %v742_v4 = vshrl.u32 %v512_v54, 16  ;;  %v745_v5 = vshll.u32 %v512_v54, 16  ;;  %1159 = vmatmul.bf16.gmra.mxu0 %v6795_v58  ;;  %v750_v12 = vshrl.u32 %v513_v55, 16  ;;  %v753_v13 = vshll.u32 %v513_v55, 16 }
  0x48   : > { %v906_v9 = vsel %vm7251_vm7, %v679_v60, %v905_v53  ;;  %v391_v14 = vmul.f32 %v7193_v6, %v6921_v57  ;;  %v688_v16 = vsel %vm7242_vm6, %v680_v61, %v687_v1  ;;  %v424_v19 = vadd.f32 %v7212_v17, %v390_v62  ;;  %v7464_v53 = vld [vmem:[%s7200_s29 + $0x70] sm:$0xff]  }
  0x49   : > { %907 = vst [vmem:[#allocation2 + $0x78] sm:$0xf] %v906_v9  ;;  %v744_v18 = vrot.slane %v742_v4, 7  ;;  %v243_v21 = vsel %vm7178_vm2, 0, %v242_v63  ;;  %v7447_v22 = vrot.slane %v750_v12, 7  ;;  %v6940_v25 = vunpack.c.l.bf16 %v7063_v8  ;;  %v6827_v12 = vld [vmem:[%s8602_s2 + $0x88] sm:$0xff] }
  0x4a   : > { %908 = vst [vmem:[#allocation2 + $0x7c] sm:$0xf] %v688_v16  ;;  %v425_v24 = vadd.f32 %v7212_v17, %v391_v14  ;;  %v6941_v26 = vunpack.c.h.bf16 %v7063_v8  ;;  %v456_v31 = vmax.f32 %v424_v19, 0.0  ;;  %v255_v32 = vsel %vm7178_vm2, 0, %v254_v15  ;;  %v849_v4 = vld [vmem:[#allocation2 + $0x18] sm:$0xf]  ;;  %2362 = vmatpush.bf16.msrb.mxu2 %v6827_v12 }
  0x4b   : > { %v747_v29 = vor.u32 %v745_v5, %v744_v18  ;;  %v748_v30 = vrot.slane %v744_v18, 4  ;;  %244 = vst [vmem:[#allocation2 + $0x54] sm:$0x1] %v243_v21  ;;  %v755_v33 = vor.u32 %v753_v13, %v7447_v22  ;;  %v400_v35 = vmul.f32 %v7193_v6, %v6940_v25 }
  0x4c   : > { %v457_v34 = vmax.f32 %v425_v24, 0.0  ;;  %256 = vst [vmem:[#allocation2 + $0x84] sm:$0x1] %v255_v32  ;;  %v488_v38 = vpack.c.bf16 %v456_v31, %v456_v31  ;;  %v401_v39 = vmul.f32 %v7193_v6, %v6941_v26  ;;  %v6956_v40 = vunpack.c.l.bf16 %v7067_v28 }
  0x4d   : > { %v934_v36 = vsel %vm7251_vm7, %v747_v29, %v933_v23  ;;  %v756_v42 = vsel %vm7242_vm6, %v748_v30, %v755_v33  ;;  %v434_v44 = vadd.f32 %v7212_v17, %v400_v35  ;;  %v6957_v45 = vunpack.c.h.bf16 %v7067_v28  ;;  %v230_v23 = vld [vmem:[#allocation2 + $0x24] sm:$0x1]  ;;  %v6851_v35 = vld [vmem:[%s8602_s2 + $0xc8] sm:$0xff] }
  0x4e   : > { %v6800_v41 = vld [vmem:[#allocation2 + $0x48] sm:$0xff]  ;;  %935 = vst [vmem:[#allocation2 + $0xa8] sm:$0xf] %v934_v36  ;;  %v489_v43 = vpack.c.bf16 %v457_v34, %v457_v34  ;;  %v538_v48 = vshrl.u32 %v488_v38, 16  ;;  %v541_v49 = vshll.u32 %v488_v38, 16  ;;  %v435_v50 = vadd.f32 %v7212_v17, %v401_v39  ;;  %v6860_v36 = vld [vmem:[%s8602_s2 + $0x110] sm:$0xff]  ;;  %2740 = vmatpush.bf16.msrb.mxu3 %v6851_v35 }
  0x4f   : > { %936 = vst [vmem:[#allocation2 + $0xac] sm:$0xf] %v756_v42  ;;  %v408_v51 = vmul.f32 %v7193_v6, %v6956_v40  ;;  %1184 = vmatmul.bf16.gmra.mxu1 %v6800_v41  ;;  %v466_v57 = vmax.f32 %v434_v44, 0.0  ;;  %v409_v58 = vmul.f32 %v7193_v6, %v6957_v45  ;;  %v267_v63 = vsel %vm7178_vm2, 0, %v266_v47  ;;  %v6819_v42 = vld [vmem:[%s8602_s2 + $0x48] sm:$0xff]  ;;  %3485 = vmatpush.bf16.msrb.mxu0 %v6860_v36 }
  0x50   : > { %v546_v54 = vshrl.u32 %v489_v43, 16  ;;  %v549_v55 = vshll.u32 %v489_v43, 16  ;;  %v540_v60 = vrot.slane %v538_v48, 7  ;;  %v467_v61 = vmax.f32 %v435_v50, 0.0  ;;  %268 = vst [vmem:[#allocation2 + $0xb4] sm:$0x1] %v267_v63  ;;  %1837 = vmatpush.bf16.msrb.mxu1 %v6819_v42 }
  0x51   : > { %v6804_v59 = vld [vmem:[#allocation2 + $0x78] sm:$0xff]  ;;  %v442_v62 = vadd.f32 %v7212_v17, %v408_v51  ;;  %v498_v5 = vpack.c.bf16 %v466_v57, %v466_v57  ;;  %v443_v8 = vadd.f32 %v7212_v17, %v409_v58  ;;  %v6972_v9 = vunpack.c.l.bf16 %v7464_v53  ;;  %v6826_v43 = vld [vmem:[%s8602_s2 + $0x80] sm:$0xff] }
  0x52   : > { %v7470_v1 = vrot.slane %v546_v54, 7  ;;  %1204 = vmatmul.bf16.gmra.mxu2 %v6804_v59  ;;  %v543_v13 = vor.u32 %v541_v49, %v540_v60  ;;  %v544_v14 = vrot.slane %v540_v60, 4  ;;  %v499_v15 = vpack.c.bf16 %v467_v61, %v467_v61  ;;  %v884_v28 = vld [vmem:[#allocation2 + $0x54] sm:$0xf]  ;;  %v6850_v54 = vld [vmem:[%s8602_s2 + $0xc0] sm:$0xff] }
  0x53   : > { %v474_v16 = vmax.f32 %v442_v62, 0.0  ;;  %v623_v19 = vshrl.u32 %v498_v5, 16  ;;  %v626_v21 = vshll.u32 %v498_v5, 16  ;;  %v475_v29 = vmax.f32 %v443_v8, 0.0  ;;  %v7059_v49 = vld [vmem:[%s7200_s29 + $0x10] sm:$0xff]   ;;  %2363 = vmatpush.bf16.msrb.mxu2 %v6826_v43  ;;  %v6818_v61 = vld [vmem:[%s8602_s2 + $0x40] sm:$0xff]  ;;  %2741 = vmatpush.bf16.msrb.mxu3 %v6850_v54 }
  0x54   : > { %v551_v18 = vor.u32 %v549_v55, %v7470_v1  ;;  %v850_v24 = vsel %vm7251_vm7, %v543_v13, %v849_v4  ;;  %v631_v25 = vshrl.u32 %v499_v15, 16  ;;  %v634_v26 = vshll.u32 %v499_v15, 16  ;;  %v6859_v55 = vld [vmem:[%s8602_s2 + $0x108] sm:$0xff]  ;;  %v912_v4 = vld [vmem:[#allocation2 + $0x84] sm:$0xf]  ;;  %1838 = vmatpush.bf16.msrb.mxu1 %v6818_v61 }
  0x55   : > { %851 = vst [vmem:[#allocation2 + $0x18] sm:$0xf] %v850_v24  ;;  %v625_v32 = vrot.slane %v623_v19, 7  ;;  %v506_v33 = vpack.c.bf16 %v474_v16, %v474_v16  ;;  %v6973_v34 = vunpack.c.h.bf16 %v7464_v53  ;;  %v507_v39 = vpack.c.bf16 %v475_v29, %v475_v29  ;;  %3486 = vmatpush.bf16.msrb.mxu0 %v6859_v55  ;;  %v6858_v19 = vld [vmem:[%s8602_s2 + $0x100] sm:$0xff]  ;;  %v1269_v61 = vld [vmem:[#allocation2 + $0x8] sm:$0x1] }
  0x56   : > { %v6808_v30 = vld [vmem:[#allocation2 + $0xa8] sm:$0xff]  ;;  %v552_v31 = vsel %vm7242_vm6, %v544_v14, %v551_v18  ;;  %v7489_v38 = vrot.slane %v631_v25, 7  ;;  %v416_v40 = vmul.f32 %v7193_v6, %v6972_v9  ;;  %v231_v41 = vsel %vm7178_vm2, 0, %v230_v23 }
  0x57   : > { %852 = vst [vmem:[#allocation2 + $0x1c] sm:$0xf] %v552_v31  ;;  %1224 = vmatmul.bf16.gmra.mxu3 %v6808_v30  ;;  %v628_v44 = vor.u32 %v626_v21, %v625_v32  ;;  %v629_v45 = vrot.slane %v625_v32, 4  ;;  %v691_v47 = vshrl.u32 %v506_v33, 16  ;;  %v694_v48 = vshll.u32 %v506_v33, 16 }
  0x58   : > { %232 = vst [vmem:[#allocation2 + $0x24] sm:$0x1] %v231_v41  ;;  %v636_v50 = vor.u32 %v634_v26, %v7489_v38  ;;  %v699_v51 = vshrl.u32 %v507_v39, 16  ;;  %v702_v53 = vshll.u32 %v507_v39, 16  ;;  %v417_v59 = vmul.f32 %v7193_v6, %v6973_v34  ;;  %v1267_v21 = vld [vmem:[#allocation2] sm:$0xf] }
  0x59   : > { %v885_v57 = vsel %vm7251_vm7, %v628_v44, %v884_v28  ;;  %v693_v58 = vrot.slane %v691_v47, 7  ;;  %v450_v60 = vadd.f32 %v7212_v17, %v416_v40  ;;  %v6924_v5 = vunpack.c.l.bf16 %v7059_v49  ;;  %v1268_v28 = vld [vmem:[#allocation2 + $0x4] sm:$0xf]  ;;  %3487 = vmatpush.bf16.msrb.mxu0 %v6858_v19  ;;  %v940_v47 = vld [vmem:[#allocation2 + $0xb4] sm:$0xf] }
  0x5a   : > { %v637_v62 = vsel %vm7242_vm6, %v629_v45, %v636_v50  ;;  %886 = vst [vmem:[#allocation2 + $0x54] sm:$0xf] %v885_v57  ;;  %v7517_v63 = vrot.slane %v699_v51, 7  ;;  %v6925_v8 = vunpack.c.h.bf16 %v7059_v49  ;;  %v451_v13 = vadd.f32 %v7212_v17, %v417_v59  ;;  %v2017_v19 = vld [vmem:[#allocation2 + $0x4] sm:$0xf] }
  0x5b   : > { %887 = vst [vmem:[#allocation2 + $0x58] sm:$0xf] %v637_v62  ;;  %v696_v9 = vor.u32 %v694_v48, %v693_v58  ;;  %v697_v12 = vrot.slane %v693_v58, 4  ;;  %v482_v14 = vmax.f32 %v450_v60, 0.0  ;;  %v392_v16 = vmul.f32 %v7193_v6, %v6924_v5 }
  0x5c   : > { %v704_v15 = vor.u32 %v702_v53, %v7517_v63  ;;  %v393_v18 = vmul.f32 %v7193_v6, %v6925_v8  ;;  %v483_v25 = vmax.f32 %v451_v13, 0.0  ;;  %v1319_v34 = vshrl.u32 %v1267_v21, 16 }
  0x5d   : > { %v913_v24 = vsel %vm7251_vm7, %v696_v9, %v912_v4  ;;  %v514_v26 = vpack.c.bf16 %v482_v14, %v482_v14  ;;  %v426_v6 = vadd.f32 %v7212_v17, %v392_v16  ;;  %v1322_v39 = vshll.u32 %v1267_v21, 16  ;;  %v274_v21 = vld [vmem:[#allocation2 + $0x14] sm:$0x1] }
  0x5e   : > { %v6796_v23 = vld [vmem:[#allocation2 + $0x18] sm:$0xff]  ;;  %v705_v29 = vsel %vm7242_vm6, %v697_v12, %v704_v15  ;;  %914 = vst [vmem:[#allocation2 + $0x84] sm:$0xf] %v913_v24  ;;  %v427_v30 = vadd.f32 %v7212_v17, %v393_v18  ;;  %v515_v31 = vpack.c.bf16 %v483_v25, %v483_v25  ;;  %v1328_v40 = vshll.u32 %v1268_v28, 16  ;;  %v2016_v12 = vld [vmem:[#allocation2] sm:$0xe] }
  0x5f   : > { %1164 = vmatmul.bf16.gmra.mxu0 %v6796_v23  ;;  %915 = vst [vmem:[#allocation2 + $0x88] sm:$0xf] %v705_v29  ;;  %v759_v32 = vshrl.u32 %v514_v26, 16  ;;  %v762_v33 = vshll.u32 %v514_v26, 16  ;;  %v458_v35 = vmax.f32 %v426_v6, 0.0  ;;  %v1321_v44 = vrot.slane %v1319_v34, 4 }
  0x60   : > { %v459_v36 = vmax.f32 %v427_v30, 0.0  ;;  %v767_v42 = vshrl.u32 %v515_v31, 16  ;;  %v770_v43 = vshll.u32 %v515_v31, 16  ;;  %v6897_v17 = vld [vmem:[%s8602_s2 + $0x1b8] sm:$0xff]  ;;  %v1324_v50 = vrot.slane %v1322_v39, 5 }
  0x61   : > { %v761_v41 = vrot.slane %v759_v32, 7  ;;  %v490_v48 = vpack.c.bf16 %v458_v35, %v458_v35  ;;  %v1332_v55 = vshrl.u32 %v1268_v28, 16  ;;  %4381 = vmatpush.bf16.msra.mxu2 %v6897_v17  ;;  %v856_v5 = vld [vmem:[#allocation2 + $0x24] sm:$0xf]  ;;  %v1330_v9 = vrot.slane %v1328_v40, 5  ;;  %v6905_v26 = vld [vmem:[%s8602_s2 + $0x1f8] sm:$0xff] }
  0x62   : > { %v6801_v45 = vld [vmem:[#allocation2 + $0x54] sm:$0xff]  ;;  %v491_v49 = vpack.c.bf16 %v459_v36, %v459_v36  ;;  %v7535_v54 = vrot.slane %v767_v42, 7  ;;  %v1325_v8 = vor.u32 %v1324_v50, %v1321_v44  ;;  %v1338_v25 = vshll.u32 %v1269_v61, 16  ;;  %v2919_v39 = vld [vmem:[#allocation2 + $0xc] sm:$0xf]  ;;  %5127 = vmatpush.bf16.msra.mxu3 %v6905_v26 }
  0x63   : > { %v764_v51 = vor.u32 %v762_v33, %v761_v41  ;;  %v765_v53 = vrot.slane %v761_v41, 4  ;;  %1189 = vmatmul.bf16.gmra.mxu1 %v6801_v45  ;;  %v555_v57 = vshrl.u32 %v490_v48, 16  ;;  %v558_v58 = vshll.u32 %v490_v48, 16  ;;  %v6873_v28 = vld [vmem:[%s8602_s2 + $0x178] sm:$0xff]  ;;  %v2018_v33 = vld [vmem:[#allocation2 + $0x8] sm:$0x1] }
  0x64   : > { %v563_v59 = vshrl.u32 %v491_v49, 16  ;;  %v566_v60 = vshll.u32 %v491_v49, 16  ;;  %v772_v62 = vor.u32 %v770_v43, %v7535_v54  ;;  %v1334_v18 = vrot.slane %v1332_v55, 4  ;;  %v6913_v29 = vld [vmem:[%s8602_s2 + $0x238] sm:$0xff]  ;;  %v2920_v40 = vld [vmem:[#allocation2 + $0x10] sm:$0xf]  ;;  %4002 = vmatpush.bf16.msra.mxu1 %v6873_v28 }
  0x65   : > { %v941_v4 = vsel %vm7251_vm7, %v764_v51, %v940_v47  ;;  %v557_v14 = vrot.slane %v555_v57, 7  ;;  %v1326_v24 = vrot.slane %v1325_v8, 4  ;;  %vm2112_vm11 = vcmask 1042432   ;;  %5649 = vmatpush.bf16.msra.mxu0 %v6913_v29  ;;  %v1270_v17 = vld [vmem:[#allocation2 + $0xc] sm:$0xf] }
  0x66   : > { %v6805_v13 = vld [vmem:[#allocation2 + $0x84] sm:$0xff]  ;;  %942 = vst [vmem:[#allocation2 + $0xb4] sm:$0xf] %v941_v4  ;;  %v7540_v15 = vrot.slane %v563_v59, 7  ;;  %v773_v23 = vsel %vm7242_vm6, %v765_v53, %v772_v62  ;;  %v1335_v35 = vor.u32 %v1334_v18, %v1330_v9  ;;  %v1340_v36 = vrot.slane %v1338_v25, 5 }
  0x67   : > { %1209 = vmatmul.bf16.gmra.mxu2 %v6805_v13  ;;  %943 = vst [vmem:[#allocation2 + $0xb8] sm:$0xf] %v773_v23  ;;  %v560_v30 = vor.u32 %v558_v58, %v557_v14  ;;  %v561_v31 = vrot.slane %v557_v14, 4  ;;  %v1331_v34 = vsel %vm7544_vm10, %v1326_v24, %v1330_v9  ;;  %vm2113_vm13 = vcmask 1046532   ;;  %v1271_v62 = vld [vmem:[#allocation2 + $0x10] sm:$0xf] }
  0x68   : > { %v568_v32 = vor.u32 %v566_v60, %v7540_v15  ;;  %vm7573_vm14 = vmor %vm2112_vm11, %vm2113_vm13  ;;  %v6280_v44 = vrot.slane %v2016_v12, 9  ;;  %v1336_v45 = vrot.slane %v1335_v35, 4  ;;  %v2117_v47 = vrot.slane %v2017_v19, 5  ;;  %v277_v23 = vld [vmem:[#allocation2 + $0x20] sm:$0x1] }
  0x69   : > { %v857_v42 = vsel %vm7251_vm7, %v560_v30, %v856_v5  ;;  %v2120_v48 = vrot.slane %v2018_v33, 5  ;;  %v275_v49 = vsel %vm7561_vm12, 0, %v274_v21  ;;  %v1719_v50 = vunpack.c.l.b16 %v1331_v34  ;;  %v2020_v34 = vld [vmem:[#allocation2 + $0x10] sm:$0xf] }
  0x6a   : > { %v569_v41 = vsel %vm7242_vm6, %v561_v31, %v568_v32  ;;  %858 = vst [vmem:[#allocation2 + $0x24] sm:$0xf] %v857_v42  ;;  %v2968_v51 = vshrl.u32 %v2919_v39, 16  ;;  %v2971_v53 = vshll.u32 %v2919_v39, 16  ;;  %v2977_v55 = vshll.u32 %v2920_v40, 16 }
  0x6b   : > { %859 = vst [vmem:[#allocation2 + $0x28] sm:$0xf] %v569_v41  ;;  %v1341_v57 = vsel %vm7544_vm10, %v1336_v45, %v1340_v36  ;;  %v2118_v58 = vsel %vm7573_vm14, %v6280_v44, %v2117_v47  ;;  %v2119_v59 = vrot.slane %v2117_v47, 4  ;;  %v2981_v60 = vshrl.u32 %v2920_v40, 16  ;;  %v2922_v41 = vld [vmem:[#allocation2 + $0x18] sm:$0xf] }
  0x6c   : > { %276 = vst [vmem:[#allocation2 + $0x14] sm:$0x1] %v275_v49  ;;  %v1720_v61 = vunpack.c.l.b16 %v1341_v57  ;;  %v1343_v4 = vshrl.u32 %v1270_v17, 16  ;;  %v536_v5 = vrot.slane %v7381_v46, 4  ;;  %v2244_v12 = vunpack.c.l.b16 %v2118_v58  ;;  %v2019_v46 = vld [vmem:[#allocation2 + $0xc] sm:$0xe] }
  0x6d   : > { %v2121_v9 = vsel %vm7573_vm14, %v2119_v59, %v2120_v48  ;;  %v2970_v13 = vrot.slane %v2968_v51, 4  ;;  %v2973_v19 = vrot.slane %v2971_v53, 5  ;;  %v1346_v21 = vshll.u32 %v1270_v17, 16  ;;  %v2923_v49 = vld [vmem:[#allocation2 + $0x1c] sm:$0xf] }
  0x6e   : > { %v6809_v8 = vld [vmem:[#allocation2 + $0xb4] sm:$0xff]  ;;  %v1751_v14 = vpack.c.b16 %v1720_v61, %v1719_v50  ;;  %v2245_v18 = vunpack.c.l.b16 %v2121_v9  ;;  %v7586_v24 = vrot.slane %v2977_v55, 5  ;;  %v2983_v25 = vrot.slane %v2981_v60, 4  ;;  %v1274_v58 = vld [vmem:[#allocation2 + $0x1c] sm:$0xf] }
  0x6f   : > { %1229 = vmatmul.bf16.gmra.mxu3 %v6809_v8  ;;  %v1352_v26 = vshll.u32 %v1271_v62, 16  ;;  %v1356_v28 = vshrl.u32 %v1271_v62, 16  ;;  %v1345_v29 = vrot.slane %v1343_v4, 4  ;;  %v1348_v30 = vrot.slane %v1346_v21, 5  ;;  %v1273_v53 = vld [vmem:[#allocation2 + $0x18] sm:$0xf] }
  0x70   : > { %v278_v35 = vsel %vm7561_vm12, 0, %v277_v23  ;;  %v2276_v36 = vpack.c.b16 %v2245_v18, %v2244_v12  ;;  %v2974_v40 = vor.u32 %v2973_v19, %v2970_v13  ;;  %v2984_v44 = vor.u32 %v2983_v25, %v7586_v24  ;;  %v6834_v21 = vld [vmem:[#allocation2 + $0xc] sm:$0xff] }
  0x71   : > { %v7588_v32 = vrot.slane %v1352_v26, 5  ;;  %v1358_v33 = vrot.slane %v1356_v28, 4  ;;  %279 = vst [vmem:[#allocation2 + $0x20] sm:$0x1] %v278_v35  ;;  %v6281_v17 = vrot.slane %v2019_v46, 9  ;;  %v1349_v45 = vor.u32 %v1348_v30, %v1345_v29 }
  0x72   : > { %v6797_v31 = vld [vmem:[#allocation2 + $0x24] sm:$0xff]  ;;  %v2124_v48 = vrot.slane %v2020_v34, 5  ;;  %v2992_v50 = vshrl.u32 %v2922_v41, 16  ;;  %v2995_v51 = vshll.u32 %v2922_v41, 16  ;;  %v553_v55 = vrot.slane %v7470_v1, 4 }
  0x73   : > { %1839 = vmatmul.bf16.vlgmr.msrb.gmra.mxu1 %v1751_v14  ;;  %v846_v39 = vld [vmem:[#allocation2 + $0x14] sm:$0x1]  ;;  %1169 = vmatmul.bf16.gmra.mxu0 %v6797_v31  ;;  %v1359_v47 = vor.u32 %v1358_v33, %v7588_v32  ;;  %v2975_v57 = vrot.slane %v2974_v40, 4  ;;  %v2985_v59 = vrot.slane %v2984_v44, 4  ;;  %v1367_v61 = vshrl.u32 %v1273_v53, 16 }
  0x74   : > { %v847_v42 = vsel %vm7178_vm2, %v536_v5, %v846_v39  ;;  %v2125_v60 = vsel %vm7573_vm14, %v6281_v17, %v2124_v48  ;;  %v1370_v62 = vshll.u32 %v1273_v53, 16  ;;  %v1350_v4 = vrot.slane %v1349_v45, 4  ;;  %v280_v44 = vld [vmem:[#allocation2 + $0x2c] sm:$0x1]  ;;  %v283_v53 = vld [vmem:[#allocation2 + $0x38] sm:$0x1] }
  0x75   : > { %848 = vst [vmem:[#allocation2 + $0x14] sm:$0x1] %v847_v42  ;;  %v1360_v5 = vrot.slane %v1359_v47, 4  ;;  %v2126_v8 = vrot.slane %v2124_v48, 4  ;;  %v3001_v9 = vshll.u32 %v2923_v49, 16  ;;  %v2994_v13 = vrot.slane %v2992_v50, 4 }
  0x76   : > { %v2997_v14 = vrot.slane %v2995_v51, 5  ;;  %v3005_v18 = vshrl.u32 %v2923_v49, 16  ;;  %v1376_v19 = vshll.u32 %v1274_v58, 16  ;;  %v1369_v23 = vrot.slane %v1367_v61, 4  ;;  %v6896_v51 = vld [vmem:[%s8602_s2 + $0x1b0] sm:$0xff] }
  0x77   : > { %2364 = vmatmul.bf16.vlgmr.msrb.gmra.mxu2 %v2276_v36  ;;  %v1372_v25 = vrot.slane %v1370_v62, 5  ;;  %v1380_v26 = vshrl.u32 %v1274_v58, 16  ;;  %v2980_v29 = vsel %vm7544_vm10, %v2975_v57, %v7586_v24  ;;  %v2246_v31 = vunpack.c.l.b16 %v2125_v60  ;;  %v2023_v58 = vld [vmem:[#allocation2 + $0x1c] sm:$0xf] }
  0x78   : > { %v853_v12 = vld [vmem:[#allocation2 + $0x20] sm:$0x1]  ;;  %v1355_v34 = vsel %vm7544_vm10, %v1350_v4, %v7588_v32  ;;  %v2998_v39 = vor.u32 %v2997_v14, %v2994_v13  ;;  %v7607_v40 = vrot.slane %v3001_v9, 5  ;;  %v3007_v41 = vrot.slane %v3005_v18, 4  ;;  %4382 = vmatpush.bf16.msra.mxu2 %v6896_v51  ;;  %v2022_v13 = vld [vmem:[#allocation2 + $0x18] sm:$0xe] }
  0x79   : > { %v854_v1 = vsel %vm7178_vm2, %v553_v55, %v853_v12  ;;  %v7609_v42 = vrot.slane %v1376_v19, 5  ;;  %v1382_v47 = vrot.slane %v1380_v26, 4  ;;  %v3368_v48 = vunpack.c.l.b16 %v2980_v29  ;;  %v2925_v14 = vld [vmem:[#allocation2 + $0x24] sm:$0xf] }
  0x7a   : > { %855 = vst [vmem:[#allocation2 + $0x20] sm:$0x1] %v854_v1  ;;  %v1721_v49 = vunpack.c.l.b16 %v1355_v34  ;;  %v1373_v50 = vor.u32 %v1372_v25, %v1369_v23  ;;  %v281_v60 = vsel %vm7561_vm12, 0, %v280_v44  ;;  %v3008_v4 = vor.u32 %v3007_v41, %v7607_v40  ;;  %v2926_v25 = vld [vmem:[#allocation2 + $0x28] sm:$0xf]  ;;  %v6872_v34 = vld [vmem:[%s8602_s2 + $0x170] sm:$0xff] }
  0x7b   : > { %282 = vst [vmem:[#allocation2 + $0x2c] sm:$0x1] %v281_v60  ;;  %v2999_v9 = vrot.slane %v2998_v39, 4  ;;  %v1383_v12 = vor.u32 %v1382_v47, %v7609_v42  ;;  %v2131_v23 = vrot.slane %v2023_v58, 5  ;;  %v1276_v44 = vld [vmem:[#allocation2 + $0x24] sm:$0xf]  ;;  %4003 = vmatpush.bf16.msra.mxu1 %v6872_v34 }
  0x7c   : > { %v2921_v28 = vld [vmem:[#allocation2 + $0x14] sm:$0x1]  ;;  %v1374_v1 = vrot.slane %v1373_v50, 4  ;;  %v3019_v47 = vshll.u32 %v2925_v14, 16  ;;  %v3025_v51 = vshll.u32 %v2926_v25, 16  ;;  %v1394_v58 = vshll.u32 %v1276_v44, 16 }
  0x7d   : > { %v1272_v30 = vld [vmem:[#allocation2 + $0x14] sm:$0x1]  ;;  %v2987_v33 = vshll.u32 %v2921_v28, 16  ;;  %v1384_v39 = vrot.slane %v1383_v12, 4 }
  0x7e   : > { %v2021_v46 = vld [vmem:[#allocation2 + $0x14] sm:$0x1]  ;;  %v1362_v35 = vshll.u32 %v1272_v30, 16  ;;  %v570_v30 = vrot.slane %v7540_v15, 4  ;;  %v3004_v15 = vsel %vm7544_vm10, %v2999_v9, %v7607_v40  ;;  %v3029_v40 = vshrl.u32 %v2926_v25, 16 }
  0x7f   : > { %v2127_v36 = vrot.slane %v2021_v46, 5  ;;  %v2989_v17 = vrot.slane %v2987_v33, 5  ;;  %2742 = vmatmul.bf16.vlgmr.msrb.gmra.mxu3 %v6834_v21  ;;  %v3009_v46 = vrot.slane %v3008_v4, 4  ;;  %v6904_v33 = vld [vmem:[%s8602_s2 + $0x1f0] sm:$0xff]  ;;  %v3370_v60 = vunpack.c.l.b16 %v3004_v15  ;;  %v286_v25 = vld [vmem:[#allocation2 + $0x44] sm:$0x1] }
  0x80   : > { %v1364_v24 = vrot.slane %v1362_v35, 5  ;;  %v6912_v35 = vld [vmem:[%s8602_s2 + $0x230] sm:$0xff]  ;;  %5128 = vmatpush.bf16.msra.mxu3 %v6904_v33  ;;  %v3021_v9 = vrot.slane %v3019_v47, 5  ;;  %v2026_v33 = vld [vmem:[#allocation2 + $0x28] sm:$0xf]  ;;  %v287_v34 = vsel %vm7561_vm12, 0, %v286_v25 }
  0x81   : > { %v2128_v45 = vsel %vm7573_vm14, %v2126_v8, %v2127_v36  ;;  %v2990_v55 = vsel %vm7544_vm10, %v2985_v59, %v2989_v17  ;;  %v284_v59 = vsel %vm7561_vm12, 0, %v283_v53  ;;  %v2924_v19 = vld [vmem:[#allocation2 + $0x20] sm:$0x1]  ;;  %v2133_v17 = vrot.slane %v2131_v23, 4  ;;  %5650 = vmatpush.bf16.msra.mxu0 %v6912_v35  ;;  %288 = vst [vmem:[#allocation2 + $0x44] sm:$0x1] %v287_v34 }
  0x82   : > { %v2247_v32 = vunpack.c.l.b16 %v2128_v45  ;;  %v1365_v57 = vsel %vm7544_vm10, %v1360_v5, %v1364_v24  ;;  %v3369_v61 = vunpack.c.l.b16 %v2990_v55  ;;  %v1275_v21 = vld [vmem:[#allocation2 + $0x20] sm:$0x1]  ;;  %v3011_v26 = vshll.u32 %v2924_v19, 16  ;;  %285 = vst [vmem:[#allocation2 + $0x38] sm:$0x1] %v284_v59 }
  0x83   : > { %v1722_v62 = vunpack.c.l.b16 %v1365_v57  ;;  %v1386_v28 = vshll.u32 %v1275_v21, 16  ;;  %v2024_v29 = vld [vmem:[#allocation2 + $0x20] sm:$0x1]  ;;  %v3016_v45 = vshrl.u32 %v2925_v14, 16  ;;  %v860_v50 = vld [vmem:[#allocation2 + $0x2c] sm:$0x1] }
  0x84   : > { %v2277_v8 = vpack.c.b16 %v2247_v32, %v2246_v31  ;;  %v3400_v5 = vpack.c.b16 %v3369_v61, %v3368_v48  ;;  %v6282_v31 = vrot.slane %v2022_v13, 9  ;;  %v3013_v36 = vrot.slane %v3011_v26, 5  ;;  %v1277_v48 = vld [vmem:[#allocation2 + $0x28] sm:$0xf] }
  0x85   : > { %v1752_v18 = vpack.c.b16 %v1722_v62, %v1721_v49  ;;  %v1388_v41 = vrot.slane %v1386_v28, 5  ;;  %v2134_v24 = vrot.slane %v2024_v29, 5  ;;  %v587_v49 = vrot.slane %v7246_v3, 4  ;;  %v6835_v62 = vld [vmem:[#allocation2 + $0x18] sm:$0xff] }
  0x86   : > { %3488 = vmatmul.bf16.vlgmr.msrb.gmra.mxu0 %v3400_v5  ;;  %v1379_v32 = vsel %vm7544_vm10, %v1374_v1, %v7609_v42  ;;  %v3014_v53 = vsel %vm7544_vm10, %v3009_v46, %v3013_v36  ;;  %v861_v55 = vsel %vm7178_vm2, %v570_v30, %v860_v50  ;;  %v1391_v57 = vshrl.u32 %v1276_v44, 16 }
  0x87   : > { %1844 = vmatmul.bf16.gmra.mxu1 %v1752_v18  ;;  %2369 = vmatmul.bf16.gmra.mxu2 %v2277_v8  ;;  %v1389_v3 = vsel %vm7544_vm10, %v1384_v39, %v1388_v41  ;;  %v2132_v61 = vsel %vm7573_vm14, %v6282_v31, %v2131_v23  ;;  %862 = vst [vmem:[#allocation2 + $0x2c] sm:$0x1] %v861_v55  ;;  %v1400_v42 = vshll.u32 %v1277_v48, 16  ;;  %v3018_v8 = vrot.slane %v3016_v45, 4  ;;  %v2025_v31 = vld [vmem:[#allocation2 + $0x24] sm:$0xe] }
  0x88   : > { %v2135_v4 = vsel %vm7573_vm14, %v2133_v17, %v2134_v24  ;;  %v1404_v12 = vshrl.u32 %v1277_v48, 16  ;;  %v3371_v14 = vunpack.c.l.b16 %v3014_v53  ;;  %v1723_v59 = vunpack.c.l.b16 %v1379_v32  ;;  %v2928_v17 = vld [vmem:[#allocation2 + $0x30] sm:$0xf] }
  0x89   : > { %v867_v13 = vld [vmem:[#allocation2 + $0x38] sm:$0x1]  ;;  %v7653_v5 = vrot.slane %v3025_v51, 5  ;;  %v3031_v18 = vrot.slane %v3029_v40, 4  ;;  %v1724_v19 = vunpack.c.l.b16 %v1389_v3  ;;  %v1393_v21 = vrot.slane %v1391_v57, 4 }
  0x8a   : > { %v1396_v1 = vrot.slane %v1394_v58, 5  ;;  %v868_v23 = vsel %vm7178_vm2, %v587_v49, %v867_v13  ;;  %v2248_v26 = vunpack.c.l.b16 %v2132_v61  ;;  %v2249_v28 = vunpack.c.l.b16 %v2135_v4  ;;  %v2929_v58 = vld [vmem:[#allocation2 + $0x34] sm:$0xf] }
  0x8b   : > { %v1402_v29 = vrot.slane %v1400_v42, 5  ;;  %v1406_v30 = vrot.slane %v1404_v12, 4  ;;  %869 = vst [vmem:[#allocation2 + $0x38] sm:$0x1] %v868_v23  ;;  %v3022_v46 = vor.u32 %v3021_v9, %v3018_v8  ;;  %v3401_v35 = vpack.c.b16 %v3371_v14, %v3370_v60  ;;  %v1279_v42 = vld [vmem:[#allocation2 + $0x30] sm:$0xf] }
  0x8c   : > { %v1753_v15 = vpack.c.b16 %v1724_v19, %v1723_v59  ;;  %v3032_v39 = vor.u32 %v3031_v18, %v7653_v5  ;;  %v1397_v44 = vor.u32 %v1396_v1, %v1393_v21  ;;  %v2278_v24 = vpack.c.b16 %v2249_v28, %v2248_v26  ;;  %v1280_v12 = vld [vmem:[#allocation2 + $0x34] sm:$0xf]  ;;  %v874_v28 = vld [vmem:[#allocation2 + $0x44] sm:$0x1] }
  0x8d   : > { %v1407_v47 = vor.u32 %v1406_v30, %v1402_v29  ;;  %v3023_v49 = vrot.slane %v3022_v46, 4  ;;  %v2138_v32 = vrot.slane %v2026_v33, 5  ;;  %v6283_v51 = vrot.slane %v2025_v31, 9  ;;  %v6836_v30 = vld [vmem:[#allocation2 + $0x24] sm:$0xff] }
  0x8e   : > { %v2927_v36 = vld [vmem:[#allocation2 + $0x2c] sm:$0x1]  ;;  %v3040_v40 = vshrl.u32 %v2928_v17, 16  ;;  %v3033_v53 = vrot.slane %v3032_v39, 4  ;;  %v1398_v57 = vrot.slane %v1397_v44, 4  ;;  %v3043_v61 = vshll.u32 %v2928_v17, 16 }
  0x8f   : > { %2747 = vmatmul.bf16.gmra.mxu3 %v6835_v62  ;;  %v1278_v41 = vld [vmem:[#allocation2 + $0x2c] sm:$0x1]  ;;  %v3035_v45 = vshll.u32 %v2927_v36, 16  ;;  %v1408_v60 = vrot.slane %v1407_v47, 4  ;;  %v604_v62 = vrot.slane %v7317_v20, 4  ;;  %v3028_v4 = vsel %vm7544_vm10, %v3023_v49, %v7653_v5 }
  0x90   : > { %v1410_v48 = vshll.u32 %v1278_v41, 16  ;;  %v2027_v50 = vld [vmem:[#allocation2 + $0x2c] sm:$0x1]  ;;  %v2140_v8 = vrot.slane %v2138_v32, 4  ;;  %v2139_v13 = vsel %vm7573_vm14, %v6283_v51, %v2138_v32  ;;  %v3042_v14 = vrot.slane %v3040_v40, 4 }
  0x91   : > { %v3037_v55 = vrot.slane %v3035_v45, 5  ;;  %v2141_v9 = vrot.slane %v2027_v50, 5  ;;  %v3049_v59 = vshll.u32 %v2929_v58, 16  ;;  %v3053_v18 = vshrl.u32 %v2929_v58, 16  ;;  %v6895_v32 = vld [vmem:[%s8602_s2 + $0x1a8] sm:$0xff] }
  0x92   : > { %v1412_v3 = vrot.slane %v1410_v48, 5  ;;  %v1403_v21 = vsel %vm7544_vm10, %v1398_v57, %v1402_v29  ;;  %v1415_v20 = vshrl.u32 %v1279_v42, 16  ;;  %v1418_v1 = vshll.u32 %v1279_v42, 16  ;;  %v2930_v39 = vld [vmem:[#allocation2 + $0x38] sm:$0x1]  ;;  %4383 = vmatpush.bf16.msra.mxu2 %v6895_v32 }
  0x93   : > { %v3038_v19 = vsel %vm7544_vm10, %v3033_v53, %v3037_v55  ;;  %v3045_v23 = vrot.slane %v3043_v61, 5  ;;  %v1424_v25 = vshll.u32 %v1280_v12, 16  ;;  %v1428_v26 = vshrl.u32 %v1280_v12, 16  ;;  %v1281_v47 = vld [vmem:[#allocation2 + $0x38] sm:$0x1] }
  0x94   : > { %v1413_v5 = vsel %vm7544_vm10, %v1408_v60, %v1412_v3  ;;  %v3372_v46 = vunpack.c.l.b16 %v3028_v4  ;;  %v2142_v31 = vsel %vm7573_vm14, %v2140_v8, %v2141_v9  ;;  %v2250_v33 = vunpack.c.l.b16 %v2139_v13  ;;  %v289_v50 = vld [vmem:[#allocation2 + $0x50] sm:$0x1]  ;;  %v2029_v53 = vld [vmem:[#allocation2 + $0x34] sm:$0xf]  ;;  %v2931_v9 = vld [vmem:[#allocation2 + $0x3c] sm:$0xf] }
  0x95   : > { %v3373_v34 = vunpack.c.l.b16 %v3038_v19  ;;  %v3055_v29 = vrot.slane %v3053_v18, 4  ;;  %v1726_v36 = vunpack.c.l.b16 %v1413_v5  ;;  %v1417_v41 = vrot.slane %v1415_v20, 4  ;;  %v2030_v13 = vld [vmem:[#allocation2 + $0x38] sm:$0x1]  ;;  %v6871_v5 = vld [vmem:[%s8602_s2 + $0x168] sm:$0xff] }
  0x96   : > { %3493 = vmatmul.bf16.gmra.mxu0 %v3401_v35  ;;  %v1725_v35 = vunpack.c.l.b16 %v1403_v21  ;;  %v1420_v44 = vrot.slane %v1418_v1, 5  ;;  %v875_v17 = vsel %vm7178_vm2, %v604_v62, %v874_v28  ;;  %v3046_v45 = vor.u32 %v3045_v23, %v3042_v14  ;;  %v2028_v62 = vld [vmem:[#allocation2 + $0x30] sm:$0xe]  ;;  %v2932_v14 = vld [vmem:[#allocation2 + $0x40] sm:$0xf]  ;;  %v6903_v1 = vld [vmem:[%s8602_s2 + $0x1e8] sm:$0xff]  ;;  %4004 = vmatpush.bf16.msra.mxu1 %v6871_v5 }
  0x97   : > { %1849 = vmatmul.bf16.gmra.mxu1 %v1753_v15  ;;  %2374 = vmatmul.bf16.gmra.mxu2 %v2278_v24  ;;  %v7674_v15 = vrot.slane %v3049_v59, 5  ;;  %v2251_v24 = vunpack.c.l.b16 %v2142_v31  ;;  %v7678_v48 = vrot.slane %v1424_v25, 5  ;;  %v1430_v49 = vrot.slane %v1428_v26, 4  ;;  %876 = vst [vmem:[#allocation2 + $0x44] sm:$0x1] %v875_v17 }
  0x98   : > { %v3059_v40 = vshll.u32 %v2930_v39, 16  ;;  %v3402_v55 = vpack.c.b16 %v3373_v34, %v3372_v46  ;;  %v1754_v57 = vpack.c.b16 %v1726_v36, %v1725_v35  ;;  %v1421_v58 = vor.u32 %v1420_v44, %v1417_v41  ;;  %v1282_v46 = vld [vmem:[#allocation2 + $0x3c] sm:$0xf]  ;;  %5129 = vmatpush.bf16.msra.mxu3 %v6903_v1 }
  0x99   : > { %v3056_v51 = vor.u32 %v3055_v29, %v7674_v15  ;;  %v1434_v60 = vshll.u32 %v1281_v47, 16  ;;  %v2279_v3 = vpack.c.b16 %v2251_v24, %v2250_v33  ;;  %v3047_v61 = vrot.slane %v3046_v45, 4  ;;  %v1283_v29 = vld [vmem:[#allocation2 + $0x40] sm:$0xf] }
  0x9a   : > { %v1431_v42 = vor.u32 %v1430_v49, %v7678_v48  ;;  %v290_v4 = vsel %vm7561_vm12, 0, %v289_v50  ;;  %v2145_v8 = vrot.slane %v2029_v53, 5  ;;  %v3061_v59 = vrot.slane %v3059_v40, 5  ;;  %v6837_v50 = vld [vmem:[#allocation2 + $0x30] sm:$0xff] }
  0x9b   : > { %291 = vst [vmem:[#allocation2 + $0x50] sm:$0x1] %v290_v4  ;;  %v3057_v12 = vrot.slane %v3056_v51, 4  ;;  %v1422_v19 = vrot.slane %v1421_v58, 4  ;;  %v1436_v21 = vrot.slane %v1434_v60, 5  ;;  %v6284_v20 = vrot.slane %v2028_v62, 9 }
  0x9c   : > { %v3052_v23 = vsel %vm7544_vm10, %v3047_v61, %v7674_v15  ;;  %v1432_v25 = vrot.slane %v1431_v42, 4  ;;  %v3064_v26 = vshrl.u32 %v2931_v9, 16  ;;  %v3067_v28 = vshll.u32 %v2931_v9, 16 }
  0x9d   : > { %v2147_v31 = vrot.slane %v2145_v8, 4  ;;  %v2148_v33 = vrot.slane %v2030_v13, 5  ;;  %v3073_v34 = vshll.u32 %v2932_v14, 16  ;;  %v3077_v35 = vshrl.u32 %v2932_v14, 16 }
  0x9e   : > { %v621_v36 = vrot.slane %v7411_v37, 4  ;;  %v1439_v39 = vshrl.u32 %v1282_v46, 16  ;;  %v1442_v15 = vshll.u32 %v1282_v46, 16  ;;  %v3062_v41 = vsel %vm7544_vm10, %v3057_v12, %v3061_v59  ;;  %v2933_v42 = vld [vmem:[#allocation2 + $0x44] sm:$0x1] }
  0x9f   : > { %2752 = vmatmul.bf16.gmra.mxu3 %v6836_v30  ;;  %v6911_v30 = vld [vmem:[%s8602_s2 + $0x228] sm:$0xff]  ;;  %v3374_v44 = vunpack.c.l.b16 %v3052_v23  ;;  %v1448_v17 = vshll.u32 %v1283_v29, 16  ;;  %v1452_v24 = vshrl.u32 %v1283_v29, 16  ;;  %v1427_v45 = vsel %vm7544_vm10, %v1422_v19, %v7678_v48  ;;  %v1284_v59 = vld [vmem:[#allocation2 + $0x44] sm:$0x1] }
  0xa0   : > { %5651 = vmatpush.bf16.msra.mxu0 %v6911_v30  ;;  %v1437_v47 = vsel %vm7544_vm10, %v1432_v25, %v1436_v21  ;;  %v3066_v49 = vrot.slane %v3064_v26, 4  ;;  %v3069_v32 = vrot.slane %v3067_v28, 5  ;;  %v2146_v37 = vsel %vm7573_vm14, %v6284_v20, %v2145_v8  ;;  %v292_v19 = vld [vmem:[#allocation2 + $0x5c] sm:$0x1]  ;;  %v2032_v20 = vld [vmem:[#allocation2 + $0x40] sm:$0xf] }
  0xa1   : > { %v2149_v51 = vsel %vm7573_vm14, %v2147_v31, %v2148_v33  ;;  %v7713_v40 = vrot.slane %v3073_v34, 5  ;;  %v3079_v53 = vrot.slane %v3077_v35, 4  ;;  %v1441_v58 = vrot.slane %v1439_v39, 4  ;;  %v2031_v35 = vld [vmem:[#allocation2 + $0x3c] sm:$0xe] }
  0xa2   : > { %v1444_v60 = vrot.slane %v1442_v15, 5  ;;  %v1728_v61 = vunpack.c.l.b16 %v1437_v47  ;;  %v7721_v8 = vrot.slane %v1448_v17, 5  ;;  %v1454_v9 = vrot.slane %v1452_v24, 4  ;;  %v2033_v29 = vld [vmem:[#allocation2 + $0x44] sm:$0x1] }
  0xa3   : > { %v2252_v12 = vunpack.c.l.b16 %v2146_v37  ;;  %v2253_v13 = vunpack.c.l.b16 %v2149_v51  ;;  %v3070_v14 = vor.u32 %v3069_v32, %v3066_v49  ;;  %v3080_v21 = vor.u32 %v3079_v53, %v7713_v40  ;;  %v1286_v51 = vld [vmem:[#allocation2 + $0x4c] sm:$0xf] }
  0xa4   : > { %v3083_v5 = vshll.u32 %v2933_v42, 16  ;;  %v1445_v23 = vor.u32 %v1444_v60, %v1441_v58  ;;  %v1455_v26 = vor.u32 %v1454_v9, %v7721_v8  ;;  %v1458_v28 = vshll.u32 %v1284_v59, 16  ;;  %v6838_v59 = vld [vmem:[#allocation2 + $0x3c] sm:$0xff] }
  0xa5   : > { %v293_v30 = vsel %vm7561_vm12, 0, %v292_v19  ;;  %v2280_v46 = vpack.c.b16 %v2253_v13, %v2252_v12  ;;  %v3071_v31 = vrot.slane %v3070_v14, 4  ;;  %v2152_v33 = vrot.slane %v2032_v20, 5 }
  0xa6   : > { %3498 = vmatmul.bf16.gmra.mxu0 %v3402_v55  ;;  %v881_v55 = vld [vmem:[#allocation2 + $0x50] sm:$0x1]  ;;  %294 = vst [vmem:[#allocation2 + $0x5c] sm:$0x1] %v293_v30  ;;  %v3081_v34 = vrot.slane %v3080_v21, 4  ;;  %v3085_v39 = vrot.slane %v3083_v5, 5 }
  0xa7   : > { %1854 = vmatmul.bf16.gmra.mxu1 %v1754_v57  ;;  %2379 = vmatmul.bf16.gmra.mxu2 %v2279_v3  ;;  %v3375_v57 = vunpack.c.l.b16 %v3062_v41  ;;  %v882_v48 = vsel %vm7178_vm2, %v621_v36, %v881_v55  ;;  %v1727_v3 = vunpack.c.l.b16 %v1427_v45  ;;  %v1446_v15 = vrot.slane %v1445_v23, 4  ;;  %v2934_v41 = vld [vmem:[#allocation2 + $0x48] sm:$0xf] }
  0xa8   : > { %883 = vst [vmem:[#allocation2 + $0x50] sm:$0x1] %v882_v48  ;;  %v1456_v17 = vrot.slane %v1455_v26, 4  ;;  %v1460_v24 = vrot.slane %v1458_v28, 5  ;;  %v1285_v45 = vld [vmem:[#allocation2 + $0x48] sm:$0xf]  ;;  %v3076_v47 = vsel %vm7544_vm10, %v3071_v31, %v7713_v40 }
  0xa9   : > { %v3403_v1 = vpack.c.b16 %v3375_v57, %v3374_v44  ;;  %v1755_v25 = vpack.c.b16 %v1728_v61, %v1727_v3  ;;  %v2935_v44 = vld [vmem:[#allocation2 + $0x4c] sm:$0xf]  ;;  %v6285_v32 = vrot.slane %v2031_v35, 9  ;;  %v2155_v37 = vrot.slane %v2033_v29, 5  ;;  %v295_v29 = vld [vmem:[#allocation2 + $0x68] sm:$0x1] }
  0xaa   : > { %v3088_v57 = vshrl.u32 %v2934_v41, 16  ;;  %v3091_v58 = vshll.u32 %v2934_v41, 16  ;;  %v3097_v60 = vshll.u32 %v2935_v44, 16  ;;  %v3101_v48 = vshrl.u32 %v2935_v44, 16 }
  0xab   : > { %v7687_v18 = vpop.f32.mrf.mxu1  ;;  %v7727_v36 = vpop.f32.mrf.mxu0  ;;  %v638_v3 = vrot.slane %v7489_v38, 4  ;;  %v3086_v61 = vsel %vm7544_vm10, %v3081_v34, %v3085_v39  ;;  %v1451_v40 = vsel %vm7544_vm10, %v1446_v15, %v7721_v8  ;;  %v1463_v42 = vshrl.u32 %v1285_v45, 16 }
  0xac   : > { %v1461_v9 = vsel %vm7544_vm10, %v1456_v17, %v1460_v24  ;;  %v1466_v12 = vshll.u32 %v1285_v45, 16  ;;  %v1472_v13 = vshll.u32 %v1286_v51, 16  ;;  %v1476_v14 = vshrl.u32 %v1286_v51, 16  ;;  %v2035_v17 = vld [vmem:[#allocation2 + $0x4c] sm:$0xf] }
  0xad   : > { %v3376_v19 = vunpack.c.l.b16 %v3076_v47  ;;  %v2153_v21 = vsel %vm7573_vm14, %v6285_v32, %v2152_v33  ;;  %v3090_v20 = vrot.slane %v3088_v57, 4  ;;  %v7750_v5 = vrot.slane %v3097_v60, 5  ;;  %v888_v23 = vld [vmem:[#allocation2 + $0x5c] sm:$0x1]  ;;  %v6894_v32 = vld [vmem:[%s8602_s2 + $0x1a0] sm:$0xff] }
  0xae   : > { %v3103_v8 = vrot.slane %v3101_v48, 4  ;;  %v1729_v26 = vunpack.c.l.b16 %v1451_v40  ;;  %v1730_v28 = vunpack.c.l.b16 %v1461_v9  ;;  %v1468_v31 = vrot.slane %v1466_v12, 5  ;;  %v2034_v57 = vld [vmem:[#allocation2 + $0x48] sm:$0xe]  ;;  %4384 = vmatpush.bf16.msra.mxu2 %v6894_v32 }
  0xaf   : > { %2757 = vmatmul.bf16.gmra.mxu3 %v6837_v50  ;;  %v2154_v50 = vrot.slane %v2152_v33, 4  ;;  %v2936_v30 = vld [vmem:[#allocation2 + $0x50] sm:$0x1]  ;;  %v7752_v34 = vrot.slane %v1472_v13, 5  ;;  %v1478_v35 = vrot.slane %v1476_v14, 4  ;;  %v889_v33 = vsel %vm7178_vm2, %v638_v3, %v888_v23 }
  0xb0   : > { %v2254_v15 = vunpack.c.l.b16 %v2153_v21  ;;  %v1287_v44 = vld [vmem:[#allocation2 + $0x50] sm:$0x1]  ;;  %890 = vst [vmem:[#allocation2 + $0x5c] sm:$0x1] %v889_v33  ;;  %v3104_v45 = vor.u32 %v3103_v8, %v7750_v5  ;;  %v3107_v47 = vshll.u32 %v2936_v30, 16  ;;  %v1756_v51 = vpack.c.b16 %v1730_v28, %v1729_v26 }
  0xb1   : > { %v2156_v38 = vsel %vm7573_vm14, %v2154_v50, %v2155_v37  ;;  %v296_v60 = vsel %vm7561_vm12, 0, %v295_v29  ;;  %v1479_v40 = vor.u32 %v1478_v35, %v7752_v34  ;;  %v2036_v9 = vld [vmem:[#allocation2 + $0x50] sm:$0x1]  ;;  %v2159_v12 = vrot.slane %v2035_v17, 5  ;;  %v2938_v8 = vld [vmem:[#allocation2 + $0x58] sm:$0xf] }
  0xb2   : > { %v7717_v62 = vpop.f32.mrf.mxu2  ;;  %v2255_v41 = vunpack.c.l.b16 %v2156_v38  ;;  %297 = vst [vmem:[#allocation2 + $0x68] sm:$0x1] %v296_v60  ;;  %v655_v38 = vrot.slane %v7255_v10, 4  ;;  %v6910_v10 = vld [vmem:[%s8602_s2 + $0x220] sm:$0xff] }
  0xb3   : > { %v7719_v4 = vpop.f32.mrf.mxu1  ;;  %v7756_v39 = vpop.f32.mrf.mxu0  ;;  %v1480_v26 = vrot.slane %v1479_v40, 4  ;;  %v2161_v30 = vrot.slane %v2159_v12, 4  ;;  %5652 = vmatpush.bf16.msra.mxu0 %v6910_v10 }
  0xb4   : > { %v2281_v13 = vpack.c.b16 %v2255_v41, %v2254_v15  ;;  %v1288_v15 = vld [vmem:[#allocation2 + $0x54] sm:$0xf]  ;;  %v1289_v41 = vld [vmem:[#allocation2 + $0x58] sm:$0xf] }
  0xb5   : > { %v7732_v49 = vpop.f32.mrf.mxu3  ;;  %v1487_v60 = vshrl.u32 %v1288_v15, 16  ;;  %v1496_v40 = vshll.u32 %v1289_v41, 16 }
  0xb6   : > { %3503 = vmatmul.bf16.gmra.mxu0 %v3403_v1  ;;  %8617 = vst [vmem:[#allocation4_spill] sm:$0xff] %v7732_v49  ;;  %v3093_v1 = vrot.slane %v3091_v58, 5  ;;  %v2937_v58 = vld [vmem:[#allocation2 + $0x54] sm:$0xf] }
  0xb7   : > { %1859 = vmatmul.bf16.gmra.mxu1 %v1755_v25  ;;  %2384 = vmatmul.bf16.gmra.mxu2 %v2280_v46  ;;  %v3377_v25 = vunpack.c.l.b16 %v3086_v61  ;;  %v1465_v46 = vrot.slane %v1463_v42, 4  ;;  %v1482_v42 = vshll.u32 %v1287_v44, 16  ;;  %v3112_v21 = vshrl.u32 %v2937_v58, 16 }
  0xb8   : > { %v3094_v24 = vor.u32 %v3093_v1, %v3090_v20  ;;  %v6286_v20 = vrot.slane %v2034_v57, 9  ;;  %v2162_v1 = vrot.slane %v2036_v9, 5  ;;  %v3115_v23 = vshll.u32 %v2937_v58, 16  ;;  %v6839_v9 = vld [vmem:[#allocation2 + $0x48] sm:$0xff] }
  0xb9   : > { %v3404_v50 = vpack.c.b16 %v3377_v25, %v3376_v19  ;;  %v1469_v61 = vor.u32 %v1468_v31, %v1465_v46  ;;  %v3109_v19 = vrot.slane %v3107_v47, 5  ;;  %v1484_v28 = vrot.slane %v1482_v42, 5  ;;  %v6902_v46 = vld [vmem:[%s8602_s2 + $0x1e0] sm:$0xff]  ;;  %v895_v32 = vld [vmem:[#allocation2 + $0x68] sm:$0x1] }
  0xba   : > { %v7734_v53 = vpop.f32.mrf.mxu2  ;;  %v3095_v14 = vrot.slane %v3094_v24, 4  ;;  %v6870_v31 = vld [vmem:[%s8602_s2 + $0x160] sm:$0xff]  ;;  %v3114_v29 = vrot.slane %v3112_v21, 4  ;;  %5130 = vmatpush.bf16.msra.mxu3 %v6902_v46  ;;  %v2160_v17 = vsel %vm7573_vm14, %v6286_v20, %v2159_v12  ;;  %v3117_v24 = vrot.slane %v3115_v23, 5  ;;  %v298_v46 = vld [vmem:[#allocation2 + $0x74] sm:$0x1] }
  0xbb   : > { %v7736_v55 = vpop.f32.mrf.mxu1  ;;  %v1470_v25 = vrot.slane %v1469_v61, 4  ;;  %4005 = vmatpush.bf16.msra.mxu1 %v6870_v31  ;;  %v3125_v47 = vshrl.u32 %v2938_v8, 16  ;;  %v896_v57 = vsel %vm7178_vm2, %v655_v38, %v895_v32  ;;  %v1490_v61 = vshll.u32 %v1288_v15, 16  ;;  %v1290_v31 = vld [vmem:[#allocation2 + $0x5c] sm:$0x1] }
  0xbc   : > { %v3100_v35 = vsel %vm7544_vm10, %v3095_v14, %v7750_v5  ;;  %v1500_v42 = vshrl.u32 %v1289_v41, 16  ;;  %897 = vst [vmem:[#allocation2 + $0x68] sm:$0x1] %v896_v57  ;;  %v3118_v23 = vor.u32 %v3117_v24, %v3114_v29  ;;  %v2038_v15 = vld [vmem:[#allocation2 + $0x58] sm:$0xf]  ;;  %v672_v57 = vrot.slane %v7350_v56, 4 }
  0xbd   : > { %v7762_v37 = vpop.f32.mrf.mxu3  ;;  %v1475_v5 = vsel %vm7544_vm10, %v1470_v25, %v7752_v34  ;;  %v3378_v12 = vunpack.c.l.b16 %v3100_v35  ;;  %v3127_v21 = vrot.slane %v3125_v47, 4  ;;  %v1489_v25 = vrot.slane %v1487_v60, 4 }
  0xbe   : > { %8618 = vst [vmem:[#allocation5_spill] sm:$0xff] %v7762_v37  ;;  %v1731_v20 = vunpack.c.l.b16 %v1475_v5  ;;  %v3119_v29 = vrot.slane %v3118_v23, 4  ;;  %v1506_v5 = vshll.u32 %v1290_v31, 16 }
  0xbf   : > { %2762 = vmatmul.bf16.gmra.mxu3 %v6838_v59  ;;  %v3105_v59 = vrot.slane %v3104_v45, 4  ;;  %v3121_v45 = vshll.u32 %v2938_v8, 16  ;;  %v2939_v8 = vld [vmem:[#allocation2 + $0x5c] sm:$0x1] }
  0xc1   : > { %v3110_v33 = vsel %vm7544_vm10, %v3105_v59, %v3109_v19  ;;  %v2256_v59 = vunpack.c.l.b16 %v2160_v17  ;;  %v3123_v19 = vrot.slane %v3121_v45, 5  ;;  %v3131_v17 = vshll.u32 %v2939_v8, 16 }
  0xc2   : > { %v7766_v48 = vpop.f32.mrf.mxu2  ;;  %v3379_v14 = vunpack.c.l.b16 %v3110_v33  ;;  %v299_v45 = vsel %vm7561_vm12, 0, %v298_v46  ;;  %v1508_v8 = vrot.slane %v1506_v5, 5  ;;  %v1292_v46 = vld [vmem:[#allocation2 + $0x64] sm:$0xf]  ;;  %v6840_v5 = vld [vmem:[#allocation2 + $0x54] sm:$0xff] }
  0xc3   : > { %v7768_v3 = vpop.f32.mrf.mxu1  ;;  %v3128_v35 = vor.u32 %v3127_v21, %v3123_v19  ;;  %300 = vst [vmem:[#allocation2 + $0x74] sm:$0x1] %v299_v45  ;;  %v2941_v21 = vld [vmem:[#allocation2 + $0x64] sm:$0xf] }
  0xc4   : > { %v7786_v44 = vpop.f32.mrf.mxu0  ;;  %v3405_v10 = vpack.c.b16 %v3379_v14, %v3378_v12  ;;  %v3145_v31 = vshll.u32 %v2941_v21, 16 }
  0xc5   : > { %v7799_v58 = vpop.f32.mrf.mxu3 }
  0xc6   : > { %3508 = vmatmul.bf16.gmra.mxu0 %v3404_v50  ;;  %v1485_v50 = vsel %vm7544_vm10, %v1480_v26, %v1484_v28  ;;  %8619 = vst [vmem:[#allocation6_spill] sm:$0xff] %v7799_v58  ;;  %v1492_v26 = vrot.slane %v1490_v61, 5  ;;  %v7805_v28 = vrot.slane %v1496_v40, 5  ;;  %v3129_v61 = vrot.slane %v3128_v35, 4  ;;  %v2039_v40 = vld [vmem:[#allocation2 + $0x5c] sm:$0x1] }
  0xc7   : > { %1864 = vmatmul.bf16.gmra.mxu1 %v1756_v51  ;;  %2389 = vmatmul.bf16.gmra.mxu2 %v2281_v13  ;;  %v2163_v51 = vsel %vm7573_vm14, %v2161_v30, %v2162_v1  ;;  %v1732_v1 = vunpack.c.l.b16 %v1485_v50  ;;  %v1502_v30 = vrot.slane %v1500_v42, 4  ;;  %v2037_v50 = vld [vmem:[#allocation2 + $0x54] sm:$0xe]  ;;  %v2940_v42 = vld [vmem:[#allocation2 + $0x60] sm:$0xf] }
  0xc8   : > { %v2257_v38 = vunpack.c.l.b16 %v2163_v51  ;;  %v1493_v24 = vor.u32 %v1492_v26, %v1489_v25  ;;  %v2166_v51 = vrot.slane %v2038_v15, 5  ;;  %v2169_v25 = vrot.slane %v2039_v40, 5 }
  0xc9   : > { %v1757_v33 = vpack.c.b16 %v1732_v1, %v1731_v20  ;;  %v1503_v32 = vor.u32 %v1502_v30, %v7805_v28  ;;  %v1291_v20 = vld [vmem:[#allocation2 + $0x60] sm:$0xf]  ;;  %v3124_v1 = vsel %vm7544_vm10, %v3119_v29, %v3123_v19  ;;  %v3136_v26 = vshrl.u32 %v2940_v42, 16 }
  0xca   : > { %v7801_v13 = vpop.f32.mrf.mxu2  ;;  %v2282_v41 = vpack.c.b16 %v2257_v38, %v2256_v59  ;;  %v6287_v59 = vrot.slane %v2037_v50, 9  ;;  %v1494_v56 = vrot.slane %v1493_v24, 4  ;;  %v2168_v23 = vrot.slane %v2166_v51, 4 }
  0xcb   : > { %8620 = vst [vmem:[#allocation7_spill] sm:$0xff] %v7801_v13  ;;  %v1504_v38 = vrot.slane %v1503_v32, 4  ;;  %v3139_v30 = vshll.u32 %v2940_v42, 16  ;;  %v1511_v35 = vshrl.u32 %v1291_v20, 16  ;;  %v1514_v15 = vshll.u32 %v1291_v20, 16 }
  0xcc   : > { %v7803_v34 = vpop.f32.mrf.mxu1  ;;  %v7809_v47 = vpop.f32.mrf.mxu0  ;;  %v1499_v19 = vsel %vm7544_vm10, %v1494_v56, %v7805_v28  ;;  %v1520_v29 = vshll.u32 %v1292_v46, 16  ;;  %v1524_v24 = vshrl.u32 %v1292_v46, 16  ;;  %v902_v32 = vld [vmem:[#allocation2 + $0x74] sm:$0x1]  ;;  %v2170_v50 = vsel %vm7573_vm14, %v2168_v23, %v2169_v25  ;;  %v2942_v46 = vld [vmem:[#allocation2 + $0x68] sm:$0x1] }
  0xcd   : > { %v7813_v60 = vpop.f32.mrf.mxu3  ;;  %v1509_v45 = vsel %vm7544_vm10, %v1504_v38, %v1508_v8  ;;  %v3138_v40 = vrot.slane %v3136_v26, 4  ;;  %v903_v42 = vsel %vm7178_vm2, %v672_v57, %v902_v32  ;;  %v1516_v20 = vrot.slane %v1514_v15, 5  ;;  %v2943_v23 = vld [vmem:[#allocation2 + $0x6c] sm:$0xf] }
  0xce   : > { %8621 = vst [vmem:[#allocation8_spill] sm:$0xff] %v7813_v60  ;;  %v1733_v56 = vunpack.c.l.b16 %v1499_v19  ;;  %v1734_v38 = vunpack.c.l.b16 %v1509_v45  ;;  %v2259_v26 = vunpack.c.l.b16 %v2170_v50  ;;  %v7840_v57 = vrot.slane %v1520_v29, 5  ;;  %v2041_v45 = vld [vmem:[#allocation2 + $0x64] sm:$0xf] }
  0xcf   : > { %2767 = vmatmul.bf16.gmra.mxu3 %v6839_v9  ;;  %v3133_v9 = vrot.slane %v3131_v17, 5  ;;  %v3380_v17 = vunpack.c.l.b16 %v3124_v1  ;;  %904 = vst [vmem:[#allocation2 + $0x74] sm:$0x1] %v903_v42  ;;  %v1526_v32 = vrot.slane %v1524_v24, 4  ;;  %v3160_v50 = vshrl.u32 %v2943_v23, 16 }
  0xd0   : > { %v1758_v29 = vpack.c.b16 %v1734_v38, %v1733_v56  ;;  %v3163_v58 = vshll.u32 %v2943_v23, 16  ;;  %v1294_v23 = vld [vmem:[#allocation2 + $0x6c] sm:$0xf]  ;;  %v706_v13 = vrot.slane %v7517_v63, 4 }
  0xd1   : > { %v1527_v60 = vor.u32 %v1526_v32, %v7840_v57 }
  0xd2   : > { %v3165_v32 = vrot.slane %v3163_v58, 5 }
  0xd4   : > { %v7817_v14 = vpop.f32.mrf.mxu1 }
  0xd5   : > { %v7815_v12 = vpop.f32.mrf.mxu2 }
  0xd6   : > { %3513 = vmatmul.bf16.gmra.mxu0 %v3405_v10  ;;  %8622 = vst [vmem:[#allocation9_spill] sm:$0xff] %v7815_v12  ;;  %v3149_v10 = vshrl.u32 %v2941_v21, 16  ;;  %v1513_v21 = vrot.slane %v1511_v35, 4 }
  0xd7   : > { %1869 = vmatmul.bf16.gmra.mxu1 %v1757_v33  ;;  %2394 = vmatmul.bf16.gmra.mxu2 %v2282_v41  ;;  %v3134_v33 = vsel %vm7544_vm10, %v3129_v61, %v3133_v9  ;;  %v2167_v41 = vsel %vm7573_vm14, %v6287_v59, %v2166_v51  ;;  %v3141_v61 = vrot.slane %v3139_v30, 5  ;;  %v301_v51 = vld [vmem:[#allocation2 + $0x80] sm:$0x1]  ;;  %v7836_v59 = vrot.slane %v3145_v31, 5  ;;  %v1293_v30 = vld [vmem:[#allocation2 + $0x68] sm:$0x1] }
  0xd8   : > { %v3151_v28 = vrot.slane %v3149_v10, 4  ;;  %v3381_v1 = vunpack.c.l.b16 %v3134_v33  ;;  %v2258_v8 = vunpack.c.l.b16 %v2167_v41  ;;  %v302_v31 = vsel %vm7561_vm12, 0, %v301_v51  ;;  %v2040_v51 = vld [vmem:[#allocation2 + $0x60] sm:$0xe] }
  0xd9   : > { %v3142_v15 = vor.u32 %v3141_v61, %v3138_v40  ;;  %303 = vst [vmem:[#allocation2 + $0x80] sm:$0x1] %v302_v31  ;;  %v3155_v41 = vshll.u32 %v2942_v46, 16  ;;  %v1517_v19 = vor.u32 %v1516_v20, %v1513_v21  ;;  %v689_v40 = vrot.slane %v7431_v52, 4  ;;  %v2944_v46 = vld [vmem:[#allocation2 + $0x70] sm:$0xf] }
  0xda   : > { %v7838_v25 = vpop.f32.mrf.mxu3  ;;  %v3152_v33 = vor.u32 %v3151_v28, %v7836_v59  ;;  %v3406_v42 = vpack.c.b16 %v3381_v1, %v3380_v17  ;;  %v2283_v24 = vpack.c.b16 %v2259_v26, %v2258_v8  ;;  %v2173_v28 = vrot.slane %v2041_v45, 5  ;;  %v2042_v17 = vld [vmem:[#allocation2 + $0x68] sm:$0x1]  ;;  %v6901_v8 = vld [vmem:[%s8602_s2 + $0x1d8] sm:$0xff] }
  0xdb   : > { %8623 = vst [vmem:[#allocation10_spill] sm:$0xff] %v7838_v25  ;;  %v1530_v25 = vshll.u32 %v1293_v30, 16  ;;  %v3143_v61 = vrot.slane %v3142_v15, 4  ;;  %v3157_v20 = vrot.slane %v3155_v41, 5  ;;  %v1518_v31 = vrot.slane %v1517_v19, 4  ;;  %v6869_v52 = vld [vmem:[%s8602_s2 + $0x158] sm:$0xff]  ;;  %5131 = vmatpush.bf16.msra.mxu3 %v6901_v8 }
  0xdc   : > { %v7834_v9 = vpop.f32.mrf.mxu0  ;;  %v3153_v21 = vrot.slane %v3152_v33, 4  ;;  %v3162_v1 = vrot.slane %v3160_v50, 4  ;;  %v6288_v38 = vrot.slane %v2040_v51, 9  ;;  %v1528_v30 = vrot.slane %v1527_v60, 4  ;;  %v1295_v41 = vld [vmem:[#allocation2 + $0x70] sm:$0xf]  ;;  %4006 = vmatpush.bf16.msra.mxu1 %v6869_v52 }
  0xdd   : > { %v7844_v10 = vpop.f32.mrf.mxu2  ;;  %v1532_v56 = vrot.slane %v1530_v25, 5  ;;  %v3169_v15 = vshll.u32 %v2944_v46, 16  ;;  %v3173_v33 = vshrl.u32 %v2944_v46, 16  ;;  %v2175_v25 = vrot.slane %v2173_v28, 4 }
  0xde   : > { %8624 = vst [vmem:[#allocation11_spill] sm:$0xff] %v7844_v10  ;;  %v2176_v45 = vrot.slane %v2042_v17, 5  ;;  %v1535_v50 = vshrl.u32 %v1294_v23, 16  ;;  %v1548_v37 = vshrl.u32 %v1295_v41, 16  ;;  %v3148_v58 = vsel %vm7544_vm10, %v3143_v61, %v7836_v59  ;;  %v6909_v59 = vld [vmem:[%s8602_s2 + $0x218] sm:$0xff]  ;;  %v6841_v61 = vld [vmem:[#allocation2 + $0x60] sm:$0xff] }
  0xdf   : > { %2772 = vmatmul.bf16.gmra.mxu3 %v6840_v5  ;;  %v6893_v5 = vld [vmem:[%s8602_s2 + $0x198] sm:$0xff]  ;;  %v1523_v17 = vsel %vm7544_vm10, %v1518_v31, %v7840_v57  ;;  %v2174_v8 = vsel %vm7573_vm14, %v6288_v38, %v2173_v28  ;;  %v1533_v52 = vsel %vm7544_vm10, %v1528_v30, %v1532_v56  ;;  %v2945_v57 = vld [vmem:[#allocation2 + $0x74] sm:$0x1]  ;;  %v3382_v28 = vunpack.c.l.b16 %v3148_v58  ;;  %5653 = vmatpush.bf16.msra.mxu0 %v6909_v59 }
  0xe0   : > { %v7846_v35 = vpop.f32.mrf.mxu1  ;;  %4385 = vmatpush.bf16.msra.mxu2 %v6893_v5  ;;  %v1544_v5 = vshll.u32 %v1295_v41, 16  ;;  %v3175_v41 = vrot.slane %v3173_v33, 4  ;;  %v1296_v38 = vld [vmem:[#allocation2 + $0x74] sm:$0x1]  ;;  %v2260_v33 = vunpack.c.l.b16 %v2174_v8 }
  0xe1   : > { %v1554_v58 = vshll.u32 %v1296_v38, 16 }
  0xe2   : > { %v7864_v51 = vpop.f32.mrf.mxu3  ;;  %v7889_v56 = vrot.slane %v1544_v5, 5  ;;  %v2043_v5 = vld [vmem:[#allocation2 + $0x6c] sm:$0xe] }
  0xe3   : > { %8625 = vst [vmem:[#allocation12_spill] sm:$0xff] %v7864_v51  ;;  %v2946_v51 = vld [vmem:[#allocation2 + $0x78] sm:$0xf] }
  0xe4   : > { %v7860_v26 = vpop.f32.mrf.mxu0  ;;  %v3184_v8 = vshrl.u32 %v2946_v51, 16 }
  0xe6   : > { %3518 = vmatmul.bf16.gmra.mxu0 %v3406_v42  ;;  %v1538_v42 = vshll.u32 %v1294_v23, 16  ;;  %v7882_v23 = vrot.slane %v3169_v15, 5  ;;  %v1736_v15 = vunpack.c.l.b16 %v1533_v52  ;;  %v3186_v12 = vrot.slane %v3184_v8, 4 }
  0xe7   : > { %1874 = vmatmul.bf16.gmra.mxu1 %v1758_v29  ;;  %2399 = vmatmul.bf16.gmra.mxu2 %v2283_v24  ;;  %v909_v29 = vld [vmem:[#allocation2 + $0x80] sm:$0x1]  ;;  %v3158_v24 = vsel %vm7544_vm10, %v3153_v21, %v3157_v20  ;;  %v2177_v21 = vsel %vm7573_vm14, %v2175_v25, %v2176_v45  ;;  %v1537_v20 = vrot.slane %v1535_v50, 4  ;;  %v3179_v25 = vshll.u32 %v2945_v57, 16  ;;  %v304_v45 = vld [vmem:[#allocation2 + $0x8c] sm:$0x1] }
  0xe8   : > { %v7862_v19 = vpop.f32.mrf.mxu1  ;;  %v910_v60 = vsel %vm7178_vm2, %v689_v40, %v909_v29  ;;  %v3166_v40 = vor.u32 %v3165_v32, %v3162_v1  ;;  %v1540_v31 = vrot.slane %v1538_v42, 5  ;;  %v1550_v1 = vrot.slane %v1548_v37, 4  ;;  %v2044_v29 = vld [vmem:[#allocation2 + $0x70] sm:$0xf] }
  0xe9   : > { %911 = vst [vmem:[#allocation2 + $0x80] sm:$0x1] %v910_v60  ;;  %v3383_v30 = vunpack.c.l.b16 %v3158_v24  ;;  %v1735_v32 = vunpack.c.l.b16 %v1523_v17  ;;  %v2261_v60 = vunpack.c.l.b16 %v2177_v21  ;;  %v2180_v24 = vrot.slane %v2044_v29, 5  ;;  %v2947_v17 = vld [vmem:[#allocation2 + $0x7c] sm:$0xf] }
  0xea   : > { %v7873_v46 = vpop.f32.mrf.mxu2  ;;  %v3167_v49 = vrot.slane %v3166_v40, 4  ;;  %v1541_v42 = vor.u32 %v1540_v31, %v1537_v20  ;;  %v1551_v37 = vor.u32 %v1550_v1, %v7889_v56  ;;  %v2045_v21 = vld [vmem:[#allocation2 + $0x74] sm:$0x1]  ;;  %v3181_v1 = vrot.slane %v3179_v25, 5 }
  0xeb   : > { %8626 = vst [vmem:[#allocation13_spill] sm:$0xff] %v7873_v46  ;;  %v3176_v46 = vor.u32 %v3175_v41, %v7882_v23  ;;  %v3407_v52 = vpack.c.b16 %v3383_v30, %v3382_v28  ;;  %v1759_v40 = vpack.c.b16 %v1736_v15, %v1735_v32  ;;  %v3187_v41 = vshll.u32 %v2946_v51, 16 }
  0xec   : > { %v2284_v20 = vpack.c.b16 %v2261_v60, %v2260_v33  ;;  %v3172_v31 = vsel %vm7544_vm10, %v3167_v49, %v7882_v23  ;;  %v1542_v29 = vrot.slane %v1541_v42, 4  ;;  %v1556_v28 = vrot.slane %v1554_v58, 5  ;;  %v1297_v33 = vld [vmem:[#allocation2 + $0x78] sm:$0xf]  ;;  %v1298_v60 = vld [vmem:[#allocation2 + $0x7c] sm:$0xf] }
  0xed   : > { %v3177_v38 = vrot.slane %v3176_v46, 4  ;;  %v6289_v30 = vrot.slane %v2043_v5, 9  ;;  %v1552_v32 = vrot.slane %v1551_v37, 4  ;;  %v2182_v15 = vrot.slane %v2180_v24, 4 }
  0xee   : > { %v2183_v51 = vrot.slane %v2045_v21, 5  ;;  %v1559_v49 = vshrl.u32 %v1297_v33, 16  ;;  %v1562_v46 = vshll.u32 %v1297_v33, 16  ;;  %v7907_v25 = vunpack.c.l.b16 %v3172_v31 }
  0xef   : > { %2777 = vmatmul.bf16.gmra.mxu3 %v6841_v61  ;;  %v305_v61 = vsel %vm7561_vm12, 0, %v304_v45  ;;  %v3189_v45 = vrot.slane %v3187_v41, 5  ;;  %v3182_v23 = vsel %vm7544_vm10, %v3177_v38, %v3181_v1  ;;  %v1547_v42 = vsel %vm7544_vm10, %v1542_v29, %v7889_v56  ;;  %v6842_v29 = vld [vmem:[#allocation2 + $0x6c] sm:$0xff] }
  0xf0   : > { %v1840_v50 = vpop.f32.mrf.mxu1  ;;  %v7892_v59 = vpop.f32.mrf.mxu0  ;;  %306 = vst [vmem:[#allocation2 + $0x8c] sm:$0x1] %v305_v61  ;;  %v2181_v58 = vsel %vm7573_vm14, %v6289_v30, %v2180_v24  ;;  %v1557_v63 = vsel %vm7544_vm10, %v1552_v32, %v1556_v28  ;;  %v1568_v8 = vshll.u32 %v1298_v60, 16  ;;  %v2184_v41 = vsel %vm7573_vm14, %v2182_v15, %v2183_v51 }
  0xf1   : > { %v1952_v5 = vadd.f32 %v1840_v50, %v7727_v36  ;;  %v3190_v61 = vor.u32 %v3189_v45, %v3186_v12  ;;  %v3385_v31 = vunpack.c.l.b16 %v3182_v23  ;;  %v1561_v36 = vrot.slane %v1559_v49, 4  ;;  %v1299_v12 = vld [vmem:[#allocation2 + $0x80] sm:$0x1]  ;;  %v2949_v23 = vld [vmem:[#allocation2 + $0x84] sm:$0xf] }
  0xf2   : > { %v7895_v10 = vpop.f32.mrf.mxu2  ;;  %v7899_v57 = vpop.f32.mrf.mxu3  ;;  %v1564_v50 = vrot.slane %v1562_v46, 5  ;;  %v1737_v28 = vunpack.c.l.b16 %v1547_v42  ;;  %v1738_v30 = vunpack.c.l.b16 %v1557_v63  ;;  %v2263_v15 = vunpack.c.l.b16 %v2184_v41  ;;  %v7930_v46 = vld [vmem:[#allocation2 + $0x7c] sm:$0xf]  ;;  %v307_v42 = vld [vmem:[#allocation2 + $0x98] sm:$0x1] }
  0xf3   : > { %8627 = vst [vmem:[#allocation14_spill] sm:$0xff] %v7895_v10  ;;  %v3193_v10 = vshll.u32 %v2947_v17, 16  ;;  %v3191_v51 = vrot.slane %v3190_v61, 4  ;;  %v2048_v41 = vld [vmem:[#allocation2 + $0x80] sm:$0x1] }
  0xf4   : > { %8628 = vst [vmem:[#allocation15_spill] sm:$0xff] %v7899_v57  ;;  %v3197_v57 = vshrl.u32 %v2947_v17, 16  ;;  %v2948_v17 = vld [vmem:[#allocation2 + $0x80] sm:$0x1]  ;;  %v1565_v49 = vor.u32 %v1564_v50, %v1561_v36  ;;  %v1760_v63 = vpack.c.b16 %v1738_v30, %v1737_v28  ;;  %v2187_v36 = vrot.slane %v7930_v46, 5  ;;  %v6892_v30 = vld [vmem:[%s8602_s2 + $0x190] sm:$0xff] }
  0xf5   : > { %v7921_v56 = vrot.slane %v3193_v10, 5  ;;  %v3203_v32 = vshll.u32 %v2948_v17, 16  ;;  %v7927_v10 = vrot.slane %v1568_v8, 5  ;;  %v2950_v50 = vld [vmem:[#allocation2 + $0x88] sm:$0xf]  ;;  %4386 = vmatpush.bf16.msra.mxu2 %v6892_v30 }
  0xf6   : > { %3523 = vmatmul.bf16.gmra.mxu0 %v3407_v52  ;;  %v1572_v52 = vshrl.u32 %v1298_v60, 16  ;;  %v2262_v60 = vunpack.c.l.b16 %v2181_v58 }
  0xf7   : > { %1879 = vmatmul.bf16.gmra.mxu1 %v1759_v40  ;;  %2404 = vmatmul.bf16.gmra.mxu2 %v2284_v20  ;;  %v3199_v20 = vrot.slane %v3197_v57, 4  ;;  %v916_v1 = vld [vmem:[#allocation2 + $0x8c] sm:$0x1]  ;;  %v3205_v8 = vrot.slane %v3203_v32, 5  ;;  %v3211_v32 = vshll.u32 %v2949_v23, 16 }
  0xf8   : > { %v7914_v37 = vpop.f32.mrf.mxu0  ;;  %v1842_v21 = vpop.f32.mrf.mxu1  ;;  %v917_v33 = vsel %vm7178_vm2, %v706_v13, %v916_v1  ;;  %v1574_v57 = vrot.slane %v1572_v52, 4  ;;  %v1578_v13 = vshll.u32 %v1299_v12, 16  ;;  %v2285_v17 = vpack.c.b16 %v2263_v15, %v2262_v60 }
  0xf9   : > { %918 = vst [vmem:[#allocation2 + $0x8c] sm:$0x1] %v917_v33  ;;  %v3200_v45 = vor.u32 %v3199_v20, %v7921_v56  ;;  %v1953_v58 = vadd.f32 %v1842_v21, %v7756_v39  ;;  %v3208_v1 = vshrl.u32 %v2949_v23, 16  ;;  %v3196_v39 = vsel %vm7544_vm10, %v3191_v51, %v7921_v56  ;;  %v6868_v23 = vld [vmem:[%s8602_s2 + $0x150] sm:$0xff] }
  0xfa   : > { %v2365_v40 = vpop.f32.mrf.mxu2  ;;  %v7923_v24 = vpop.f32.mrf.mxu3  ;;  %v1575_v52 = vor.u32 %v1574_v57, %v7927_v10  ;;  %v1566_v21 = vrot.slane %v1565_v49, 4  ;;  %v1580_v15 = vrot.slane %v1578_v13, 5  ;;  %v2190_v57 = vrot.slane %v2048_v41, 5  ;;  %4007 = vmatpush.bf16.msra.mxu1 %v6868_v23 }
  0xfb   : > { %v2477_v38 = vadd.f32 %v2365_v40, %v1952_v5  ;;  %v3408_v5 = vpack.c.b16 %v3385_v31, %v7907_v25  ;;  %v2046_v40 = vld [vmem:[#allocation2 + $0x78] sm:$0xe]  ;;  %v3201_v20 = vrot.slane %v3200_v45, 4  ;;  %v2189_v51 = vrot.slane %v2187_v36, 4 }
  0xfc   : > { %v6290_v12 = vrot.slane %v2046_v40, 9  ;;  %v1576_v46 = vrot.slane %v1575_v52, 4  ;;  %v3210_v49 = vrot.slane %v3208_v1, 4  ;;  %v723_v41 = vrot.slane %v7266_v27, 4 }
  0xfd   : > { %v3206_v56 = vsel %vm7544_vm10, %v3201_v20, %v3205_v8  ;;  %v1301_v8 = vld [vmem:[#allocation2 + $0x88] sm:$0xf] }
  0xfe   : > { %v1596_v20 = vshrl.u32 %v1301_v8, 16  ;;  %v7961_v1 = vunpack.c.l.b16 %v3206_v56  ;;  %v2188_v27 = vsel %vm7573_vm14, %v6290_v12, %v2187_v36 }
  0xff   : > { %2782 = vmatmul.bf16.gmra.mxu3 %v6842_v29  ;;  %v308_v29 = vsel %vm7561_vm12, 0, %v307_v42  ;;  %v3217_v42 = vshll.u32 %v2950_v50, 16 }
 0x100   : > { %309 = vst [vmem:[#allocation2 + $0x98] sm:$0x1] %v308_v29  ;;  %v2951_v30 = vld [vmem:[#allocation2 + $0x8c] sm:$0x1]  ;;  %v1598_v36 = vrot.slane %v1596_v20, 4 }
 0x101   : > { %v7963_v29 = vrot.slane %v3217_v42, 5  ;;  %v6908_v42 = vld [vmem:[%s8602_s2 + $0x210] sm:$0xff]  ;;  %v310_v20 = vld [vmem:[#allocation2 + $0xa4] sm:$0x1] }
 0x102   : > { %v2367_v61 = vpop.f32.mrf.mxu2  ;;  %v2743_v31 = vpop.f32.mrf.mxu3  ;;  %5654 = vmatpush.bf16.msra.mxu0 %v6908_v42 }
 0x103   : > { %v3489_v25 = vpop.f32.mrf.mxu0  ;;  %v2478_v28 = vadd.f32 %v2367_v61, %v1953_v58  ;;  %v2855_v33 = vadd.f32 %v2743_v31, %v2477_v38  ;;  %v3221_v58 = vshrl.u32 %v2950_v50, 16  ;;  %v6900_v38 = vld [vmem:[%s8602_s2 + $0x1d0] sm:$0xff]  ;;  %v1592_v61 = vshll.u32 %v1301_v8, 16 }
 0x104   : > { %v1845_v60 = vpop.f32.mrf.mxu1  ;;  %5132 = vmatpush.bf16.msra.mxu3 %v6900_v38  ;;  %v7959_v50 = vunpack.c.l.b16 %v3196_v39  ;;  %v6843_v38 = vld [vmem:[#allocation2 + $0x78] sm:$0xff] }
 0x105   : > { %v1954_v45 = vadd.f32 %v1845_v60, %v7786_v44  ;;  %v1300_v44 = vld [vmem:[#allocation2 + $0x84] sm:$0xf]  ;;  %v7953_v13 = vadd.f32 %v3489_v25, %v2855_v33 }
 0x106   : > { %3528 = vmatmul.bf16.gmra.mxu0 %v3408_v5  ;;  %v1571_v5 = vsel %vm7544_vm10, %v1566_v21, %v7927_v10  ;;  %v1583_v52 = vshrl.u32 %v1300_v44, 16  ;;  %v1586_v40 = vshll.u32 %v1300_v44, 16  ;;  %v1581_v10 = vsel %vm7544_vm10, %v1576_v46, %v1580_v15 }
 0x107   : > { %1884 = vmatmul.bf16.gmra.mxu1 %v1760_v63  ;;  %2409 = vmatmul.bf16.gmra.mxu2 %v2285_v17  ;;  %v3213_v63 = vrot.slane %v3211_v32, 5  ;;  %v3223_v17 = vrot.slane %v3221_v58, 4  ;;  %v7967_v31 = vunpack.c.l.b16 %v1571_v5  ;;  %v2191_v21 = vsel %vm7573_vm14, %v2189_v51, %v2190_v57  ;;  %v923_v15 = vld [vmem:[#allocation2 + $0x98] sm:$0x1]  ;;  %v1302_v5 = vld [vmem:[#allocation2 + $0x8c] sm:$0x1] }
 0x108   : > { %v1585_v58 = vrot.slane %v1583_v52, 4  ;;  %v1588_v56 = vrot.slane %v1586_v40, 5  ;;  %v7976_v44 = vrot.slane %v1592_v61, 5  ;;  %v924_v12 = vsel %vm7178_vm2, %v723_v41, %v923_v15  ;;  %v2952_v61 = vld [vmem:[#allocation2 + $0x90] sm:$0xf] }
 0x109   : > { %v3214_v60 = vor.u32 %v3213_v63, %v3210_v49  ;;  %v3224_v51 = vor.u32 %v3223_v17, %v7963_v29  ;;  %v3227_v49 = vshll.u32 %v2951_v30, 16  ;;  %925 = vst [vmem:[#allocation2 + $0x98] sm:$0x1] %v924_v12  ;;  %v7982_v63 = vld [vmem:[#allocation2 + $0x88] sm:$0xf]  ;;  %v2265_v8 = vunpack.c.l.b16 %v2191_v21 }
 0x10a   : > { %v2370_v25 = vpop.f32.mrf.mxu2  ;;  %v2745_v32 = vpop.f32.mrf.mxu3  ;;  %v1589_v40 = vor.u32 %v1588_v56, %v1585_v58  ;;  %v3409_v41 = vpack.c.b16 %v7961_v1, %v7959_v50  ;;  %v2194_v42 = vrot.slane %v7982_v63, 5  ;;  %v2953_v21 = vld [vmem:[#allocation2 + $0x94] sm:$0xf]  ;;  %v3235_v58 = vshll.u32 %v2952_v61, 16 }
 0x10b   : > { %v3491_v39 = vpop.f32.mrf.mxu0  ;;  %v2479_v33 = vadd.f32 %v2370_v25, %v1954_v45  ;;  %v2856_v46 = vadd.f32 %v2745_v32, %v2478_v28  ;;  %v1740_v45 = vunpack.c.l.b16 %v1581_v10  ;;  %v2264_v28 = vunpack.c.l.b16 %v2188_v27  ;;  %v2049_v32 = vld [vmem:[#allocation2 + $0x84] sm:$0xe] }
 0x10c   : > { %v1847_v23 = vpop.f32.mrf.mxu1  ;;  %v3215_v52 = vrot.slane %v3214_v60, 4  ;;  %v1602_v25 = vshll.u32 %v1302_v5, 16  ;;  %v3225_v10 = vrot.slane %v3224_v51, 4  ;;  %v3229_v30 = vrot.slane %v3227_v49, 5  ;;  %v2051_v5 = vld [vmem:[#allocation2 + $0x8c] sm:$0x1] }
 0x10d   : > { %v1955_v57 = vadd.f32 %v1847_v23, %v7809_v47  ;;  %v1599_v47 = vor.u32 %v1598_v36, %v7976_v44  ;;  %v1761_v17 = vpack.c.b16 %v1740_v45, %v7967_v31  ;;  %v3232_v60 = vshrl.u32 %v2952_v61, 16 }
 0x10e   : > { %v311_v56 = vsel %vm7561_vm12, 0, %v310_v20  ;;  %v7991_v15 = vadd.f32 %v3491_v39, %v2856_v46  ;;  %v2286_v23 = vpack.c.b16 %v2265_v8, %v2264_v28  ;;  %v3220_v31 = vsel %vm7544_vm10, %v3215_v52, %v7963_v29  ;;  %v1303_v8 = vld [vmem:[#allocation2 + $0x90] sm:$0xf]  ;;  %v1304_v52 = vld [vmem:[#allocation2 + $0x94] sm:$0xf] }
 0x10f   : > { %2787 = vmatmul.bf16.gmra.mxu3 %v6843_v38  ;;  %v1590_v36 = vrot.slane %v1589_v40, 4  ;;  %312 = vst [vmem:[#allocation2 + $0xa4] sm:$0x1] %v311_v56  ;;  %v1600_v51 = vrot.slane %v1599_v47, 4  ;;  %v1604_v49 = vrot.slane %v1602_v25, 5  ;;  %v6291_v63 = vrot.slane %v2049_v32, 9 }
 0x110   : > { %v2196_v39 = vrot.slane %v2194_v42, 4  ;;  %v3241_v46 = vshll.u32 %v2953_v21, 16  ;;  %v3245_v20 = vshrl.u32 %v2953_v21, 16  ;;  %v3234_v28 = vrot.slane %v3232_v60, 4 }
 0x111   : > { %v3237_v29 = vrot.slane %v3235_v58, 5  ;;  %v1595_v40 = vsel %vm7544_vm10, %v1590_v36, %v7976_v44  ;;  %v1607_v47 = vshrl.u32 %v1303_v8, 16  ;;  %v1610_v25 = vshll.u32 %v1303_v8, 16 }
 0x112   : > { %v2372_v27 = vpop.f32.mrf.mxu2  ;;  %v2748_v1 = vpop.f32.mrf.mxu3  ;;  %v1620_v32 = vshrl.u32 %v1304_v52, 16  ;;  %v3247_v21 = vrot.slane %v3245_v20, 4  ;;  %v1605_v58 = vsel %vm7544_vm10, %v1600_v51, %v1604_v49  ;;  %v8013_v56 = vunpack.c.l.b16 %v1595_v40  ;;  %v6844_v20 = vld [vmem:[#allocation2 + $0x84] sm:$0xff] }
 0x113   : > { %v3494_v50 = vpop.f32.mrf.mxu0  ;;  %v2480_v38 = vadd.f32 %v2372_v27, %v1955_v57  ;;  %v2857_v12 = vadd.f32 %v2748_v1, %v2479_v33  ;;  %v3230_v57 = vsel %vm7544_vm10, %v3225_v10, %v3229_v30  ;;  %v8005_v27 = vunpack.c.l.b16 %v3220_v31 }
 0x114   : > { %v1850_v45 = vpop.f32.mrf.mxu1  ;;  %v8007_v10 = vunpack.c.l.b16 %v3230_v57  ;;  %v8009_v30 = vrot.slane %v3241_v46, 5  ;;  %v2195_v44 = vsel %vm7573_vm14, %v6291_v63, %v2194_v42  ;;  %v1622_v49 = vrot.slane %v1620_v32, 4  ;;  %v2955_v63 = vld [vmem:[#allocation2 + $0x9c] sm:$0xf] }
 0x115   : > { %v1956_v61 = vadd.f32 %v1850_v45, %v7834_v9  ;;  %v7999_v33 = vadd.f32 %v3494_v50, %v2857_v12  ;;  %v2197_v9 = vrot.slane %v2051_v5, 5  ;;  %v2954_v50 = vld [vmem:[#allocation2 + $0x98] sm:$0x1]  ;;  %v1609_v12 = vrot.slane %v1607_v47, 4 }
 0x116   : > { %3533 = vmatmul.bf16.gmra.mxu0 %v3409_v41  ;;  %v740_v41 = vrot.slane %v7360_v11, 4  ;;  %v3238_v11 = vor.u32 %v3237_v29, %v3234_v28  ;;  %v1612_v45 = vrot.slane %v1610_v25, 5  ;;  %v930_v5 = vld [vmem:[#allocation2 + $0xa4] sm:$0x1]  ;;  %v1742_v29 = vunpack.c.l.b16 %v1605_v58 }
 0x117   : > { %1889 = vmatmul.bf16.gmra.mxu1 %v1761_v17  ;;  %2414 = vmatmul.bf16.gmra.mxu2 %v2286_v23  ;;  %v1616_v17 = vshll.u32 %v1304_v52, 16  ;;  %v2198_v36 = vsel %vm7573_vm14, %v2196_v39, %v2197_v9  ;;  %v3251_v8 = vshll.u32 %v2954_v50, 16  ;;  %v1305_v39 = vld [vmem:[#allocation2 + $0x98] sm:$0x1]  ;;  %v2266_v52 = vunpack.c.l.b16 %v2195_v44  ;;  %v8025_v9 = vld [vmem:[#allocation2 + $0x94] sm:$0xf] }
 0x118   : > { %v931_v42 = vsel %vm7178_vm2, %v740_v41, %v930_v5  ;;  %v2267_v40 = vunpack.c.l.b16 %v2198_v36  ;;  %v3256_v47 = vshrl.u32 %v2955_v63, 16  ;;  %v3259_v25 = vshll.u32 %v2955_v63, 16  ;;  %v2956_v44 = vld [vmem:[#allocation2 + $0xa0] sm:$0xf]  ;;  %v2052_v36 = vld [vmem:[#allocation2 + $0x90] sm:$0xe] }
 0x119   : > { %v8019_v51 = vrot.slane %v1616_v17, 5  ;;  %932 = vst [vmem:[#allocation2 + $0xa4] sm:$0x1] %v931_v42  ;;  %v313_v17 = vld [vmem:[#allocation2 + $0xb0] sm:$0x1]  ;;  %v1613_v32 = vor.u32 %v1612_v45, %v1609_v12  ;;  %v3253_v50 = vrot.slane %v3251_v8, 5 }
 0x11a   : > { %v2375_v60 = vpop.f32.mrf.mxu2  ;;  %v2750_v23 = vpop.f32.mrf.mxu3  ;;  %v2054_v5 = vld [vmem:[#allocation2 + $0x98] sm:$0x1]  ;;  %v314_v12 = vsel %vm7561_vm12, 0, %v313_v17  ;;  %v3261_v63 = vrot.slane %v3259_v25, 5 }
 0x11b   : > { %v3496_v1 = vpop.f32.mrf.mxu0  ;;  %v2481_v31 = vadd.f32 %v2375_v60, %v1956_v61  ;;  %v2858_v46 = vadd.f32 %v2750_v23, %v2480_v38  ;;  %v3248_v61 = vor.u32 %v3247_v21, %v8009_v30  ;;  %v3239_v38 = vrot.slane %v3238_v11, 4  ;;  %315 = vst [vmem:[#allocation2 + $0xb0] sm:$0x1] %v314_v12 }
 0x11c   : > { %v1852_v57 = vpop.f32.mrf.mxu1  ;;  %v1623_v41 = vor.u32 %v1622_v49, %v8019_v51  ;;  %v1626_v60 = vshll.u32 %v1305_v39, 16  ;;  %v1762_v21 = vpack.c.b16 %v1742_v29, %v8013_v56  ;;  %v2287_v11 = vpack.c.b16 %v2267_v40, %v2266_v52 }
 0x11d   : > { %v1957_v28 = vadd.f32 %v1852_v57, %v7860_v26  ;;  %v3410_v26 = vpack.c.b16 %v8007_v10, %v8005_v27  ;;  %v3249_v58 = vrot.slane %v3248_v61, 4  ;;  %v2201_v57 = vrot.slane %v8025_v9, 5  ;;  %v6891_v10 = vld [vmem:[%s8602_s2 + $0x188] sm:$0xff] }
 0x11e   : > { %v8034_v45 = vadd.f32 %v3496_v1, %v2858_v46  ;;  %v3244_v27 = vsel %vm7544_vm10, %v3239_v38, %v8009_v30  ;;  %v3258_v56 = vrot.slane %v3256_v47, 4  ;;  %v1614_v8 = vrot.slane %v1613_v32, 4  ;;  %4387 = vmatpush.bf16.msra.mxu2 %v6891_v10  ;;  %v6867_v47 = vld [vmem:[%s8602_s2 + $0x148] sm:$0xff]  ;;  %v1307_v32 = vld [vmem:[#allocation2 + $0xa0] sm:$0xf] }
 0x11f   : > { %2792 = vmatmul.bf16.gmra.mxu3 %v6844_v20  ;;  %v1624_v39 = vrot.slane %v1623_v41, 4  ;;  %v1628_v1 = vrot.slane %v1626_v60, 5  ;;  %v6292_v52 = vrot.slane %v2052_v36, 9  ;;  %v3269_v40 = vshrl.u32 %v2956_v44, 16  ;;  %4008 = vmatpush.bf16.msra.mxu1 %v6867_v47 }
 0x120   : > { %v3254_v30 = vsel %vm7544_vm10, %v3249_v58, %v3253_v50  ;;  %v2203_v38 = vrot.slane %v2201_v57, 4  ;;  %v2204_v9 = vrot.slane %v2054_v5, 5  ;;  %v3262_v17 = vor.u32 %v3261_v63, %v3258_v56 }
 0x121   : > { %v1644_v58 = vshrl.u32 %v1307_v32, 16  ;;  %v8054_v50 = vunpack.c.l.b16 %v3244_v27  ;;  %v3271_v36 = vrot.slane %v3269_v40, 4  ;;  %v1629_v12 = vsel %vm7544_vm10, %v1624_v39, %v1628_v1  ;;  %v6845_v39 = vld [vmem:[#allocation2 + $0x90] sm:$0xff] }
 0x122   : > { %v2377_v23 = vpop.f32.mrf.mxu2  ;;  %v2753_v49 = vpop.f32.mrf.mxu3  ;;  %v3263_v63 = vrot.slane %v3262_v17, 4  ;;  %v1744_v47 = vunpack.c.l.b16 %v1629_v12 }
 0x123   : > { %v3499_v20 = vpop.f32.mrf.mxu0  ;;  %v2482_v42 = vadd.f32 %v2377_v23, %v1957_v28  ;;  %v2859_v29 = vadd.f32 %v2753_v49, %v2481_v31  ;;  %v3265_v28 = vshll.u32 %v2956_v44, 16  ;;  %v6899_v31 = vld [vmem:[%s8602_s2 + $0x1c8] sm:$0xff]  ;;  %v8056_v44 = vunpack.c.l.b16 %v3254_v30  ;;  %v2957_v49 = vld [vmem:[#allocation2 + $0xa4] sm:$0x1] }
 0x124   : > { %v1855_v61 = vpop.f32.mrf.mxu1  ;;  %5133 = vmatpush.bf16.msra.mxu3 %v6899_v31 }
 0x125   : > { %v1958_v46 = vadd.f32 %v1855_v61, %v7892_v59  ;;  %v1306_v59 = vld [vmem:[#allocation2 + $0x9c] sm:$0xf]  ;;  %v8051_v25 = vadd.f32 %v3499_v20, %v2859_v29  ;;  %v3267_v23 = vrot.slane %v3265_v28, 5  ;;  %v2205_v20 = vsel %vm7573_vm14, %v2203_v38, %v2204_v9  ;;  %v6907_v29 = vld [vmem:[%s8602_s2 + $0x208] sm:$0xff]  ;;  %v1308_v9 = vld [vmem:[#allocation2 + $0xa4] sm:$0x1] }
 0x126   : > { %3538 = vmatmul.bf16.gmra.mxu0 %v3410_v26  ;;  %v1631_v41 = vshrl.u32 %v1306_v59, 16  ;;  %v1634_v60 = vshll.u32 %v1306_v59, 16  ;;  %v757_v26 = vrot.slane %v7447_v22, 4  ;;  %v2202_v22 = vsel %vm7573_vm14, %v6292_v52, %v2201_v57 }
 0x127   : > { %1894 = vmatmul.bf16.gmra.mxu1 %v1762_v21  ;;  %2419 = vmatmul.bf16.gmra.mxu2 %v2287_v11  ;;  %v1640_v21 = vshll.u32 %v1307_v32, 16  ;;  %v1619_v11 = vsel %vm7544_vm10, %v1614_v8, %v8019_v51  ;;  %v937_v8 = vld [vmem:[#allocation2 + $0xb0] sm:$0x1]  ;;  %v1646_v57 = vrot.slane %v1644_v58, 4  ;;  %v3275_v38 = vshll.u32 %v2957_v49, 16 }
 0x128   : > { %v1633_v61 = vrot.slane %v1631_v41, 4  ;;  %v1636_v51 = vrot.slane %v1634_v60, 5  ;;  %v938_v52 = vsel %vm7178_vm2, %v757_v26, %v937_v8  ;;  %5655 = vmatpush.bf16.msra.mxu0 %v6907_v29  ;;  %v1743_v31 = vunpack.c.l.b16 %v1619_v11  ;;  %v2958_v32 = vld [vmem:[#allocation2 + $0xa8] sm:$0xf]  ;;  %v2057_v29 = vld [vmem:[#allocation2 + $0xa4] sm:$0x1] }
 0x129   : > { %v8070_v40 = vrot.slane %v1640_v21, 5  ;;  %939 = vst [vmem:[#allocation2 + $0xb0] sm:$0x1] %v938_v52  ;;  %v2268_v59 = vunpack.c.l.b16 %v2202_v22  ;;  %v2269_v17 = vunpack.c.l.b16 %v2205_v20  ;;  %v774_v41 = vrot.slane %v7535_v54, 4  ;;  %v316_v21 = vld [vmem:[#allocation2 + $0xbc] sm:$0x1] }
 0x12a   : > { %v2380_v5 = vpop.f32.mrf.mxu2  ;;  %v2755_v10 = vpop.f32.mrf.mxu3  ;;  %v3411_v60 = vpack.c.b16 %v8056_v44, %v8054_v50  ;;  %v1637_v26 = vor.u32 %v1636_v51, %v1633_v61  ;;  %v8083_v12 = vrot.slane %v3275_v38, 5  ;;  %v3280_v20 = vshrl.u32 %v2958_v32, 16  ;;  %v2055_v44 = vld [vmem:[#allocation2 + $0x9c] sm:$0xe]  ;;  %v7124_v54 = vld [vmem:[%s8601_s1 + $0x1] ss:$0 sm:$0xff] }
 0x12b   : > { %v3501_v27 = vpop.f32.mrf.mxu0  ;;  %v2483_v56 = vadd.f32 %v2380_v5, %v1958_v46  ;;  %v2860_v28 = vadd.f32 %v2755_v10, %v2482_v42  ;;  %v3272_v46 = vor.u32 %v3271_v36, %v3267_v23  ;;  %v2056_v42 = vld [vmem:[#allocation2 + $0xa0] sm:$0xf]  ;;  %v1647_v58 = vor.u32 %v1646_v57, %v8070_v40  ;;  %v2959_v5 = vld [vmem:[#allocation2 + $0xac] sm:$0xf]  ;;  %v7072_v52 = vld [vmem:[%s7200_s29 + $0x78] sm:$0xff]  }
 0x12c   : > { %v1857_v1 = vpop.f32.mrf.mxu1  ;;  %v1650_v36 = vshll.u32 %v1308_v9, 16  ;;  %v2208_v22 = vrot.slane %v2056_v42, 5  ;;  %v1763_v10 = vpack.c.b16 %v1744_v47, %v1743_v31  ;;  %v2288_v50 = vpack.c.b16 %v2269_v17, %v2268_v59 }
 0x12d   : > { %v1959_v30 = vadd.f32 %v1857_v1, %v7914_v37  ;;  %v3268_v37 = vsel %vm7544_vm10, %v3263_v63, %v3267_v23  ;;  %v8081_v11 = vrot.slane %v3272_v46, 4  ;;  %v3283_v8 = vshll.u32 %v2958_v32, 16 }
 0x12e   : > { %v317_v23 = vsel %vm7561_vm12, 0, %v316_v21  ;;  %v3289_v1 = vshll.u32 %v2959_v5, 16  ;;  %v3293_v57 = vshrl.u32 %v2959_v5, 16  ;;  %v1638_v9 = vrot.slane %v1637_v26, 4  ;;  %v1309_v5 = vld [vmem:[#allocation2 + $0xa8] sm:$0xf] }
 0x12f   : > { %2797 = vmatmul.bf16.gmra.mxu3 %v6845_v39  ;;  %v8087_v39 = vunpack.c.l.b16 %v3268_v37  ;;  %318 = vst [vmem:[#allocation2 + $0xbc] sm:$0x1] %v317_v23  ;;  %v1648_v31 = vrot.slane %v1647_v58, 4  ;;  %v1652_v47 = vrot.slane %v1650_v36, 5  ;;  %v6293_v59 = vrot.slane %v2055_v44, 9 }
 0x130   : > { %v2210_v17 = vrot.slane %v2208_v22, 4  ;;  %v2211_v42 = vrot.slane %v2057_v29, 5  ;;  %v8090_v32 = vadd.f32 %v3501_v27, %v2860_v28  ;;  %v3282_v21 = vrot.slane %v3280_v20, 4  ;;  %v2960_v26 = vld [vmem:[#allocation2 + $0xb0] sm:$0x1] }
 0x131   : > { %v3285_v37 = vrot.slane %v3283_v8, 5  ;;  %v8096_v58 = vrot.slane %v3289_v1, 5  ;;  %v3295_v36 = vrot.slane %v3293_v57, 4  ;;  %v1655_v44 = vshrl.u32 %v1309_v5, 16 }
 0x132   : > { %v2382_v49 = vpop.f32.mrf.mxu2  ;;  %v2758_v61 = vpop.f32.mrf.mxu3  ;;  %v1658_v27 = vshll.u32 %v1309_v5, 16  ;;  %v1643_v28 = vsel %vm7544_vm10, %v1638_v9, %v8070_v40  ;;  %v2212_v23 = vsel %vm7573_vm14, %v2210_v17, %v2211_v42  ;;  %v3299_v1 = vshll.u32 %v2960_v26, 16  ;;  %v7123_v40 = vld [vmem:[%s8601_s1] ss:$0 sm:$0xff] }
 0x133   : > { %v3504_v63 = vpop.f32.mrf.mxu0  ;;  %v2484_v51 = vadd.f32 %v2382_v49, %v1959_v30  ;;  %v2861_v46 = vadd.f32 %v2758_v61, %v2483_v56  ;;  %v3278_v30 = vsel %vm7544_vm10, %v8081_v11, %v8083_v12  ;;  %v1310_v56 = vld [vmem:[#allocation2 + $0xac] sm:$0xf]  ;;  %v6976_v49 = vunpack.c.l.bf16 %v7072_v52 }
 0x134   : > { %v1860_v38 = vpop.f32.mrf.mxu1  ;;  %v6977_v11 = vunpack.c.h.bf16 %v7072_v52  ;;  %v1668_v29 = vshrl.u32 %v1310_v56, 16  ;;  %v3286_v61 = vor.u32 %v3285_v37, %v3282_v21  ;;  %v8122_v21 = vld [vmem:[#allocation2 + $0xb4] sm:$0xf]  ;;  %v1745_v5 = vunpack.c.l.b16 %v1643_v28  ;;  %v269_v28 = vld [vmem:[#allocation2 + $0xc0] sm:$0x1] }
 0x135   : > { %v8103_v12 = vadd.f32 %v3504_v63, %v2861_v46  ;;  %v1960_v20 = vadd.f32 %v1860_v38, %v7687_v18  ;;  %v418_v57 = vmul.f32 %v7123_v40, %v6976_v49  ;;  %v3296_v46 = vor.u32 %v3295_v36, %v8096_v58 }
 0x136   : > { %3543 = vmatmul.bf16.gmra.mxu0 %v3411_v60  ;;  %v1653_v60 = vsel %vm7544_vm10, %v1648_v31, %v1652_v47  ;;  %v1660_v38 = vrot.slane %v1658_v27, 5  ;;  %v944_v9 = vld [vmem:[#allocation2 + $0xbc] sm:$0x1]  ;;  %v419_v37 = vmul.f32 %v7123_v40, %v6977_v11  ;;  %v1670_v26 = vrot.slane %v1668_v29, 4  ;;  %v8126_v27 = vld [vmem:[#allocation2 + $0xac] sm:$0xf] }
 0x137   : > { %1899 = vmatmul.bf16.gmra.mxu1 %v1763_v10  ;;  %2424 = vmatmul.bf16.gmra.mxu2 %v2288_v50  ;;  %v2209_v10 = vsel %vm7573_vm14, %v6293_v59, %v2208_v22  ;;  %v1664_v50 = vshll.u32 %v1310_v56, 16  ;;  %v1657_v22 = vrot.slane %v1655_v44, 4  ;;  %v6846_v47 = vld [vmem:[#allocation2 + $0x9c] sm:$0xff]  ;;  %v3393_v59 = vunpack.c.l.b16 %v3278_v30  ;;  %v1311_v56 = vld [vmem:[#allocation2 + $0xb0] sm:$0x1] }
 0x138   : > { %v945_v42 = vsel %vm7178_vm2, %v774_v41, %v944_v9  ;;  %v1746_v36 = vunpack.c.l.b16 %v1653_v60  ;;  %v2271_v44 = vunpack.c.l.b16 %v2212_v23  ;;  %v452_v30 = vadd.f32 %v7124_v54, %v418_v57  ;;  %v319_v9 = vld [vmem:[#allocation2 + $0xc8] sm:$0x1] }
 0x139   : > { %v8124_v49 = vrot.slane %v1664_v50, 5  ;;  %946 = vst [vmem:[#allocation2 + $0xbc] sm:$0x1] %v945_v42  ;;  %v3287_v41 = vrot.slane %v3286_v61, 4  ;;  %v1661_v11 = vor.u32 %v1660_v38, %v1657_v22  ;;  %v3412_v50 = vpack.c.b16 %v3393_v59, %v8087_v39  ;;  %v2058_v22 = vld [vmem:[#allocation2 + $0xa8] sm:$0xe] }
 0x13a   : > { %v2385_v8 = vpop.f32.mrf.mxu2  ;;  %v2760_v52 = vpop.f32.mrf.mxu3  ;;  %v1674_v29 = vshll.u32 %v1311_v56, 16  ;;  %v3304_v60 = vshrl.u32 %v8122_v21, 16  ;;  %v3307_v57 = vshll.u32 %v8122_v21, 16  ;;  %v270_v38 = vsel %vm7178_vm2, 0, %v269_v28  ;;  %v6866_v28 = vld [vmem:[%s8602_s2 + $0x140] sm:$0xff] }
 0x13b   : > { %v8113_v63 = vpop.f32.mrf.mxu0  ;;  %v2485_v18 = vadd.f32 %v2385_v8, %v1960_v20  ;;  %v8116_v31 = vadd.f32 %v2760_v52, %v2484_v51  ;;  %v2270_v51 = vunpack.c.l.b16 %v2209_v10  ;;  %v3297_v20 = vrot.slane %v3296_v46, 4  ;;  %271 = vst [vmem:[#allocation2 + $0xc0] sm:$0x1] %v270_v38  ;;  %4009 = vmatpush.bf16.msra.mxu1 %v6866_v28 }
 0x13c   : > { %v1862_v17 = vpop.f32.mrf.mxu1  ;;  %v3301_v8 = vrot.slane %v3299_v1, 5  ;;  %v453_v10 = vadd.f32 %v7124_v54, %v419_v37  ;;  %v1671_v40 = vor.u32 %v1670_v26, %v8124_v49  ;;  %v2215_v52 = vrot.slane %v8126_v27, 5  ;;  %v2060_v37 = vld [vmem:[#allocation2 + $0xb0] sm:$0x1] }
 0x13d   : > { %v1961_v23 = vadd.f32 %v1862_v17, %v7719_v4  ;;  %v1764_v46 = vpack.c.b16 %v1746_v36, %v1745_v5  ;;  %v2289_v1 = vpack.c.b16 %v2271_v44, %v2270_v51  ;;  %v484_v39 = vmax.f32 %v452_v30, 0.0  ;;  %v6890_v5 = vld [vmem:[%s8602_s2 + $0x180] sm:$0xff] }
 0x13e   : > { %v3292_v4 = vsel %vm7544_vm10, %v3287_v41, %v8096_v58  ;;  %v3302_v17 = vsel %vm7544_vm10, %v3297_v20, %v3301_v8  ;;  %v1662_v21 = vrot.slane %v1661_v11, 4  ;;  %v1676_v36 = vrot.slane %v1674_v29, 5  ;;  %4388 = vmatpush.bf16.msra.mxu2 %v6890_v5  ;;  %v2962_v58 = vld [vmem:[#allocation2 + $0xb8] sm:$0xf]  ;;  %v6898_v11 = vld [vmem:[%s8602_s2 + $0x1c0] sm:$0xff] }
 0x13f   : > { %2802 = vmatmul.bf16.gmra.mxu3 %v6846_v47  ;;  %v485_v51 = vmax.f32 %v453_v10, 0.0  ;;  %v516_v44 = vpack.c.bf16 %v484_v39, %v484_v39  ;;  %v1672_v27 = vrot.slane %v1671_v40, 4  ;;  %v6294_v54 = vrot.slane %v2058_v22, 9  ;;  %v1312_v29 = vld [vmem:[#allocation2 + $0xb4] sm:$0xf] }
 0x140   : > { %v2217_v30 = vrot.slane %v2215_v52, 4  ;;  %v320_v41 = vsel %vm7561_vm12, 0, %v319_v9  ;;  %v8153_v20 = vunpack.c.l.b16 %v3292_v4  ;;  %v8155_v8 = vunpack.c.l.b16 %v3302_v17  ;;  %5134 = vmatpush.bf16.msra.mxu3 %v6898_v11 }
 0x141   : > { %v776_v10 = vshrl.u32 %v516_v44, 16  ;;  %v1667_v6 = vsel %vm7544_vm10, %v1662_v21, %v8124_v49  ;;  %v517_v40 = vpack.c.bf16 %v485_v51, %v485_v51  ;;  %v3313_v22 = vshll.u32 %v2962_v58, 16  ;;  %321 = vst [vmem:[#allocation2 + $0xc8] sm:$0x1] %v320_v41 }
 0x142   : > { %v2387_v61 = vpop.f32.mrf.mxu2  ;;  %v2763_v59 = vpop.f32.mrf.mxu3  ;;  %v3317_v38 = vshrl.u32 %v2962_v58, 16  ;;  %v1677_v9 = vsel %vm7544_vm10, %v1672_v27, %v1676_v36  ;;  %v1679_v49 = vshrl.u32 %v1312_v29, 16  ;;  %v8175_v4 = vunpack.c.l.b16 %v1667_v6  ;;  %v6847_v58 = vld [vmem:[#allocation2 + $0xa8] sm:$0xff]  ;;  %v947_v28 = vld [vmem:[#allocation2 + $0xc0] sm:$0xf] }
 0x143   : > { %v8139_v47 = vpop.f32.mrf.mxu0  ;;  %v2486_v42 = vadd.f32 %v2387_v61, %v1961_v23  ;;  %v8149_v56 = vadd.f32 %v2763_v59, %v2485_v18  ;;  %v2218_v18 = vrot.slane %v2060_v37, 5  ;;  %v1313_v23 = vld [vmem:[#allocation2 + $0xb8] sm:$0xf]  ;;  %v779_v61 = vshll.u32 %v516_v44, 16 }
 0x144   : > { %v1865_v26 = vpop.f32.mrf.mxu1  ;;  %v8170_v39 = vrot.slane %v776_v10, 7  ;;  %v1688_v17 = vshll.u32 %v1313_v23, 16  ;;  %v1692_v21 = vshrl.u32 %v1313_v23, 16  ;;  %v784_v36 = vshrl.u32 %v517_v40, 16  ;;  %v2963_v10 = vld [vmem:[#allocation2 + $0xbc] sm:$0x1] }
 0x145   : > { %v2219_v44 = vsel %vm7573_vm14, %v2217_v30, %v2218_v18  ;;  %v1748_v11 = vunpack.c.l.b16 %v1677_v9  ;;  %v1681_v30 = vrot.slane %v1679_v49, 4  ;;  %v787_v6 = vshll.u32 %v517_v40, 16 }
 0x146   : > { %3548 = vmatmul.bf16.gmra.mxu0 %v3412_v50  ;;  %v8166_v50 = vrot.slane %v3304_v60, 4  ;;  %v1682_v60 = vshll.u32 %v1312_v29, 16  ;;  %v3413_v29 = vpack.c.b16 %v8155_v8, %v8153_v20  ;;  %v782_v9 = vrot.slane %v8170_v39, 4 }
 0x147   : > { %1904 = vmatmul.bf16.gmra.mxu1 %v1764_v46  ;;  %2429 = vmatmul.bf16.gmra.mxu2 %v2289_v1  ;;  %v8168_v46 = vrot.slane %v3307_v57, 5  ;;  %v1962_v1 = vadd.f32 %v1865_v26, %v7736_v55  ;;  %v2216_v57 = vsel %vm7573_vm14, %v6294_v54, %v2215_v52  ;;  %v6906_v55 = vld [vmem:[%s8602_s2 + $0x200] sm:$0xff]  ;;  %v781_v26 = vor.u32 %v779_v61, %v8170_v39  ;;  %v1314_v61 = vld [vmem:[#allocation2 + $0xbc] sm:$0x1] }
 0x148   : > { %v8185_v52 = vrot.slane %v3313_v22, 5  ;;  %v3319_v54 = vrot.slane %v3317_v38, 4  ;;  %5656 = vmatpush.bf16.msra.mxu0 %v6906_v55  ;;  %v1684_v18 = vrot.slane %v1682_v60, 5  ;;  %v2272_v23 = vunpack.c.l.b16 %v2216_v57  ;;  %v2062_v57 = vld [vmem:[#allocation2 + $0xb8] sm:$0xf] }
 0x149   : > { %v786_v22 = vrot.slane %v784_v36, 7  ;;  %v948_v38 = vsel %vm7251_vm7, %v781_v26, %v947_v28  ;;  %v8196_v20 = vadd.f32 %v8113_v63, %v8116_v31  ;;  %v1765_v8 = vpack.c.b16 %v1748_v11, %v8175_v4  ;;  %v2063_v28 = vld [vmem:[#allocation2 + $0xbc] sm:$0x1] }
 0x14a   : > { %v2390_v59 = vpop.f32.mrf.mxu2  ;;  %v2765_v5 = vpop.f32.mrf.mxu3  ;;  %v3310_v40 = vor.u32 %v8168_v46, %v8166_v50  ;;  %v3320_v49 = vor.u32 %v3319_v54, %v8185_v52  ;;  %v3323_v60 = vshll.u32 %v2963_v10, 16  ;;  %949 = vst [vmem:[#allocation2 + $0xc0] sm:$0xf] %v948_v38  ;;  %v1698_v7 = vshll.u32 %v1314_v61, 16 }
 0x14b   : > { %v3511_v37 = vpop.f32.mrf.mxu0  ;;  %v2487_v51 = vadd.f32 %v2390_v59, %v1962_v1  ;;  %v2864_v27 = vadd.f32 %v2765_v5, %v2486_v42  ;;  %v2273_v1 = vunpack.c.l.b16 %v2219_v44  ;;  %v8189_v59 = vrot.slane %v1688_v17, 5  ;;  %v951_v5 = vld [vmem:[#allocation2 + $0xc8] sm:$0x1] }
 0x14c   : > { %v1867_v41 = vpop.f32.mrf.mxu1  ;;  %v1694_v42 = vrot.slane %v1692_v21, 4  ;;  %v1685_v17 = vor.u32 %v1684_v18, %v1681_v30  ;;  %v789_v21 = vor.u32 %v787_v6, %v786_v22  ;;  %v791_v31 = vrot.slane %v786_v22, 4 }
 0x14d   : > { %v1963_v39 = vadd.f32 %v1867_v41, %v7768_v3  ;;  %v8206_v4 = vadd.f32 %v8139_v47, %v8149_v56  ;;  %v8208_v50 = vadd.f32 %v3511_v37, %v2864_v27  ;;  %v2290_v36 = vpack.c.b16 %v2273_v1, %v2272_v23 }
 0x14e   : > { %v1695_v63 = vor.u32 %v1694_v42, %v8189_v59  ;;  %v2222_v3 = vrot.slane %v2062_v57, 5  ;;  %v790_v41 = vsel %vm7242_vm6, %v782_v9, %v789_v21  ;;  %v952_v10 = vsel %vm7178_vm2, %v791_v31, %v951_v5 }
 0x14f   : > { %2807 = vmatmul.bf16.gmra.mxu3 %v6847_v58  ;;  %v2061_v58 = vld [vmem:[#allocation2 + $0xb4] sm:$0xe]  ;;  %950 = vst [vmem:[#allocation2 + $0xc4] sm:$0xf] %v790_v41  ;;  %v3311_v47 = vrot.slane %v3310_v40, 4  ;;  %v3321_v56 = vrot.slane %v3320_v49, 4 }
 0x150   : > { %v3325_v37 = vrot.slane %v3323_v60, 5  ;;  %v1686_v27 = vrot.slane %v1685_v17, 4  ;;  %953 = vst [vmem:[#allocation2 + $0xc8] sm:$0x1] %v952_v10  ;;  %v1696_v30 = vrot.slane %v1695_v63, 4  ;;  %v1700_v18 = vrot.slane %v1698_v7, 5 }
 0x151   : > { %v6295_v6 = vrot.slane %v2061_v58, 9  ;;  %v2224_v0 = vrot.slane %v2222_v3, 4  ;;  %v2964_v1 = vld [vmem:[#allocation2 + $0xc0] sm:$0xf]  ;;  %v3316_v2 = vsel %vm7544_vm10, %v3311_v47, %v8185_v52  ;;  %v6848_v17 = vld [vmem:[#allocation2 + $0xb4] sm:$0xff] }
 0x152   : > { %v2392_v44 = vpop.f32.mrf.mxu2  ;;  %v2768_v55 = vpop.f32.mrf.mxu3  ;;  %v3326_v42 = vsel %vm7544_vm10, %v3321_v56, %v3325_v37  ;;  %v1691_v9 = vsel %vm7544_vm10, %v1686_v27, %v8189_v59  ;;  %v1701_v22 = vsel %vm7544_vm10, %v1696_v30, %v1700_v18  ;;  %v3328_v60 = vshrl.u32 %v2964_v1, 16  ;;  %v4567_v10 = vld [vmem:[#allocation2 + $0x1c] sm:$0xf] }
 0x153   : > { %v3514_v46 = vpop.f32.mrf.mxu0  ;;  %v2488_v26 = vadd.f32 %v2392_v44, %v1963_v39  ;;  %v2865_v11 = vadd.f32 %v2768_v55, %v2487_v51  ;;  %v2225_v51 = vrot.slane %v2063_v28, 5  ;;  %v2223_v38 = vsel %vm7573_vm14, %v6295_v6, %v2222_v3 }
 0x154   : > { %v1870_v54 = vpop.f32.mrf.mxu1  ;;  %v3331_v57 = vshll.u32 %v2964_v1, 16  ;;  %v3396_v5 = vunpack.c.l.b16 %v3316_v2  ;;  %v3397_v44 = vunpack.c.l.b16 %v3326_v42  ;;  %v1749_v63 = vunpack.c.l.b16 %v1691_v9 }
 0x155   : > { %v8214_v23 = vadd.f32 %v3514_v46, %v2865_v11  ;;  %v1964_v61 = vadd.f32 %v1870_v54, %v7803_v34  ;;  %v2226_v52 = vsel %vm7573_vm14, %v2224_v0, %v2225_v51  ;;  %v1750_v31 = vunpack.c.l.b16 %v1701_v22  ;;  %v3666_v54 = vld [vmem:[#allocation2 + $0x10] sm:$0xf] }
 0x156   : > { %3553 = vmatmul.bf16.gmra.mxu0 %v3413_v29  ;;  %v2965_v49 = vld [vmem:[#allocation2 + $0xc4] sm:$0xf]  ;;  %v2274_v46 = vunpack.c.l.b16 %v2223_v38  ;;  %v2275_v55 = vunpack.c.l.b16 %v2226_v52  ;;  %v3330_v58 = vrot.slane %v3328_v60, 4  ;;  %v3333_v3 = vrot.slane %v3331_v57, 5  ;;  %v3667_v38 = vld [vmem:[#allocation2 + $0x14] sm:$0x1] }
 0x157   : > { %1909 = vmatmul.bf16.gmra.mxu1 %v1765_v8  ;;  %2434 = vmatmul.bf16.gmra.mxu2 %v2290_v36  ;;  %v3337_v21 = vshll.u32 %v2965_v49, 16  ;;  %v3341_v59 = vshrl.u32 %v2965_v49, 16  ;;  %v4566_v36 = vld [vmem:[#allocation2 + $0x18] sm:$0xf]  ;;  %v2966_v28 = vld [vmem:[#allocation2 + $0xc8] sm:$0x1]  ;;  %v3414_v37 = vpack.c.b16 %v3397_v44, %v3396_v5  ;;  %v1766_v30 = vpack.c.b16 %v1750_v31, %v1749_v63 }
 0x158   : > { %v4615_v47 = vshrl.u32 %v4566_v36, 16  ;;  %v4618_v56 = vshll.u32 %v4566_v36, 16  ;;  %v2291_v18 = vpack.c.b16 %v2275_v55, %v2274_v46  ;;  %v3763_v6 = vrot.slane %v3666_v54, 5  ;;  %v4568_v46 = vld [vmem:[#allocation2 + $0x20] sm:$0x1] }
 0x159   : > { %v3339_v41 = vrot.slane %v3337_v21, 5  ;;  %v3343_v11 = vrot.slane %v3341_v59, 4  ;;  %v3347_v42 = vshll.u32 %v2966_v28, 16  ;;  %v3766_v44 = vrot.slane %v3667_v38, 5 }
 0x15a   : > { %v2395_v29 = vpop.f32.mrf.mxu2  ;;  %v2770_v34 = vpop.f32.mrf.mxu3  ;;  %v4617_v52 = vrot.slane %v4615_v47, 4  ;;  %v4620_v49 = vrot.slane %v4618_v56, 5  ;;  %v3765_v57 = vrot.slane %v3763_v6, 4  ;;  %v4634_v56 = vshll.u32 %v4568_v46, 16 }
 0x15b   : > { %v3516_v8 = vpop.f32.mrf.mxu0  ;;  %v2489_v40 = vadd.f32 %v2395_v29, %v1964_v61  ;;  %v2866_v39 = vadd.f32 %v2770_v34, %v2488_v26  ;;  %v3334_v61 = vor.u32 %v3333_v3, %v3330_v58  ;;  %v3344_v2 = vor.u32 %v3343_v11, %v3339_v41  ;;  %v3665_v29 = vld [vmem:[#allocation2 + $0xc] sm:$0xe] }
 0x15c   : > { %v1872_v7 = vpop.f32.mrf.mxu1  ;;  %v4624_v34 = vshll.u32 %v4567_v10, 16  ;;  %v6504_v60 = vrot.slane %v3665_v29, 9  ;;  %v3349_v5 = vrot.slane %v3347_v42, 5  ;;  %v4621_v55 = vor.u32 %v4620_v49, %v4617_v52  ;;  %v4569_v42 = vld [vmem:[#allocation2 + $0x24] sm:$0xf] }
 0x15d   : > { %v1965_v26 = vadd.f32 %v1872_v7, %v7817_v14  ;;  %v4628_v14 = vshrl.u32 %v4567_v10, 16  ;;  %v3335_v21 = vrot.slane %v3334_v61, 4  ;;  %v3345_v59 = vrot.slane %v3344_v2, 4  ;;  %v3669_v2 = vld [vmem:[#allocation2 + $0x1c] sm:$0xf] }
 0x15e   : > { %v3764_v58 = vsel %vm7573_vm14, %v6504_v60, %v3763_v6  ;;  %v3767_v28 = vsel %vm7573_vm14, %v3765_v57, %v3766_v44  ;;  %v4636_v61 = vrot.slane %v4634_v56, 5  ;;  %v4639_v44 = vshrl.u32 %v4569_v42, 16 }
 0x15f   : > { %2812 = vmatmul.bf16.gmra.mxu3 %v6848_v17  ;;  %v8232_v17 = vadd.f32 %v3516_v8, %v2866_v39  ;;  %v4630_v63 = vrot.slane %v4628_v14, 4  ;;  %v3340_v39 = vsel %vm7544_vm10, %v3335_v21, %v3339_v41  ;;  %v3350_v11 = vsel %vm7544_vm10, %v3345_v59, %v3349_v5  ;;  %v5312_v14 = vld [vmem:[#allocation2 + $0x18] sm:$0xe]  ;;  %v5314_v59 = vld [vmem:[#allocation2 + $0x20] sm:$0x1] }
 0x160   : > { %v3891_v6 = vunpack.c.l.b16 %v3767_v28  ;;  %v6874_v21 = vld [vmem:[#allocation2 + $0x18] sm:$0xff]  ;;  %v3770_v5 = vrot.slane %v3669_v2, 5 }
 0x162   : > { %v2397_v27 = vpop.f32.mrf.mxu2  ;;  %v2773_v51 = vpop.f32.mrf.mxu3 }
 0x163   : > { %v3519_v0 = vpop.f32.mrf.mxu0  ;;  %v2490_v1 = vadd.f32 %v2397_v27, %v1965_v26  ;;  %v2867_v9 = vadd.f32 %v2773_v51, %v2489_v40  ;;  %v4626_v40 = vrot.slane %v4624_v34, 5  ;;  %v3398_v27 = vunpack.c.l.b16 %v3340_v39 }
 0x164   : > { %v1875_v22 = vpop.f32.mrf.mxu1 }
 0x165   : > { %v8234_v7 = vadd.f32 %v3519_v0, %v2867_v9  ;;  %v1966_v31 = vadd.f32 %v1875_v22, %v7846_v35  ;;  %v6849_v35 = vld [vmem:[#allocation2 + $0xc0] sm:$0xff]  ;;  %v4631_v47 = vor.u32 %v4630_v63, %v4626_v40  ;;  %v5313_v0 = vld [vmem:[#allocation2 + $0x1c] sm:$0xf]  ;;  %v4642_v63 = vshll.u32 %v4569_v42, 16 }
 0x166   : > { %3558 = vmatmul.bf16.gmra.mxu0 %v3414_v37  ;;  %v4622_v37 = vrot.slane %v4621_v55, 4  ;;  %v5410_v52 = vrot.slane %v5313_v0, 5  ;;  %v3668_v55 = vld [vmem:[#allocation2 + $0x18] sm:$0xe] }
 0x167   : > { %1914 = vmatmul.bf16.gmra.mxu1 %v1766_v30  ;;  %2439 = vmatmul.bf16.gmra.mxu2 %v2291_v18  ;;  %v3399_v30 = vunpack.c.l.b16 %v3350_v11  ;;  %v3890_v18 = vunpack.c.l.b16 %v3764_v58  ;;  %v4632_v41 = vrot.slane %v4631_v47, 4  ;;  %v5413_v11 = vrot.slane %v5314_v59, 5  ;;  %v5316_v59 = vld [vmem:[#allocation2 + $0x28] sm:$0xf] }
 0x168   : > { %v4627_v34 = vsel %vm7544_vm10, %v4622_v37, %v4626_v40  ;;  %v5412_v39 = vrot.slane %v5410_v52, 4  ;;  %v4641_v47 = vrot.slane %v4639_v44, 4  ;;  %v4644_v56 = vrot.slane %v4642_v63, 5  ;;  %v4572_v44 = vld [vmem:[#allocation2 + $0x30] sm:$0xf] }
 0x169   : > { %v3415_v9 = vpack.c.b16 %v3399_v30, %v3398_v27  ;;  %v3922_v38 = vpack.c.b16 %v3891_v6, %v3890_v18  ;;  %v5015_v40 = vunpack.c.l.b16 %v4627_v34  ;;  %v4571_v18 = vld [vmem:[#allocation2 + $0x2c] sm:$0x1]  ;;  %v4573_v63 = vld [vmem:[#allocation2 + $0x34] sm:$0xf] }
 0x16a   : > { %v2400_v36 = vpop.f32.mrf.mxu2  ;;  %v2775_v8 = vpop.f32.mrf.mxu3  ;;  %v5414_v0 = vsel %vm7573_vm14, %v5412_v39, %v5413_v11 }
 0x16b   : > { %v3521_v3 = vpop.f32.mrf.mxu0  ;;  %v2491_v54 = vadd.f32 %v2400_v36, %v1966_v31  ;;  %v2868_v26 = vadd.f32 %v2775_v8, %v2490_v1  ;;  %v4570_v1 = vld [vmem:[#allocation2 + $0x28] sm:$0xf]  ;;  %v3670_v36 = vld [vmem:[#allocation2 + $0x20] sm:$0x1]  ;;  %v6728_v8 = vrot.slane %v5312_v14, 9  ;;  %v4658_v14 = vshll.u32 %v4571_v18, 16 }
 0x16c   : > { %v1877_v10 = vpop.f32.mrf.mxu1  ;;  %v4648_v58 = vshll.u32 %v4570_v1, 16 }
 0x16d   : > { %v8245_v51 = vadd.f32 %v3521_v3, %v2868_v26  ;;  %v1967_v29 = vadd.f32 %v1877_v10, %v7862_v19  ;;  %v4637_v19 = vsel %vm7544_vm10, %v4632_v41, %v4636_v61  ;;  %v4652_v3 = vshrl.u32 %v4570_v1, 16 }
 0x16e   : > { %v5016_v26 = vunpack.c.l.b16 %v4637_v19  ;;  %v3773_v10 = vrot.slane %v3670_v36, 5  ;;  %v8254_v37 = vrot.slane %v4648_v58, 5  ;;  %v5411_v6 = vsel %vm7573_vm14, %v6728_v8, %v5410_v52  ;;  %v5315_v36 = vld [vmem:[#allocation2 + $0x24] sm:$0xe] }
 0x16f   : > { %2817 = vmatmul.bf16.gmra.mxu3 %v6849_v35  ;;  %v6505_v35 = vrot.slane %v3668_v55, 9  ;;  %v4654_v27 = vrot.slane %v4652_v3, 4  ;;  %v5537_v52 = vunpack.c.l.b16 %v5411_v6  ;;  %v4660_v19 = vrot.slane %v4658_v14, 5  ;;  %v3672_v55 = vld [vmem:[#allocation2 + $0x28] sm:$0xf] }
 0x170   : > { %v5047_v42 = vpack.c.b16 %v5016_v26, %v5015_v40  ;;  %v5417_v58 = vrot.slane %v5316_v59, 5  ;;  %v4663_v3 = vshrl.u32 %v4572_v44, 16  ;;  %v4666_v40 = vshll.u32 %v4572_v44, 16 }
 0x171   : > { %v3771_v1 = vsel %vm7573_vm14, %v6505_v35, %v3770_v5  ;;  %v4655_v34 = vor.u32 %v4654_v27, %v8254_v37  ;;  %v4672_v26 = vshll.u32 %v4573_v63, 16  ;;  %v4676_v35 = vshrl.u32 %v4573_v63, 16  ;;  %v5317_v27 = vld [vmem:[#allocation2 + $0x2c] sm:$0x1] }
 0x172   : > { %v2402_v22 = vpop.f32.mrf.mxu2  ;;  %v2778_v60 = vpop.f32.mrf.mxu3 }
 0x173   : > { %v3524_v49 = vpop.f32.mrf.mxu0  ;;  %v2492_v57 = vadd.f32 %v2402_v22, %v1967_v29  ;;  %v2869_v31 = vadd.f32 %v2778_v60, %v2491_v54  ;;  %v3772_v54 = vrot.slane %v3770_v5, 4  ;;  %v3892_v60 = vunpack.c.l.b16 %v3771_v1 }
 0x174   : > { %v1880_v46 = vpop.f32.mrf.mxu1  ;;  %v4665_v1 = vrot.slane %v4663_v3, 4 }
 0x175   : > { %v8252_v28 = vadd.f32 %v3524_v49, %v2869_v31  ;;  %v1968_v30 = vadd.f32 %v1880_v46, %v7717_v62  ;;  %v5538_v49 = vunpack.c.l.b16 %v5414_v0  ;;  %v4656_v46 = vrot.slane %v4655_v34, 4 }
 0x176   : > { %3563 = vmatmul.bf16.gmra.mxu0 %v3415_v9  ;;  %v3774_v9 = vsel %vm7573_vm14, %v3772_v54, %v3773_v10  ;;  %v6729_v0 = vrot.slane %v5315_v36, 9 }
 0x177   : > { %4010 = vmatmul.bf16.vlgmr.msra.gmra.mxu1 %v3922_v38  ;;  %4389 = vmatmul.bf16.vlgmr.msra.gmra.mxu2 %v6874_v21  ;;  %v4645_v38 = vor.u32 %v4644_v56, %v4641_v47  ;;  %v3893_v21 = vunpack.c.l.b16 %v3774_v9  ;;  %v5569_v8 = vpack.c.b16 %v5538_v49, %v5537_v52  ;;  %v6875_v56 = vld [vmem:[#allocation2 + $0x24] sm:$0xff]  ;;  %v4668_v9 = vrot.slane %v4666_v40, 5  ;;  %v4574_v52 = vld [vmem:[#allocation2 + $0x38] sm:$0x1] }
 0x178   : > { %v5418_v44 = vsel %vm7573_vm14, %v6729_v0, %v5417_v58  ;;  %v8629_v0 = vld [vmem:[#allocation7_spill] sm:$0xff] }
 0x179   : > { %v4646_v5 = vrot.slane %v4645_v38, 4  ;;  %v3923_v11 = vpack.c.b16 %v3893_v21, %v3892_v60  ;;  %v4669_v59 = vor.u32 %v4668_v9, %v4665_v1  ;;  %v5318_v9 = vld [vmem:[#allocation2 + $0x30] sm:$0xe] }
 0x17a   : > { %v2405_v41 = vpop.f32.mrf.mxu2  ;;  %v2780_v2 = vpop.f32.mrf.mxu3 }
 0x17b   : > { %v3526_v61 = vpop.f32.mrf.mxu0  ;;  %v2493_v29 = vadd.f32 %v2405_v41, %v1968_v30  ;;  %v2870_v22 = vadd.f32 %v2780_v2, %v2492_v57  ;;  %v3777_v30 = vrot.slane %v3672_v55, 5  ;;  %v3671_v41 = vld [vmem:[#allocation2 + $0x24] sm:$0xe]  ;;  %v4661_v2 = vsel %vm7544_vm10, %v4656_v46, %v4660_v19 }
 0x17c   : > { %v1882_v62 = vpop.f32.mrf.mxu1  ;;  %v6506_v34 = vrot.slane %v3671_v41, 9  ;;  %v5018_v60 = vunpack.c.l.b16 %v4661_v2  ;;  %v4682_v19 = vshll.u32 %v4574_v52, 16  ;;  %v5320_v52 = vld [vmem:[#allocation2 + $0x38] sm:$0x1] }
 0x17d   : > { %v8266_v31 = vadd.f32 %v3526_v61, %v2870_v22  ;;  %v1969_v57 = vadd.f32 %v1882_v62, %v7734_v53  ;;  %v4651_v53 = vsel %vm7544_vm10, %v4646_v5, %v8254_v37  ;;  %v3673_v61 = vld [vmem:[#allocation2 + $0x2c] sm:$0x1]  ;;  %v5420_v22 = vrot.slane %v5317_v27, 5  ;;  %v5319_v27 = vld [vmem:[#allocation2 + $0x34] sm:$0xf] }
 0x17e   : > { %v8274_v62 = vrot.slane %v4672_v26, 5  ;;  %v3779_v37 = vrot.slane %v3777_v30, 4  ;;  %v3780_v14 = vrot.slane %v3673_v61, 5  ;;  %v5017_v49 = vunpack.c.l.b16 %v4651_v53  ;;  %v4575_v53 = vld [vmem:[#allocation2 + $0x3c] sm:$0xf] }
 0x17f   : > { %5135 = vmatmul.bf16.vlgmr.msra.gmra.mxu3 %v5047_v42  ;;  %v5419_v42 = vrot.slane %v5417_v58, 4  ;;  %v3778_v3 = vsel %vm7573_vm14, %v6506_v34, %v3777_v30  ;;  %v5539_v58 = vunpack.c.l.b16 %v5418_v44  ;;  %v4670_v26 = vrot.slane %v4669_v59, 4  ;;  %v4576_v61 = vld [vmem:[#allocation2 + $0x40] sm:$0xf] }
 0x181   : > { %v5421_v63 = vsel %vm7573_vm14, %v5419_v42, %v5420_v22  ;;  %v4675_v42 = vsel %vm7544_vm10, %v4670_v26, %v8274_v62  ;;  %v5424_v22 = vrot.slane %v5319_v27, 5 }
 0x182   : > { %v2407_v39 = vpop.f32.mrf.mxu2  ;;  %v2783_v10 = vpop.f32.mrf.mxu3 }
 0x183   : > { %v3529_v54 = vpop.f32.mrf.mxu0  ;;  %v2494_v47 = vadd.f32 %v2407_v39, %v1969_v57  ;;  %v2871_v18 = vadd.f32 %v2783_v10, %v2493_v29  ;;  %v4678_v29 = vrot.slane %v4676_v35, 4  ;;  %v3894_v35 = vunpack.c.l.b16 %v3778_v3 }
 0x184   : > { %v1885_v6 = vpop.f32.mrf.mxu1  ;;  %v5426_v3 = vrot.slane %v5424_v22, 4 }
 0x185   : > { %v8276_v38 = vadd.f32 %v3529_v54, %v2871_v18  ;;  %v1970_v21 = vadd.f32 %v1885_v6, %v7766_v48  ;;  %v4679_v46 = vor.u32 %v4678_v29, %v8274_v62  ;;  %v3781_v48 = vsel %vm7573_vm14, %v3779_v37, %v3780_v14  ;;  %v3675_v6 = vld [vmem:[#allocation2 + $0x34] sm:$0xf] }
 0x186   : > { %5657 = vmatmul.bf16.vlgmr.msra.gmra.mxu0 %v5569_v8  ;;  %v5048_v8 = vpack.c.b16 %v5018_v60, %v5017_v49  ;;  %v3895_v54 = vunpack.c.l.b16 %v3781_v48  ;;  %v6876_v14 = vld [vmem:[#allocation2 + $0x30] sm:$0xff]  ;;  %v3784_v49 = vrot.slane %v3675_v6, 5  ;;  %v4687_v60 = vshrl.u32 %v4575_v53, 16 }
 0x187   : > { %4015 = vmatmul.bf16.gmra.mxu1 %v3923_v11  ;;  %4394 = vmatmul.bf16.gmra.mxu2 %v6875_v56  ;;  %v5540_v11 = vunpack.c.l.b16 %v5421_v63  ;;  %v4680_v10 = vrot.slane %v4679_v46, 4  ;;  %v4684_v56 = vrot.slane %v4682_v19, 5  ;;  %v3674_v63 = vld [vmem:[#allocation2 + $0x30] sm:$0xe]  ;;  %v4696_v46 = vshll.u32 %v4576_v61, 16 }
 0x188   : > { %v3924_v2 = vpack.c.b16 %v3895_v54, %v3894_v35  ;;  %v4700_v19 = vshrl.u32 %v4576_v61, 16  ;;  %v6730_v62 = vrot.slane %v5318_v9, 9  ;;  %v8630_v54 = vld [vmem:[#allocation9_spill] sm:$0xff] }
 0x189   : > { %v5570_v30 = vpack.c.b16 %v5540_v11, %v5539_v58  ;;  %v4685_v1 = vsel %vm7544_vm10, %v4680_v10, %v4684_v56  ;;  %v4689_v11 = vrot.slane %v4687_v60, 4  ;;  %v8298_v26 = vrot.slane %v4696_v46, 5  ;;  %v4577_v56 = vld [vmem:[#allocation2 + $0x44] sm:$0x1] }
 0x18a   : > { %v2410_v5 = vpop.f32.mrf.mxu2  ;;  %v2785_v57 = vpop.f32.mrf.mxu3  ;;  %v4702_v35 = vrot.slane %v4700_v19, 4  ;;  %v5425_v6 = vsel %vm7573_vm14, %v6730_v62, %v5424_v22  ;;  %v3678_v19 = vld [vmem:[#allocation2 + $0x40] sm:$0xf] }
 0x18b   : > { %v3531_v55 = vpop.f32.mrf.mxu0  ;;  %v2495_v36 = vadd.f32 %v2410_v5, %v1970_v21  ;;  %v2872_v40 = vadd.f32 %v2785_v57, %v2494_v47  ;;  %v4690_v21 = vshll.u32 %v4575_v53, 16  ;;  %v3676_v5 = vld [vmem:[#allocation2 + $0x38] sm:$0x1]  ;;  %v5020_v57 = vunpack.c.l.b16 %v4685_v1 }
 0x18c   : > { %v1887_v39 = vpop.f32.mrf.mxu1  ;;  %v3787_v58 = vrot.slane %v3676_v5, 5  ;;  %v5541_v22 = vunpack.c.l.b16 %v5425_v6  ;;  %v3791_v6 = vrot.slane %v3678_v19, 5 }
 0x18d   : > { %v8288_v18 = vadd.f32 %v3531_v55, %v2872_v40  ;;  %v1971_v41 = vadd.f32 %v1887_v39, %v8629_v0  ;;  %v5019_v55 = vunpack.c.l.b16 %v4675_v42  ;;  %v5427_v40 = vrot.slane %v5320_v52, 5 }
 0x18e   : > { %v3786_v39 = vrot.slane %v3784_v49, 4 }
 0x18f   : > { %5140 = vmatmul.bf16.gmra.mxu3 %v5048_v8  ;;  %v6507_v8 = vrot.slane %v3674_v63, 9  ;;  %v5049_v27 = vpack.c.b16 %v5020_v57, %v5019_v55  ;;  %v5321_v55 = vld [vmem:[#allocation2 + $0x3c] sm:$0xe] }
 0x192   : > { %v2412_v47 = vpop.f32.mrf.mxu2  ;;  %v2788_v34 = vpop.f32.mrf.mxu3 }
 0x193   : > { %v3534_v29 = vpop.f32.mrf.mxu0  ;;  %v2496_v37 = vadd.f32 %v2412_v47, %v1971_v41  ;;  %v2873_v59 = vadd.f32 %v2788_v34, %v2495_v36  ;;  %v4692_v36 = vrot.slane %v4690_v21, 5  ;;  %v5428_v41 = vsel %vm7573_vm14, %v5426_v3, %v5427_v40  ;;  %v5322_v21 = vld [vmem:[#allocation2 + $0x40] sm:$0xf] }
 0x194   : > { %v1890_v44 = vpop.f32.mrf.mxu1  ;;  %v3785_v47 = vsel %vm7573_vm14, %v6507_v8, %v3784_v49  ;;  %v4706_v34 = vshll.u32 %v4577_v56, 16  ;;  %v5431_v57 = vrot.slane %v5322_v21, 5  ;;  %v6877_v56 = vld [vmem:[#allocation2 + $0x3c] sm:$0xff]  ;;  %v4580_v21 = vld [vmem:[#allocation2 + $0x50] sm:$0x1] }
 0x195   : > { %v8296_v48 = vadd.f32 %v3534_v29, %v2873_v59  ;;  %v1972_v10 = vadd.f32 %v1890_v44, %v8630_v54  ;;  %v4693_v9 = vor.u32 %v4692_v36, %v4689_v11  ;;  %v4703_v29 = vor.u32 %v4702_v35, %v8298_v26  ;;  %v4578_v59 = vld [vmem:[#allocation2 + $0x48] sm:$0xf]  ;;  %v4579_v44 = vld [vmem:[#allocation2 + $0x4c] sm:$0xf] }
 0x196   : > { %5662 = vmatmul.bf16.gmra.mxu0 %v5570_v30  ;;  %v3896_v52 = vunpack.c.l.b16 %v3785_v47  ;;  %v4708_v46 = vrot.slane %v4706_v34, 5  ;;  %v4711_v3 = vshrl.u32 %v4578_v59, 16  ;;  %v4714_v40 = vshll.u32 %v4578_v59, 16  ;;  %v3677_v47 = vld [vmem:[#allocation2 + $0x3c] sm:$0xe] }
 0x197   : > { %4020 = vmatmul.bf16.gmra.mxu1 %v3924_v2  ;;  %4399 = vmatmul.bf16.gmra.mxu2 %v6876_v14  ;;  %v3788_v2 = vsel %vm7573_vm14, %v3786_v39, %v3787_v58  ;;  %v5542_v14 = vunpack.c.l.b16 %v5428_v41  ;;  %v4694_v49 = vrot.slane %v4693_v9, 4  ;;  %v4704_v5 = vrot.slane %v4703_v29, 4 }
 0x198   : > { %v3897_v60 = vunpack.c.l.b16 %v3788_v2  ;;  %v4720_v11 = vshll.u32 %v4579_v44, 16  ;;  %v4724_v36 = vshrl.u32 %v4579_v44, 16  ;;  %v6731_v41 = vrot.slane %v5321_v55, 9  ;;  %v3679_v2 = vld [vmem:[#allocation2 + $0x44] sm:$0x1] }
 0x199   : > { %v5571_v8 = vpack.c.b16 %v5542_v14, %v5541_v22  ;;  %v4713_v9 = vrot.slane %v4711_v3, 4  ;;  %v4716_v29 = vrot.slane %v4714_v40, 5  ;;  %v4730_v3 = vshll.u32 %v4580_v21, 16 }
 0x19a   : > { %v2415_v53 = vpop.f32.mrf.mxu2  ;;  %v2790_v0 = vpop.f32.mrf.mxu3  ;;  %v3925_v58 = vpack.c.b16 %v3897_v60, %v3896_v52  ;;  %v8318_v22 = vrot.slane %v4720_v11, 5  ;;  %v6508_v52 = vrot.slane %v3677_v47, 9  ;;  %v3794_v60 = vrot.slane %v3679_v2, 5  ;;  %v5325_v47 = vld [vmem:[#allocation2 + $0x4c] sm:$0xf] }
 0x19b   : > { %v3536_v30 = vpop.f32.mrf.mxu0  ;;  %v2497_v61 = vadd.f32 %v2415_v53, %v1972_v10  ;;  %v2874_v42 = vadd.f32 %v2790_v0, %v2496_v37  ;;  %v8631_v37 = vld [vmem:[#allocation11_spill] sm:$0xff]  ;;  %v4699_v0 = vsel %vm7544_vm10, %v4694_v49, %v8298_v26  ;;  %v3793_v26 = vrot.slane %v3791_v6, 4  ;;  %v8632_v49 = vld [vmem:[#allocation13_spill] sm:$0xff] }
 0x19c   : > { %v1892_v1 = vpop.f32.mrf.mxu1  ;;  %v5021_v59 = vunpack.c.l.b16 %v4699_v0  ;;  %v5432_v19 = vsel %vm7573_vm14, %v6731_v41, %v5431_v57  ;;  %v4732_v41 = vrot.slane %v4730_v3, 5  ;;  %v5438_v21 = vrot.slane %v5325_v47, 5 }
 0x19d   : > { %v8310_v63 = vadd.f32 %v3536_v30, %v2874_v42  ;;  %v1973_v62 = vadd.f32 %v1892_v1, %v8631_v37  ;;  %v4709_v42 = vsel %vm7544_vm10, %v4704_v5, %v4708_v46  ;;  %v5433_v1 = vrot.slane %v5431_v57, 4 }
 0x19e   : > { %v5022_v44 = vunpack.c.l.b16 %v4709_v42  ;;  %v4717_v46 = vor.u32 %v4716_v29, %v4713_v9  ;;  %v3795_v11 = vsel %vm7573_vm14, %v3793_v26, %v3794_v60  ;;  %v5543_v57 = vunpack.c.l.b16 %v5432_v19  ;;  %v3681_v42 = vld [vmem:[#allocation2 + $0x4c] sm:$0xf]  ;;  %v5324_v60 = vld [vmem:[#allocation2 + $0x48] sm:$0xe] }
 0x19f   : > { %5145 = vmatmul.bf16.gmra.mxu3 %v5049_v27  ;;  %v5323_v27 = vld [vmem:[#allocation2 + $0x44] sm:$0x1]  ;;  %v8633_v9 = vld [vmem:[#allocation14_spill] sm:$0xff]  ;;  %v3798_v19 = vrot.slane %v3681_v42, 5  ;;  %v8634_v42 = vld [vmem:[#allocation4_spill] sm:$0xff] }
 0x1a0   : > { %v5434_v34 = vrot.slane %v5323_v27, 5  ;;  %v4718_v27 = vrot.slane %v4717_v46, 4  ;;  %v5326_v46 = vld [vmem:[#allocation2 + $0x50] sm:$0x1] }
 0x1a2   : > { %v2417_v39 = vpop.f32.mrf.mxu2  ;;  %v2793_v54 = vpop.f32.mrf.mxu3  ;;  %v5435_v37 = vsel %vm7573_vm14, %v5433_v1, %v5434_v34  ;;  %v4581_v1 = vld [vmem:[#allocation2 + $0x54] sm:$0xf]  ;;  %v4582_v34 = vld [vmem:[#allocation2 + $0x58] sm:$0xf] }
 0x1a3   : > { %v3539_v35 = vpop.f32.mrf.mxu0  ;;  %v2498_v10 = vadd.f32 %v2417_v39, %v1973_v62  ;;  %v2875_v53 = vadd.f32 %v2793_v54, %v2497_v61  ;;  %v4726_v61 = vrot.slane %v4724_v36, 4 }
 0x1a4   : > { %v1895_v30 = vpop.f32.mrf.mxu1 }
 0x1a5   : > { %v8320_v14 = vadd.f32 %v3539_v35, %v2875_v53  ;;  %v1974_v5 = vadd.f32 %v1895_v30, %v8632_v49  ;;  %v4727_v55 = vor.u32 %v4726_v61, %v8318_v22  ;;  %v5050_v35 = vpack.c.b16 %v5022_v44, %v5021_v59 }
 0x1a6   : > { %5667 = vmatmul.bf16.gmra.mxu0 %v5571_v8  ;;  %v3899_v30 = vunpack.c.l.b16 %v3795_v11  ;;  %v4748_v11 = vshrl.u32 %v4582_v34, 16 }
 0x1a7   : > { %4025 = vmatmul.bf16.gmra.mxu1 %v3925_v58  ;;  %4404 = vmatmul.bf16.gmra.mxu2 %v6877_v56  ;;  %v3792_v58 = vsel %vm7573_vm14, %v6508_v52, %v3791_v6  ;;  %v5544_v56 = vunpack.c.l.b16 %v5435_v37  ;;  %v4728_v0 = vrot.slane %v4727_v55, 4  ;;  %v4723_v52 = vsel %vm7544_vm10, %v4718_v27, %v8318_v22 }
 0x1a8   : > { %v3898_v53 = vunpack.c.l.b16 %v3792_v58  ;;  %v4735_v37 = vshrl.u32 %v4581_v1, 16  ;;  %v4744_v58 = vshll.u32 %v4582_v34, 16  ;;  %v6732_v22 = vrot.slane %v5324_v60, 9 }
 0x1a9   : > { %v5572_v6 = vpack.c.b16 %v5544_v56, %v5543_v57  ;;  %v4733_v26 = vsel %vm7544_vm10, %v4728_v0, %v4732_v41  ;;  %v5441_v56 = vrot.slane %v5326_v46, 5  ;;  %v4750_v47 = vrot.slane %v4748_v11, 4  ;;  %v4585_v11 = vld [vmem:[#allocation2 + $0x64] sm:$0xf] }
 0x1aa   : > { %v2420_v62 = vpop.f32.mrf.mxu2  ;;  %v2795_v8 = vpop.f32.mrf.mxu3  ;;  %v3926_v61 = vpack.c.b16 %v3899_v30, %v3898_v53  ;;  %v3800_v53 = vrot.slane %v3798_v19, 4  ;;  %v4737_v0 = vrot.slane %v4735_v37, 4  ;;  %v8342_v41 = vrot.slane %v4744_v58, 5  ;;  %v4584_v58 = vld [vmem:[#allocation2 + $0x60] sm:$0xf] }
 0x1ab   : > { %v3541_v40 = vpop.f32.mrf.mxu0  ;;  %v2499_v39 = vadd.f32 %v2420_v62, %v1974_v5  ;;  %v2876_v36 = vadd.f32 %v2795_v8, %v2498_v10  ;;  %v6878_v5 = vld [vmem:[#allocation2 + $0x48] sm:$0xff]  ;;  %v4738_v62 = vshll.u32 %v4581_v1, 16  ;;  %v3682_v8 = vld [vmem:[#allocation2 + $0x50] sm:$0x1] }
 0x1ac   : > { %v1897_v54 = vpop.f32.mrf.mxu1  ;;  %v3801_v30 = vrot.slane %v3682_v8, 5  ;;  %v4751_v37 = vor.u32 %v4750_v47, %v8342_v41  ;;  %v5328_v8 = vld [vmem:[#allocation2 + $0x58] sm:$0xf] }
 0x1ad   : > { %v8332_v2 = vadd.f32 %v3541_v40, %v2876_v36  ;;  %v1975_v29 = vadd.f32 %v1897_v54, %v8633_v9  ;;  %v3680_v40 = vld [vmem:[#allocation2 + $0x48] sm:$0xe]  ;;  %v5023_v36 = vunpack.c.l.b16 %v4723_v52  ;;  %v5440_v54 = vrot.slane %v5438_v21, 4  ;;  %v4583_v9 = vld [vmem:[#allocation2 + $0x5c] sm:$0x1] }
 0x1ae   : > { %v6509_v27 = vrot.slane %v3680_v40, 9 }
 0x1af   : > { %5150 = vmatmul.bf16.gmra.mxu3 %v5050_v35  ;;  %v5024_v35 = vunpack.c.l.b16 %v4733_v26  ;;  %v5442_v52 = vsel %vm7573_vm14, %v5440_v54, %v5441_v56  ;;  %v3684_v54 = vld [vmem:[#allocation2 + $0x58] sm:$0xf] }
 0x1b0   : > { %v3799_v60 = vsel %vm7573_vm14, %v6509_v27, %v3798_v19  ;;  %v5327_v27 = vld [vmem:[#allocation2 + $0x54] sm:$0xe] }
 0x1b2   : > { %v2422_v10 = vpop.f32.mrf.mxu2  ;;  %v2798_v44 = vpop.f32.mrf.mxu3 }
 0x1b3   : > { %v3544_v59 = vpop.f32.mrf.mxu0  ;;  %v2500_v49 = vadd.f32 %v2422_v10, %v1975_v29  ;;  %v2877_v55 = vadd.f32 %v2798_v44, %v2499_v39  ;;  %v4740_v39 = vrot.slane %v4738_v62, 5  ;;  %v5439_v29 = vsel %vm7573_vm14, %v6732_v22, %v5438_v21 }
 0x1b4   : > { %v1900_v3 = vpop.f32.mrf.mxu1  ;;  %v4754_v62 = vshll.u32 %v4583_v9, 16  ;;  %v5545_v21 = vunpack.c.l.b16 %v5439_v29  ;;  %v4772_v9 = vshrl.u32 %v4585_v11, 16 }
 0x1b5   : > { %v8340_v57 = vadd.f32 %v3544_v59, %v2877_v55  ;;  %v1976_v1 = vadd.f32 %v1900_v3, %v8634_v42  ;;  %v3802_v59 = vsel %vm7573_vm14, %v3800_v53, %v3801_v30  ;;  %v4741_v46 = vor.u32 %v4740_v39, %v4737_v0 }
 0x1b6   : > { %5672 = vmatmul.bf16.gmra.mxu0 %v5572_v6  ;;  %v5051_v6 = vpack.c.b16 %v5024_v35, %v5023_v36  ;;  %v5546_v55 = vunpack.c.l.b16 %v5442_v52  ;;  %v3900_v3 = vunpack.c.l.b16 %v3799_v60  ;;  %v3901_v40 = vunpack.c.l.b16 %v3802_v59 }
 0x1b7   : > { %4030 = vmatmul.bf16.gmra.mxu1 %v3926_v61  ;;  %4409 = vmatmul.bf16.gmra.mxu2 %v6878_v5  ;;  %v4742_v19 = vrot.slane %v4741_v46, 4  ;;  %v4752_v36 = vrot.slane %v4751_v37, 4  ;;  %v4756_v35 = vrot.slane %v4754_v62, 5  ;;  %v5445_v53 = vrot.slane %v5328_v8, 5  ;;  %v3683_v46 = vld [vmem:[#allocation2 + $0x54] sm:$0xe] }
 0x1b8   : > { %v4759_v30 = vshrl.u32 %v4584_v58, 16  ;;  %v4762_v0 = vshll.u32 %v4584_v58, 16  ;;  %v5573_v39 = vpack.c.b16 %v5546_v55, %v5545_v21  ;;  %v3927_v42 = vpack.c.b16 %v3901_v40, %v3900_v3  ;;  %v3685_v37 = vld [vmem:[#allocation2 + $0x5c] sm:$0x1] }
 0x1b9   : > { %v3805_v52 = vrot.slane %v3684_v54, 5  ;;  %v4757_v62 = vsel %vm7544_vm10, %v4752_v36, %v4756_v35  ;;  %v5447_v21 = vrot.slane %v5445_v53, 4  ;;  %v4586_v54 = vld [vmem:[#allocation2 + $0x68] sm:$0x1] }
 0x1ba   : > { %v2425_v34 = vpop.f32.mrf.mxu2  ;;  %v2800_v61 = vpop.f32.mrf.mxu3  ;;  %v4761_v55 = vrot.slane %v4759_v30, 4  ;;  %v4764_v3 = vrot.slane %v4762_v0, 5 }
 0x1bb   : > { %v3546_v10 = vpop.f32.mrf.mxu0  ;;  %v2501_v26 = vadd.f32 %v2425_v34, %v1976_v1  ;;  %v2878_v44 = vadd.f32 %v2800_v61, %v2500_v49  ;;  %v8635_v49 = vld [vmem:[#allocation5_spill] sm:$0xff]  ;;  %v4768_v1 = vshll.u32 %v4585_v11, 16  ;;  %v6879_v61 = vld [vmem:[#allocation2 + $0x54] sm:$0xff]  ;;  %v6510_v11 = vrot.slane %v3683_v46, 9 }
 0x1bc   : > { %v1902_v5 = vpop.f32.mrf.mxu1  ;;  %v4765_v35 = vor.u32 %v4764_v3, %v4761_v55  ;;  %v5331_v55 = vld [vmem:[#allocation2 + $0x64] sm:$0xf] }
 0x1bd   : > { %v8354_v22 = vadd.f32 %v3546_v10, %v2878_v44  ;;  %v1977_v56 = vadd.f32 %v1902_v5, %v8635_v49  ;;  %v4747_v44 = vsel %vm7544_vm10, %v4742_v19, %v8342_v41  ;;  %v6733_v5 = vrot.slane %v5327_v27, 9  ;;  %v8636_v27 = vld [vmem:[#allocation6_spill] sm:$0xff] }
 0x1be   : > { %v8362_v8 = vrot.slane %v4768_v1, 5  ;;  %v3807_v41 = vrot.slane %v3805_v52, 4  ;;  %v3808_v19 = vrot.slane %v3685_v37, 5  ;;  %v5025_v49 = vunpack.c.l.b16 %v4747_v44 }
 0x1bf   : > { %5155 = vmatmul.bf16.gmra.mxu3 %v5051_v6  ;;  %v5329_v6 = vld [vmem:[#allocation2 + $0x5c] sm:$0x1]  ;;  %v5446_v30 = vsel %vm7573_vm14, %v6733_v5, %v5445_v53  ;;  %v4766_v5 = vrot.slane %v4765_v35, 4 }
 0x1c0   : > { %v5448_v40 = vrot.slane %v5329_v6, 5  ;;  %v5547_v53 = vunpack.c.l.b16 %v5446_v30 }
 0x1c2   : > { %v2427_v47 = vpop.f32.mrf.mxu2  ;;  %v2803_v34 = vpop.f32.mrf.mxu3  ;;  %v5449_v0 = vsel %vm7573_vm14, %v5447_v21, %v5448_v40  ;;  %v3687_v40 = vld [vmem:[#allocation2 + $0x64] sm:$0xf] }
 0x1c3   : > { %v3549_v29 = vpop.f32.mrf.mxu0  ;;  %v2502_v10 = vadd.f32 %v2427_v47, %v1977_v56  ;;  %v2879_v60 = vadd.f32 %v2803_v34, %v2501_v26  ;;  %v4774_v26 = vrot.slane %v4772_v9, 4  ;;  %v5026_v56 = vunpack.c.l.b16 %v4757_v62 }
 0x1c4   : > { %v1905_v59 = vpop.f32.mrf.mxu1  ;;  %v3806_v34 = vsel %vm7573_vm14, %v6510_v11, %v3805_v52  ;;  %v5548_v44 = vunpack.c.l.b16 %v5449_v0  ;;  %v8637_v11 = vld [vmem:[#allocation8_spill] sm:$0xff] }
 0x1c5   : > { %v8364_v58 = vadd.f32 %v3549_v29, %v2879_v60  ;;  %v1978_v36 = vadd.f32 %v1905_v59, %v8636_v27  ;;  %v4775_v47 = vor.u32 %v4774_v26, %v8362_v8  ;;  %v5052_v60 = vpack.c.b16 %v5026_v56, %v5025_v49  ;;  %v4587_v26 = vld [vmem:[#allocation2 + $0x6c] sm:$0xf]  ;;  %v5330_v27 = vld [vmem:[#allocation2 + $0x60] sm:$0xe] }
 0x1c6   : > { %5677 = vmatmul.bf16.gmra.mxu0 %v5573_v39  ;;  %v3902_v46 = vunpack.c.l.b16 %v3806_v34  ;;  %v5574_v52 = vpack.c.b16 %v5548_v44, %v5547_v53  ;;  %v4771_v49 = vsel %vm7544_vm10, %v4766_v5, %v8362_v8  ;;  %v6734_v8 = vrot.slane %v5330_v27, 9  ;;  %v4589_v27 = vld [vmem:[#allocation2 + $0x74] sm:$0x1] }
 0x1c7   : > { %4035 = vmatmul.bf16.gmra.mxu1 %v3927_v42  ;;  %4414 = vmatmul.bf16.gmra.mxu2 %v6879_v61  ;;  %v4778_v42 = vshll.u32 %v4586_v54, 16  ;;  %v3809_v61 = vsel %vm7573_vm14, %v3807_v41, %v3808_v19  ;;  %v4776_v62 = vrot.slane %v4775_v47, 4  ;;  %v4588_v41 = vld [vmem:[#allocation2 + $0x70] sm:$0xf]  ;;  %v5332_v47 = vld [vmem:[#allocation2 + $0x68] sm:$0x1]  ;;  %v5027_v44 = vunpack.c.l.b16 %v4771_v49 }
 0x1c8   : > { %v3903_v37 = vunpack.c.l.b16 %v3809_v61  ;;  %v4796_v53 = vshrl.u32 %v4588_v41, 16 }
 0x1c9   : > { %v4780_v21 = vrot.slane %v4778_v42, 5  ;;  %v3812_v42 = vrot.slane %v3687_v40, 5 }
 0x1ca   : > { %v2430_v39 = vpop.f32.mrf.mxu2  ;;  %v2805_v9 = vpop.f32.mrf.mxu3  ;;  %v3928_v19 = vpack.c.b16 %v3903_v37, %v3902_v46 }
 0x1cb   : > { %v3551_v1 = vpop.f32.mrf.mxu0  ;;  %v2503_v29 = vadd.f32 %v2430_v39, %v1978_v36  ;;  %v2880_v6 = vadd.f32 %v2805_v9, %v2502_v10  ;;  %v4781_v56 = vsel %vm7544_vm10, %v4776_v62, %v4780_v21  ;;  %v5452_v36 = vrot.slane %v5331_v55, 5  ;;  %v6880_v39 = vld [vmem:[#allocation2 + $0x60] sm:$0xff] }
 0x1cc   : > { %v1907_v59 = vpop.f32.mrf.mxu1  ;;  %v4786_v9 = vshll.u32 %v4587_v26, 16  ;;  %v5028_v5 = vunpack.c.l.b16 %v4781_v56  ;;  %v5455_v62 = vrot.slane %v5332_v47, 5  ;;  %v3814_v55 = vrot.slane %v3812_v42, 4 }
 0x1cd   : > { %v8376_v3 = vadd.f32 %v3551_v1, %v2880_v6  ;;  %v1979_v54 = vadd.f32 %v1907_v59, %v8637_v11  ;;  %v4783_v1 = vshrl.u32 %v4587_v26, 16  ;;  %v3686_v6 = vld [vmem:[#allocation2 + $0x60] sm:$0xe]  ;;  %v4792_v59 = vshll.u32 %v4588_v41, 16 }
 0x1ce   : > { %v5454_v46 = vrot.slane %v5452_v36, 4  ;;  %v6511_v21 = vrot.slane %v3686_v6, 9 }
 0x1cf   : > { %5160 = vmatmul.bf16.gmra.mxu3 %v5052_v60  ;;  %v3688_v60 = vld [vmem:[#allocation2 + $0x68] sm:$0x1]  ;;  %v4785_v26 = vrot.slane %v4783_v1, 4  ;;  %v8386_v11 = vrot.slane %v4792_v59, 5 }
 0x1d0   : > { %v3815_v40 = vrot.slane %v3688_v60, 5  ;;  %v3813_v47 = vsel %vm7573_vm14, %v6511_v21, %v3812_v42  ;;  %v4802_v60 = vshll.u32 %v4589_v27, 16 }
 0x1d2   : > { %v2432_v10 = vpop.f32.mrf.mxu2  ;;  %v2808_v30 = vpop.f32.mrf.mxu3  ;;  %v3816_v1 = vsel %vm7573_vm14, %v3814_v55, %v3815_v40  ;;  %v3690_v55 = vld [vmem:[#allocation2 + $0x70] sm:$0xf] }
 0x1d3   : > { %v3554_v35 = vpop.f32.mrf.mxu0  ;;  %v2504_v0 = vadd.f32 %v2432_v10, %v1979_v54  ;;  %v2881_v34 = vadd.f32 %v2808_v30, %v2503_v29  ;;  %v4788_v29 = vrot.slane %v4786_v9, 5  ;;  %v4798_v54 = vrot.slane %v4796_v53, 4  ;;  %v8639_v10 = vld [vmem:[#allocation10_spill] sm:$0xff] }
 0x1d4   : > { %v1910_v61 = vpop.f32.mrf.mxu1  ;;  %v5456_v30 = vsel %vm7573_vm14, %v5454_v46, %v5455_v62  ;;  %v3904_v53 = vunpack.c.l.b16 %v3813_v47  ;;  %v4591_v46 = vld [vmem:[#allocation2 + $0x7c] sm:$0xf] }
 0x1d5   : > { %v8384_v37 = vadd.f32 %v3554_v35, %v2881_v34  ;;  %v1980_v41 = vadd.f32 %v1910_v61, %v8639_v10  ;;  %v4789_v61 = vor.u32 %v4788_v29, %v4785_v26  ;;  %v4799_v6 = vor.u32 %v4798_v54, %v8386_v11  ;;  %v5333_v26 = vld [vmem:[#allocation2 + $0x6c] sm:$0xe] }
 0x1d6   : > { %5682 = vmatmul.bf16.gmra.mxu0 %v5574_v52  ;;  %v5053_v52 = vpack.c.b16 %v5028_v5, %v5027_v44  ;;  %v5550_v59 = vunpack.c.l.b16 %v5456_v30  ;;  %v5334_v44 = vld [vmem:[#allocation2 + $0x70] sm:$0xf]  ;;  %v4590_v5 = vld [vmem:[#allocation2 + $0x78] sm:$0xf]  ;;  %v4804_v10 = vrot.slane %v4802_v60, 5  ;;  %v4820_v30 = vshrl.u32 %v4591_v46, 16 }
 0x1d7   : > { %4040 = vmatmul.bf16.gmra.mxu1 %v3928_v19  ;;  %8638 = vst [vmem:[#allocation7_spill] sm:$0xff] %v8384_v37  ;;  %4419 = vmatmul.bf16.gmra.mxu2 %v6880_v39  ;;  %v5453_v19 = vsel %vm7573_vm14, %v6734_v8, %v5452_v36  ;;  %v3905_v8 = vunpack.c.l.b16 %v3816_v1  ;;  %v4790_v42 = vrot.slane %v4789_v61, 4  ;;  %v4800_v21 = vrot.slane %v4799_v6, 4  ;;  %v8643_v37 = vld [vmem:[#allocation15_spill] sm:$0xff] }
 0x1d8   : > { %v5549_v36 = vunpack.c.l.b16 %v5453_v19  ;;  %v5459_v29 = vrot.slane %v5334_v44, 5  ;;  %v4807_v54 = vshrl.u32 %v4590_v5, 16  ;;  %v3819_v61 = vrot.slane %v3690_v55, 5 }
 0x1d9   : > { %v6735_v44 = vrot.slane %v5333_v26, 9  ;;  %v4592_v26 = vld [vmem:[#allocation2 + $0x80] sm:$0x1] }
 0x1da   : > { %v2435_v49 = vpop.f32.mrf.mxu2  ;;  %v2810_v35 = vpop.f32.mrf.mxu3  ;;  %v5575_v27 = vpack.c.b16 %v5550_v59, %v5549_v36  ;;  %v4805_v36 = vsel %vm7544_vm10, %v4800_v21, %v4804_v10  ;;  %v5461_v59 = vrot.slane %v5459_v29, 4 }
 0x1db   : > { %v3556_v56 = vpop.f32.mrf.mxu0  ;;  %v2505_v39 = vadd.f32 %v2435_v49, %v1980_v41  ;;  %v2882_v9 = vadd.f32 %v2810_v35, %v2504_v0  ;;  %v8641_v0 = vld [vmem:[#allocation12_spill] sm:$0xff]  ;;  %v4810_v41 = vshll.u32 %v4590_v5, 16  ;;  %v3929_v49 = vpack.c.b16 %v3905_v8, %v3904_v53  ;;  %v3691_v5 = vld [vmem:[#allocation2 + $0x74] sm:$0x1] }
 0x1dc   : > { %v1912_v34 = vpop.f32.mrf.mxu1  ;;  %v4816_v35 = vshll.u32 %v4591_v46, 16  ;;  %v4809_v53 = vrot.slane %v4807_v54, 4  ;;  %v5460_v54 = vsel %vm7573_vm14, %v6735_v44, %v5459_v29 }
 0x1dd   : > { %v8398_v62 = vadd.f32 %v3556_v56, %v2882_v9  ;;  %v1981_v40 = vadd.f32 %v1912_v34, %v8641_v0  ;;  %v6881_v9 = vld [vmem:[#allocation2 + $0x6c] sm:$0xff]  ;;  %v4795_v34 = vsel %vm7544_vm10, %v4790_v42, %v8386_v11  ;;  %v4812_v8 = vrot.slane %v4810_v41, 5 }
 0x1de   : > { %v3689_v0 = vld [vmem:[#allocation2 + $0x6c] sm:$0xe]  ;;  %v3821_v11 = vrot.slane %v3819_v61, 4  ;;  %v3822_v42 = vrot.slane %v3691_v5, 5  ;;  %v5551_v29 = vunpack.c.l.b16 %v5460_v54 }
 0x1df   : > { %8640 = vst [vmem:[#allocation9_spill] sm:$0xff] %v8398_v62  ;;  %5165 = vmatmul.bf16.gmra.mxu3 %v5053_v52  ;;  %v5335_v52 = vld [vmem:[#allocation2 + $0x74] sm:$0x1]  ;;  %v5030_v62 = vunpack.c.l.b16 %v4805_v36  ;;  %v4813_v10 = vor.u32 %v4812_v8, %v4809_v53  ;;  %v5337_v8 = vld [vmem:[#allocation2 + $0x7c] sm:$0xf] }
 0x1e0   : > { %v5462_v46 = vrot.slane %v5335_v52, 5 }
 0x1e2   : > { %v2437_v19 = vpop.f32.mrf.mxu2  ;;  %v2813_v1 = vpop.f32.mrf.mxu3  ;;  %v5463_v41 = vsel %vm7573_vm14, %v5461_v59, %v5462_v46 }
 0x1e3   : > { %v3559_v47 = vpop.f32.mrf.mxu0  ;;  %v2506_v56 = vadd.f32 %v2437_v19, %v1981_v40  ;;  %v2883_v6 = vadd.f32 %v2813_v1, %v2505_v39  ;;  %v8406_v40 = vrot.slane %v4816_v35, 5  ;;  %v4822_v39 = vrot.slane %v4820_v30, 4 }
 0x1e4   : > { %v1915_v60 = vpop.f32.mrf.mxu1  ;;  %v6512_v19 = vrot.slane %v3689_v0, 9  ;;  %v5029_v1 = vunpack.c.l.b16 %v4795_v34  ;;  %v4826_v35 = vshll.u32 %v4592_v26, 16  ;;  %v5552_v44 = vunpack.c.l.b16 %v5463_v41  ;;  %v4593_v26 = vld [vmem:[#allocation2 + $0x84] sm:$0xf] }
 0x1e5   : > { %v8408_v55 = vadd.f32 %v3559_v47, %v2883_v6  ;;  %v1982_v21 = vadd.f32 %v1915_v60, %v8643_v37  ;;  %v3823_v37 = vsel %vm7573_vm14, %v3821_v11, %v3822_v42  ;;  %v4814_v0 = vrot.slane %v4813_v10, 4  ;;  %v4594_v11 = vld [vmem:[#allocation2 + $0x88] sm:$0xf] }
 0x1e6   : > { %5687 = vmatmul.bf16.gmra.mxu0 %v5575_v27  ;;  %v3820_v52 = vsel %vm7573_vm14, %v6512_v19, %v3819_v61  ;;  %v5054_v60 = vpack.c.b16 %v5030_v62, %v5029_v1  ;;  %v3907_v36 = vunpack.c.l.b16 %v3823_v37  ;;  %v4828_v53 = vrot.slane %v4826_v35, 5  ;;  %v5338_v35 = vld [vmem:[#allocation2 + $0x80] sm:$0x1] }
 0x1e7   : > { %4045 = vmatmul.bf16.gmra.mxu1 %v3929_v49  ;;  %8642 = vst [vmem:[#allocation11_spill] sm:$0xff] %v8408_v55  ;;  %4424 = vmatmul.bf16.gmra.mxu2 %v6881_v9  ;;  %v4823_v49 = vor.u32 %v4822_v39, %v8406_v40  ;;  %v3906_v5 = vunpack.c.l.b16 %v3820_v52  ;;  %v3693_v39 = vld [vmem:[#allocation2 + $0x7c] sm:$0xf]  ;;  %v5576_v61 = vpack.c.b16 %v5552_v44, %v5551_v29  ;;  %v5466_v10 = vrot.slane %v5337_v8, 5 }
 0x1e8   : > { %v4819_v42 = vsel %vm7544_vm10, %v4814_v0, %v8406_v40  ;;  %v4844_v29 = vshrl.u32 %v4594_v11, 16 }
 0x1e9   : > { %v4824_v59 = vrot.slane %v4823_v49, 4  ;;  %v3930_v62 = vpack.c.b16 %v3907_v36, %v3906_v5  ;;  %v6882_v49 = vld [vmem:[#allocation2 + $0x78] sm:$0xff]  ;;  %v5031_v44 = vunpack.c.l.b16 %v4819_v42  ;;  %v5468_v5 = vrot.slane %v5466_v10, 4 }
 0x1ea   : > { %v2440_v27 = vpop.f32.mrf.mxu2  ;;  %v2815_v47 = vpop.f32.mrf.mxu3 }
 0x1eb   : > { %v3561_v30 = vpop.f32.mrf.mxu0  ;;  %v2507_v9 = vadd.f32 %v2440_v27, %v1982_v21  ;;  %v2884_v6 = vadd.f32 %v2815_v47, %v2506_v56  ;;  %v4829_v1 = vsel %vm7544_vm10, %v4824_v59, %v4828_v53  ;;  %v5336_v21 = vld [vmem:[#allocation2 + $0x78] sm:$0xe]  ;;  %v4831_v47 = vshrl.u32 %v4593_v26, 16 }
 0x1ec   : > { %v1917_v34 = vpop.f32.mrf.mxu1  ;;  %v6736_v40 = vrot.slane %v5336_v21, 9  ;;  %v5032_v0 = vunpack.c.l.b16 %v4829_v1  ;;  %v5469_v59 = vrot.slane %v5338_v35, 5 }
 0x1ed   : > { %v8420_v46 = vadd.f32 %v3561_v30, %v2884_v6  ;;  %v1983_v19 = vadd.f32 %v1917_v34, %v7923_v24  ;;  %v3826_v30 = vrot.slane %v3693_v39, 5  ;;  %v4834_v24 = vshll.u32 %v4593_v26, 16  ;;  %v3692_v6 = vld [vmem:[#allocation2 + $0x78] sm:$0xe] }
 0x1ee   : > { %v4840_v34 = vshll.u32 %v4594_v11, 16  ;;  %v6513_v53 = vrot.slane %v3692_v6, 9  ;;  %v4833_v26 = vrot.slane %v4831_v47, 4  ;;  %v5055_v1 = vpack.c.b16 %v5032_v0, %v5031_v44  ;;  %v4596_v44 = vld [vmem:[#allocation2 + $0x90] sm:$0xf] }
 0x1ef   : > { %8644 = vst [vmem:[#allocation13_spill] sm:$0xff] %v8420_v46  ;;  %5170 = vmatmul.bf16.gmra.mxu3 %v5054_v60  ;;  %v3694_v60 = vld [vmem:[#allocation2 + $0x80] sm:$0x1]  ;;  %v3828_v8 = vrot.slane %v3826_v30, 4  ;;  %v5470_v21 = vsel %vm7573_vm14, %v5468_v5, %v5469_v59  ;;  %v4597_v0 = vld [vmem:[#allocation2 + $0x94] sm:$0xf] }
 0x1f0   : > { %v3829_v39 = vrot.slane %v3694_v60, 5  ;;  %v5554_v60 = vunpack.c.l.b16 %v5470_v21  ;;  %v4864_v21 = vshll.u32 %v4597_v0, 16 }
 0x1f2   : > { %v2442_v56 = vpop.f32.mrf.mxu2  ;;  %v2818_v41 = vpop.f32.mrf.mxu3 }
 0x1f3   : > { %v3564_v54 = vpop.f32.mrf.mxu0  ;;  %v2508_v27 = vadd.f32 %v2442_v56, %v1983_v19  ;;  %v2885_v52 = vadd.f32 %v2818_v41, %v2507_v9  ;;  %v4836_v9 = vrot.slane %v4834_v24, 5  ;;  %v8430_v19 = vrot.slane %v4840_v34, 5  ;;  %v4595_v41 = vld [vmem:[#allocation2 + $0x8c] sm:$0x1] }
 0x1f4   : > { %v4011_v37 = vpop.f32.mrf.mxu1  ;;  %v4846_v56 = vrot.slane %v4844_v29, 4  ;;  %v4850_v6 = vshll.u32 %v4595_v41, 16 }
 0x1f5   : > { %v8428_v36 = vadd.f32 %v3564_v54, %v2885_v52  ;;  %v3827_v54 = vsel %vm7573_vm14, %v6513_v53, %v3826_v30  ;;  %v4837_v24 = vor.u32 %v4836_v9, %v4833_v26  ;;  %v4855_v9 = vshrl.u32 %v4596_v44, 16 }
 0x1f6   : > { %5692 = vmatmul.bf16.gmra.mxu0 %v5576_v61  ;;  %v5467_v61 = vsel %vm7573_vm14, %v6736_v40, %v5466_v10  ;;  %v4847_v52 = vor.u32 %v4846_v56, %v8430_v19  ;;  %v3908_v34 = vunpack.c.l.b16 %v3827_v54  ;;  %v5340_v40 = vld [vmem:[#allocation2 + $0x88] sm:$0xf]  ;;  %v4852_v53 = vrot.slane %v4850_v6, 5  ;;  %v3695_v6 = vld [vmem:[#allocation2 + $0x84] sm:$0xe] }
 0x1f7   : > { %4050 = vmatmul.bf16.gmra.mxu1 %v3930_v62  ;;  %8645 = vst [vmem:[#allocation14_spill] sm:$0xff] %v8428_v36  ;;  %4429 = vmatmul.bf16.gmra.mxu2 %v6882_v49  ;;  %v3830_v49 = vsel %vm7573_vm14, %v3828_v8, %v3829_v39  ;;  %v5553_v10 = vunpack.c.l.b16 %v5467_v61  ;;  %v4838_v30 = vrot.slane %v4837_v24, 4  ;;  %v3696_v8 = vld [vmem:[#allocation2 + $0x88] sm:$0xf]  ;;  %v5339_v39 = vld [vmem:[#allocation2 + $0x84] sm:$0xe] }
 0x1f8   : > { %v3909_v29 = vunpack.c.l.b16 %v3830_v49  ;;  %v4848_v59 = vrot.slane %v4847_v52, 4  ;;  %v5473_v26 = vrot.slane %v5340_v40, 5  ;;  %v4858_v56 = vshll.u32 %v4596_v44, 16  ;;  %v3697_v40 = vld [vmem:[#allocation2 + $0x8c] sm:$0x1] }
 0x1f9   : > { %v5577_v41 = vpack.c.b16 %v5554_v60, %v5553_v10  ;;  %v4868_v54 = vshrl.u32 %v4597_v0, 16  ;;  %v3833_v24 = vrot.slane %v3696_v8, 5  ;;  %v8450_v0 = vrot.slane %v4864_v21, 5 }
 0x1fa   : > { %v4390_v11 = vpop.f32.mrf.mxu2  ;;  %v2820_v42 = vpop.f32.mrf.mxu3  ;;  %v4853_v10 = vsel %vm7544_vm10, %v4848_v59, %v4852_v53  ;;  %v5475_v60 = vrot.slane %v5473_v26, 4 }
 0x1fb   : > { %v3566_v62 = vpop.f32.mrf.mxu0  ;;  %v2886_v35 = vadd.f32 %v2820_v42, %v2508_v27  ;;  %v4123_v27 = vadd.f32 %v4011_v37, %v7953_v13  ;;  %v3931_v42 = vpack.c.b16 %v3909_v29, %v3908_v34  ;;  %v4843_v13 = vsel %vm7544_vm10, %v4838_v30, %v8430_v19 }
 0x1fc   : > { %v4013_v47 = vpop.f32.mrf.mxu1  ;;  %v6737_v37 = vrot.slane %v5339_v39, 9  ;;  %v4857_v34 = vrot.slane %v4855_v9, 4  ;;  %v4860_v29 = vrot.slane %v4858_v56, 5  ;;  %v4870_v8 = vrot.slane %v4868_v54, 4 }
 0x1fd   : > { %v8441_v5 = vadd.f32 %v3566_v62, %v2886_v35  ;;  %v4502_v36 = vadd.f32 %v4390_v11, %v4123_v27  ;;  %v6883_v35 = vld [vmem:[#allocation2 + $0x84] sm:$0xff]  ;;  %v4124_v11 = vadd.f32 %v4013_v47, %v7991_v15  ;;  %v6514_v19 = vrot.slane %v3695_v6, 9 }
 0x1fe   : > { %v3835_v30 = vrot.slane %v3833_v24, 4  ;;  %v3836_v39 = vrot.slane %v3697_v40, 5  ;;  %v5033_v55 = vunpack.c.l.b16 %v4843_v13  ;;  %v5034_v59 = vunpack.c.l.b16 %v4853_v10  ;;  %v5343_v10 = vld [vmem:[#allocation2 + $0x94] sm:$0xf] }
 0x1ff   : > { %8646 = vst [vmem:[#allocation4_spill] sm:$0xff] %v8441_v5  ;;  %5175 = vmatmul.bf16.gmra.mxu3 %v5055_v1  ;;  %v5341_v1 = vld [vmem:[#allocation2 + $0x8c] sm:$0x1]  ;;  %v4598_v5 = vld [vmem:[#allocation2 + $0x98] sm:$0x1]  ;;  %v4861_v53 = vor.u32 %v4860_v29, %v4857_v34  ;;  %v5474_v9 = vsel %vm7573_vm14, %v6737_v37, %v5473_v26  ;;  %v3834_v21 = vsel %vm7573_vm14, %v6514_v19, %v3833_v24 }
 0x200   : > { %v5476_v44 = vrot.slane %v5341_v1, 5  ;;  %v4874_v56 = vshll.u32 %v4598_v5, 16  ;;  %v4871_v54 = vor.u32 %v4870_v8, %v8450_v0  ;;  %v5555_v1 = vunpack.c.l.b16 %v5474_v9  ;;  %v4600_v34 = vld [vmem:[#allocation2 + $0xa0] sm:$0xf]  ;;  %v5342_v19 = vld [vmem:[#allocation2 + $0x90] sm:$0xe] }
 0x201   : > { %v4862_v37 = vrot.slane %v4861_v53, 4 }
 0x202   : > { %v4392_v61 = vpop.f32.mrf.mxu2  ;;  %v5136_v62 = vpop.f32.mrf.mxu3  ;;  %v5477_v15 = vsel %vm7573_vm14, %v5475_v60, %v5476_v44  ;;  %v4599_v60 = vld [vmem:[#allocation2 + $0x9c] sm:$0xf] }
 0x203   : > { %v5658_v49 = vpop.f32.mrf.mxu0  ;;  %v5248_v27 = vadd.f32 %v5136_v62, %v4502_v36  ;;  %v4503_v46 = vadd.f32 %v4392_v61, %v4124_v11  ;;  %v3837_v61 = vsel %vm7573_vm14, %v3835_v30, %v3836_v39  ;;  %v5556_v13 = vunpack.c.l.b16 %v5477_v15  ;;  %v5344_v15 = vld [vmem:[#allocation2 + $0x98] sm:$0x1] }
 0x204   : > { %v4016_v52 = vpop.f32.mrf.mxu1  ;;  %v3911_v40 = vunpack.c.l.b16 %v3837_v61  ;;  %v5480_v30 = vrot.slane %v5343_v10, 5  ;;  %v4879_v39 = vshrl.u32 %v4599_v60, 16  ;;  %v4892_v61 = vshrl.u32 %v4600_v34, 16 }
 0x205   : > { %v4125_v5 = vadd.f32 %v4016_v52, %v7999_v33  ;;  %v3699_v52 = vld [vmem:[#allocation2 + $0x94] sm:$0xf]  ;;  %v5578_v8 = vpack.c.b16 %v5556_v13, %v5555_v1  ;;  %v3698_v1 = vld [vmem:[#allocation2 + $0x90] sm:$0xe]  ;;  %v3700_v13 = vld [vmem:[#allocation2 + $0x98] sm:$0x1] }
 0x206   : > { %5697 = vmatmul.bf16.gmra.mxu0 %v5577_v41  ;;  %v5770_v41 = vadd.f32 %v5658_v49, %v5248_v27  ;;  %v3910_v49 = vunpack.c.l.b16 %v3834_v21  ;;  %v4867_v27 = vsel %vm7544_vm10, %v4862_v37, %v8450_v0  ;;  %v6884_v21 = vld [vmem:[#allocation2 + $0x90] sm:$0xff] }
 0x207   : > { %4055 = vmatmul.bf16.gmra.mxu1 %v3931_v42  ;;  %4434 = vmatmul.bf16.gmra.mxu2 %v6883_v35  ;;  %v5056_v35 = vpack.c.b16 %v5034_v59, %v5033_v55  ;;  %v4872_v55 = vrot.slane %v4871_v54, 4  ;;  %v5035_v37 = vunpack.c.l.b16 %v4867_v27 }
 0x208   : > { %v5967_v24 = vmul.f32 %v5770_v41, %v5770_v41  ;;  %v3932_v9 = vpack.c.b16 %v3911_v40, %v3910_v49  ;;  %v4881_v49 = vrot.slane %v4879_v39, 4 }
 0x20a   : > { %v4395_v47 = vpop.f32.mrf.mxu2  ;;  %v5138_v36 = vpop.f32.mrf.mxu3 }
 0x20b   : > { %v5660_v42 = vpop.f32.mrf.mxu0  ;;  %v5249_v62 = vadd.f32 %v5138_v36, %v4503_v46  ;;  %v4876_v46 = vrot.slane %v4874_v56, 5  ;;  %v4504_v33 = vadd.f32 %v4395_v47, %v4125_v5  ;;  %v4882_v56 = vshll.u32 %v4599_v60, 16 }
 0x20c   : > { %v4018_v26 = vpop.f32.mrf.mxu1  ;;  %v3840_v47 = vrot.slane %v3699_v52, 5  ;;  %v5483_v5 = vrot.slane %v5344_v15, 5 }
 0x20d   : > { %v5771_v6 = vadd.f32 %v5660_v42, %v5249_v62  ;;  %v4888_v42 = vshll.u32 %v4600_v34, 16  ;;  %v4877_v0 = vsel %vm7544_vm10, %v4872_v55, %v4876_v46  ;;  %v4126_v10 = vadd.f32 %v4018_v26, %v8034_v45 }
 0x20e   : > { %v4884_v60 = vrot.slane %v4882_v56, 5  ;;  %v6515_v34 = vrot.slane %v3698_v1, 9  ;;  %v4894_v55 = vrot.slane %v4892_v61, 4  ;;  %v5036_v27 = vunpack.c.l.b16 %v4877_v0 }
 0x20f   : > { %v6981_v29 = vpack.c.bf16 %v5771_v6, %v5770_v41  ;;  %v5930_v11 = vadd.f32 %v5771_v6, %v5770_v41  ;;  %v5968_v44 = vmul.f32 %v5771_v6, %v5771_v6  ;;  %5180 = vmatmul.bf16.gmra.mxu3 %v5056_v35  ;;  %v6738_v35 = vrot.slane %v5342_v19, 9  ;;  %v4601_v19 = vld [vmem:[#allocation2 + $0xa4] sm:$0x1] }
 0x210   : > { %v5482_v6 = vrot.slane %v5480_v30, 4  ;;  %v4885_v39 = vor.u32 %v4884_v60, %v4881_v49 }
 0x211   : > { %6982 = vst [vmem:[%s8467_s27] sm:$0xff] %v6981_v29   ;;  %v5999_v59 = vadd.f32 %v5968_v44, %v5967_v24  ;;  %v8476_v24 = vrot.slane %v4888_v42, 5  ;;  %v3842_v29 = vrot.slane %v3840_v47, 4  ;;  %v3843_v44 = vrot.slane %v3700_v13, 5  ;;  %v5346_v13 = vld [vmem:[#allocation2 + $0xa0] sm:$0xf] }
 0x212   : > { %v4397_v53 = vpop.f32.mrf.mxu2  ;;  %v5141_v36 = vpop.f32.mrf.mxu3  ;;  %v5484_v45 = vsel %vm7573_vm14, %v5482_v6, %v5483_v5  ;;  %v3841_v42 = vsel %vm7573_vm14, %v6515_v34, %v3840_v47  ;;  %v4886_v6 = vrot.slane %v4885_v39, 4 }
 0x213   : > { %v5663_v41 = vpop.f32.mrf.mxu0  ;;  %v5250_v54 = vadd.f32 %v5141_v36, %v4504_v33  ;;  %v4505_v52 = vadd.f32 %v4397_v53, %v4126_v10  ;;  %v4895_v53 = vor.u32 %v4894_v55, %v8476_v24  ;;  %v5057_v36 = vpack.c.b16 %v5036_v27, %v5035_v37  ;;  %v4603_v27 = vld [vmem:[#allocation2 + $0xac] sm:$0xf] }
 0x214   : > { %v4021_v62 = vpop.f32.mrf.mxu1  ;;  %v5558_v61 = vunpack.c.l.b16 %v5484_v45  ;;  %v5487_v55 = vrot.slane %v5346_v13, 5 }
 0x215   : > { %v5772_v40 = vadd.f32 %v5663_v41, %v5250_v54  ;;  %v4898_v41 = vshll.u32 %v4601_v19, 16  ;;  %v4127_v0 = vadd.f32 %v4021_v62, %v8051_v25  ;;  %v4896_v47 = vrot.slane %v4895_v53, 4  ;;  %v3703_v53 = vld [vmem:[#allocation2 + $0xa4] sm:$0x1] }
 0x216   : > { %5702 = vmatmul.bf16.gmra.mxu0 %v5578_v8  ;;  %v5481_v8 = vsel %vm7573_vm14, %v6738_v35, %v5480_v30  ;;  %v3912_v35 = vunpack.c.l.b16 %v3841_v42 }
 0x217   : > { %4060 = vmatmul.bf16.gmra.mxu1 %v3932_v9  ;;  %4439 = vmatmul.bf16.gmra.mxu2 %v6884_v21  ;;  %v5931_v46 = vadd.f32 %v5930_v11, %v5772_v40  ;;  %v5969_v33 = vmul.f32 %v5772_v40, %v5772_v40  ;;  %v3844_v11 = vsel %vm7573_vm14, %v3842_v29, %v3843_v44  ;;  %v5557_v30 = vunpack.c.l.b16 %v5481_v8  ;;  %v5345_v29 = vld [vmem:[#allocation2 + $0x9c] sm:$0xe]  ;;  %v5347_v44 = vld [vmem:[#allocation2 + $0xa4] sm:$0x1] }
 0x218   : > { %v3913_v1 = vunpack.c.l.b16 %v3844_v11  ;;  %v4900_v5 = vrot.slane %v4898_v41, 5  ;;  %v6739_v11 = vrot.slane %v5345_v29, 9 }
 0x219   : > { %v6000_v15 = vadd.f32 %v5999_v59, %v5969_v33  ;;  %v5579_v37 = vpack.c.b16 %v5558_v61, %v5557_v30  ;;  %v4602_v33 = vld [vmem:[#allocation2 + $0xa8] sm:$0xf]  ;;  %v5490_v30 = vrot.slane %v5347_v44, 5  ;;  %v4912_v61 = vshll.u32 %v4603_v27, 16 }
 0x21a   : > { %v4400_v26 = vpop.f32.mrf.mxu2  ;;  %v5143_v56 = vpop.f32.mrf.mxu3  ;;  %v3933_v62 = vpack.c.b16 %v3913_v1, %v3912_v35  ;;  %v4903_v19 = vshrl.u32 %v4602_v33, 16  ;;  %v4906_v8 = vshll.u32 %v4602_v33, 16  ;;  %v4901_v42 = vsel %vm7544_vm10, %v4896_v47, %v4900_v5 }
 0x21b   : > { %v5665_v9 = vpop.f32.mrf.mxu0  ;;  %v5251_v59 = vadd.f32 %v5143_v56, %v4505_v52  ;;  %v4506_v34 = vadd.f32 %v4400_v26, %v4127_v0  ;;  %v4916_v35 = vshrl.u32 %v4603_v27, 16  ;;  %v3850_v47 = vrot.slane %v3703_v53, 5 }
 0x21c   : > { %v4023_v21 = vpop.f32.mrf.mxu1  ;;  %v4905_v0 = vrot.slane %v4903_v19, 4 }
 0x21d   : > { %v5773_v54 = vadd.f32 %v5665_v9, %v5251_v59  ;;  %v6885_v9 = vld [vmem:[#allocation2 + $0x9c] sm:$0xff]  ;;  %v4128_v59 = vadd.f32 %v4023_v21, %v8090_v32  ;;  %v5488_v32 = vsel %vm7573_vm14, %v6739_v11, %v5487_v55  ;;  %v4914_v21 = vrot.slane %v4912_v61, 5 }
 0x21e   : > { %v4918_v29 = vrot.slane %v4916_v35, 4 }
 0x21f   : > { %v6986_v49 = vpack.c.bf16 %v5773_v54, %v5772_v40  ;;  %v5932_v10 = vadd.f32 %v5931_v46, %v5773_v54  ;;  %v5970_v60 = vmul.f32 %v5773_v54, %v5773_v54  ;;  %5185 = vmatmul.bf16.gmra.mxu3 %v5057_v36  ;;  %v4891_v40 = vsel %vm7544_vm10, %v4886_v6, %v8476_v24  ;;  %v3702_v46 = vld [vmem:[#allocation2 + $0xa0] sm:$0xf] }
 0x220   : > { %v3847_v41 = vrot.slane %v3702_v46, 5  ;;  %v5489_v36 = vrot.slane %v5487_v55, 4  ;;  %v4908_v24 = vrot.slane %v4906_v8, 5  ;;  %v5037_v1 = vunpack.c.l.b16 %v4891_v40 }
 0x221   : > { %7073 = vst [vmem:[%s8467_s27 + $0x8] sm:$0xff] %v6986_v49   ;;  %v6001_v52 = vadd.f32 %v6000_v15, %v5970_v60  ;;  %v3701_v15 = vld [vmem:[#allocation2 + $0x9c] sm:$0xe]  ;;  %v5559_v55 = vunpack.c.l.b16 %v5488_v32  ;;  %v4919_v46 = vor.u32 %v4918_v29, %v4914_v21  ;;  %v3704_v29 = vld [vmem:[#allocation2 + $0xa8] sm:$0xe] }
 0x222   : > { %v4402_v25 = vpop.f32.mrf.mxu2  ;;  %v5146_v39 = vpop.f32.mrf.mxu3  ;;  %v6516_v13 = vrot.slane %v3701_v15, 9  ;;  %v3849_v6 = vrot.slane %v3847_v41, 4  ;;  %v5491_v44 = vsel %vm7573_vm14, %v5489_v36, %v5490_v30  ;;  %v4909_v27 = vor.u32 %v4908_v24, %v4905_v0  ;;  %v5348_v0 = vld [vmem:[#allocation2 + $0xa8] sm:$0xe]  ;;  %v5350_v24 = vld [vmem:[#allocation2 + $0xb0] sm:$0x1] }
 0x223   : > { %v5668_v45 = vpop.f32.mrf.mxu0  ;;  %v5252_v26 = vadd.f32 %v5146_v39, %v4506_v34  ;;  %v4507_v60 = vadd.f32 %v4402_v25, %v4128_v59  ;;  %v5038_v34 = vunpack.c.l.b16 %v4901_v42  ;;  %v5560_v40 = vunpack.c.l.b16 %v5491_v44  ;;  %v5349_v59 = vld [vmem:[#allocation2 + $0xac] sm:$0xf] }
 0x224   : > { %v4026_v56 = vpop.f32.mrf.mxu1  ;;  %v3851_v25 = vsel %vm7573_vm14, %v3849_v6, %v3850_v47  ;;  %v4910_v53 = vrot.slane %v4909_v27, 4  ;;  %v4920_v35 = vrot.slane %v4919_v46, 4  ;;  %v3705_v44 = vld [vmem:[#allocation2 + $0xac] sm:$0xf]  ;;  %v6517_v46 = vrot.slane %v3704_v29, 9 }
 0x225   : > { %v5774_v54 = vadd.f32 %v5668_v45, %v5252_v26  ;;  %v5058_v39 = vpack.c.b16 %v5038_v34, %v5037_v1  ;;  %v3915_v15 = vunpack.c.l.b16 %v3851_v25  ;;  %v5580_v6 = vpack.c.b16 %v5560_v40, %v5559_v55  ;;  %v3706_v25 = vld [vmem:[#allocation2 + $0xb0] sm:$0x1] }
 0x226   : > { %5707 = vmatmul.bf16.gmra.mxu0 %v5579_v37  ;;  %v4915_v34 = vsel %vm7544_vm10, %v4910_v53, %v4914_v21 }
 0x227   : > { %4065 = vmatmul.bf16.gmra.mxu1 %v3933_v62  ;;  %4444 = vmatmul.bf16.gmra.mxu2 %v6885_v9  ;;  %v5933_v5 = vadd.f32 %v5932_v10, %v5774_v54  ;;  %v5971_v49 = vmul.f32 %v5774_v54, %v5774_v54  ;;  %v4604_v62 = vld [vmem:[#allocation2 + $0xb0] sm:$0x1]  ;;  %v3848_v10 = vsel %vm7573_vm14, %v6516_v13, %v3847_v41  ;;  %v5494_v13 = vrot.slane %v5349_v59, 5 }
 0x228   : > { %v4922_v26 = vshll.u32 %v4604_v62, 16  ;;  %v3914_v11 = vunpack.c.l.b16 %v3848_v10  ;;  %v5497_v10 = vrot.slane %v5350_v24, 5 }
 0x229   : > { %v6002_v37 = vadd.f32 %v6001_v52, %v5971_v49  ;;  %v4129_v52 = vadd.f32 %v4026_v56, %v8103_v12  ;;  %v4605_v12 = vld [vmem:[#allocation2 + $0xb4] sm:$0xf]  ;;  %v5496_v55 = vrot.slane %v5494_v13, 4 }
 0x22a   : > { %v4405_v33 = vpop.f32.mrf.mxu2  ;;  %v5148_v8 = vpop.f32.mrf.mxu3  ;;  %v4924_v1 = vrot.slane %v4922_v26, 5  ;;  %v3934_v49 = vpack.c.b16 %v3915_v15, %v3914_v11  ;;  %v4930_v62 = vshll.u32 %v4605_v12, 16  ;;  %v3857_v11 = vrot.slane %v3706_v25, 5 }
 0x22b   : > { %v5670_v19 = vpop.f32.mrf.mxu0  ;;  %v5253_v45 = vadd.f32 %v5148_v8, %v4507_v60  ;;  %v4508_v61 = vadd.f32 %v4405_v33, %v4129_v52  ;;  %v6886_v60 = vld [vmem:[#allocation2 + $0xa8] sm:$0xff]  ;;  %v4927_v33 = vshrl.u32 %v4605_v12, 16  ;;  %v6740_v8 = vrot.slane %v5348_v0, 9  ;;  %v4607_v12 = vld [vmem:[#allocation2 + $0xbc] sm:$0x1] }
 0x22c   : > { %v4028_v9 = vpop.f32.mrf.mxu1  ;;  %v4932_v53 = vrot.slane %v4930_v62, 5  ;;  %v4946_v29 = vshll.u32 %v4607_v12, 16 }
 0x22d   : > { %v5775_v42 = vadd.f32 %v5670_v19, %v5253_v45  ;;  %v4925_v45 = vsel %vm7544_vm10, %v4920_v35, %v4924_v1  ;;  %v4130_v40 = vadd.f32 %v4028_v9, %v8196_v20  ;;  %v4929_v15 = vrot.slane %v4927_v33, 4 }
 0x22e   : > { %v5495_v1 = vsel %vm7573_vm14, %v6740_v8, %v5494_v13  ;;  %v5498_v20 = vsel %vm7573_vm14, %v5496_v55, %v5497_v10  ;;  %v5352_v8 = vld [vmem:[#allocation2 + $0xb8] sm:$0xf] }
 0x22f   : > { %v6991_v36 = vpack.c.bf16 %v5775_v42, %v5774_v54  ;;  %v5934_v41 = vadd.f32 %v5933_v5, %v5775_v42  ;;  %v5972_v30 = vmul.f32 %v5775_v42, %v5775_v42  ;;  %5190 = vmatmul.bf16.gmra.mxu3 %v5058_v39  ;;  %v4606_v54 = vld [vmem:[#allocation2 + $0xb8] sm:$0xf]  ;;  %v5039_v39 = vunpack.c.l.b16 %v4915_v34 }
 0x230   : > { %v4936_v52 = vshll.u32 %v4606_v54, 16  ;;  %v4940_v26 = vshrl.u32 %v4606_v54, 16 }
 0x231   : > { %7074 = vst [vmem:[%s8467_s27 + $0x10] sm:$0xff] %v6991_v36   ;;  %v6003_v56 = vadd.f32 %v6002_v37, %v5972_v30  ;;  %v3854_v37 = vrot.slane %v3705_v44, 5 }
 0x232   : > { %v4407_v47 = vpop.f32.mrf.mxu2  ;;  %v5151_v32 = vpop.f32.mrf.mxu3  ;;  %v8510_v0 = vrot.slane %v4936_v52, 5  ;;  %v4942_v24 = vrot.slane %v4940_v26, 4  ;;  %v5353_v52 = vld [vmem:[#allocation2 + $0xbc] sm:$0x1]  ;;  %v4948_v26 = vrot.slane %v4946_v29, 5 }
 0x233   : > { %v5673_v5 = vpop.f32.mrf.mxu0  ;;  %v5254_v27 = vadd.f32 %v5151_v32, %v4508_v61  ;;  %v3856_v42 = vrot.slane %v3854_v37, 4  ;;  %v4509_v30 = vadd.f32 %v4407_v47, %v4130_v40  ;;  %v5040_v61 = vunpack.c.l.b16 %v4925_v45 }
 0x234   : > { %v4031_v19 = vpop.f32.mrf.mxu1  ;;  %v5562_v32 = vunpack.c.l.b16 %v5498_v20  ;;  %v4943_v13 = vor.u32 %v4942_v24, %v8510_v0 }
 0x235   : > { %v5776_v21 = vadd.f32 %v5673_v5, %v5254_v27  ;;  %v3858_v47 = vsel %vm7573_vm14, %v3856_v42, %v3857_v11  ;;  %v5059_v54 = vpack.c.b16 %v5040_v61, %v5039_v39  ;;  %v5561_v5 = vunpack.c.l.b16 %v5495_v1  ;;  %v5351_v39 = vld [vmem:[#allocation2 + $0xb4] sm:$0xe]  ;;  %v4608_v11 = vld [vmem:[#allocation2 + $0xc0] sm:$0xf]  ;;  %v3708_v1 = vld [vmem:[#allocation2 + $0xb8] sm:$0xf] }
 0x236   : > { %5712 = vmatmul.bf16.gmra.mxu0 %v5580_v6  ;;  %v4131_v33 = vadd.f32 %v4031_v19, %v8206_v4  ;;  %v3917_v27 = vunpack.c.l.b16 %v3858_v47  ;;  %v5501_v42 = vrot.slane %v5352_v8, 5  ;;  %v6741_v24 = vrot.slane %v5351_v39, 9 }
 0x237   : > { %4070 = vmatmul.bf16.gmra.mxu1 %v3934_v49  ;;  %4449 = vmatmul.bf16.gmra.mxu2 %v6886_v60  ;;  %v5935_v59 = vadd.f32 %v5934_v41, %v5776_v21  ;;  %v5973_v36 = vmul.f32 %v5776_v21, %v5776_v21  ;;  %v3855_v41 = vsel %vm7573_vm14, %v6517_v46, %v3854_v37  ;;  %v4944_v46 = vrot.slane %v4943_v13, 4 }
 0x238   : > { %v4933_v60 = vor.u32 %v4932_v53, %v4929_v15  ;;  %v3916_v62 = vunpack.c.l.b16 %v3855_v41  ;;  %v5581_v40 = vpack.c.b16 %v5562_v32, %v5561_v5  ;;  %v4609_v53 = vld [vmem:[#allocation2 + $0xc4] sm:$0xf]  ;;  %v3709_v41 = vld [vmem:[#allocation2 + $0xbc] sm:$0x1] }
 0x239   : > { %v6004_v35 = vadd.f32 %v6003_v56, %v5973_v36  ;;  %v4951_v36 = vshrl.u32 %v4608_v11, 16  ;;  %v4964_v29 = vshrl.u32 %v4609_v53, 16 }
 0x23a   : > { %v4410_v9 = vpop.f32.mrf.mxu2  ;;  %v5153_v49 = vpop.f32.mrf.mxu3  ;;  %v4934_v10 = vrot.slane %v4933_v60, 4  ;;  %v3935_v19 = vpack.c.b16 %v3917_v27, %v3916_v62  ;;  %v4949_v60 = vsel %vm7544_vm10, %v4944_v46, %v4948_v26  ;;  %v3864_v62 = vrot.slane %v3709_v41, 5 }
 0x23b   : > { %v5675_v6 = vpop.f32.mrf.mxu0  ;;  %v5255_v34 = vadd.f32 %v5153_v49, %v4509_v30  ;;  %v4510_v55 = vadd.f32 %v4410_v9, %v4131_v33  ;;  %v4954_v30 = vshll.u32 %v4608_v11, 16  ;;  %v3707_v49 = vld [vmem:[#allocation2 + $0xb4] sm:$0xe]  ;;  %v4953_v32 = vrot.slane %v4951_v36, 4 }
 0x23c   : > { %v4033_v56 = vpop.f32.mrf.mxu1  ;;  %v4939_v12 = vsel %vm7544_vm10, %v4934_v10, %v8510_v0  ;;  %v6518_v0 = vrot.slane %v3707_v49, 9 }
 0x23d   : > { %v5777_v44 = vadd.f32 %v5675_v6, %v5255_v34  ;;  %v5504_v6 = vrot.slane %v5353_v52, 5  ;;  %v4132_v47 = vadd.f32 %v4033_v56, %v8208_v50  ;;  %v5503_v34 = vrot.slane %v5501_v42, 4 }
 0x23e   : > { %v4956_v13 = vrot.slane %v4954_v30, 5  ;;  %v5042_v50 = vunpack.c.l.b16 %v4949_v60  ;;  %v5502_v56 = vsel %vm7573_vm14, %v6741_v24, %v5501_v42  ;;  %v5356_v60 = vld [vmem:[#allocation2 + $0xc8] sm:$0x1] }
 0x23f   : > { %v6996_v25 = vpack.c.bf16 %v5777_v44, %v5776_v21  ;;  %v5936_v37 = vadd.f32 %v5935_v59, %v5777_v44  ;;  %v5974_v45 = vmul.f32 %v5777_v44, %v5777_v44  ;;  %5195 = vmatmul.bf16.gmra.mxu3 %v5059_v54  ;;  %v6887_v59 = vld [vmem:[#allocation2 + $0xb4] sm:$0xff]  ;;  %v4960_v54 = vshll.u32 %v4609_v53, 16 }
 0x240   : > { %v5041_v44 = vunpack.c.l.b16 %v4939_v12  ;;  %v5505_v39 = vsel %vm7573_vm14, %v5503_v34, %v5504_v6  ;;  %v4957_v46 = vor.u32 %v4956_v13, %v4953_v32  ;;  %v5563_v42 = vunpack.c.l.b16 %v5502_v56  ;;  %v5355_v12 = vld [vmem:[#allocation2 + $0xc4] sm:$0xf] }
 0x241   : > { %7075 = vst [vmem:[%s8467_s27 + $0x18] sm:$0xff] %v6996_v25   ;;  %v6005_v15 = vadd.f32 %v6004_v35, %v5974_v45  ;;  %v3861_v35 = vrot.slane %v3708_v1, 5  ;;  %v4962_v25 = vrot.slane %v4960_v54, 5  ;;  %v4966_v45 = vrot.slane %v4964_v29, 4 }
 0x242   : > { %v4412_v4 = vpop.f32.mrf.mxu2  ;;  %v5156_v21 = vpop.f32.mrf.mxu3  ;;  %v5060_v53 = vpack.c.b16 %v5042_v50, %v5041_v44  ;;  %v5564_v30 = vunpack.c.l.b16 %v5505_v39  ;;  %v5508_v32 = vrot.slane %v5355_v12, 5 }
 0x243   : > { %v5678_v61 = vpop.f32.mrf.mxu0  ;;  %v5256_v20 = vadd.f32 %v5156_v21, %v4510_v55  ;;  %v3863_v33 = vrot.slane %v3861_v35, 4  ;;  %v4511_v10 = vadd.f32 %v4412_v4, %v4132_v47  ;;  %v5354_v47 = vld [vmem:[#allocation2 + $0xc0] sm:$0xe] }
 0x244   : > { %v4036_v9 = vpop.f32.mrf.mxu1  ;;  %v5582_v13 = vpack.c.b16 %v5564_v30, %v5563_v42 }
 0x245   : > { %v5778_v5 = vadd.f32 %v5678_v61, %v5256_v20  ;;  %v3865_v4 = vsel %vm7573_vm14, %v3863_v33, %v3864_v62  ;;  %v4967_v61 = vor.u32 %v4966_v45, %v4962_v25  ;;  %v4958_v20 = vrot.slane %v4957_v46, 4  ;;  %v3712_v46 = vld [vmem:[#allocation2 + $0xc8] sm:$0x1] }
 0x246   : > { %5717 = vmatmul.bf16.gmra.mxu0 %v5581_v40  ;;  %v4610_v40 = vld [vmem:[#allocation2 + $0xc8] sm:$0x1]  ;;  %v3919_v1 = vunpack.c.l.b16 %v3865_v4  ;;  %v3871_v30 = vrot.slane %v3712_v46, 5 }
 0x247   : > { %4075 = vmatmul.bf16.gmra.mxu1 %v3935_v19  ;;  %4454 = vmatmul.bf16.gmra.mxu2 %v6887_v59  ;;  %v5937_v27 = vadd.f32 %v5936_v37, %v5778_v5  ;;  %v5975_v8 = vmul.f32 %v5778_v5, %v5778_v5  ;;  %v3862_v37 = vsel %vm7573_vm14, %v6518_v0, %v3861_v35  ;;  %v4970_v21 = vshll.u32 %v4610_v40, 16  ;;  %v6888_v0 = vld [vmem:[#allocation2 + $0xc0] sm:$0xff] }
 0x248   : > { %v3918_v24 = vunpack.c.l.b16 %v3862_v37  ;;  %v4968_v34 = vrot.slane %v4967_v61, 4  ;;  %v4963_v33 = vsel %vm7544_vm10, %v4958_v20, %v4962_v25  ;;  %v5511_v40 = vrot.slane %v5356_v60, 5 }
 0x249   : > { %v6006_v55 = vadd.f32 %v6005_v15, %v5975_v8  ;;  %v4133_v15 = vadd.f32 %v4036_v9, %v8214_v23  ;;  %v4972_v54 = vrot.slane %v4970_v21, 5  ;;  %v4611_v23 = vld [vmem:[#allocation2 + $0xcc] sm:$0xf]  ;;  %v3710_v8 = vld [vmem:[#allocation2 + $0xc0] sm:$0xe]  ;;  %v5510_v37 = vrot.slane %v5508_v32, 4 }
 0x24a   : > { %v4415_v52 = vpop.f32.mrf.mxu2  ;;  %v5158_v11 = vpop.f32.mrf.mxu3  ;;  %v3936_v44 = vpack.c.b16 %v3919_v1, %v3918_v24  ;;  %v4975_v50 = vshrl.u32 %v4611_v23, 16  ;;  %v4978_v56 = vshll.u32 %v4611_v23, 16 }
 0x24b   : > { %v5680_v26 = vpop.f32.mrf.mxu0  ;;  %v5257_v19 = vadd.f32 %v5158_v11, %v4511_v10  ;;  %v4512_v35 = vadd.f32 %v4415_v52, %v4133_v15  ;;  %v3711_v10 = vld [vmem:[#allocation2 + $0xc4] sm:$0xf]  ;;  %v6742_v52 = vrot.slane %v5354_v47, 9  ;;  %v5043_v11 = vunpack.c.l.b16 %v4963_v33  ;;  %v4613_v47 = vld [vmem:[#allocation2 + $0xd4] sm:$0x1] }
 0x24c   : > { %v4038_v36 = vpop.f32.mrf.mxu1  ;;  %v4977_v61 = vrot.slane %v4975_v50, 4  ;;  %v4980_v21 = vrot.slane %v4978_v56, 5  ;;  %v4994_v33 = vshll.u32 %v4613_v47, 16 }
 0x24d   : > { %v5779_v59 = vadd.f32 %v5680_v26, %v5257_v19  ;;  %v4973_v26 = vsel %vm7544_vm10, %v4968_v34, %v4972_v54  ;;  %v4134_v19 = vadd.f32 %v4038_v36, %v8232_v17  ;;  %v5512_v17 = vsel %vm7573_vm14, %v5510_v37, %v5511_v40  ;;  %v5358_v40 = vld [vmem:[#allocation2 + $0xd0] sm:$0xf] }
 0x24e   : > { %v5044_v20 = vunpack.c.l.b16 %v4973_v26  ;;  %v4981_v23 = vor.u32 %v4980_v21, %v4977_v61  ;;  %v5359_v61 = vld [vmem:[#allocation2 + $0xd4] sm:$0x1] }
 0x24f   : > { %v7001_v6 = vpack.c.bf16 %v5779_v59, %v5778_v5  ;;  %v5938_v49 = vadd.f32 %v5937_v27, %v5779_v59  ;;  %v5976_v41 = vmul.f32 %v5779_v59, %v5779_v59  ;;  %5200 = vmatmul.bf16.gmra.mxu3 %v5060_v53  ;;  %v4612_v5 = vld [vmem:[#allocation2 + $0xd0] sm:$0xf]  ;;  %v6519_v53 = vrot.slane %v3710_v8, 9 }
 0x250   : > { %v4984_v4 = vshll.u32 %v4612_v5, 16  ;;  %v4988_v42 = vshrl.u32 %v4612_v5, 16 }
 0x251   : > { %7076 = vst [vmem:[%s8467_s27 + $0x20] sm:$0xff] %v7001_v6   ;;  %v6007_v9 = vadd.f32 %v6006_v55, %v5976_v41  ;;  %v3868_v55 = vrot.slane %v3711_v10, 5  ;;  %v4982_v10 = vrot.slane %v4981_v23, 4 }
 0x252   : > { %v4417_v29 = vpop.f32.mrf.mxu2  ;;  %v5161_v27 = vpop.f32.mrf.mxu3  ;;  %v4986_v12 = vrot.slane %v4984_v4, 5  ;;  %v4990_v6 = vrot.slane %v4988_v42, 4  ;;  %v6889_v42 = vld [vmem:[#allocation2 + $0xcc] sm:$0xff] }
 0x253   : > { %v5683_v62 = vpop.f32.mrf.mxu0  ;;  %v5258_v45 = vadd.f32 %v5161_v27, %v4512_v35  ;;  %v3870_v15 = vrot.slane %v3868_v55, 4  ;;  %v4513_v1 = vadd.f32 %v4417_v29, %v4134_v19  ;;  %v5509_v35 = vsel %vm7573_vm14, %v6742_v52, %v5508_v32 }
 0x254   : > { %v4041_v39 = vpop.f32.mrf.mxu1  ;;  %v3869_v54 = vsel %vm7573_vm14, %v6519_v53, %v3868_v55  ;;  %v5061_v29 = vpack.c.b16 %v5044_v20, %v5043_v11  ;;  %v4991_v32 = vor.u32 %v4990_v6, %v4986_v12  ;;  %v4996_v55 = vrot.slane %v4994_v33, 5 }
 0x255   : > { %v5780_v25 = vadd.f32 %v5683_v62, %v5258_v45  ;;  %v4135_v62 = vadd.f32 %v4041_v39, %v8234_v7  ;;  %v3920_v27 = vunpack.c.l.b16 %v3869_v54  ;;  %v5515_v7 = vrot.slane %v5358_v40, 5 }
 0x256   : > { %5722 = vmatmul.bf16.gmra.mxu0 %v5582_v13  ;;  %v4992_v46 = vrot.slane %v4991_v32, 4 }
 0x257   : > { %4080 = vmatmul.bf16.gmra.mxu1 %v3936_v44  ;;  %4459 = vmatmul.bf16.gmra.mxu2 %v6888_v0  ;;  %v5939_v59 = vadd.f32 %v5938_v49, %v5780_v25  ;;  %v5977_v24 = vmul.f32 %v5780_v25, %v5780_v25  ;;  %v3872_v49 = vsel %vm7573_vm14, %v3870_v15, %v3871_v30  ;;  %v5565_v44 = vunpack.c.l.b16 %v5509_v35  ;;  %v5357_v30 = vld [vmem:[#allocation2 + $0xcc] sm:$0xe] }
 0x258   : > { %v5566_v0 = vunpack.c.l.b16 %v5512_v17  ;;  %v3921_v8 = vunpack.c.l.b16 %v3872_v49  ;;  %v4997_v21 = vsel %vm7544_vm10, %v4992_v46, %v4996_v55  ;;  %v6743_v20 = vrot.slane %v5357_v30, 9 }
 0x259   : > { %v6008_v41 = vadd.f32 %v6007_v9, %v5977_v24  ;;  %v5517_v6 = vrot.slane %v5515_v7, 4  ;;  %v5046_v47 = vunpack.c.l.b16 %v4997_v21 }
 0x25a   : > { %v4420_v36 = vpop.f32.mrf.mxu2  ;;  %v5163_v34 = vpop.f32.mrf.mxu3  ;;  %v5583_v11 = vpack.c.b16 %v5566_v0, %v5565_v44  ;;  %v3937_v4 = vpack.c.b16 %v3921_v8, %v3920_v27  ;;  %v5516_v54 = vsel %vm7573_vm14, %v6743_v20, %v5515_v7 }
 0x25b   : > { %v5685_v60 = vpop.f32.mrf.mxu0  ;;  %v5259_v13 = vadd.f32 %v5163_v34, %v4513_v1  ;;  %v4514_v52 = vadd.f32 %v4420_v36, %v4135_v62  ;;  %v5567_v44 = vunpack.c.l.b16 %v5516_v54 }
 0x25c   : > { %v4043_v9 = vpop.f32.mrf.mxu1 }
 0x25d   : > { %v5781_v5 = vadd.f32 %v5685_v60, %v5259_v13  ;;  %v4136_v24 = vadd.f32 %v4043_v9, %v8245_v51 }
 0x25f   : > { %v7006_v50 = vpack.c.bf16 %v5781_v5, %v5780_v25  ;;  %v5940_v56 = vadd.f32 %v5939_v59, %v5781_v5  ;;  %v5978_v45 = vmul.f32 %v5781_v5, %v5781_v5  ;;  %5205 = vmatmul.bf16.gmra.mxu3 %v5061_v29  ;;  %v4987_v25 = vsel %vm7544_vm10, %v4982_v10, %v4986_v12 }
 0x260   : > { %v5045_v1 = vunpack.c.l.b16 %v4987_v25 }
 0x261   : > { %7077 = vst [vmem:[%s8467_s27 + $0x28] sm:$0xff] %v7006_v50   ;;  %v6009_v26 = vadd.f32 %v6008_v41, %v5978_v45  ;;  %v5518_v41 = vrot.slane %v5359_v61, 5 }
 0x262   : > { %v4422_v37 = vpop.f32.mrf.mxu2  ;;  %v5166_v53 = vpop.f32.mrf.mxu3  ;;  %v5062_v23 = vpack.c.b16 %v5046_v47, %v5045_v1 }
 0x263   : > { %v5688_v19 = vpop.f32.mrf.mxu0  ;;  %v5260_v39 = vadd.f32 %v5166_v53, %v4514_v52  ;;  %v4515_v36 = vadd.f32 %v4422_v37, %v4136_v24  ;;  %v5519_v51 = vsel %vm7573_vm14, %v5517_v6, %v5518_v41 }
 0x264   : > { %v4046_v15 = vpop.f32.mrf.mxu1  ;;  %v5568_v0 = vunpack.c.l.b16 %v5519_v51 }
 0x265   : > { %v5782_v59 = vadd.f32 %v5688_v19, %v5260_v39  ;;  %v4137_v9 = vadd.f32 %v4046_v15, %v8252_v28 }
 0x266   : > { %5727 = vmatmul.bf16.gmra.mxu0 %v5583_v11  ;;  %v5584_v8 = vpack.c.b16 %v5568_v0, %v5567_v44 }
 0x267   : > { %4085 = vmatmul.bf16.gmra.mxu1 %v3937_v4  ;;  %4464 = vmatmul.bf16.gmra.mxu2 %v6889_v42  ;;  %v5941_v35 = vadd.f32 %v5940_v56, %v5782_v59  ;;  %v5979_v17 = vmul.f32 %v5782_v59, %v5782_v59 }
 0x269   : > { %v6010_v12 = vadd.f32 %v6009_v26, %v5979_v17 }
 0x26a   : > { %v4425_v60 = vpop.f32.mrf.mxu2  ;;  %v5168_v16 = vpop.f32.mrf.mxu3 }
 0x26b   : > { %v5690_v34 = vpop.f32.mrf.mxu0  ;;  %v5261_v49 = vadd.f32 %v5168_v16, %v4515_v36  ;;  %v4516_v62 = vadd.f32 %v4425_v60, %v4137_v9 }
 0x26c   : > { %v4048_v13 = vpop.f32.mrf.mxu1 }
 0x26d   : > { %v5783_v29 = vadd.f32 %v5690_v34, %v5261_v49  ;;  %v4138_v40 = vadd.f32 %v4048_v13, %v8266_v31 }
 0x26f   : > { %v7011_v32 = vpack.c.bf16 %v5783_v29, %v5782_v59  ;;  %v5942_v33 = vadd.f32 %v5941_v35, %v5783_v29  ;;  %v5980_v5 = vmul.f32 %v5783_v29, %v5783_v29  ;;  %5210 = vmatmul.bf16.gmra.mxu3 %v5062_v23 }
 0x271   : > { %7078 = vst [vmem:[%s8467_s27 + $0x30] sm:$0xff] %v7011_v32   ;;  %v6011_v27 = vadd.f32 %v6010_v12, %v5980_v5 }
 0x272   : > { %v4427_v10 = vpop.f32.mrf.mxu2  ;;  %v5171_v43 = vpop.f32.mrf.mxu3 }
 0x273   : > { %v5693_v50 = vpop.f32.mrf.mxu0  ;;  %v5262_v56 = vadd.f32 %v5171_v43, %v4516_v62  ;;  %v4517_v55 = vadd.f32 %v4427_v10, %v4138_v40 }
 0x274   : > { %v4051_v45 = vpop.f32.mrf.mxu1 }
 0x275   : > { %v5784_v52 = vadd.f32 %v5693_v50, %v5262_v56  ;;  %v4139_v7 = vadd.f32 %v4051_v45, %v8276_v38 }
 0x276   : > { %5732 = vmatmul.bf16.gmra.mxu0 %v5584_v8 }
 0x277   : > { %v5943_v28 = vadd.f32 %v5942_v33, %v5784_v52  ;;  %v5981_v46 = vmul.f32 %v5784_v52, %v5784_v52 }
 0x279   : > { %v6012_v26 = vadd.f32 %v6011_v27, %v5981_v46 }
 0x27a   : > { %v4430_v11 = vpop.f32.mrf.mxu2  ;;  %v5173_v4 = vpop.f32.mrf.mxu3 }
 0x27b   : > { %v5695_v37 = vpop.f32.mrf.mxu0  ;;  %v5263_v19 = vadd.f32 %v5173_v4, %v4517_v55  ;;  %v4518_v30 = vadd.f32 %v4430_v11, %v4139_v7 }
 0x27c   : > { %v4053_v53 = vpop.f32.mrf.mxu1 }
 0x27d   : > { %v5785_v42 = vadd.f32 %v5695_v37, %v5263_v19  ;;  %v4140_v6 = vadd.f32 %v4053_v53, %v8288_v18 }
 0x27f   : > { %v7016_v39 = vpack.c.bf16 %v5785_v42, %v5784_v52  ;;  %v5944_v15 = vadd.f32 %v5943_v28, %v5785_v42  ;;  %v5982_v25 = vmul.f32 %v5785_v42, %v5785_v42 }
 0x281   : > { %7079 = vst [vmem:[%s8467_s27 + $0x38] sm:$0xff] %v7016_v39   ;;  %v6013_v61 = vadd.f32 %v6012_v26, %v5982_v25 }
 0x282   : > { %v4432_v31 = vpop.f32.mrf.mxu2  ;;  %v5176_v59 = vpop.f32.mrf.mxu3 }
 0x283   : > { %v5698_v21 = vpop.f32.mrf.mxu0  ;;  %v5264_v24 = vadd.f32 %v5176_v59, %v4518_v30  ;;  %v4519_v17 = vadd.f32 %v4432_v31, %v4140_v6 }
 0x284   : > { %v4056_v1 = vpop.f32.mrf.mxu1 }
 0x285   : > { %v5786_v20 = vadd.f32 %v5698_v21, %v5264_v24  ;;  %v4141_v54 = vadd.f32 %v4056_v1, %v8296_v48 }
 0x287   : > { %v5945_v41 = vadd.f32 %v5944_v15, %v5786_v20  ;;  %v5983_v35 = vmul.f32 %v5786_v20, %v5786_v20 }
 0x289   : > { %v6014_v36 = vadd.f32 %v6013_v61, %v5983_v35 }
 0x28a   : > { %v4435_v38 = vpop.f32.mrf.mxu2  ;;  %v5178_v12 = vpop.f32.mrf.mxu3 }
 0x28b   : > { %v5700_v47 = vpop.f32.mrf.mxu0  ;;  %v5265_v60 = vadd.f32 %v5178_v12, %v4519_v17  ;;  %v4520_v13 = vadd.f32 %v4435_v38, %v4141_v54 }
 0x28c   : > { %v4058_v34 = vpop.f32.mrf.mxu1 }
 0x28d   : > { %v5787_v16 = vadd.f32 %v5700_v47, %v5265_v60  ;;  %v4142_v5 = vadd.f32 %v4058_v34, %v8310_v63 }
 0x28f   : > { %v7021_v51 = vpack.c.bf16 %v5787_v16, %v5786_v20  ;;  %v5946_v49 = vadd.f32 %v5945_v41, %v5787_v16  ;;  %v5984_v23 = vmul.f32 %v5787_v16, %v5787_v16 }
 0x291   : > { %7080 = vst [vmem:[%s8467_s27 + $0x40] sm:$0xff] %v7021_v51   ;;  %v6015_v29 = vadd.f32 %v6014_v36, %v5984_v23 }
 0x292   : > { %v4437_v18 = vpop.f32.mrf.mxu2  ;;  %v5181_v44 = vpop.f32.mrf.mxu3 }
 0x293   : > { %v5703_v9 = vpop.f32.mrf.mxu0  ;;  %v5266_v0 = vadd.f32 %v5181_v44, %v4520_v13  ;;  %v4521_v8 = vadd.f32 %v4437_v18, %v4142_v5 }
 0x294   : > { %v4061_v32 = vpop.f32.mrf.mxu1 }
 0x295   : > { %v5788_v33 = vadd.f32 %v5703_v9, %v5266_v0  ;;  %v4143_v40 = vadd.f32 %v4061_v32, %v8320_v14 }
 0x297   : > { %v5947_v62 = vadd.f32 %v5946_v49, %v5788_v33  ;;  %v5985_v27 = vmul.f32 %v5788_v33, %v5788_v33 }
 0x299   : > { %v6016_v10 = vadd.f32 %v6015_v29, %v5985_v27 }
 0x29a   : > { %v4440_v48 = vpop.f32.mrf.mxu2  ;;  %v5183_v43 = vpop.f32.mrf.mxu3 }
 0x29b   : > { %v5705_v50 = vpop.f32.mrf.mxu0  ;;  %v5267_v56 = vadd.f32 %v5183_v43, %v4521_v8  ;;  %v4522_v26 = vadd.f32 %v4440_v48, %v4143_v40 }
 0x29c   : > { %v4063_v45 = vpop.f32.mrf.mxu1 }
 0x29d   : > { %v5789_v52 = vadd.f32 %v5705_v50, %v5267_v56  ;;  %v4144_v7 = vadd.f32 %v4063_v45, %v8332_v2 }
 0x29f   : > { %v7026_v28 = vpack.c.bf16 %v5789_v52, %v5788_v33  ;;  %v5948_v46 = vadd.f32 %v5947_v62, %v5789_v52  ;;  %v5986_v55 = vmul.f32 %v5789_v52, %v5789_v52 }
 0x2a1   : > { %7081 = vst [vmem:[%s8467_s27 + $0x48] sm:$0xff] %v7026_v28   ;;  %v6017_v11 = vadd.f32 %v6016_v10, %v5986_v55 }
 0x2a2   : > { %v4442_v63 = vpop.f32.mrf.mxu2  ;;  %v5186_v4 = vpop.f32.mrf.mxu3 }
 0x2a3   : > { %v5708_v37 = vpop.f32.mrf.mxu0  ;;  %v5268_v19 = vadd.f32 %v5186_v4, %v4522_v26  ;;  %v4523_v25 = vadd.f32 %v4442_v63, %v4144_v7  ;;  %v8647_v63 = vld [vmem:[#allocation7_spill] sm:$0xff] }
 0x2a4   : > { %v4066_v53 = vpop.f32.mrf.mxu1 }
 0x2a5   : > { %v5790_v42 = vadd.f32 %v5708_v37, %v5268_v19  ;;  %v4145_v1 = vadd.f32 %v4066_v53, %v8340_v57 }
 0x2a7   : > { %v5949_v39 = vadd.f32 %v5948_v46, %v5790_v42  ;;  %v5987_v15 = vmul.f32 %v5790_v42, %v5790_v42 }
 0x2a9   : > { %v6018_v30 = vadd.f32 %v6017_v11, %v5987_v15 }
 0x2aa   : > { %v4445_v14 = vpop.f32.mrf.mxu2  ;;  %v5188_v31 = vpop.f32.mrf.mxu3 }
 0x2ab   : > { %v5710_v61 = vpop.f32.mrf.mxu0  ;;  %v5269_v21 = vadd.f32 %v5188_v31, %v4523_v25  ;;  %v4524_v35 = vadd.f32 %v4445_v14, %v4145_v1 }
 0x2ac   : > { %v4068_v59 = vpop.f32.mrf.mxu1 }
 0x2ad   : > { %v5791_v24 = vadd.f32 %v5710_v61, %v5269_v21  ;;  %v4146_v34 = vadd.f32 %v4068_v59, %v8354_v22  ;;  %v8648_v61 = vld [vmem:[#allocation9_spill] sm:$0xff] }
 0x2af   : > { %v7031_v20 = vpack.c.bf16 %v5791_v24, %v5790_v42  ;;  %v5950_v6 = vadd.f32 %v5949_v39, %v5791_v24  ;;  %v5988_v41 = vmul.f32 %v5791_v24, %v5791_v24 }
 0x2b1   : > { %7082 = vst [vmem:[%s8467_s27 + $0x50] sm:$0xff] %v7031_v20   ;;  %v6019_v17 = vadd.f32 %v6018_v30, %v5988_v41 }
 0x2b2   : > { %v4447_v2 = vpop.f32.mrf.mxu2  ;;  %v5191_v38 = vpop.f32.mrf.mxu3 }
 0x2b3   : > { %v5713_v36 = vpop.f32.mrf.mxu0  ;;  %v5270_v47 = vadd.f32 %v5191_v38, %v4524_v35  ;;  %v4525_v51 = vadd.f32 %v4447_v2, %v4146_v34  ;;  %v8649_v2 = vld [vmem:[#allocation11_spill] sm:$0xff] }
 0x2b4   : > { %v4071_v12 = vpop.f32.mrf.mxu1 }
 0x2b5   : > { %v5792_v60 = vadd.f32 %v5713_v36, %v5270_v47  ;;  %v4147_v44 = vadd.f32 %v4071_v12, %v8364_v58 }
 0x2b7   : > { %v5951_v16 = vadd.f32 %v5950_v6, %v5792_v60  ;;  %v5989_v54 = vmul.f32 %v5792_v60, %v5792_v60 }
 0x2b9   : > { %v6020_v49 = vadd.f32 %v6019_v17, %v5989_v54 }
 0x2ba   : > { %v4450_v57 = vpop.f32.mrf.mxu2  ;;  %v5193_v13 = vpop.f32.mrf.mxu3 }
 0x2bb   : > { %v5715_v23 = vpop.f32.mrf.mxu0  ;;  %v5271_v29 = vadd.f32 %v5193_v13, %v4525_v51  ;;  %v4526_v5 = vadd.f32 %v4450_v57, %v4147_v44  ;;  %v8650_v13 = vld [vmem:[#allocation13_spill] sm:$0xff] }
 0x2bc   : > { %v4073_v18 = vpop.f32.mrf.mxu1 }
 0x2bd   : > { %v5793_v9 = vadd.f32 %v5715_v23, %v5271_v29  ;;  %v4148_v43 = vadd.f32 %v4073_v18, %v8376_v3 }
 0x2bf   : > { %v7036_v0 = vpack.c.bf16 %v5793_v9, %v5792_v60  ;;  %v5952_v32 = vadd.f32 %v5951_v16, %v5793_v9  ;;  %v5990_v33 = vmul.f32 %v5793_v9, %v5793_v9 }
 0x2c1   : > { %7083 = vst [vmem:[%s8467_s27 + $0x58] sm:$0xff] %v7036_v0   ;;  %v6021_v62 = vadd.f32 %v6020_v49, %v5990_v33 }
 0x2c2   : > { %v4452_v22 = vpop.f32.mrf.mxu2  ;;  %v5196_v8 = vpop.f32.mrf.mxu3 }
 0x2c3   : > { %v5718_v27 = vpop.f32.mrf.mxu0  ;;  %v5272_v10 = vadd.f32 %v5196_v8, %v4526_v5  ;;  %v4527_v52 = vadd.f32 %v4452_v22, %v4148_v43  ;;  %v8651_v8 = vld [vmem:[#allocation14_spill] sm:$0xff] }
 0x2c4   : > { %v4076_v48 = vpop.f32.mrf.mxu1 }
 0x2c5   : > { %v5794_v50 = vadd.f32 %v5718_v27, %v5272_v10  ;;  %v4149_v37 = vadd.f32 %v4076_v48, %v8647_v63 }
 0x2c7   : > { %v5953_v56 = vadd.f32 %v5952_v32, %v5794_v50  ;;  %v5991_v45 = vmul.f32 %v5794_v50, %v5794_v50 }
 0x2c9   : > { %v6022_v40 = vadd.f32 %v6021_v62, %v5991_v45 }
 0x2ca   : > { %v4455_v58 = vpop.f32.mrf.mxu2  ;;  %v5198_v46 = vpop.f32.mrf.mxu3 }
 0x2cb   : > { %v5720_v28 = vpop.f32.mrf.mxu0  ;;  %v5273_v55 = vadd.f32 %v5198_v46, %v4527_v52  ;;  %v4528_v42 = vadd.f32 %v4455_v58, %v4149_v37 }
 0x2cc   : > { %v4078_v26 = vpop.f32.mrf.mxu1 }
 0x2cd   : > { %v5795_v11 = vadd.f32 %v5720_v28, %v5273_v55  ;;  %v4150_v31 = vadd.f32 %v4078_v26, %v8648_v61  ;;  %v8652_v26 = vld [vmem:[#allocation4_spill] sm:$0xff] }
 0x2cf   : > { %v7041_v4 = vpack.c.bf16 %v5795_v11, %v5794_v50  ;;  %v5954_v19 = vadd.f32 %v5953_v56, %v5795_v11  ;;  %v5992_v53 = vmul.f32 %v5795_v11, %v5795_v11 }
 0x2d1   : > { %7084 = vst [vmem:[%s8467_s27 + $0x60] sm:$0xff] %v7041_v4   ;;  %v6023_v7 = vadd.f32 %v6022_v40, %v5992_v53 }
 0x2d2   : > { %v4457_v3 = vpop.f32.mrf.mxu2  ;;  %v5201_v15 = vpop.f32.mrf.mxu3 }
 0x2d3   : > { %v5723_v39 = vpop.f32.mrf.mxu0  ;;  %v5274_v25 = vadd.f32 %v5201_v15, %v4528_v42  ;;  %v4529_v24 = vadd.f32 %v4457_v3, %v4150_v31 }
 0x2d4   : > { %v4081_v30 = vpop.f32.mrf.mxu1 }
 0x2d5   : > { %v5796_v14 = vadd.f32 %v5723_v39, %v5274_v25  ;;  %v4151_v36 = vadd.f32 %v4081_v30, %v8649_v2 }
 0x2d7   : > { %v5955_v21 = vadd.f32 %v5954_v19, %v5796_v14  ;;  %v5993_v59 = vmul.f32 %v5796_v14, %v5796_v14 }
 0x2d9   : > { %v6024_v1 = vadd.f32 %v6023_v7, %v5993_v59 }
 0x2da   : > { %v4460_v20 = vpop.f32.mrf.mxu2  ;;  %v5203_v41 = vpop.f32.mrf.mxu3 }
 0x2db   : > { %v5725_v6 = vpop.f32.mrf.mxu0  ;;  %v5275_v35 = vadd.f32 %v5203_v41, %v4529_v24  ;;  %v4530_v34 = vadd.f32 %v4460_v20, %v4151_v36 }
 0x2dc   : > { %v4083_v38 = vpop.f32.mrf.mxu1 }
 0x2dd   : > { %v5797_v17 = vadd.f32 %v5725_v6, %v5275_v35  ;;  %v4152_v29 = vadd.f32 %v4083_v38, %v8650_v13 }
 0x2df   : > { %v7046_v47 = vpack.c.bf16 %v5797_v17, %v5796_v14  ;;  %v5956_v12 = vadd.f32 %v5955_v21, %v5797_v17  ;;  %v5994_v60 = vmul.f32 %v5797_v17, %v5797_v17 }
 0x2e1   : > { %7085 = vst [vmem:[%s8467_s27 + $0x68] sm:$0xff] %v7046_v47   ;;  %v6025_v16 = vadd.f32 %v6024_v1, %v5994_v60 }
 0x2e2   : > { %v4462_v54 = vpop.f32.mrf.mxu2  ;;  %v5206_v49 = vpop.f32.mrf.mxu3 }
 0x2e3   : > { %v5728_v51 = vpop.f32.mrf.mxu0  ;;  %v5276_v57 = vadd.f32 %v5206_v49, %v4530_v34  ;;  %v4531_v44 = vadd.f32 %v4462_v54, %v4152_v29 }
 0x2e4   : > { %v4086_v0 = vpop.f32.mrf.mxu1 }
 0x2e5   : > { %v5798_v23 = vadd.f32 %v5728_v51, %v5276_v57  ;;  %v4153_v10 = vadd.f32 %v4086_v0, %v8651_v8 }
 0x2e7   : > { %v5957_v18 = vadd.f32 %v5956_v12, %v5798_v23  ;;  %v5995_v9 = vmul.f32 %v5798_v23, %v5798_v23 }
 0x2e9   : > { %v6026_v32 = vadd.f32 %v6025_v16, %v5995_v9 }
 0x2ea   : > { %v4465_v33 = vpop.f32.mrf.mxu2  ;;  %v5208_v62 = vpop.f32.mrf.mxu3 }
 0x2eb   : > { %v5730_v5 = vpop.f32.mrf.mxu0  ;;  %v5277_v22 = vadd.f32 %v5208_v62, %v4531_v44  ;;  %v4532_v56 = vadd.f32 %v4465_v33, %v4153_v10 }
 0x2ec   : > { %v4088_v52 = vpop.f32.mrf.mxu1 }
 0x2ed   : > { %v5799_v27 = vadd.f32 %v5730_v5, %v5277_v22  ;;  %v4154_v11 = vadd.f32 %v4088_v52, %v8652_v26 }
 0x2ef   : > { %v7051_v48 = vpack.c.bf16 %v5799_v27, %v5798_v23  ;;  %v5958_v50 = vadd.f32 %v5957_v18, %v5799_v27  ;;  %v5996_v43 = vmul.f32 %v5799_v27, %v5799_v27 }
 0x2f1   : > { %7086 = vst [vmem:[%s8467_s27 + $0x70] sm:$0xff] %v7051_v48   ;;  %v6027_v45 = vadd.f32 %v6026_v32, %v5996_v43 }
 0x2f2   : > { %v5211_v58 = vpop.f32.mrf.mxu3  ;;  %v4467_v46 = vpop.f32.mrf.mxu2 }
 0x2f3   : > { %v5733_v40 = vpop.f32.mrf.mxu0  ;;  %v5278_v28 = vadd.f32 %v5211_v58, %v4532_v56  ;;  %v4533_v4 = vadd.f32 %v4467_v46, %v4154_v11 }
 0x2f5   : > { %v5800_v55 = vadd.f32 %v5733_v40, %v5278_v28 }
 0x2f7   : > { %v5959_v63 = vadd.f32 %v5958_v50, %v5800_v55  ;;  %v5997_v37 = vmul.f32 %v5800_v55, %v5800_v55 }
 0x2f9   : > { %v6028_v19 = vadd.f32 %v6027_v45, %v5997_v37 }
 0x2fa   : > { %v5213_v53 = vpop.f32.mrf.mxu3 }
 0x2fb   : > { %v5279_v42 = vadd.f32 %v5213_v53, %v4533_v4  ;;  %v5735_v7 = vpop.f32.mrf.mxu0 }
 0x2fd   : > { %v5801_v3 = vadd.f32 %v5735_v7, %v5279_v42 }
 0x2ff   : > { %v7056_v39 = vpack.c.bf16 %v5801_v3, %v5800_v55  ;;  %v5960_v15 = vadd.f32 %v5959_v63, %v5801_v3  ;;  %v5998_v25 = vmul.f32 %v5801_v3, %v5801_v3 }
 0x301   : > { %7087 = vst [vmem:[%s8467_s27 + $0x78] sm:$0xff] %v7056_v39   ;;  %v5961_v30 = vrot.slane %v5960_v15, 4  ;;  %v6029_v14 = vadd.f32 %v6028_v19, %v5998_v25 }
 0x303   : > { %v5962_v61 = vadd.f32 %v5961_v30, %v5960_v15  ;;  %v6030_v31 = vrot.slane %v6029_v14, 4 }
 0x305   : > { %v5963_v21 = vrot.slane %v5962_v61, 2  ;;  %v6031_v59 = vadd.f32 %v6030_v31, %v6029_v14 }
 0x307   : > { %v5964_v24 = vadd.f32 %v5963_v21, %v5962_v61  ;;  %v6032_v1 = vrot.slane %v6031_v59, 2 }
 0x309   : > { %v5965_v20 = vrot.slane %v5964_v24, 1  ;;  %v6033_v6 = vadd.f32 %v6032_v1, %v6031_v59 }
 0x30b   : > { %v6034_v41 = vrot.slane %v6033_v6, 1  ;;  %v5966_v35 = vadd.f32 %v5965_v20, %v5964_v24 }
 0x30d   : > { %v6035_v17 = vadd.f32 %v6034_v41, %v6033_v6 }
 0x30f   : > { %v6037_v2 = vsel %vm221_vm0, %v5966_v35, %v6035_v17 }
 0x310   : > { %6038 = vst [vmem:[%s211_s30] sm:$0x3] %v6037_v2 }
 0x311 PF: > { %s15_s15 = sadd.s32 1, %s7131_s15  }
 0x312   : > { %p12_p5 = scmp.ge.s32.totalorder %s15_s15, 4  }
 0x314   :  { %14 = sbr.rel (!%p12_p5) target bundleno = 1 (0x1), region = 85 }

</bundles_post_ra>
